<compile_context>
chip_gen: v7x
topology: tpu7x:2x2x1
jax: 0.10.0
libtpu: 0.0.40
codegen_flags: <defaults>
</compile_context>

<pallas_src>
import functools

import jax
import jax.numpy as jnp
import numpy as np
from jax.experimental import pallas as pl
from jax.experimental.pallas import tpu as pltpu


# ----------------------------------------------------------------------------- #
# Packed weight-slab layout (shared between wrapper and kernel)
# ----------------------------------------------------------------------------- #
def _slab_layout(n, H, Tm1):
    """Row offsets for the packed weight slab.  Columns = 5H (>= 128)."""
    C = max(5 * H, 128)
    off = {}
    r = 0

    def vec(name):
        nonlocal r
        off[name] = r
        r += 1

    def mat(name, rows):
        nonlocal r
        r = (r + 7) & ~7            # sublane-tile (8-row) alignment for matrices
        off[name] = r
        r += rows

    for nm in ("bE", "bD", "WihD", "wea_h", "wea_s", "ba1", "wa2", "bout", "scal"):
        vec(nm)
    mat("wea_x", Tm1)               # per-timestep input-attention weights (column)
    mat("WE_x", n)                  # encoder LSTM input weights   (n, 4H)
    mat("WE_h", H)                  # encoder LSTM recurrent       (H, 4H)
    mat("Wcomb", H)                 # Wfc[:H] @ WihD               (H, 4H)
    mat("Wout", 2 * H)              # [I_2H | Wreg | Wdom]         (2H, 2H+4)
    mat("Wbig", 2 * H)              # [[WhhD, Wa1_d], [0, Wa1_c]]  (2H, 5H)
    mat("Wa1x", H)                  # temporal-attention x-proj    (H, H)
    R = (r + 7) & ~7
    return off, R, C


# ----------------------------------------------------------------------------- #
# Pallas kernel
# ----------------------------------------------------------------------------- #
def _dann_dalstm_kernel(Xt_ref, yp_ref, w_ref, out_ref,
                        enc_scratch, xpart_scratch,
                        *, B, Tm1, n, H, off):
    f32 = jnp.float32
    H4 = 4 * H

    def vrow(name, width):
        r0 = off[name]
        return w_ref[r0:r0 + 1, 0:width]

    def mat(name, rows, width):
        r0 = off[name]
        return w_ref[r0:r0 + rows, 0:width]

    def gate_combine(gates, c_prev):
        # Full-width activations (one sigmoid + one tanh EUP push), lane slices
        # for the combine.  PyTorch gate order [i, f, g, o].
        sig = jax.nn.sigmoid(gates)
        th = jnp.tanh(gates)
        i = sig[:, 0:H]
        f = sig[:, H:2 * H]
        g = th[:, 2 * H:3 * H]
        o = sig[:, 3 * H:4 * H]
        c_new = f * c_prev + i * g
        return o * jnp.tanh(c_new), c_new

    # Scalar parameters packed in one slab row: [bea, ba2, wfc_y, bfc].
    scal = vrow("scal", 4)
    bea = scal[:, 0:1]
    ba2 = scal[:, 1:2]
    wfc_y = scal[:, 2:3]
    bfc = scal[:, 3:4]

    # ---------------- encoder: input attention + LSTM ---------------- #
    wea_h = vrow("wea_h", H)                       # (1, H)
    wea_s = vrow("wea_s", H)                       # (1, H)
    WE_x = mat("WE_x", n, H4)                      # (n, 4H)
    WE_h = mat("WE_h", H, H4)                      # (H, 4H)
    bE = vrow("bE", H4)                            # (1, 4H)

    # Time-profile part of the input-attention score (step independent):
    #   score_x[b, k] = sum_t X[t, b, k] * w_x[t]     (bea folded in)
    rx = off["wea_x"]
    score_x = jnp.zeros((B, n), f32) + bea
    for t in range(Tm1):
        score_x = score_x + Xt_ref[t] * w_ref[rx + t:rx + t + 1, 0:1]

    h = jnp.zeros((B, H), f32)
    s = jnp.zeros((B, H), f32)
    for t in range(Tm1):
        # Recurrent projection issued at step start (overlaps the attention path).
        rec = jnp.dot(h, WE_h, preferred_element_type=f32)            # (B, 4H)
        # Input attention score: VPU multiply + lane reduce (no concat, no N=1 dot).
        score = jnp.sum(h * wea_h + s * wea_s, axis=1, keepdims=True) + score_x
        m = jnp.max(score, axis=1, keepdims=True)
        e = jnp.exp(score - m)
        attn = e / jnp.sum(e, axis=1, keepdims=True)                   # (B, n)
        x_tilde = attn * Xt_ref[t]                                     # (B, n)
        gates = jnp.dot(x_tilde, WE_x, preferred_element_type=f32) + rec + bE
        h, s = gate_combine(gates, s)
        enc_scratch[t * B:(t + 1) * B, :] = h                          # stacked store

    # ---------------- decoder precompute ---------------- #
    # Step-invariant x-part of the temporal-attention pre-activation
    # (ba1 folded in), kept in VMEM scratch and re-read per step.
    xp2 = (jnp.dot(enc_scratch[...], mat("Wa1x", H, H),
                   preferred_element_type=f32) + vrow("ba1", H))       # (Tm1*B, H)
    xpart_scratch[...] = xp2

    # y-driven part of the decoder LSTM input, all steps at once.
    ytl = yp_ref[...] * wfc_y + bfc                                    # (B, Tm1)

    # ---------------- decoder: temporal attention + LSTM ---------------- #
    d = jnp.zeros((B, H), f32)
    c = jnp.zeros((B, H), f32)
    context = jnp.zeros((B, H), f32)
    for t in range(Tm1):
        # One fused matmul gives both the recurrent gate term (cols 0:4H) and
        # the attention pre-projection dc (cols 4H:5H); both slices tile-aligned.
        dcrec = jnp.dot(jnp.concatenate([d, c], axis=1),
                        mat("Wbig", 2 * H, 5 * H),
                        preferred_element_type=f32)                    # (B, 5H)
        rec = dcrec[:, 0:H4]                                           # d @ WhhD
        dc = dcrec[:, H4:H4 + H]                                       # d@Wa1_d + c@Wa1_c

        enc3 = enc_scratch[...].reshape(Tm1, B, H)
        xpart3 = xpart_scratch[...].reshape(Tm1, B, H)
        hid = jnp.tanh(xpart3 + dc[None, :, :])                        # (Tm1, B, H)
        # Attention scores via VPU multiply + minor-axis reduce (no N=1 dot).
        scores = jnp.sum(hid * vrow("wa2", H), axis=-1, keepdims=True) + ba2
        # Softmax over the time axis (leading dim).
        m = jnp.max(scores, axis=0, keepdims=True)
        e = jnp.exp(scores - m)
        beta = e / jnp.sum(e, axis=0, keepdims=True)                   # (Tm1, B, 1)
        context = jnp.sum(beta * enc3, axis=0)                         # (B, H)

        # Decoder LSTM gates; the y_tilde rank-1 path is folded into Wcomb and a
        # broadcast multiply of the precomputed y term.
        gates = (jnp.dot(context, mat("Wcomb", H, H4), preferred_element_type=f32)
                 + rec
                 + ytl[:, t:t + 1] * vrow("WihD", H4)
                 + vrow("bD", H4))                                     # (B, 4H)
        d, c = gate_combine(gates, c)

    feature = jnp.concatenate([d, context], axis=1)                    # (B, 2H)

    # Fused lane-dense output: [feature | val_pred | domain_pred | 0...]
    # Wout = [I_2H | Wreg | Wdom] so the feature passes through exactly.
    out_ref[...] = (jnp.dot(feature, mat("Wout", 2 * H, 128),
                            preferred_element_type=f32) + vrow("bout", 128))


# ----------------------------------------------------------------------------- #
# Wrapper
# ----------------------------------------------------------------------------- #
def dann_dalstm_multi_src_forward(X, y_prev, alpha, params):
    """Returns (feature, val_pred, domain_pred) like the PyTorch module."""
    del alpha  # forward of the gradient-reversal layer is identity
    B, Tm1, n = X.shape
    H = params["WhhE"].shape[0]
    assert 2 * H + 4 <= 128, "fused output head assumes 2H+4 <= 128 lanes"

    Xt = jnp.transpose(X, (1, 0, 2)).astype(jnp.float32)   # (Tm1, B, n) time-major
    yp = y_prev.astype(jnp.float32)

    # ---- build the packed weight slab (trace-time) ---- #
    off, R, C = _slab_layout(n, H, Tm1)
    f32 = jnp.float32

    def put(W, name, arr):
        arr = jnp.asarray(arr, f32)
        r0 = off[name]
        return W.at[r0:r0 + arr.shape[0], 0:arr.shape[1]].set(arr)

    p = params
    Wcomb = p["Wfc"][:H, :] @ p["WihD"]                                  # (H, 4H)
    Wout = jnp.concatenate([jnp.eye(2 * H, dtype=f32), p["Wreg"], p["Wdom"]], axis=1)
    bout = jnp.concatenate([jnp.zeros((1, 2 * H), f32), p["breg"], p["bdom"]], axis=1)
    Wbig = jnp.concatenate(
        [jnp.concatenate([p["WhhD"], p["Wa1_d"]], axis=1),
         jnp.concatenate([jnp.zeros((H, 4 * H), f32), p["Wa1_c"]], axis=1)], axis=0)
    scal = jnp.concatenate([p["bea"], p["ba2"], p["Wfc"][H:H + 1, 0:1], p["bfc"]],
                           axis=1)                                       # (1, 4)

    W = jnp.zeros((R, C), f32)
    W = put(W, "bE", p["bE"])
    W = put(W, "bD", p["bD"])
    W = put(W, "WihD", p["WihD"])
    W = put(W, "wea_h", p["Wea_h"].T)
    W = put(W, "wea_s", p["Wea_s"].T)
    W = put(W, "ba1", p["ba1"])
    W = put(W, "wa2", p["Wa2"].T)
    W = put(W, "bout", bout)
    W = put(W, "scal", scal)
    W = put(W, "wea_x", p["Wea_x"].T)       # (Tm1, 1) column
    W = put(W, "WE_x", p["WihE"])
    W = put(W, "WE_h", p["WhhE"])
    W = put(W, "Wcomb", Wcomb)
    W = put(W, "Wout", Wout)
    W = put(W, "Wbig", Wbig)
    W = put(W, "Wa1x", p["Wa1_x"])

    kernel = functools.partial(_dann_dalstm_kernel, B=B, Tm1=Tm1, n=n, H=H, off=off)
    vmem_spec = pl.BlockSpec(memory_space=pltpu.MemorySpace.VMEM)

    out = pl.pallas_call(
        kernel,
        out_shape=jax.ShapeDtypeStruct((B, 128), jnp.float32),
        in_specs=[vmem_spec, vmem_spec, vmem_spec],
        out_specs=vmem_spec,
        scratch_shapes=[pltpu.VMEM((Tm1 * B, H), jnp.float32),   # encoder hiddens
                        pltpu.VMEM((Tm1 * B, H), jnp.float32)],  # x-part of attention
    )(Xt, yp, W)

    feature = out[:, 0:2 * H]
    val_pred = out[:, 2 * H:2 * H + 1]
    domain_pred = out[:, 2 * H + 1:2 * H + 4]
    return feature, val_pred, domain_pred


# ----------------------------------------------------------------------------- #
# Pure-JAX reference (same math) for a correctness check
# ----------------------------------------------------------------------------- #
def _forward_ref(X, y_prev, alpha, p):
    del alpha
    B, Tm1, n = X.shape
    H = p["WhhE"].shape[0]

    def lstm(x, h, c, Wih, Whh, b):
        g = x @ Wih + h @ Whh + b
        i = jax.nn.sigmoid(g[:, :H])
        f = jax.nn.sigmoid(g[:, H:2 * H])
        gg = jnp.tanh(g[:, 2 * H:3 * H])
        o = jax.nn.sigmoid(g[:, 3 * H:])
        c = f * c + i * gg
        return o * jnp.tanh(c), c

    h = jnp.zeros((B, H)); s = jnp.zeros((B, H))
    score_x = jnp.einsum("btk,t->bk", X, p["Wea_x"][0])
    enc = []
    for t in range(Tm1):
        score = h @ p["Wea_h"] + s @ p["Wea_s"] + score_x + p["bea"]
        a = jax.nn.softmax(score, axis=1)
        x_tilde = a * X[:, t, :]
        h, s = lstm(x_tilde, h, s, p["WihE"], p["WhhE"], p["bE"])
        enc.append(h)
    X_enc = jnp.stack(enc, axis=1)                       # (B, Tm1, H)

    d = jnp.zeros((B, H)); c = jnp.zeros((B, H)); ctx = jnp.zeros((B, H))
    for t in range(Tm1):
        dc = d @ p["Wa1_d"] + c @ p["Wa1_c"] + p["ba1"]
        hid = jnp.tanh(jnp.einsum("bth,hk->btk", X_enc, p["Wa1_x"]) + dc[:, None, :])
        sc = jnp.einsum("btk,ko->bt", hid, p["Wa2"]) + p["ba2"]
        beta = jax.nn.softmax(sc, axis=1)
        ctx = jnp.einsum("bt,bth->bh", beta, X_enc)
        y_t = jnp.concatenate([ctx, y_prev[:, t:t + 1]], axis=1) @ p["Wfc"] + p["bfc"]
        d, c = lstm(y_t, d, c, p["WihD"], p["WhhD"], p["bD"])

    feat = jnp.concatenate([d, ctx], axis=1)
    return feat, feat @ p["Wreg"] + p["breg"], feat @ p["Wdom"] + p["bdom"]


# ----------------------------------------------------------------------------- #
# Deterministic synthetic parameters
# ----------------------------------------------------------------------------- #
def init_params(key, n, T, H, scale=0.1):
    Tm1 = T - 1
    shapes = {
        "WihE": (n, 4 * H), "WhhE": (H, 4 * H), "bE": (1, 4 * H),
        "Wea_h": (H, 1), "Wea_s": (H, 1), "Wea_x": (1, Tm1), "bea": (1, 1),
        "Wa1_d": (H, H), "Wa1_c": (H, H), "Wa1_x": (H, H), "ba1": (1, H),
        "Wa2": (H, 1), "ba2": (1, 1),
        "WihD": (1, 4 * H), "WhhD": (H, 4 * H), "bD": (1, 4 * H),
        "Wfc": (H + 1, 1), "bfc": (1, 1),
        "Wdom": (2 * H, 3), "bdom": (1, 3),
        "Wreg": (2 * H, 1), "breg": (1, 1),
    }
    keys = jax.random.split(key, len(shapes))
    return {name: scale * jax.random.normal(k, shp, jnp.float32)
            for (name, shp), k in zip(shapes.items(), keys)}


# ----------------------------------------------------------------------------- #
if __name__ == "__main__":
    B, T, n, H = 8, 10, 4, 32          # batch, window length, driving series, hidden
    Tm1 = T - 1

    key = jax.random.PRNGKey(0)
    k_x, k_y, k_p = jax.random.split(key, 3)
    X = jax.random.normal(k_x, (B, Tm1, n), jnp.float32)
    y_prev = jax.random.normal(k_y, (B, Tm1), jnp.float32)
    alpha = 1.0                         # grad-reversal coefficient (unused in forward)
    params = init_params(k_p, n, T, H)

    feat, val_pred, dom_pred = dann_dalstm_multi_src_forward(X, y_prev, alpha, params)
    jax.block_until_ready((feat, val_pred, dom_pred))

    feat_r, val_r, dom_r = _forward_ref(X, y_prev, alpha, params)
    assert feat.shape == (B, 2 * H) and val_pred.shape == (B, 1) and dom_pred.shape == (B, 3)
    np.testing.assert_allclose(np.asarray(feat), np.asarray(feat_r), rtol=5e-3, atol=5e-3)
    np.testing.assert_allclose(np.asarray(val_pred), np.asarray(val_r), rtol=5e-3, atol=5e-3)
    np.testing.assert_allclose(np.asarray(dom_pred), np.asarray(dom_r), rtol=5e-3, atol=5e-3)

    print("KERNEL_OK")
</pallas_src>

<mosaic_0001>
module attributes {stable_mosaic.version = 11 : i64} {
  func.func @_dann_dalstm_kernel(%arg0: memref<9x8x4xf32, #tpu.memory_space<vmem>>, %arg1: memref<8x9xf32, #tpu.memory_space<vmem>>, %arg2: memref<264x160xf32, #tpu.memory_space<vmem>>, %arg3: memref<8x128xf32, #tpu.memory_space<vmem>>, %arg4: memref<72x32xf32, #tpu.memory_space<vmem>>, %arg5: memref<72x32xf32, #tpu.memory_space<vmem>>) attributes {dimension_semantics = [], scalar_prefetch = 0 : i64, scratch_operands = 2 : i64, tpu.core_type = #tpu.core_type<tc>} {
    %c8 = arith.constant 8 : index
    %c0 = arith.constant 0 : index
    %0 = vector.load %arg2[%c8, %c0] : memref<264x160xf32, #tpu.memory_space<vmem>>, vector<1x4xf32>
    %1 = vector.extract_strided_slice %0 {offsets = [0, 0], sizes = [1, 1], strides = [1, 1]} : vector<1x4xf32> to vector<1x1xf32>
    %2 = vector.extract_strided_slice %0 {offsets = [0, 1], sizes = [1, 1], strides = [1, 1]} : vector<1x4xf32> to vector<1x1xf32>
    %3 = vector.extract_strided_slice %0 {offsets = [0, 2], sizes = [1, 1], strides = [1, 1]} : vector<1x4xf32> to vector<1x1xf32>
    %4 = vector.extract_strided_slice %0 {offsets = [0, 3], sizes = [1, 1], strides = [1, 1]} : vector<1x4xf32> to vector<1x1xf32>
    %c3 = arith.constant 3 : index
    %c0_0 = arith.constant 0 : index
    %5 = vector.load %arg2[%c3, %c0_0] : memref<264x160xf32, #tpu.memory_space<vmem>>, vector<1x32xf32>
    %c4 = arith.constant 4 : index
    %c0_1 = arith.constant 0 : index
    %6 = vector.load %arg2[%c4, %c0_1] : memref<264x160xf32, #tpu.memory_space<vmem>>, vector<1x32xf32>
    %c32 = arith.constant 32 : index
    %c0_2 = arith.constant 0 : index
    %7 = vector.load %arg2[%c32, %c0_2] : memref<264x160xf32, #tpu.memory_space<vmem>>, vector<4x128xf32>
    %c40 = arith.constant 40 : index
    %c0_3 = arith.constant 0 : index
    %8 = vector.load %arg2[%c40, %c0_3] : memref<264x160xf32, #tpu.memory_space<vmem>>, vector<32x128xf32>
    %c0_4 = arith.constant 0 : index
    %c0_5 = arith.constant 0 : index
    %9 = vector.load %arg2[%c0_4, %c0_5] : memref<264x160xf32, #tpu.memory_space<vmem>>, vector<1x128xf32>
    %cst = arith.constant 0.000000e+00 : f32
    %10 = vector.broadcast %cst : f32 to vector<8x4xf32>
    %11 = vector.broadcast %1 : vector<1x1xf32> to vector<8x4xf32>
    %12 = arith.addf %10, %11 : vector<8x4xf32>
    %c0_6 = arith.constant 0 : index
    %c0_7 = arith.constant 0 : index
    %c0_8 = arith.constant 0 : index
    %13 = vector.load %arg0[%c0_6, %c0_7, %c0_8] : memref<9x8x4xf32, #tpu.memory_space<vmem>>, vector<1x8x4xf32>
    %14 = vector.shape_cast %13 : vector<1x8x4xf32> to vector<8x4xf32>
    %c16 = arith.constant 16 : index
    %c0_9 = arith.constant 0 : index
    %15 = vector.load %arg2[%c16, %c0_9] : memref<264x160xf32, #tpu.memory_space<vmem>>, vector<1x1xf32>
    %16 = vector.broadcast %15 : vector<1x1xf32> to vector<8x4xf32>
    %17 = arith.mulf %14, %16 : vector<8x4xf32>
    %18 = arith.addf %12, %17 : vector<8x4xf32>
    %c1 = arith.constant 1 : index
    %c0_10 = arith.constant 0 : index
    %c0_11 = arith.constant 0 : index
    %19 = vector.load %arg0[%c1, %c0_10, %c0_11] : memref<9x8x4xf32, #tpu.memory_space<vmem>>, vector<1x8x4xf32>
    %20 = vector.shape_cast %19 : vector<1x8x4xf32> to vector<8x4xf32>
    %c17 = arith.constant 17 : index
    %c0_12 = arith.constant 0 : index
    %21 = vector.load %arg2[%c17, %c0_12] : memref<264x160xf32, #tpu.memory_space<vmem>>, vector<1x1xf32>
    %22 = vector.broadcast %21 : vector<1x1xf32> to vector<8x4xf32>
    %23 = arith.mulf %20, %22 : vector<8x4xf32>
    %24 = arith.addf %18, %23 : vector<8x4xf32>
    %c2 = arith.constant 2 : index
    %c0_13 = arith.constant 0 : index
    %c0_14 = arith.constant 0 : index
    %25 = vector.load %arg0[%c2, %c0_13, %c0_14] : memref<9x8x4xf32, #tpu.memory_space<vmem>>, vector<1x8x4xf32>
    %26 = vector.shape_cast %25 : vector<1x8x4xf32> to vector<8x4xf32>
    %c18 = arith.constant 18 : index
    %c0_15 = arith.constant 0 : index
    %27 = vector.load %arg2[%c18, %c0_15] : memref<264x160xf32, #tpu.memory_space<vmem>>, vector<1x1xf32>
    %28 = vector.broadcast %27 : vector<1x1xf32> to vector<8x4xf32>
    %29 = arith.mulf %26, %28 : vector<8x4xf32>
    %30 = arith.addf %24, %29 : vector<8x4xf32>
    %c3_16 = arith.constant 3 : index
    %c0_17 = arith.constant 0 : index
    %c0_18 = arith.constant 0 : index
    %31 = vector.load %arg0[%c3_16, %c0_17, %c0_18] : memref<9x8x4xf32, #tpu.memory_space<vmem>>, vector<1x8x4xf32>
    %32 = vector.shape_cast %31 : vector<1x8x4xf32> to vector<8x4xf32>
    %c19 = arith.constant 19 : index
    %c0_19 = arith.constant 0 : index
    %33 = vector.load %arg2[%c19, %c0_19] : memref<264x160xf32, #tpu.memory_space<vmem>>, vector<1x1xf32>
    %34 = vector.broadcast %33 : vector<1x1xf32> to vector<8x4xf32>
    %35 = arith.mulf %32, %34 : vector<8x4xf32>
    %36 = arith.addf %30, %35 : vector<8x4xf32>
    %c4_20 = arith.constant 4 : index
    %c0_21 = arith.constant 0 : index
    %c0_22 = arith.constant 0 : index
    %37 = vector.load %arg0[%c4_20, %c0_21, %c0_22] : memref<9x8x4xf32, #tpu.memory_space<vmem>>, vector<1x8x4xf32>
    %38 = vector.shape_cast %37 : vector<1x8x4xf32> to vector<8x4xf32>
    %c20 = arith.constant 20 : index
    %c0_23 = arith.constant 0 : index
    %39 = vector.load %arg2[%c20, %c0_23] : memref<264x160xf32, #tpu.memory_space<vmem>>, vector<1x1xf32>
    %40 = vector.broadcast %39 : vector<1x1xf32> to vector<8x4xf32>
    %41 = arith.mulf %38, %40 : vector<8x4xf32>
    %42 = arith.addf %36, %41 : vector<8x4xf32>
    %c5 = arith.constant 5 : index
    %c0_24 = arith.constant 0 : index
    %c0_25 = arith.constant 0 : index
    %43 = vector.load %arg0[%c5, %c0_24, %c0_25] : memref<9x8x4xf32, #tpu.memory_space<vmem>>, vector<1x8x4xf32>
    %44 = vector.shape_cast %43 : vector<1x8x4xf32> to vector<8x4xf32>
    %c21 = arith.constant 21 : index
    %c0_26 = arith.constant 0 : index
    %45 = vector.load %arg2[%c21, %c0_26] : memref<264x160xf32, #tpu.memory_space<vmem>>, vector<1x1xf32>
    %46 = vector.broadcast %45 : vector<1x1xf32> to vector<8x4xf32>
    %47 = arith.mulf %44, %46 : vector<8x4xf32>
    %48 = arith.addf %42, %47 : vector<8x4xf32>
    %c6 = arith.constant 6 : index
    %c0_27 = arith.constant 0 : index
    %c0_28 = arith.constant 0 : index
    %49 = vector.load %arg0[%c6, %c0_27, %c0_28] : memref<9x8x4xf32, #tpu.memory_space<vmem>>, vector<1x8x4xf32>
    %50 = vector.shape_cast %49 : vector<1x8x4xf32> to vector<8x4xf32>
    %c22 = arith.constant 22 : index
    %c0_29 = arith.constant 0 : index
    %51 = vector.load %arg2[%c22, %c0_29] : memref<264x160xf32, #tpu.memory_space<vmem>>, vector<1x1xf32>
    %52 = vector.broadcast %51 : vector<1x1xf32> to vector<8x4xf32>
    %53 = arith.mulf %50, %52 : vector<8x4xf32>
    %54 = arith.addf %48, %53 : vector<8x4xf32>
    %c7 = arith.constant 7 : index
    %c0_30 = arith.constant 0 : index
    %c0_31 = arith.constant 0 : index
    %55 = vector.load %arg0[%c7, %c0_30, %c0_31] : memref<9x8x4xf32, #tpu.memory_space<vmem>>, vector<1x8x4xf32>
    %56 = vector.shape_cast %55 : vector<1x8x4xf32> to vector<8x4xf32>
    %c23 = arith.constant 23 : index
    %c0_32 = arith.constant 0 : index
    %57 = vector.load %arg2[%c23, %c0_32] : memref<264x160xf32, #tpu.memory_space<vmem>>, vector<1x1xf32>
    %58 = vector.broadcast %57 : vector<1x1xf32> to vector<8x4xf32>
    %59 = arith.mulf %56, %58 : vector<8x4xf32>
    %60 = arith.addf %54, %59 : vector<8x4xf32>
    %c8_33 = arith.constant 8 : index
    %c0_34 = arith.constant 0 : index
    %c0_35 = arith.constant 0 : index
    %61 = vector.load %arg0[%c8_33, %c0_34, %c0_35] : memref<9x8x4xf32, #tpu.memory_space<vmem>>, vector<1x8x4xf32>
    %62 = vector.shape_cast %61 : vector<1x8x4xf32> to vector<8x4xf32>
    %c24 = arith.constant 24 : index
    %c0_36 = arith.constant 0 : index
    %63 = vector.load %arg2[%c24, %c0_36] : memref<264x160xf32, #tpu.memory_space<vmem>>, vector<1x1xf32>
    %64 = vector.broadcast %63 : vector<1x1xf32> to vector<8x4xf32>
    %65 = arith.mulf %62, %64 : vector<8x4xf32>
    %66 = arith.addf %60, %65 : vector<8x4xf32>
    %cst_37 = arith.constant 0.000000e+00 : f32
    %67 = vector.broadcast %cst_37 : f32 to vector<8x32xf32>
    %cst_38 = arith.constant 0.000000e+00 : f32
    %68 = vector.broadcast %cst_38 : f32 to vector<8x32xf32>
    %cst_39 = arith.constant dense<0.000000e+00> : vector<8x128xf32>
    %69 = tpu.matmul %67, %8, %cst_39 {dimension_numbers = #tpu.dot_dimension_numbers<[1], [0], [0], [1], [0, 0, 1, 1], [], []>} : vector<8x32xf32>, vector<32x128xf32>, vector<8x128xf32> -> vector<8x128xf32>
    %70 = vector.broadcast %5 : vector<1x32xf32> to vector<8x32xf32>
    %71 = arith.mulf %67, %70 : vector<8x32xf32>
    %72 = vector.broadcast %6 : vector<1x32xf32> to vector<8x32xf32>
    %73 = arith.mulf %68, %72 : vector<8x32xf32>
    %74 = arith.addf %71, %73 : vector<8x32xf32>
    %cst_40 = arith.constant dense<0.000000e+00> : vector<8xf32>
    %75 = vector.multi_reduction <add>, %74, %cst_40 [1] : vector<8x32xf32> to vector<8xf32>
    %76 = vector.shape_cast %75 : vector<8xf32> to vector<8x1xf32>
    %77 = vector.broadcast %76 : vector<8x1xf32> to vector<8x4xf32>
    %78 = arith.addf %77, %66 : vector<8x4xf32>
    %cst_41 = arith.constant dense<0xFF800000> : vector<8xf32>
    %79 = vector.multi_reduction <maximumf>, %78, %cst_41 [1] : vector<8x4xf32> to vector<8xf32>
    %80 = vector.shape_cast %79 : vector<8xf32> to vector<8x1xf32>
    %81 = vector.broadcast %80 : vector<8x1xf32> to vector<8x4xf32>
    %82 = arith.subf %78, %81 : vector<8x4xf32>
    %83 = math.exp %82 : vector<8x4xf32>
    %cst_42 = arith.constant dense<0.000000e+00> : vector<8xf32>
    %84 = vector.multi_reduction <add>, %83, %cst_42 [1] : vector<8x4xf32> to vector<8xf32>
    %85 = vector.shape_cast %84 : vector<8xf32> to vector<8x1xf32>
    %86 = vector.broadcast %85 : vector<8x1xf32> to vector<8x4xf32>
    %87 = arith.divf %83, %86 : vector<8x4xf32>
    %c0_43 = arith.constant 0 : index
    %c0_44 = arith.constant 0 : index
    %c0_45 = arith.constant 0 : index
    %88 = vector.load %arg0[%c0_43, %c0_44, %c0_45] : memref<9x8x4xf32, #tpu.memory_space<vmem>>, vector<1x8x4xf32>
    %89 = vector.shape_cast %88 : vector<1x8x4xf32> to vector<8x4xf32>
    %90 = arith.mulf %87, %89 : vector<8x4xf32>
    %cst_46 = arith.constant dense<0.000000e+00> : vector<8x128xf32>
    %91 = tpu.matmul %90, %7, %cst_46 {dimension_numbers = #tpu.dot_dimension_numbers<[1], [0], [0], [1], [0, 0, 1, 1], [], []>} : vector<8x4xf32>, vector<4x128xf32>, vector<8x128xf32> -> vector<8x128xf32>
    %92 = arith.addf %91, %69 : vector<8x128xf32>
    %93 = vector.broadcast %9 : vector<1x128xf32> to vector<8x128xf32>
    %94 = arith.addf %92, %93 : vector<8x128xf32>
    %95 = arith.negf %94 : vector<8x128xf32>
    %96 = math.exp %95 : vector<8x128xf32>
    %cst_47 = arith.constant 1.000000e+00 : f32
    %97 = vector.broadcast %cst_47 : f32 to vector<8x128xf32>
    %98 = arith.addf %97, %96 : vector<8x128xf32>
    %99 = arith.divf %97, %98 : vector<8x128xf32>
    %100 = math.tanh %94 : vector<8x128xf32>
    %101 = vector.extract_strided_slice %99 {offsets = [0, 0], sizes = [8, 32], strides = [1, 1]} : vector<8x128xf32> to vector<8x32xf32>
    %102 = vector.extract_strided_slice %99 {offsets = [0, 32], sizes = [8, 32], strides = [1, 1]} : vector<8x128xf32> to vector<8x32xf32>
    %103 = vector.extract_strided_slice %100 {offsets = [0, 64], sizes = [8, 32], strides = [1, 1]} : vector<8x128xf32> to vector<8x32xf32>
    %104 = vector.extract_strided_slice %99 {offsets = [0, 96], sizes = [8, 32], strides = [1, 1]} : vector<8x128xf32> to vector<8x32xf32>
    %105 = arith.mulf %102, %68 : vector<8x32xf32>
    %106 = arith.mulf %101, %103 : vector<8x32xf32>
    %107 = arith.addf %105, %106 : vector<8x32xf32>
    %108 = math.tanh %107 : vector<8x32xf32>
    %109 = arith.mulf %104, %108 : vector<8x32xf32>
    %c0_48 = arith.constant 0 : index
    %c0_49 = arith.constant 0 : index
    %110 = vector.load %arg4[%c0_48, %c0_49] : memref<72x32xf32, #tpu.memory_space<vmem>>, vector<8x32xf32>
    tpu.vector_store %arg4[%c0_48, %c0_49], %109 {strides = array<i32>} : memref<72x32xf32, #tpu.memory_space<vmem>>, vector<8x32xf32>,
    %cst_50 = arith.constant dense<0.000000e+00> : vector<8x128xf32>
    %111 = tpu.matmul %109, %8, %cst_50 {dimension_numbers = #tpu.dot_dimension_numbers<[1], [0], [0], [1], [0, 0, 1, 1], [], []>} : vector<8x32xf32>, vector<32x128xf32>, vector<8x128xf32> -> vector<8x128xf32>
    %112 = vector.broadcast %5 : vector<1x32xf32> to vector<8x32xf32>
    %113 = arith.mulf %109, %112 : vector<8x32xf32>
    %114 = vector.broadcast %6 : vector<1x32xf32> to vector<8x32xf32>
    %115 = arith.mulf %107, %114 : vector<8x32xf32>
    %116 = arith.addf %113, %115 : vector<8x32xf32>
    %cst_51 = arith.constant dense<0.000000e+00> : vector<8xf32>
    %117 = vector.multi_reduction <add>, %116, %cst_51 [1] : vector<8x32xf32> to vector<8xf32>
    %118 = vector.shape_cast %117 : vector<8xf32> to vector<8x1xf32>
    %119 = vector.broadcast %118 : vector<8x1xf32> to vector<8x4xf32>
    %120 = arith.addf %119, %66 : vector<8x4xf32>
    %cst_52 = arith.constant dense<0xFF800000> : vector<8xf32>
    %121 = vector.multi_reduction <maximumf>, %120, %cst_52 [1] : vector<8x4xf32> to vector<8xf32>
    %122 = vector.shape_cast %121 : vector<8xf32> to vector<8x1xf32>
    %123 = vector.broadcast %122 : vector<8x1xf32> to vector<8x4xf32>
    %124 = arith.subf %120, %123 : vector<8x4xf32>
    %125 = math.exp %124 : vector<8x4xf32>
    %cst_53 = arith.constant dense<0.000000e+00> : vector<8xf32>
    %126 = vector.multi_reduction <add>, %125, %cst_53 [1] : vector<8x4xf32> to vector<8xf32>
    %127 = vector.shape_cast %126 : vector<8xf32> to vector<8x1xf32>
    %128 = vector.broadcast %127 : vector<8x1xf32> to vector<8x4xf32>
    %129 = arith.divf %125, %128 : vector<8x4xf32>
    %c1_54 = arith.constant 1 : index
    %c0_55 = arith.constant 0 : index
    %c0_56 = arith.constant 0 : index
    %130 = vector.load %arg0[%c1_54, %c0_55, %c0_56] : memref<9x8x4xf32, #tpu.memory_space<vmem>>, vector<1x8x4xf32>
    %131 = vector.shape_cast %130 : vector<1x8x4xf32> to vector<8x4xf32>
    %132 = arith.mulf %129, %131 : vector<8x4xf32>
    %cst_57 = arith.constant dense<0.000000e+00> : vector<8x128xf32>
    %133 = tpu.matmul %132, %7, %cst_57 {dimension_numbers = #tpu.dot_dimension_numbers<[1], [0], [0], [1], [0, 0, 1, 1], [], []>} : vector<8x4xf32>, vector<4x128xf32>, vector<8x128xf32> -> vector<8x128xf32>
    %134 = arith.addf %133, %111 : vector<8x128xf32>
    %135 = vector.broadcast %9 : vector<1x128xf32> to vector<8x128xf32>
    %136 = arith.addf %134, %135 : vector<8x128xf32>
    %137 = arith.negf %136 : vector<8x128xf32>
    %138 = math.exp %137 : vector<8x128xf32>
    %cst_58 = arith.constant 1.000000e+00 : f32
    %139 = vector.broadcast %cst_58 : f32 to vector<8x128xf32>
    %140 = arith.addf %139, %138 : vector<8x128xf32>
    %141 = arith.divf %139, %140 : vector<8x128xf32>
    %142 = math.tanh %136 : vector<8x128xf32>
    %143 = vector.extract_strided_slice %141 {offsets = [0, 0], sizes = [8, 32], strides = [1, 1]} : vector<8x128xf32> to vector<8x32xf32>
    %144 = vector.extract_strided_slice %141 {offsets = [0, 32], sizes = [8, 32], strides = [1, 1]} : vector<8x128xf32> to vector<8x32xf32>
    %145 = vector.extract_strided_slice %142 {offsets = [0, 64], sizes = [8, 32], strides = [1, 1]} : vector<8x128xf32> to vector<8x32xf32>
    %146 = vector.extract_strided_slice %141 {offsets = [0, 96], sizes = [8, 32], strides = [1, 1]} : vector<8x128xf32> to vector<8x32xf32>
    %147 = arith.mulf %144, %107 : vector<8x32xf32>
    %148 = arith.mulf %143, %145 : vector<8x32xf32>
    %149 = arith.addf %147, %148 : vector<8x32xf32>
    %150 = math.tanh %149 : vector<8x32xf32>
    %151 = arith.mulf %146, %150 : vector<8x32xf32>
    %c8_59 = arith.constant 8 : index
    %c0_60 = arith.constant 0 : index
    %152 = vector.load %arg4[%c8_59, %c0_60] : memref<72x32xf32, #tpu.memory_space<vmem>>, vector<8x32xf32>
    tpu.vector_store %arg4[%c8_59, %c0_60], %151 {strides = array<i32>} : memref<72x32xf32, #tpu.memory_space<vmem>>, vector<8x32xf32>,
    %cst_61 = arith.constant dense<0.000000e+00> : vector<8x128xf32>
    %153 = tpu.matmul %151, %8, %cst_61 {dimension_numbers = #tpu.dot_dimension_numbers<[1], [0], [0], [1], [0, 0, 1, 1], [], []>} : vector<8x32xf32>, vector<32x128xf32>, vector<8x128xf32> -> vector<8x128xf32>
    %154 = vector.broadcast %5 : vector<1x32xf32> to vector<8x32xf32>
    %155 = arith.mulf %151, %154 : vector<8x32xf32>
    %156 = vector.broadcast %6 : vector<1x32xf32> to vector<8x32xf32>
    %157 = arith.mulf %149, %156 : vector<8x32xf32>
    %158 = arith.addf %155, %157 : vector<8x32xf32>
    %cst_62 = arith.constant dense<0.000000e+00> : vector<8xf32>
    %159 = vector.multi_reduction <add>, %158, %cst_62 [1] : vector<8x32xf32> to vector<8xf32>
    %160 = vector.shape_cast %159 : vector<8xf32> to vector<8x1xf32>
    %161 = vector.broadcast %160 : vector<8x1xf32> to vector<8x4xf32>
    %162 = arith.addf %161, %66 : vector<8x4xf32>
    %cst_63 = arith.constant dense<0xFF800000> : vector<8xf32>
    %163 = vector.multi_reduction <maximumf>, %162, %cst_63 [1] : vector<8x4xf32> to vector<8xf32>
    %164 = vector.shape_cast %163 : vector<8xf32> to vector<8x1xf32>
    %165 = vector.broadcast %164 : vector<8x1xf32> to vector<8x4xf32>
    %166 = arith.subf %162, %165 : vector<8x4xf32>
    %167 = math.exp %166 : vector<8x4xf32>
    %cst_64 = arith.constant dense<0.000000e+00> : vector<8xf32>
    %168 = vector.multi_reduction <add>, %167, %cst_64 [1] : vector<8x4xf32> to vector<8xf32>
    %169 = vector.shape_cast %168 : vector<8xf32> to vector<8x1xf32>
    %170 = vector.broadcast %169 : vector<8x1xf32> to vector<8x4xf32>
    %171 = arith.divf %167, %170 : vector<8x4xf32>
    %c2_65 = arith.constant 2 : index
    %c0_66 = arith.constant 0 : index
    %c0_67 = arith.constant 0 : index
    %172 = vector.load %arg0[%c2_65, %c0_66, %c0_67] : memref<9x8x4xf32, #tpu.memory_space<vmem>>, vector<1x8x4xf32>
    %173 = vector.shape_cast %172 : vector<1x8x4xf32> to vector<8x4xf32>
    %174 = arith.mulf %171, %173 : vector<8x4xf32>
    %cst_68 = arith.constant dense<0.000000e+00> : vector<8x128xf32>
    %175 = tpu.matmul %174, %7, %cst_68 {dimension_numbers = #tpu.dot_dimension_numbers<[1], [0], [0], [1], [0, 0, 1, 1], [], []>} : vector<8x4xf32>, vector<4x128xf32>, vector<8x128xf32> -> vector<8x128xf32>
    %176 = arith.addf %175, %153 : vector<8x128xf32>
    %177 = vector.broadcast %9 : vector<1x128xf32> to vector<8x128xf32>
    %178 = arith.addf %176, %177 : vector<8x128xf32>
    %179 = arith.negf %178 : vector<8x128xf32>
    %180 = math.exp %179 : vector<8x128xf32>
    %cst_69 = arith.constant 1.000000e+00 : f32
    %181 = vector.broadcast %cst_69 : f32 to vector<8x128xf32>
    %182 = arith.addf %181, %180 : vector<8x128xf32>
    %183 = arith.divf %181, %182 : vector<8x128xf32>
    %184 = math.tanh %178 : vector<8x128xf32>
    %185 = vector.extract_strided_slice %183 {offsets = [0, 0], sizes = [8, 32], strides = [1, 1]} : vector<8x128xf32> to vector<8x32xf32>
    %186 = vector.extract_strided_slice %183 {offsets = [0, 32], sizes = [8, 32], strides = [1, 1]} : vector<8x128xf32> to vector<8x32xf32>
    %187 = vector.extract_strided_slice %184 {offsets = [0, 64], sizes = [8, 32], strides = [1, 1]} : vector<8x128xf32> to vector<8x32xf32>
    %188 = vector.extract_strided_slice %183 {offsets = [0, 96], sizes = [8, 32], strides = [1, 1]} : vector<8x128xf32> to vector<8x32xf32>
    %189 = arith.mulf %186, %149 : vector<8x32xf32>
    %190 = arith.mulf %185, %187 : vector<8x32xf32>
    %191 = arith.addf %189, %190 : vector<8x32xf32>
    %192 = math.tanh %191 : vector<8x32xf32>
    %193 = arith.mulf %188, %192 : vector<8x32xf32>
    %c16_70 = arith.constant 16 : index
    %c0_71 = arith.constant 0 : index
    %194 = vector.load %arg4[%c16_70, %c0_71] : memref<72x32xf32, #tpu.memory_space<vmem>>, vector<8x32xf32>
    tpu.vector_store %arg4[%c16_70, %c0_71], %193 {strides = array<i32>} : memref<72x32xf32, #tpu.memory_space<vmem>>, vector<8x32xf32>,
    %cst_72 = arith.constant dense<0.000000e+00> : vector<8x128xf32>
    %195 = tpu.matmul %193, %8, %cst_72 {dimension_numbers = #tpu.dot_dimension_numbers<[1], [0], [0], [1], [0, 0, 1, 1], [], []>} : vector<8x32xf32>, vector<32x128xf32>, vector<8x128xf32> -> vector<8x128xf32>
    %196 = vector.broadcast %5 : vector<1x32xf32> to vector<8x32xf32>
    %197 = arith.mulf %193, %196 : vector<8x32xf32>
    %198 = vector.broadcast %6 : vector<1x32xf32> to vector<8x32xf32>
    %199 = arith.mulf %191, %198 : vector<8x32xf32>
    %200 = arith.addf %197, %199 : vector<8x32xf32>
    %cst_73 = arith.constant dense<0.000000e+00> : vector<8xf32>
    %201 = vector.multi_reduction <add>, %200, %cst_73 [1] : vector<8x32xf32> to vector<8xf32>
    %202 = vector.shape_cast %201 : vector<8xf32> to vector<8x1xf32>
    %203 = vector.broadcast %202 : vector<8x1xf32> to vector<8x4xf32>
    %204 = arith.addf %203, %66 : vector<8x4xf32>
    %cst_74 = arith.constant dense<0xFF800000> : vector<8xf32>
    %205 = vector.multi_reduction <maximumf>, %204, %cst_74 [1] : vector<8x4xf32> to vector<8xf32>
    %206 = vector.shape_cast %205 : vector<8xf32> to vector<8x1xf32>
    %207 = vector.broadcast %206 : vector<8x1xf32> to vector<8x4xf32>
    %208 = arith.subf %204, %207 : vector<8x4xf32>
    %209 = math.exp %208 : vector<8x4xf32>
    %cst_75 = arith.constant dense<0.000000e+00> : vector<8xf32>
    %210 = vector.multi_reduction <add>, %209, %cst_75 [1] : vector<8x4xf32> to vector<8xf32>
    %211 = vector.shape_cast %210 : vector<8xf32> to vector<8x1xf32>
    %212 = vector.broadcast %211 : vector<8x1xf32> to vector<8x4xf32>
    %213 = arith.divf %209, %212 : vector<8x4xf32>
    %c3_76 = arith.constant 3 : index
    %c0_77 = arith.constant 0 : index
    %c0_78 = arith.constant 0 : index
    %214 = vector.load %arg0[%c3_76, %c0_77, %c0_78] : memref<9x8x4xf32, #tpu.memory_space<vmem>>, vector<1x8x4xf32>
    %215 = vector.shape_cast %214 : vector<1x8x4xf32> to vector<8x4xf32>
    %216 = arith.mulf %213, %215 : vector<8x4xf32>
    %cst_79 = arith.constant dense<0.000000e+00> : vector<8x128xf32>
    %217 = tpu.matmul %216, %7, %cst_79 {dimension_numbers = #tpu.dot_dimension_numbers<[1], [0], [0], [1], [0, 0, 1, 1], [], []>} : vector<8x4xf32>, vector<4x128xf32>, vector<8x128xf32> -> vector<8x128xf32>
    %218 = arith.addf %217, %195 : vector<8x128xf32>
    %219 = vector.broadcast %9 : vector<1x128xf32> to vector<8x128xf32>
    %220 = arith.addf %218, %219 : vector<8x128xf32>
    %221 = arith.negf %220 : vector<8x128xf32>
    %222 = math.exp %221 : vector<8x128xf32>
    %cst_80 = arith.constant 1.000000e+00 : f32
    %223 = vector.broadcast %cst_80 : f32 to vector<8x128xf32>
    %224 = arith.addf %223, %222 : vector<8x128xf32>
    %225 = arith.divf %223, %224 : vector<8x128xf32>
    %226 = math.tanh %220 : vector<8x128xf32>
    %227 = vector.extract_strided_slice %225 {offsets = [0, 0], sizes = [8, 32], strides = [1, 1]} : vector<8x128xf32> to vector<8x32xf32>
    %228 = vector.extract_strided_slice %225 {offsets = [0, 32], sizes = [8, 32], strides = [1, 1]} : vector<8x128xf32> to vector<8x32xf32>
    %229 = vector.extract_strided_slice %226 {offsets = [0, 64], sizes = [8, 32], strides = [1, 1]} : vector<8x128xf32> to vector<8x32xf32>
    %230 = vector.extract_strided_slice %225 {offsets = [0, 96], sizes = [8, 32], strides = [1, 1]} : vector<8x128xf32> to vector<8x32xf32>
    %231 = arith.mulf %228, %191 : vector<8x32xf32>
    %232 = arith.mulf %227, %229 : vector<8x32xf32>
    %233 = arith.addf %231, %232 : vector<8x32xf32>
    %234 = math.tanh %233 : vector<8x32xf32>
    %235 = arith.mulf %230, %234 : vector<8x32xf32>
    %c24_81 = arith.constant 24 : index
    %c0_82 = arith.constant 0 : index
    %236 = vector.load %arg4[%c24_81, %c0_82] : memref<72x32xf32, #tpu.memory_space<vmem>>, vector<8x32xf32>
    tpu.vector_store %arg4[%c24_81, %c0_82], %235 {strides = array<i32>} : memref<72x32xf32, #tpu.memory_space<vmem>>, vector<8x32xf32>,
    %cst_83 = arith.constant dense<0.000000e+00> : vector<8x128xf32>
    %237 = tpu.matmul %235, %8, %cst_83 {dimension_numbers = #tpu.dot_dimension_numbers<[1], [0], [0], [1], [0, 0, 1, 1], [], []>} : vector<8x32xf32>, vector<32x128xf32>, vector<8x128xf32> -> vector<8x128xf32>
    %238 = vector.broadcast %5 : vector<1x32xf32> to vector<8x32xf32>
    %239 = arith.mulf %235, %238 : vector<8x32xf32>
    %240 = vector.broadcast %6 : vector<1x32xf32> to vector<8x32xf32>
    %241 = arith.mulf %233, %240 : vector<8x32xf32>
    %242 = arith.addf %239, %241 : vector<8x32xf32>
    %cst_84 = arith.constant dense<0.000000e+00> : vector<8xf32>
    %243 = vector.multi_reduction <add>, %242, %cst_84 [1] : vector<8x32xf32> to vector<8xf32>
    %244 = vector.shape_cast %243 : vector<8xf32> to vector<8x1xf32>
    %245 = vector.broadcast %244 : vector<8x1xf32> to vector<8x4xf32>
    %246 = arith.addf %245, %66 : vector<8x4xf32>
    %cst_85 = arith.constant dense<0xFF800000> : vector<8xf32>
    %247 = vector.multi_reduction <maximumf>, %246, %cst_85 [1] : vector<8x4xf32> to vector<8xf32>
    %248 = vector.shape_cast %247 : vector<8xf32> to vector<8x1xf32>
    %249 = vector.broadcast %248 : vector<8x1xf32> to vector<8x4xf32>
    %250 = arith.subf %246, %249 : vector<8x4xf32>
    %251 = math.exp %250 : vector<8x4xf32>
    %cst_86 = arith.constant dense<0.000000e+00> : vector<8xf32>
    %252 = vector.multi_reduction <add>, %251, %cst_86 [1] : vector<8x4xf32> to vector<8xf32>
    %253 = vector.shape_cast %252 : vector<8xf32> to vector<8x1xf32>
    %254 = vector.broadcast %253 : vector<8x1xf32> to vector<8x4xf32>
    %255 = arith.divf %251, %254 : vector<8x4xf32>
    %c4_87 = arith.constant 4 : index
    %c0_88 = arith.constant 0 : index
    %c0_89 = arith.constant 0 : index
    %256 = vector.load %arg0[%c4_87, %c0_88, %c0_89] : memref<9x8x4xf32, #tpu.memory_space<vmem>>, vector<1x8x4xf32>
    %257 = vector.shape_cast %256 : vector<1x8x4xf32> to vector<8x4xf32>
    %258 = arith.mulf %255, %257 : vector<8x4xf32>
    %cst_90 = arith.constant dense<0.000000e+00> : vector<8x128xf32>
    %259 = tpu.matmul %258, %7, %cst_90 {dimension_numbers = #tpu.dot_dimension_numbers<[1], [0], [0], [1], [0, 0, 1, 1], [], []>} : vector<8x4xf32>, vector<4x128xf32>, vector<8x128xf32> -> vector<8x128xf32>
    %260 = arith.addf %259, %237 : vector<8x128xf32>
    %261 = vector.broadcast %9 : vector<1x128xf32> to vector<8x128xf32>
    %262 = arith.addf %260, %261 : vector<8x128xf32>
    %263 = arith.negf %262 : vector<8x128xf32>
    %264 = math.exp %263 : vector<8x128xf32>
    %cst_91 = arith.constant 1.000000e+00 : f32
    %265 = vector.broadcast %cst_91 : f32 to vector<8x128xf32>
    %266 = arith.addf %265, %264 : vector<8x128xf32>
    %267 = arith.divf %265, %266 : vector<8x128xf32>
    %268 = math.tanh %262 : vector<8x128xf32>
    %269 = vector.extract_strided_slice %267 {offsets = [0, 0], sizes = [8, 32], strides = [1, 1]} : vector<8x128xf32> to vector<8x32xf32>
    %270 = vector.extract_strided_slice %267 {offsets = [0, 32], sizes = [8, 32], strides = [1, 1]} : vector<8x128xf32> to vector<8x32xf32>
    %271 = vector.extract_strided_slice %268 {offsets = [0, 64], sizes = [8, 32], strides = [1, 1]} : vector<8x128xf32> to vector<8x32xf32>
    %272 = vector.extract_strided_slice %267 {offsets = [0, 96], sizes = [8, 32], strides = [1, 1]} : vector<8x128xf32> to vector<8x32xf32>
    %273 = arith.mulf %270, %233 : vector<8x32xf32>
    %274 = arith.mulf %269, %271 : vector<8x32xf32>
    %275 = arith.addf %273, %274 : vector<8x32xf32>
    %276 = math.tanh %275 : vector<8x32xf32>
    %277 = arith.mulf %272, %276 : vector<8x32xf32>
    %c32_92 = arith.constant 32 : index
    %c0_93 = arith.constant 0 : index
    %278 = vector.load %arg4[%c32_92, %c0_93] : memref<72x32xf32, #tpu.memory_space<vmem>>, vector<8x32xf32>
    tpu.vector_store %arg4[%c32_92, %c0_93], %277 {strides = array<i32>} : memref<72x32xf32, #tpu.memory_space<vmem>>, vector<8x32xf32>,
    %cst_94 = arith.constant dense<0.000000e+00> : vector<8x128xf32>
    %279 = tpu.matmul %277, %8, %cst_94 {dimension_numbers = #tpu.dot_dimension_numbers<[1], [0], [0], [1], [0, 0, 1, 1], [], []>} : vector<8x32xf32>, vector<32x128xf32>, vector<8x128xf32> -> vector<8x128xf32>
    %280 = vector.broadcast %5 : vector<1x32xf32> to vector<8x32xf32>
    %281 = arith.mulf %277, %280 : vector<8x32xf32>
    %282 = vector.broadcast %6 : vector<1x32xf32> to vector<8x32xf32>
    %283 = arith.mulf %275, %282 : vector<8x32xf32>
    %284 = arith.addf %281, %283 : vector<8x32xf32>
    %cst_95 = arith.constant dense<0.000000e+00> : vector<8xf32>
    %285 = vector.multi_reduction <add>, %284, %cst_95 [1] : vector<8x32xf32> to vector<8xf32>
    %286 = vector.shape_cast %285 : vector<8xf32> to vector<8x1xf32>
    %287 = vector.broadcast %286 : vector<8x1xf32> to vector<8x4xf32>
    %288 = arith.addf %287, %66 : vector<8x4xf32>
    %cst_96 = arith.constant dense<0xFF800000> : vector<8xf32>
    %289 = vector.multi_reduction <maximumf>, %288, %cst_96 [1] : vector<8x4xf32> to vector<8xf32>
    %290 = vector.shape_cast %289 : vector<8xf32> to vector<8x1xf32>
    %291 = vector.broadcast %290 : vector<8x1xf32> to vector<8x4xf32>
    %292 = arith.subf %288, %291 : vector<8x4xf32>
    %293 = math.exp %292 : vector<8x4xf32>
    %cst_97 = arith.constant dense<0.000000e+00> : vector<8xf32>
    %294 = vector.multi_reduction <add>, %293, %cst_97 [1] : vector<8x4xf32> to vector<8xf32>
    %295 = vector.shape_cast %294 : vector<8xf32> to vector<8x1xf32>
    %296 = vector.broadcast %295 : vector<8x1xf32> to vector<8x4xf32>
    %297 = arith.divf %293, %296 : vector<8x4xf32>
    %c5_98 = arith.constant 5 : index
    %c0_99 = arith.constant 0 : index
    %c0_100 = arith.constant 0 : index
    %298 = vector.load %arg0[%c5_98, %c0_99, %c0_100] : memref<9x8x4xf32, #tpu.memory_space<vmem>>, vector<1x8x4xf32>
    %299 = vector.shape_cast %298 : vector<1x8x4xf32> to vector<8x4xf32>
    %300 = arith.mulf %297, %299 : vector<8x4xf32>
    %cst_101 = arith.constant dense<0.000000e+00> : vector<8x128xf32>
    %301 = tpu.matmul %300, %7, %cst_101 {dimension_numbers = #tpu.dot_dimension_numbers<[1], [0], [0], [1], [0, 0, 1, 1], [], []>} : vector<8x4xf32>, vector<4x128xf32>, vector<8x128xf32> -> vector<8x128xf32>
    %302 = arith.addf %301, %279 : vector<8x128xf32>
    %303 = vector.broadcast %9 : vector<1x128xf32> to vector<8x128xf32>
    %304 = arith.addf %302, %303 : vector<8x128xf32>
    %305 = arith.negf %304 : vector<8x128xf32>
    %306 = math.exp %305 : vector<8x128xf32>
    %cst_102 = arith.constant 1.000000e+00 : f32
    %307 = vector.broadcast %cst_102 : f32 to vector<8x128xf32>
    %308 = arith.addf %307, %306 : vector<8x128xf32>
    %309 = arith.divf %307, %308 : vector<8x128xf32>
    %310 = math.tanh %304 : vector<8x128xf32>
    %311 = vector.extract_strided_slice %309 {offsets = [0, 0], sizes = [8, 32], strides = [1, 1]} : vector<8x128xf32> to vector<8x32xf32>
    %312 = vector.extract_strided_slice %309 {offsets = [0, 32], sizes = [8, 32], strides = [1, 1]} : vector<8x128xf32> to vector<8x32xf32>
    %313 = vector.extract_strided_slice %310 {offsets = [0, 64], sizes = [8, 32], strides = [1, 1]} : vector<8x128xf32> to vector<8x32xf32>
    %314 = vector.extract_strided_slice %309 {offsets = [0, 96], sizes = [8, 32], strides = [1, 1]} : vector<8x128xf32> to vector<8x32xf32>
    %315 = arith.mulf %312, %275 : vector<8x32xf32>
    %316 = arith.mulf %311, %313 : vector<8x32xf32>
    %317 = arith.addf %315, %316 : vector<8x32xf32>
    %318 = math.tanh %317 : vector<8x32xf32>
    %319 = arith.mulf %314, %318 : vector<8x32xf32>
    %c40_103 = arith.constant 40 : index
    %c0_104 = arith.constant 0 : index
    %320 = vector.load %arg4[%c40_103, %c0_104] : memref<72x32xf32, #tpu.memory_space<vmem>>, vector<8x32xf32>
    tpu.vector_store %arg4[%c40_103, %c0_104], %319 {strides = array<i32>} : memref<72x32xf32, #tpu.memory_space<vmem>>, vector<8x32xf32>,
    %cst_105 = arith.constant dense<0.000000e+00> : vector<8x128xf32>
    %321 = tpu.matmul %319, %8, %cst_105 {dimension_numbers = #tpu.dot_dimension_numbers<[1], [0], [0], [1], [0, 0, 1, 1], [], []>} : vector<8x32xf32>, vector<32x128xf32>, vector<8x128xf32> -> vector<8x128xf32>
    %322 = vector.broadcast %5 : vector<1x32xf32> to vector<8x32xf32>
    %323 = arith.mulf %319, %322 : vector<8x32xf32>
    %324 = vector.broadcast %6 : vector<1x32xf32> to vector<8x32xf32>
    %325 = arith.mulf %317, %324 : vector<8x32xf32>
    %326 = arith.addf %323, %325 : vector<8x32xf32>
    %cst_106 = arith.constant dense<0.000000e+00> : vector<8xf32>
    %327 = vector.multi_reduction <add>, %326, %cst_106 [1] : vector<8x32xf32> to vector<8xf32>
    %328 = vector.shape_cast %327 : vector<8xf32> to vector<8x1xf32>
    %329 = vector.broadcast %328 : vector<8x1xf32> to vector<8x4xf32>
    %330 = arith.addf %329, %66 : vector<8x4xf32>
    %cst_107 = arith.constant dense<0xFF800000> : vector<8xf32>
    %331 = vector.multi_reduction <maximumf>, %330, %cst_107 [1] : vector<8x4xf32> to vector<8xf32>
    %332 = vector.shape_cast %331 : vector<8xf32> to vector<8x1xf32>
    %333 = vector.broadcast %332 : vector<8x1xf32> to vector<8x4xf32>
    %334 = arith.subf %330, %333 : vector<8x4xf32>
    %335 = math.exp %334 : vector<8x4xf32>
    %cst_108 = arith.constant dense<0.000000e+00> : vector<8xf32>
    %336 = vector.multi_reduction <add>, %335, %cst_108 [1] : vector<8x4xf32> to vector<8xf32>
    %337 = vector.shape_cast %336 : vector<8xf32> to vector<8x1xf32>
    %338 = vector.broadcast %337 : vector<8x1xf32> to vector<8x4xf32>
    %339 = arith.divf %335, %338 : vector<8x4xf32>
    %c6_109 = arith.constant 6 : index
    %c0_110 = arith.constant 0 : index
    %c0_111 = arith.constant 0 : index
    %340 = vector.load %arg0[%c6_109, %c0_110, %c0_111] : memref<9x8x4xf32, #tpu.memory_space<vmem>>, vector<1x8x4xf32>
    %341 = vector.shape_cast %340 : vector<1x8x4xf32> to vector<8x4xf32>
    %342 = arith.mulf %339, %341 : vector<8x4xf32>
    %cst_112 = arith.constant dense<0.000000e+00> : vector<8x128xf32>
    %343 = tpu.matmul %342, %7, %cst_112 {dimension_numbers = #tpu.dot_dimension_numbers<[1], [0], [0], [1], [0, 0, 1, 1], [], []>} : vector<8x4xf32>, vector<4x128xf32>, vector<8x128xf32> -> vector<8x128xf32>
    %344 = arith.addf %343, %321 : vector<8x128xf32>
    %345 = vector.broadcast %9 : vector<1x128xf32> to vector<8x128xf32>
    %346 = arith.addf %344, %345 : vector<8x128xf32>
    %347 = arith.negf %346 : vector<8x128xf32>
    %348 = math.exp %347 : vector<8x128xf32>
    %cst_113 = arith.constant 1.000000e+00 : f32
    %349 = vector.broadcast %cst_113 : f32 to vector<8x128xf32>
    %350 = arith.addf %349, %348 : vector<8x128xf32>
    %351 = arith.divf %349, %350 : vector<8x128xf32>
    %352 = math.tanh %346 : vector<8x128xf32>
    %353 = vector.extract_strided_slice %351 {offsets = [0, 0], sizes = [8, 32], strides = [1, 1]} : vector<8x128xf32> to vector<8x32xf32>
    %354 = vector.extract_strided_slice %351 {offsets = [0, 32], sizes = [8, 32], strides = [1, 1]} : vector<8x128xf32> to vector<8x32xf32>
    %355 = vector.extract_strided_slice %352 {offsets = [0, 64], sizes = [8, 32], strides = [1, 1]} : vector<8x128xf32> to vector<8x32xf32>
    %356 = vector.extract_strided_slice %351 {offsets = [0, 96], sizes = [8, 32], strides = [1, 1]} : vector<8x128xf32> to vector<8x32xf32>
    %357 = arith.mulf %354, %317 : vector<8x32xf32>
    %358 = arith.mulf %353, %355 : vector<8x32xf32>
    %359 = arith.addf %357, %358 : vector<8x32xf32>
    %360 = math.tanh %359 : vector<8x32xf32>
    %361 = arith.mulf %356, %360 : vector<8x32xf32>
    %c48 = arith.constant 48 : index
    %c0_114 = arith.constant 0 : index
    %362 = vector.load %arg4[%c48, %c0_114] : memref<72x32xf32, #tpu.memory_space<vmem>>, vector<8x32xf32>
    tpu.vector_store %arg4[%c48, %c0_114], %361 {strides = array<i32>} : memref<72x32xf32, #tpu.memory_space<vmem>>, vector<8x32xf32>,
    %cst_115 = arith.constant dense<0.000000e+00> : vector<8x128xf32>
    %363 = tpu.matmul %361, %8, %cst_115 {dimension_numbers = #tpu.dot_dimension_numbers<[1], [0], [0], [1], [0, 0, 1, 1], [], []>} : vector<8x32xf32>, vector<32x128xf32>, vector<8x128xf32> -> vector<8x128xf32>
    %364 = vector.broadcast %5 : vector<1x32xf32> to vector<8x32xf32>
    %365 = arith.mulf %361, %364 : vector<8x32xf32>
    %366 = vector.broadcast %6 : vector<1x32xf32> to vector<8x32xf32>
    %367 = arith.mulf %359, %366 : vector<8x32xf32>
    %368 = arith.addf %365, %367 : vector<8x32xf32>
    %cst_116 = arith.constant dense<0.000000e+00> : vector<8xf32>
    %369 = vector.multi_reduction <add>, %368, %cst_116 [1] : vector<8x32xf32> to vector<8xf32>
    %370 = vector.shape_cast %369 : vector<8xf32> to vector<8x1xf32>
    %371 = vector.broadcast %370 : vector<8x1xf32> to vector<8x4xf32>
    %372 = arith.addf %371, %66 : vector<8x4xf32>
    %cst_117 = arith.constant dense<0xFF800000> : vector<8xf32>
    %373 = vector.multi_reduction <maximumf>, %372, %cst_117 [1] : vector<8x4xf32> to vector<8xf32>
    %374 = vector.shape_cast %373 : vector<8xf32> to vector<8x1xf32>
    %375 = vector.broadcast %374 : vector<8x1xf32> to vector<8x4xf32>
    %376 = arith.subf %372, %375 : vector<8x4xf32>
    %377 = math.exp %376 : vector<8x4xf32>
    %cst_118 = arith.constant dense<0.000000e+00> : vector<8xf32>
    %378 = vector.multi_reduction <add>, %377, %cst_118 [1] : vector<8x4xf32> to vector<8xf32>
    %379 = vector.shape_cast %378 : vector<8xf32> to vector<8x1xf32>
    %380 = vector.broadcast %379 : vector<8x1xf32> to vector<8x4xf32>
    %381 = arith.divf %377, %380 : vector<8x4xf32>
    %c7_119 = arith.constant 7 : index
    %c0_120 = arith.constant 0 : index
    %c0_121 = arith.constant 0 : index
    %382 = vector.load %arg0[%c7_119, %c0_120, %c0_121] : memref<9x8x4xf32, #tpu.memory_space<vmem>>, vector<1x8x4xf32>
    %383 = vector.shape_cast %382 : vector<1x8x4xf32> to vector<8x4xf32>
    %384 = arith.mulf %381, %383 : vector<8x4xf32>
    %cst_122 = arith.constant dense<0.000000e+00> : vector<8x128xf32>
    %385 = tpu.matmul %384, %7, %cst_122 {dimension_numbers = #tpu.dot_dimension_numbers<[1], [0], [0], [1], [0, 0, 1, 1], [], []>} : vector<8x4xf32>, vector<4x128xf32>, vector<8x128xf32> -> vector<8x128xf32>
    %386 = arith.addf %385, %363 : vector<8x128xf32>
    %387 = vector.broadcast %9 : vector<1x128xf32> to vector<8x128xf32>
    %388 = arith.addf %386, %387 : vector<8x128xf32>
    %389 = arith.negf %388 : vector<8x128xf32>
    %390 = math.exp %389 : vector<8x128xf32>
    %cst_123 = arith.constant 1.000000e+00 : f32
    %391 = vector.broadcast %cst_123 : f32 to vector<8x128xf32>
    %392 = arith.addf %391, %390 : vector<8x128xf32>
    %393 = arith.divf %391, %392 : vector<8x128xf32>
    %394 = math.tanh %388 : vector<8x128xf32>
    %395 = vector.extract_strided_slice %393 {offsets = [0, 0], sizes = [8, 32], strides = [1, 1]} : vector<8x128xf32> to vector<8x32xf32>
    %396 = vector.extract_strided_slice %393 {offsets = [0, 32], sizes = [8, 32], strides = [1, 1]} : vector<8x128xf32> to vector<8x32xf32>
    %397 = vector.extract_strided_slice %394 {offsets = [0, 64], sizes = [8, 32], strides = [1, 1]} : vector<8x128xf32> to vector<8x32xf32>
    %398 = vector.extract_strided_slice %393 {offsets = [0, 96], sizes = [8, 32], strides = [1, 1]} : vector<8x128xf32> to vector<8x32xf32>
    %399 = arith.mulf %396, %359 : vector<8x32xf32>
    %400 = arith.mulf %395, %397 : vector<8x32xf32>
    %401 = arith.addf %399, %400 : vector<8x32xf32>
    %402 = math.tanh %401 : vector<8x32xf32>
    %403 = arith.mulf %398, %402 : vector<8x32xf32>
    %c56 = arith.constant 56 : index
    %c0_124 = arith.constant 0 : index
    %404 = vector.load %arg4[%c56, %c0_124] : memref<72x32xf32, #tpu.memory_space<vmem>>, vector<8x32xf32>
    tpu.vector_store %arg4[%c56, %c0_124], %403 {strides = array<i32>} : memref<72x32xf32, #tpu.memory_space<vmem>>, vector<8x32xf32>,
    %cst_125 = arith.constant dense<0.000000e+00> : vector<8x128xf32>
    %405 = tpu.matmul %403, %8, %cst_125 {dimension_numbers = #tpu.dot_dimension_numbers<[1], [0], [0], [1], [0, 0, 1, 1], [], []>} : vector<8x32xf32>, vector<32x128xf32>, vector<8x128xf32> -> vector<8x128xf32>
    %406 = vector.broadcast %5 : vector<1x32xf32> to vector<8x32xf32>
    %407 = arith.mulf %403, %406 : vector<8x32xf32>
    %408 = vector.broadcast %6 : vector<1x32xf32> to vector<8x32xf32>
    %409 = arith.mulf %401, %408 : vector<8x32xf32>
    %410 = arith.addf %407, %409 : vector<8x32xf32>
    %cst_126 = arith.constant dense<0.000000e+00> : vector<8xf32>
    %411 = vector.multi_reduction <add>, %410, %cst_126 [1] : vector<8x32xf32> to vector<8xf32>
    %412 = vector.shape_cast %411 : vector<8xf32> to vector<8x1xf32>
    %413 = vector.broadcast %412 : vector<8x1xf32> to vector<8x4xf32>
    %414 = arith.addf %413, %66 : vector<8x4xf32>
    %cst_127 = arith.constant dense<0xFF800000> : vector<8xf32>
    %415 = vector.multi_reduction <maximumf>, %414, %cst_127 [1] : vector<8x4xf32> to vector<8xf32>
    %416 = vector.shape_cast %415 : vector<8xf32> to vector<8x1xf32>
    %417 = vector.broadcast %416 : vector<8x1xf32> to vector<8x4xf32>
    %418 = arith.subf %414, %417 : vector<8x4xf32>
    %419 = math.exp %418 : vector<8x4xf32>
    %cst_128 = arith.constant dense<0.000000e+00> : vector<8xf32>
    %420 = vector.multi_reduction <add>, %419, %cst_128 [1] : vector<8x4xf32> to vector<8xf32>
    %421 = vector.shape_cast %420 : vector<8xf32> to vector<8x1xf32>
    %422 = vector.broadcast %421 : vector<8x1xf32> to vector<8x4xf32>
    %423 = arith.divf %419, %422 : vector<8x4xf32>
    %c8_129 = arith.constant 8 : index
    %c0_130 = arith.constant 0 : index
    %c0_131 = arith.constant 0 : index
    %424 = vector.load %arg0[%c8_129, %c0_130, %c0_131] : memref<9x8x4xf32, #tpu.memory_space<vmem>>, vector<1x8x4xf32>
    %425 = vector.shape_cast %424 : vector<1x8x4xf32> to vector<8x4xf32>
    %426 = arith.mulf %423, %425 : vector<8x4xf32>
    %cst_132 = arith.constant dense<0.000000e+00> : vector<8x128xf32>
    %427 = tpu.matmul %426, %7, %cst_132 {dimension_numbers = #tpu.dot_dimension_numbers<[1], [0], [0], [1], [0, 0, 1, 1], [], []>} : vector<8x4xf32>, vector<4x128xf32>, vector<8x128xf32> -> vector<8x128xf32>
    %428 = arith.addf %427, %405 : vector<8x128xf32>
    %429 = vector.broadcast %9 : vector<1x128xf32> to vector<8x128xf32>
    %430 = arith.addf %428, %429 : vector<8x128xf32>
    %431 = arith.negf %430 : vector<8x128xf32>
    %432 = math.exp %431 : vector<8x128xf32>
    %cst_133 = arith.constant 1.000000e+00 : f32
    %433 = vector.broadcast %cst_133 : f32 to vector<8x128xf32>
    %434 = arith.addf %433, %432 : vector<8x128xf32>
    %435 = arith.divf %433, %434 : vector<8x128xf32>
    %436 = math.tanh %430 : vector<8x128xf32>
    %437 = vector.extract_strided_slice %435 {offsets = [0, 0], sizes = [8, 32], strides = [1, 1]} : vector<8x128xf32> to vector<8x32xf32>
    %438 = vector.extract_strided_slice %435 {offsets = [0, 32], sizes = [8, 32], strides = [1, 1]} : vector<8x128xf32> to vector<8x32xf32>
    %439 = vector.extract_strided_slice %436 {offsets = [0, 64], sizes = [8, 32], strides = [1, 1]} : vector<8x128xf32> to vector<8x32xf32>
    %440 = vector.extract_strided_slice %435 {offsets = [0, 96], sizes = [8, 32], strides = [1, 1]} : vector<8x128xf32> to vector<8x32xf32>
    %441 = arith.mulf %438, %401 : vector<8x32xf32>
    %442 = arith.mulf %437, %439 : vector<8x32xf32>
    %443 = arith.addf %441, %442 : vector<8x32xf32>
    %444 = math.tanh %443 : vector<8x32xf32>
    %445 = arith.mulf %440, %444 : vector<8x32xf32>
    %c64 = arith.constant 64 : index
    %c0_134 = arith.constant 0 : index
    %446 = vector.load %arg4[%c64, %c0_134] : memref<72x32xf32, #tpu.memory_space<vmem>>, vector<8x32xf32>
    tpu.vector_store %arg4[%c64, %c0_134], %445 {strides = array<i32>} : memref<72x32xf32, #tpu.memory_space<vmem>>, vector<8x32xf32>,
    %c0_135 = arith.constant 0 : index
    %c0_136 = arith.constant 0 : index
    %447 = vector.load %arg4[%c0_135, %c0_136] : memref<72x32xf32, #tpu.memory_space<vmem>>, vector<72x32xf32>
    %c232 = arith.constant 232 : index
    %c0_137 = arith.constant 0 : index
    %448 = vector.load %arg2[%c232, %c0_137] : memref<264x160xf32, #tpu.memory_space<vmem>>, vector<32x32xf32>
    %cst_138 = arith.constant dense<0.000000e+00> : vector<72x32xf32>
    %449 = tpu.matmul %447, %448, %cst_138 {dimension_numbers = #tpu.dot_dimension_numbers<[1], [0], [0], [1], [0, 0, 1, 1], [], []>} : vector<72x32xf32>, vector<32x32xf32>, vector<72x32xf32> -> vector<72x32xf32>
    %c5_139 = arith.constant 5 : index
    %c0_140 = arith.constant 0 : index
    %450 = vector.load %arg2[%c5_139, %c0_140] : memref<264x160xf32, #tpu.memory_space<vmem>>, vector<1x32xf32>
    %451 = vector.broadcast %450 : vector<1x32xf32> to vector<72x32xf32>
    %452 = arith.addf %449, %451 : vector<72x32xf32>
    %c0_141 = arith.constant 0 : index
    %c0_142 = arith.constant 0 : index
    %453 = vector.load %arg5[%c0_141, %c0_142] : memref<72x32xf32, #tpu.memory_space<vmem>>, vector<72x32xf32>
    tpu.vector_store %arg5[%c0_141, %c0_142], %452 {strides = array<i32>} : memref<72x32xf32, #tpu.memory_space<vmem>>, vector<72x32xf32>,
    %c0_143 = arith.constant 0 : index
    %c0_144 = arith.constant 0 : index
    %454 = vector.load %arg1[%c0_143, %c0_144] : memref<8x9xf32, #tpu.memory_space<vmem>>, vector<8x9xf32>
    %455 = vector.broadcast %3 : vector<1x1xf32> to vector<8x9xf32>
    %456 = arith.mulf %454, %455 : vector<8x9xf32>
    %457 = vector.broadcast %4 : vector<1x1xf32> to vector<8x9xf32>
    %458 = arith.addf %456, %457 : vector<8x9xf32>
    %cst_145 = arith.constant 0.000000e+00 : f32
    %459 = vector.broadcast %cst_145 : f32 to vector<8x32xf32>
    %cst_146 = arith.constant 0.000000e+00 : f32
    %460 = vector.broadcast %cst_146 : f32 to vector<8x32xf32>
    %461 = tpu.concatenate %459, %460 in 1 : vector<8x32xf32>, vector<8x32xf32> -> vector<8x64xf32>
    %c168 = arith.constant 168 : index
    %c0_147 = arith.constant 0 : index
    %462 = vector.load %arg2[%c168, %c0_147] : memref<264x160xf32, #tpu.memory_space<vmem>>, vector<64x160xf32>
    %cst_148 = arith.constant dense<0.000000e+00> : vector<8x160xf32>
    %463 = tpu.matmul %461, %462, %cst_148 {dimension_numbers = #tpu.dot_dimension_numbers<[1], [0], [0], [1], [0, 0, 1, 1], [], []>} : vector<8x64xf32>, vector<64x160xf32>, vector<8x160xf32> -> vector<8x160xf32>
    %464 = vector.extract_strided_slice %463 {offsets = [0, 0], sizes = [8, 128], strides = [1, 1]} : vector<8x160xf32> to vector<8x128xf32>
    %465 = vector.extract_strided_slice %463 {offsets = [0, 128], sizes = [8, 32], strides = [1, 1]} : vector<8x160xf32> to vector<8x32xf32>
    %c0_149 = arith.constant 0 : index
    %c0_150 = arith.constant 0 : index
    %466 = vector.load %arg4[%c0_149, %c0_150] : memref<72x32xf32, #tpu.memory_space<vmem>>, vector<72x32xf32>
    %467 = vector.shape_cast %466 : vector<72x32xf32> to vector<9x8x32xf32>
    %c0_151 = arith.constant 0 : index
    %c0_152 = arith.constant 0 : index
    %468 = vector.load %arg5[%c0_151, %c0_152] : memref<72x32xf32, #tpu.memory_space<vmem>>, vector<72x32xf32>
    %469 = vector.shape_cast %468 : vector<72x32xf32> to vector<9x8x32xf32>
    %470 = vector.shape_cast %465 : vector<8x32xf32> to vector<1x8x32xf32>
    %471 = vector.broadcast %470 : vector<1x8x32xf32> to vector<9x8x32xf32>
    %472 = arith.addf %469, %471 : vector<9x8x32xf32>
    %473 = math.tanh %472 : vector<9x8x32xf32>
    %c6_153 = arith.constant 6 : index
    %c0_154 = arith.constant 0 : index
    %474 = vector.load %arg2[%c6_153, %c0_154] : memref<264x160xf32, #tpu.memory_space<vmem>>, vector<1x32xf32>
    %475 = vector.shape_cast %474 : vector<1x32xf32> to vector<1x1x32xf32>
    %476 = vector.broadcast %475 : vector<1x1x32xf32> to vector<9x8x32xf32>
    %477 = arith.mulf %473, %476 : vector<9x8x32xf32>
    %cst_155 = arith.constant dense<0.000000e+00> : vector<9x8xf32>
    %478 = vector.multi_reduction <add>, %477, %cst_155 [2] : vector<9x8x32xf32> to vector<9x8xf32>
    %479 = vector.shape_cast %478 : vector<9x8xf32> to vector<9x8x1xf32>
    %480 = vector.shape_cast %2 : vector<1x1xf32> to vector<1x1x1xf32>
    %481 = vector.broadcast %480 : vector<1x1x1xf32> to vector<9x8x1xf32>
    %482 = arith.addf %479, %481 : vector<9x8x1xf32>
    %cst_156 = arith.constant dense<0xFF800000> : vector<8x1xf32>
    %483 = vector.multi_reduction <maximumf>, %482, %cst_156 [0] : vector<9x8x1xf32> to vector<8x1xf32>
    %484 = vector.shape_cast %483 : vector<8x1xf32> to vector<1x8x1xf32>
    %485 = vector.broadcast %484 : vector<1x8x1xf32> to vector<9x8x1xf32>
    %486 = arith.subf %482, %485 : vector<9x8x1xf32>
    %487 = math.exp %486 : vector<9x8x1xf32>
    %cst_157 = arith.constant dense<0.000000e+00> : vector<8x1xf32>
    %488 = vector.multi_reduction <add>, %487, %cst_157 [0] : vector<9x8x1xf32> to vector<8x1xf32>
    %489 = vector.shape_cast %488 : vector<8x1xf32> to vector<1x8x1xf32>
    %490 = vector.broadcast %489 : vector<1x8x1xf32> to vector<9x8x1xf32>
    %491 = arith.divf %487, %490 : vector<9x8x1xf32>
    %492 = vector.broadcast %491 : vector<9x8x1xf32> to vector<9x8x32xf32>
    %493 = arith.mulf %492, %467 : vector<9x8x32xf32>
    %cst_158 = arith.constant dense<0.000000e+00> : vector<8x32xf32>
    %494 = vector.multi_reduction <add>, %493, %cst_158 [0] : vector<9x8x32xf32> to vector<8x32xf32>
    %c72 = arith.constant 72 : index
    %c0_159 = arith.constant 0 : index
    %495 = vector.load %arg2[%c72, %c0_159] : memref<264x160xf32, #tpu.memory_space<vmem>>, vector<32x128xf32>
    %cst_160 = arith.constant dense<0.000000e+00> : vector<8x128xf32>
    %496 = tpu.matmul %494, %495, %cst_160 {dimension_numbers = #tpu.dot_dimension_numbers<[1], [0], [0], [1], [0, 0, 1, 1], [], []>} : vector<8x32xf32>, vector<32x128xf32>, vector<8x128xf32> -> vector<8x128xf32>
    %497 = arith.addf %496, %464 : vector<8x128xf32>
    %498 = vector.extract_strided_slice %458 {offsets = [0, 0], sizes = [8, 1], strides = [1, 1]} : vector<8x9xf32> to vector<8x1xf32>
    %c2_161 = arith.constant 2 : index
    %c0_162 = arith.constant 0 : index
    %499 = vector.load %arg2[%c2_161, %c0_162] : memref<264x160xf32, #tpu.memory_space<vmem>>, vector<1x128xf32>
    %500 = vector.broadcast %498 : vector<8x1xf32> to vector<8x128xf32>
    %501 = vector.broadcast %499 : vector<1x128xf32> to vector<8x128xf32>
    %502 = arith.mulf %500, %501 : vector<8x128xf32>
    %503 = arith.addf %497, %502 : vector<8x128xf32>
    %c1_163 = arith.constant 1 : index
    %c0_164 = arith.constant 0 : index
    %504 = vector.load %arg2[%c1_163, %c0_164] : memref<264x160xf32, #tpu.memory_space<vmem>>, vector<1x128xf32>
    %505 = vector.broadcast %504 : vector<1x128xf32> to vector<8x128xf32>
    %506 = arith.addf %503, %505 : vector<8x128xf32>
    %507 = arith.negf %506 : vector<8x128xf32>
    %508 = math.exp %507 : vector<8x128xf32>
    %cst_165 = arith.constant 1.000000e+00 : f32
    %509 = vector.broadcast %cst_165 : f32 to vector<8x128xf32>
    %510 = arith.addf %509, %508 : vector<8x128xf32>
    %511 = arith.divf %509, %510 : vector<8x128xf32>
    %512 = math.tanh %506 : vector<8x128xf32>
    %513 = vector.extract_strided_slice %511 {offsets = [0, 0], sizes = [8, 32], strides = [1, 1]} : vector<8x128xf32> to vector<8x32xf32>
    %514 = vector.extract_strided_slice %511 {offsets = [0, 32], sizes = [8, 32], strides = [1, 1]} : vector<8x128xf32> to vector<8x32xf32>
    %515 = vector.extract_strided_slice %512 {offsets = [0, 64], sizes = [8, 32], strides = [1, 1]} : vector<8x128xf32> to vector<8x32xf32>
    %516 = vector.extract_strided_slice %511 {offsets = [0, 96], sizes = [8, 32], strides = [1, 1]} : vector<8x128xf32> to vector<8x32xf32>
    %517 = arith.mulf %514, %460 : vector<8x32xf32>
    %518 = arith.mulf %513, %515 : vector<8x32xf32>
    %519 = arith.addf %517, %518 : vector<8x32xf32>
    %520 = math.tanh %519 : vector<8x32xf32>
    %521 = arith.mulf %516, %520 : vector<8x32xf32>
    %522 = tpu.concatenate %521, %519 in 1 : vector<8x32xf32>, vector<8x32xf32> -> vector<8x64xf32>
    %c168_166 = arith.constant 168 : index
    %c0_167 = arith.constant 0 : index
    %523 = vector.load %arg2[%c168_166, %c0_167] : memref<264x160xf32, #tpu.memory_space<vmem>>, vector<64x160xf32>
    %cst_168 = arith.constant dense<0.000000e+00> : vector<8x160xf32>
    %524 = tpu.matmul %522, %523, %cst_168 {dimension_numbers = #tpu.dot_dimension_numbers<[1], [0], [0], [1], [0, 0, 1, 1], [], []>} : vector<8x64xf32>, vector<64x160xf32>, vector<8x160xf32> -> vector<8x160xf32>
    %525 = vector.extract_strided_slice %524 {offsets = [0, 0], sizes = [8, 128], strides = [1, 1]} : vector<8x160xf32> to vector<8x128xf32>
    %526 = vector.extract_strided_slice %524 {offsets = [0, 128], sizes = [8, 32], strides = [1, 1]} : vector<8x160xf32> to vector<8x32xf32>
    %c0_169 = arith.constant 0 : index
    %c0_170 = arith.constant 0 : index
    %527 = vector.load %arg4[%c0_169, %c0_170] : memref<72x32xf32, #tpu.memory_space<vmem>>, vector<72x32xf32>
    %528 = vector.shape_cast %527 : vector<72x32xf32> to vector<9x8x32xf32>
    %c0_171 = arith.constant 0 : index
    %c0_172 = arith.constant 0 : index
    %529 = vector.load %arg5[%c0_171, %c0_172] : memref<72x32xf32, #tpu.memory_space<vmem>>, vector<72x32xf32>
    %530 = vector.shape_cast %529 : vector<72x32xf32> to vector<9x8x32xf32>
    %531 = vector.shape_cast %526 : vector<8x32xf32> to vector<1x8x32xf32>
    %532 = vector.broadcast %531 : vector<1x8x32xf32> to vector<9x8x32xf32>
    %533 = arith.addf %530, %532 : vector<9x8x32xf32>
    %534 = math.tanh %533 : vector<9x8x32xf32>
    %c6_173 = arith.constant 6 : index
    %c0_174 = arith.constant 0 : index
    %535 = vector.load %arg2[%c6_173, %c0_174] : memref<264x160xf32, #tpu.memory_space<vmem>>, vector<1x32xf32>
    %536 = vector.shape_cast %535 : vector<1x32xf32> to vector<1x1x32xf32>
    %537 = vector.broadcast %536 : vector<1x1x32xf32> to vector<9x8x32xf32>
    %538 = arith.mulf %534, %537 : vector<9x8x32xf32>
    %cst_175 = arith.constant dense<0.000000e+00> : vector<9x8xf32>
    %539 = vector.multi_reduction <add>, %538, %cst_175 [2] : vector<9x8x32xf32> to vector<9x8xf32>
    %540 = vector.shape_cast %539 : vector<9x8xf32> to vector<9x8x1xf32>
    %541 = vector.shape_cast %2 : vector<1x1xf32> to vector<1x1x1xf32>
    %542 = vector.broadcast %541 : vector<1x1x1xf32> to vector<9x8x1xf32>
    %543 = arith.addf %540, %542 : vector<9x8x1xf32>
    %cst_176 = arith.constant dense<0xFF800000> : vector<8x1xf32>
    %544 = vector.multi_reduction <maximumf>, %543, %cst_176 [0] : vector<9x8x1xf32> to vector<8x1xf32>
    %545 = vector.shape_cast %544 : vector<8x1xf32> to vector<1x8x1xf32>
    %546 = vector.broadcast %545 : vector<1x8x1xf32> to vector<9x8x1xf32>
    %547 = arith.subf %543, %546 : vector<9x8x1xf32>
    %548 = math.exp %547 : vector<9x8x1xf32>
    %cst_177 = arith.constant dense<0.000000e+00> : vector<8x1xf32>
    %549 = vector.multi_reduction <add>, %548, %cst_177 [0] : vector<9x8x1xf32> to vector<8x1xf32>
    %550 = vector.shape_cast %549 : vector<8x1xf32> to vector<1x8x1xf32>
    %551 = vector.broadcast %550 : vector<1x8x1xf32> to vector<9x8x1xf32>
    %552 = arith.divf %548, %551 : vector<9x8x1xf32>
    %553 = vector.broadcast %552 : vector<9x8x1xf32> to vector<9x8x32xf32>
    %554 = arith.mulf %553, %528 : vector<9x8x32xf32>
    %cst_178 = arith.constant dense<0.000000e+00> : vector<8x32xf32>
    %555 = vector.multi_reduction <add>, %554, %cst_178 [0] : vector<9x8x32xf32> to vector<8x32xf32>
    %c72_179 = arith.constant 72 : index
    %c0_180 = arith.constant 0 : index
    %556 = vector.load %arg2[%c72_179, %c0_180] : memref<264x160xf32, #tpu.memory_space<vmem>>, vector<32x128xf32>
    %cst_181 = arith.constant dense<0.000000e+00> : vector<8x128xf32>
    %557 = tpu.matmul %555, %556, %cst_181 {dimension_numbers = #tpu.dot_dimension_numbers<[1], [0], [0], [1], [0, 0, 1, 1], [], []>} : vector<8x32xf32>, vector<32x128xf32>, vector<8x128xf32> -> vector<8x128xf32>
    %558 = arith.addf %557, %525 : vector<8x128xf32>
    %559 = vector.extract_strided_slice %458 {offsets = [0, 1], sizes = [8, 1], strides = [1, 1]} : vector<8x9xf32> to vector<8x1xf32>
    %c2_182 = arith.constant 2 : index
    %c0_183 = arith.constant 0 : index
    %560 = vector.load %arg2[%c2_182, %c0_183] : memref<264x160xf32, #tpu.memory_space<vmem>>, vector<1x128xf32>
    %561 = vector.broadcast %559 : vector<8x1xf32> to vector<8x128xf32>
    %562 = vector.broadcast %560 : vector<1x128xf32> to vector<8x128xf32>
    %563 = arith.mulf %561, %562 : vector<8x128xf32>
    %564 = arith.addf %558, %563 : vector<8x128xf32>
    %c1_184 = arith.constant 1 : index
    %c0_185 = arith.constant 0 : index
    %565 = vector.load %arg2[%c1_184, %c0_185] : memref<264x160xf32, #tpu.memory_space<vmem>>, vector<1x128xf32>
    %566 = vector.broadcast %565 : vector<1x128xf32> to vector<8x128xf32>
    %567 = arith.addf %564, %566 : vector<8x128xf32>
    %568 = arith.negf %567 : vector<8x128xf32>
    %569 = math.exp %568 : vector<8x128xf32>
    %cst_186 = arith.constant 1.000000e+00 : f32
    %570 = vector.broadcast %cst_186 : f32 to vector<8x128xf32>
    %571 = arith.addf %570, %569 : vector<8x128xf32>
    %572 = arith.divf %570, %571 : vector<8x128xf32>
    %573 = math.tanh %567 : vector<8x128xf32>
    %574 = vector.extract_strided_slice %572 {offsets = [0, 0], sizes = [8, 32], strides = [1, 1]} : vector<8x128xf32> to vector<8x32xf32>
    %575 = vector.extract_strided_slice %572 {offsets = [0, 32], sizes = [8, 32], strides = [1, 1]} : vector<8x128xf32> to vector<8x32xf32>
    %576 = vector.extract_strided_slice %573 {offsets = [0, 64], sizes = [8, 32], strides = [1, 1]} : vector<8x128xf32> to vector<8x32xf32>
    %577 = vector.extract_strided_slice %572 {offsets = [0, 96], sizes = [8, 32], strides = [1, 1]} : vector<8x128xf32> to vector<8x32xf32>
    %578 = arith.mulf %575, %519 : vector<8x32xf32>
    %579 = arith.mulf %574, %576 : vector<8x32xf32>
    %580 = arith.addf %578, %579 : vector<8x32xf32>
    %581 = math.tanh %580 : vector<8x32xf32>
    %582 = arith.mulf %577, %581 : vector<8x32xf32>
    %583 = tpu.concatenate %582, %580 in 1 : vector<8x32xf32>, vector<8x32xf32> -> vector<8x64xf32>
    %c168_187 = arith.constant 168 : index
    %c0_188 = arith.constant 0 : index
    %584 = vector.load %arg2[%c168_187, %c0_188] : memref<264x160xf32, #tpu.memory_space<vmem>>, vector<64x160xf32>
    %cst_189 = arith.constant dense<0.000000e+00> : vector<8x160xf32>
    %585 = tpu.matmul %583, %584, %cst_189 {dimension_numbers = #tpu.dot_dimension_numbers<[1], [0], [0], [1], [0, 0, 1, 1], [], []>} : vector<8x64xf32>, vector<64x160xf32>, vector<8x160xf32> -> vector<8x160xf32>
    %586 = vector.extract_strided_slice %585 {offsets = [0, 0], sizes = [8, 128], strides = [1, 1]} : vector<8x160xf32> to vector<8x128xf32>
    %587 = vector.extract_strided_slice %585 {offsets = [0, 128], sizes = [8, 32], strides = [1, 1]} : vector<8x160xf32> to vector<8x32xf32>
    %c0_190 = arith.constant 0 : index
    %c0_191 = arith.constant 0 : index
    %588 = vector.load %arg4[%c0_190, %c0_191] : memref<72x32xf32, #tpu.memory_space<vmem>>, vector<72x32xf32>
    %589 = vector.shape_cast %588 : vector<72x32xf32> to vector<9x8x32xf32>
    %c0_192 = arith.constant 0 : index
    %c0_193 = arith.constant 0 : index
    %590 = vector.load %arg5[%c0_192, %c0_193] : memref<72x32xf32, #tpu.memory_space<vmem>>, vector<72x32xf32>
    %591 = vector.shape_cast %590 : vector<72x32xf32> to vector<9x8x32xf32>
    %592 = vector.shape_cast %587 : vector<8x32xf32> to vector<1x8x32xf32>
    %593 = vector.broadcast %592 : vector<1x8x32xf32> to vector<9x8x32xf32>
    %594 = arith.addf %591, %593 : vector<9x8x32xf32>
    %595 = math.tanh %594 : vector<9x8x32xf32>
    %c6_194 = arith.constant 6 : index
    %c0_195 = arith.constant 0 : index
    %596 = vector.load %arg2[%c6_194, %c0_195] : memref<264x160xf32, #tpu.memory_space<vmem>>, vector<1x32xf32>
    %597 = vector.shape_cast %596 : vector<1x32xf32> to vector<1x1x32xf32>
    %598 = vector.broadcast %597 : vector<1x1x32xf32> to vector<9x8x32xf32>
    %599 = arith.mulf %595, %598 : vector<9x8x32xf32>
    %cst_196 = arith.constant dense<0.000000e+00> : vector<9x8xf32>
    %600 = vector.multi_reduction <add>, %599, %cst_196 [2] : vector<9x8x32xf32> to vector<9x8xf32>
    %601 = vector.shape_cast %600 : vector<9x8xf32> to vector<9x8x1xf32>
    %602 = vector.shape_cast %2 : vector<1x1xf32> to vector<1x1x1xf32>
    %603 = vector.broadcast %602 : vector<1x1x1xf32> to vector<9x8x1xf32>
    %604 = arith.addf %601, %603 : vector<9x8x1xf32>
    %cst_197 = arith.constant dense<0xFF800000> : vector<8x1xf32>
    %605 = vector.multi_reduction <maximumf>, %604, %cst_197 [0] : vector<9x8x1xf32> to vector<8x1xf32>
    %606 = vector.shape_cast %605 : vector<8x1xf32> to vector<1x8x1xf32>
    %607 = vector.broadcast %606 : vector<1x8x1xf32> to vector<9x8x1xf32>
    %608 = arith.subf %604, %607 : vector<9x8x1xf32>
    %609 = math.exp %608 : vector<9x8x1xf32>
    %cst_198 = arith.constant dense<0.000000e+00> : vector<8x1xf32>
    %610 = vector.multi_reduction <add>, %609, %cst_198 [0] : vector<9x8x1xf32> to vector<8x1xf32>
    %611 = vector.shape_cast %610 : vector<8x1xf32> to vector<1x8x1xf32>
    %612 = vector.broadcast %611 : vector<1x8x1xf32> to vector<9x8x1xf32>
    %613 = arith.divf %609, %612 : vector<9x8x1xf32>
    %614 = vector.broadcast %613 : vector<9x8x1xf32> to vector<9x8x32xf32>
    %615 = arith.mulf %614, %589 : vector<9x8x32xf32>
    %cst_199 = arith.constant dense<0.000000e+00> : vector<8x32xf32>
    %616 = vector.multi_reduction <add>, %615, %cst_199 [0] : vector<9x8x32xf32> to vector<8x32xf32>
    %c72_200 = arith.constant 72 : index
    %c0_201 = arith.constant 0 : index
    %617 = vector.load %arg2[%c72_200, %c0_201] : memref<264x160xf32, #tpu.memory_space<vmem>>, vector<32x128xf32>
    %cst_202 = arith.constant dense<0.000000e+00> : vector<8x128xf32>
    %618 = tpu.matmul %616, %617, %cst_202 {dimension_numbers = #tpu.dot_dimension_numbers<[1], [0], [0], [1], [0, 0, 1, 1], [], []>} : vector<8x32xf32>, vector<32x128xf32>, vector<8x128xf32> -> vector<8x128xf32>
    %619 = arith.addf %618, %586 : vector<8x128xf32>
    %620 = vector.extract_strided_slice %458 {offsets = [0, 2], sizes = [8, 1], strides = [1, 1]} : vector<8x9xf32> to vector<8x1xf32>
    %c2_203 = arith.constant 2 : index
    %c0_204 = arith.constant 0 : index
    %621 = vector.load %arg2[%c2_203, %c0_204] : memref<264x160xf32, #tpu.memory_space<vmem>>, vector<1x128xf32>
    %622 = vector.broadcast %620 : vector<8x1xf32> to vector<8x128xf32>
    %623 = vector.broadcast %621 : vector<1x128xf32> to vector<8x128xf32>
    %624 = arith.mulf %622, %623 : vector<8x128xf32>
    %625 = arith.addf %619, %624 : vector<8x128xf32>
    %c1_205 = arith.constant 1 : index
    %c0_206 = arith.constant 0 : index
    %626 = vector.load %arg2[%c1_205, %c0_206] : memref<264x160xf32, #tpu.memory_space<vmem>>, vector<1x128xf32>
    %627 = vector.broadcast %626 : vector<1x128xf32> to vector<8x128xf32>
    %628 = arith.addf %625, %627 : vector<8x128xf32>
    %629 = arith.negf %628 : vector<8x128xf32>
    %630 = math.exp %629 : vector<8x128xf32>
    %cst_207 = arith.constant 1.000000e+00 : f32
    %631 = vector.broadcast %cst_207 : f32 to vector<8x128xf32>
    %632 = arith.addf %631, %630 : vector<8x128xf32>
    %633 = arith.divf %631, %632 : vector<8x128xf32>
    %634 = math.tanh %628 : vector<8x128xf32>
    %635 = vector.extract_strided_slice %633 {offsets = [0, 0], sizes = [8, 32], strides = [1, 1]} : vector<8x128xf32> to vector<8x32xf32>
    %636 = vector.extract_strided_slice %633 {offsets = [0, 32], sizes = [8, 32], strides = [1, 1]} : vector<8x128xf32> to vector<8x32xf32>
    %637 = vector.extract_strided_slice %634 {offsets = [0, 64], sizes = [8, 32], strides = [1, 1]} : vector<8x128xf32> to vector<8x32xf32>
    %638 = vector.extract_strided_slice %633 {offsets = [0, 96], sizes = [8, 32], strides = [1, 1]} : vector<8x128xf32> to vector<8x32xf32>
    %639 = arith.mulf %636, %580 : vector<8x32xf32>
    %640 = arith.mulf %635, %637 : vector<8x32xf32>
    %641 = arith.addf %639, %640 : vector<8x32xf32>
    %642 = math.tanh %641 : vector<8x32xf32>
    %643 = arith.mulf %638, %642 : vector<8x32xf32>
    %644 = tpu.concatenate %643, %641 in 1 : vector<8x32xf32>, vector<8x32xf32> -> vector<8x64xf32>
    %c168_208 = arith.constant 168 : index
    %c0_209 = arith.constant 0 : index
    %645 = vector.load %arg2[%c168_208, %c0_209] : memref<264x160xf32, #tpu.memory_space<vmem>>, vector<64x160xf32>
    %cst_210 = arith.constant dense<0.000000e+00> : vector<8x160xf32>
    %646 = tpu.matmul %644, %645, %cst_210 {dimension_numbers = #tpu.dot_dimension_numbers<[1], [0], [0], [1], [0, 0, 1, 1], [], []>} : vector<8x64xf32>, vector<64x160xf32>, vector<8x160xf32> -> vector<8x160xf32>
    %647 = vector.extract_strided_slice %646 {offsets = [0, 0], sizes = [8, 128], strides = [1, 1]} : vector<8x160xf32> to vector<8x128xf32>
    %648 = vector.extract_strided_slice %646 {offsets = [0, 128], sizes = [8, 32], strides = [1, 1]} : vector<8x160xf32> to vector<8x32xf32>
    %c0_211 = arith.constant 0 : index
    %c0_212 = arith.constant 0 : index
    %649 = vector.load %arg4[%c0_211, %c0_212] : memref<72x32xf32, #tpu.memory_space<vmem>>, vector<72x32xf32>
    %650 = vector.shape_cast %649 : vector<72x32xf32> to vector<9x8x32xf32>
    %c0_213 = arith.constant 0 : index
    %c0_214 = arith.constant 0 : index
    %651 = vector.load %arg5[%c0_213, %c0_214] : memref<72x32xf32, #tpu.memory_space<vmem>>, vector<72x32xf32>
    %652 = vector.shape_cast %651 : vector<72x32xf32> to vector<9x8x32xf32>
    %653 = vector.shape_cast %648 : vector<8x32xf32> to vector<1x8x32xf32>
    %654 = vector.broadcast %653 : vector<1x8x32xf32> to vector<9x8x32xf32>
    %655 = arith.addf %652, %654 : vector<9x8x32xf32>
    %656 = math.tanh %655 : vector<9x8x32xf32>
    %c6_215 = arith.constant 6 : index
    %c0_216 = arith.constant 0 : index
    %657 = vector.load %arg2[%c6_215, %c0_216] : memref<264x160xf32, #tpu.memory_space<vmem>>, vector<1x32xf32>
    %658 = vector.shape_cast %657 : vector<1x32xf32> to vector<1x1x32xf32>
    %659 = vector.broadcast %658 : vector<1x1x32xf32> to vector<9x8x32xf32>
    %660 = arith.mulf %656, %659 : vector<9x8x32xf32>
    %cst_217 = arith.constant dense<0.000000e+00> : vector<9x8xf32>
    %661 = vector.multi_reduction <add>, %660, %cst_217 [2] : vector<9x8x32xf32> to vector<9x8xf32>
    %662 = vector.shape_cast %661 : vector<9x8xf32> to vector<9x8x1xf32>
    %663 = vector.shape_cast %2 : vector<1x1xf32> to vector<1x1x1xf32>
    %664 = vector.broadcast %663 : vector<1x1x1xf32> to vector<9x8x1xf32>
    %665 = arith.addf %662, %664 : vector<9x8x1xf32>
    %cst_218 = arith.constant dense<0xFF800000> : vector<8x1xf32>
    %666 = vector.multi_reduction <maximumf>, %665, %cst_218 [0] : vector<9x8x1xf32> to vector<8x1xf32>
    %667 = vector.shape_cast %666 : vector<8x1xf32> to vector<1x8x1xf32>
    %668 = vector.broadcast %667 : vector<1x8x1xf32> to vector<9x8x1xf32>
    %669 = arith.subf %665, %668 : vector<9x8x1xf32>
    %670 = math.exp %669 : vector<9x8x1xf32>
    %cst_219 = arith.constant dense<0.000000e+00> : vector<8x1xf32>
    %671 = vector.multi_reduction <add>, %670, %cst_219 [0] : vector<9x8x1xf32> to vector<8x1xf32>
    %672 = vector.shape_cast %671 : vector<8x1xf32> to vector<1x8x1xf32>
    %673 = vector.broadcast %672 : vector<1x8x1xf32> to vector<9x8x1xf32>
    %674 = arith.divf %670, %673 : vector<9x8x1xf32>
    %675 = vector.broadcast %674 : vector<9x8x1xf32> to vector<9x8x32xf32>
    %676 = arith.mulf %675, %650 : vector<9x8x32xf32>
    %cst_220 = arith.constant dense<0.000000e+00> : vector<8x32xf32>
    %677 = vector.multi_reduction <add>, %676, %cst_220 [0] : vector<9x8x32xf32> to vector<8x32xf32>
    %c72_221 = arith.constant 72 : index
    %c0_222 = arith.constant 0 : index
    %678 = vector.load %arg2[%c72_221, %c0_222] : memref<264x160xf32, #tpu.memory_space<vmem>>, vector<32x128xf32>
    %cst_223 = arith.constant dense<0.000000e+00> : vector<8x128xf32>
    %679 = tpu.matmul %677, %678, %cst_223 {dimension_numbers = #tpu.dot_dimension_numbers<[1], [0], [0], [1], [0, 0, 1, 1], [], []>} : vector<8x32xf32>, vector<32x128xf32>, vector<8x128xf32> -> vector<8x128xf32>
    %680 = arith.addf %679, %647 : vector<8x128xf32>
    %681 = vector.extract_strided_slice %458 {offsets = [0, 3], sizes = [8, 1], strides = [1, 1]} : vector<8x9xf32> to vector<8x1xf32>
    %c2_224 = arith.constant 2 : index
    %c0_225 = arith.constant 0 : index
    %682 = vector.load %arg2[%c2_224, %c0_225] : memref<264x160xf32, #tpu.memory_space<vmem>>, vector<1x128xf32>
    %683 = vector.broadcast %681 : vector<8x1xf32> to vector<8x128xf32>
    %684 = vector.broadcast %682 : vector<1x128xf32> to vector<8x128xf32>
    %685 = arith.mulf %683, %684 : vector<8x128xf32>
    %686 = arith.addf %680, %685 : vector<8x128xf32>
    %c1_226 = arith.constant 1 : index
    %c0_227 = arith.constant 0 : index
    %687 = vector.load %arg2[%c1_226, %c0_227] : memref<264x160xf32, #tpu.memory_space<vmem>>, vector<1x128xf32>
    %688 = vector.broadcast %687 : vector<1x128xf32> to vector<8x128xf32>
    %689 = arith.addf %686, %688 : vector<8x128xf32>
    %690 = arith.negf %689 : vector<8x128xf32>
    %691 = math.exp %690 : vector<8x128xf32>
    %cst_228 = arith.constant 1.000000e+00 : f32
    %692 = vector.broadcast %cst_228 : f32 to vector<8x128xf32>
    %693 = arith.addf %692, %691 : vector<8x128xf32>
    %694 = arith.divf %692, %693 : vector<8x128xf32>
    %695 = math.tanh %689 : vector<8x128xf32>
    %696 = vector.extract_strided_slice %694 {offsets = [0, 0], sizes = [8, 32], strides = [1, 1]} : vector<8x128xf32> to vector<8x32xf32>
    %697 = vector.extract_strided_slice %694 {offsets = [0, 32], sizes = [8, 32], strides = [1, 1]} : vector<8x128xf32> to vector<8x32xf32>
    %698 = vector.extract_strided_slice %695 {offsets = [0, 64], sizes = [8, 32], strides = [1, 1]} : vector<8x128xf32> to vector<8x32xf32>
    %699 = vector.extract_strided_slice %694 {offsets = [0, 96], sizes = [8, 32], strides = [1, 1]} : vector<8x128xf32> to vector<8x32xf32>
    %700 = arith.mulf %697, %641 : vector<8x32xf32>
    %701 = arith.mulf %696, %698 : vector<8x32xf32>
    %702 = arith.addf %700, %701 : vector<8x32xf32>
    %703 = math.tanh %702 : vector<8x32xf32>
    %704 = arith.mulf %699, %703 : vector<8x32xf32>
    %705 = tpu.concatenate %704, %702 in 1 : vector<8x32xf32>, vector<8x32xf32> -> vector<8x64xf32>
    %c168_229 = arith.constant 168 : index
    %c0_230 = arith.constant 0 : index
    %706 = vector.load %arg2[%c168_229, %c0_230] : memref<264x160xf32, #tpu.memory_space<vmem>>, vector<64x160xf32>
    %cst_231 = arith.constant dense<0.000000e+00> : vector<8x160xf32>
    %707 = tpu.matmul %705, %706, %cst_231 {dimension_numbers = #tpu.dot_dimension_numbers<[1], [0], [0], [1], [0, 0, 1, 1], [], []>} : vector<8x64xf32>, vector<64x160xf32>, vector<8x160xf32> -> vector<8x160xf32>
    %708 = vector.extract_strided_slice %707 {offsets = [0, 0], sizes = [8, 128], strides = [1, 1]} : vector<8x160xf32> to vector<8x128xf32>
    %709 = vector.extract_strided_slice %707 {offsets = [0, 128], sizes = [8, 32], strides = [1, 1]} : vector<8x160xf32> to vector<8x32xf32>
    %c0_232 = arith.constant 0 : index
    %c0_233 = arith.constant 0 : index
    %710 = vector.load %arg4[%c0_232, %c0_233] : memref<72x32xf32, #tpu.memory_space<vmem>>, vector<72x32xf32>
    %711 = vector.shape_cast %710 : vector<72x32xf32> to vector<9x8x32xf32>
    %c0_234 = arith.constant 0 : index
    %c0_235 = arith.constant 0 : index
    %712 = vector.load %arg5[%c0_234, %c0_235] : memref<72x32xf32, #tpu.memory_space<vmem>>, vector<72x32xf32>
    %713 = vector.shape_cast %712 : vector<72x32xf32> to vector<9x8x32xf32>
    %714 = vector.shape_cast %709 : vector<8x32xf32> to vector<1x8x32xf32>
    %715 = vector.broadcast %714 : vector<1x8x32xf32> to vector<9x8x32xf32>
    %716 = arith.addf %713, %715 : vector<9x8x32xf32>
    %717 = math.tanh %716 : vector<9x8x32xf32>
    %c6_236 = arith.constant 6 : index
    %c0_237 = arith.constant 0 : index
    %718 = vector.load %arg2[%c6_236, %c0_237] : memref<264x160xf32, #tpu.memory_space<vmem>>, vector<1x32xf32>
    %719 = vector.shape_cast %718 : vector<1x32xf32> to vector<1x1x32xf32>
    %720 = vector.broadcast %719 : vector<1x1x32xf32> to vector<9x8x32xf32>
    %721 = arith.mulf %717, %720 : vector<9x8x32xf32>
    %cst_238 = arith.constant dense<0.000000e+00> : vector<9x8xf32>
    %722 = vector.multi_reduction <add>, %721, %cst_238 [2] : vector<9x8x32xf32> to vector<9x8xf32>
    %723 = vector.shape_cast %722 : vector<9x8xf32> to vector<9x8x1xf32>
    %724 = vector.shape_cast %2 : vector<1x1xf32> to vector<1x1x1xf32>
    %725 = vector.broadcast %724 : vector<1x1x1xf32> to vector<9x8x1xf32>
    %726 = arith.addf %723, %725 : vector<9x8x1xf32>
    %cst_239 = arith.constant dense<0xFF800000> : vector<8x1xf32>
    %727 = vector.multi_reduction <maximumf>, %726, %cst_239 [0] : vector<9x8x1xf32> to vector<8x1xf32>
    %728 = vector.shape_cast %727 : vector<8x1xf32> to vector<1x8x1xf32>
    %729 = vector.broadcast %728 : vector<1x8x1xf32> to vector<9x8x1xf32>
    %730 = arith.subf %726, %729 : vector<9x8x1xf32>
    %731 = math.exp %730 : vector<9x8x1xf32>
    %cst_240 = arith.constant dense<0.000000e+00> : vector<8x1xf32>
    %732 = vector.multi_reduction <add>, %731, %cst_240 [0] : vector<9x8x1xf32> to vector<8x1xf32>
    %733 = vector.shape_cast %732 : vector<8x1xf32> to vector<1x8x1xf32>
    %734 = vector.broadcast %733 : vector<1x8x1xf32> to vector<9x8x1xf32>
    %735 = arith.divf %731, %734 : vector<9x8x1xf32>
    %736 = vector.broadcast %735 : vector<9x8x1xf32> to vector<9x8x32xf32>
    %737 = arith.mulf %736, %711 : vector<9x8x32xf32>
    %cst_241 = arith.constant dense<0.000000e+00> : vector<8x32xf32>
    %738 = vector.multi_reduction <add>, %737, %cst_241 [0] : vector<9x8x32xf32> to vector<8x32xf32>
    %c72_242 = arith.constant 72 : index
    %c0_243 = arith.constant 0 : index
    %739 = vector.load %arg2[%c72_242, %c0_243] : memref<264x160xf32, #tpu.memory_space<vmem>>, vector<32x128xf32>
    %cst_244 = arith.constant dense<0.000000e+00> : vector<8x128xf32>
    %740 = tpu.matmul %738, %739, %cst_244 {dimension_numbers = #tpu.dot_dimension_numbers<[1], [0], [0], [1], [0, 0, 1, 1], [], []>} : vector<8x32xf32>, vector<32x128xf32>, vector<8x128xf32> -> vector<8x128xf32>
    %741 = arith.addf %740, %708 : vector<8x128xf32>
    %742 = vector.extract_strided_slice %458 {offsets = [0, 4], sizes = [8, 1], strides = [1, 1]} : vector<8x9xf32> to vector<8x1xf32>
    %c2_245 = arith.constant 2 : index
    %c0_246 = arith.constant 0 : index
    %743 = vector.load %arg2[%c2_245, %c0_246] : memref<264x160xf32, #tpu.memory_space<vmem>>, vector<1x128xf32>
    %744 = vector.broadcast %742 : vector<8x1xf32> to vector<8x128xf32>
    %745 = vector.broadcast %743 : vector<1x128xf32> to vector<8x128xf32>
    %746 = arith.mulf %744, %745 : vector<8x128xf32>
    %747 = arith.addf %741, %746 : vector<8x128xf32>
    %c1_247 = arith.constant 1 : index
    %c0_248 = arith.constant 0 : index
    %748 = vector.load %arg2[%c1_247, %c0_248] : memref<264x160xf32, #tpu.memory_space<vmem>>, vector<1x128xf32>
    %749 = vector.broadcast %748 : vector<1x128xf32> to vector<8x128xf32>
    %750 = arith.addf %747, %749 : vector<8x128xf32>
    %751 = arith.negf %750 : vector<8x128xf32>
    %752 = math.exp %751 : vector<8x128xf32>
    %cst_249 = arith.constant 1.000000e+00 : f32
    %753 = vector.broadcast %cst_249 : f32 to vector<8x128xf32>
    %754 = arith.addf %753, %752 : vector<8x128xf32>
    %755 = arith.divf %753, %754 : vector<8x128xf32>
    %756 = math.tanh %750 : vector<8x128xf32>
    %757 = vector.extract_strided_slice %755 {offsets = [0, 0], sizes = [8, 32], strides = [1, 1]} : vector<8x128xf32> to vector<8x32xf32>
    %758 = vector.extract_strided_slice %755 {offsets = [0, 32], sizes = [8, 32], strides = [1, 1]} : vector<8x128xf32> to vector<8x32xf32>
    %759 = vector.extract_strided_slice %756 {offsets = [0, 64], sizes = [8, 32], strides = [1, 1]} : vector<8x128xf32> to vector<8x32xf32>
    %760 = vector.extract_strided_slice %755 {offsets = [0, 96], sizes = [8, 32], strides = [1, 1]} : vector<8x128xf32> to vector<8x32xf32>
    %761 = arith.mulf %758, %702 : vector<8x32xf32>
    %762 = arith.mulf %757, %759 : vector<8x32xf32>
    %763 = arith.addf %761, %762 : vector<8x32xf32>
    %764 = math.tanh %763 : vector<8x32xf32>
    %765 = arith.mulf %760, %764 : vector<8x32xf32>
    %766 = tpu.concatenate %765, %763 in 1 : vector<8x32xf32>, vector<8x32xf32> -> vector<8x64xf32>
    %c168_250 = arith.constant 168 : index
    %c0_251 = arith.constant 0 : index
    %767 = vector.load %arg2[%c168_250, %c0_251] : memref<264x160xf32, #tpu.memory_space<vmem>>, vector<64x160xf32>
    %cst_252 = arith.constant dense<0.000000e+00> : vector<8x160xf32>
    %768 = tpu.matmul %766, %767, %cst_252 {dimension_numbers = #tpu.dot_dimension_numbers<[1], [0], [0], [1], [0, 0, 1, 1], [], []>} : vector<8x64xf32>, vector<64x160xf32>, vector<8x160xf32> -> vector<8x160xf32>
    %769 = vector.extract_strided_slice %768 {offsets = [0, 0], sizes = [8, 128], strides = [1, 1]} : vector<8x160xf32> to vector<8x128xf32>
    %770 = vector.extract_strided_slice %768 {offsets = [0, 128], sizes = [8, 32], strides = [1, 1]} : vector<8x160xf32> to vector<8x32xf32>
    %c0_253 = arith.constant 0 : index
    %c0_254 = arith.constant 0 : index
    %771 = vector.load %arg4[%c0_253, %c0_254] : memref<72x32xf32, #tpu.memory_space<vmem>>, vector<72x32xf32>
    %772 = vector.shape_cast %771 : vector<72x32xf32> to vector<9x8x32xf32>
    %c0_255 = arith.constant 0 : index
    %c0_256 = arith.constant 0 : index
    %773 = vector.load %arg5[%c0_255, %c0_256] : memref<72x32xf32, #tpu.memory_space<vmem>>, vector<72x32xf32>
    %774 = vector.shape_cast %773 : vector<72x32xf32> to vector<9x8x32xf32>
    %775 = vector.shape_cast %770 : vector<8x32xf32> to vector<1x8x32xf32>
    %776 = vector.broadcast %775 : vector<1x8x32xf32> to vector<9x8x32xf32>
    %777 = arith.addf %774, %776 : vector<9x8x32xf32>
    %778 = math.tanh %777 : vector<9x8x32xf32>
    %c6_257 = arith.constant 6 : index
    %c0_258 = arith.constant 0 : index
    %779 = vector.load %arg2[%c6_257, %c0_258] : memref<264x160xf32, #tpu.memory_space<vmem>>, vector<1x32xf32>
    %780 = vector.shape_cast %779 : vector<1x32xf32> to vector<1x1x32xf32>
    %781 = vector.broadcast %780 : vector<1x1x32xf32> to vector<9x8x32xf32>
    %782 = arith.mulf %778, %781 : vector<9x8x32xf32>
    %cst_259 = arith.constant dense<0.000000e+00> : vector<9x8xf32>
    %783 = vector.multi_reduction <add>, %782, %cst_259 [2] : vector<9x8x32xf32> to vector<9x8xf32>
    %784 = vector.shape_cast %783 : vector<9x8xf32> to vector<9x8x1xf32>
    %785 = vector.shape_cast %2 : vector<1x1xf32> to vector<1x1x1xf32>
    %786 = vector.broadcast %785 : vector<1x1x1xf32> to vector<9x8x1xf32>
    %787 = arith.addf %784, %786 : vector<9x8x1xf32>
    %cst_260 = arith.constant dense<0xFF800000> : vector<8x1xf32>
    %788 = vector.multi_reduction <maximumf>, %787, %cst_260 [0] : vector<9x8x1xf32> to vector<8x1xf32>
    %789 = vector.shape_cast %788 : vector<8x1xf32> to vector<1x8x1xf32>
    %790 = vector.broadcast %789 : vector<1x8x1xf32> to vector<9x8x1xf32>
    %791 = arith.subf %787, %790 : vector<9x8x1xf32>
    %792 = math.exp %791 : vector<9x8x1xf32>
    %cst_261 = arith.constant dense<0.000000e+00> : vector<8x1xf32>
    %793 = vector.multi_reduction <add>, %792, %cst_261 [0] : vector<9x8x1xf32> to vector<8x1xf32>
    %794 = vector.shape_cast %793 : vector<8x1xf32> to vector<1x8x1xf32>
    %795 = vector.broadcast %794 : vector<1x8x1xf32> to vector<9x8x1xf32>
    %796 = arith.divf %792, %795 : vector<9x8x1xf32>
    %797 = vector.broadcast %796 : vector<9x8x1xf32> to vector<9x8x32xf32>
    %798 = arith.mulf %797, %772 : vector<9x8x32xf32>
    %cst_262 = arith.constant dense<0.000000e+00> : vector<8x32xf32>
    %799 = vector.multi_reduction <add>, %798, %cst_262 [0] : vector<9x8x32xf32> to vector<8x32xf32>
    %c72_263 = arith.constant 72 : index
    %c0_264 = arith.constant 0 : index
    %800 = vector.load %arg2[%c72_263, %c0_264] : memref<264x160xf32, #tpu.memory_space<vmem>>, vector<32x128xf32>
    %cst_265 = arith.constant dense<0.000000e+00> : vector<8x128xf32>
    %801 = tpu.matmul %799, %800, %cst_265 {dimension_numbers = #tpu.dot_dimension_numbers<[1], [0], [0], [1], [0, 0, 1, 1], [], []>} : vector<8x32xf32>, vector<32x128xf32>, vector<8x128xf32> -> vector<8x128xf32>
    %802 = arith.addf %801, %769 : vector<8x128xf32>
    %803 = vector.extract_strided_slice %458 {offsets = [0, 5], sizes = [8, 1], strides = [1, 1]} : vector<8x9xf32> to vector<8x1xf32>
    %c2_266 = arith.constant 2 : index
    %c0_267 = arith.constant 0 : index
    %804 = vector.load %arg2[%c2_266, %c0_267] : memref<264x160xf32, #tpu.memory_space<vmem>>, vector<1x128xf32>
    %805 = vector.broadcast %803 : vector<8x1xf32> to vector<8x128xf32>
    %806 = vector.broadcast %804 : vector<1x128xf32> to vector<8x128xf32>
    %807 = arith.mulf %805, %806 : vector<8x128xf32>
    %808 = arith.addf %802, %807 : vector<8x128xf32>
    %c1_268 = arith.constant 1 : index
    %c0_269 = arith.constant 0 : index
    %809 = vector.load %arg2[%c1_268, %c0_269] : memref<264x160xf32, #tpu.memory_space<vmem>>, vector<1x128xf32>
    %810 = vector.broadcast %809 : vector<1x128xf32> to vector<8x128xf32>
    %811 = arith.addf %808, %810 : vector<8x128xf32>
    %812 = arith.negf %811 : vector<8x128xf32>
    %813 = math.exp %812 : vector<8x128xf32>
    %cst_270 = arith.constant 1.000000e+00 : f32
    %814 = vector.broadcast %cst_270 : f32 to vector<8x128xf32>
    %815 = arith.addf %814, %813 : vector<8x128xf32>
    %816 = arith.divf %814, %815 : vector<8x128xf32>
    %817 = math.tanh %811 : vector<8x128xf32>
    %818 = vector.extract_strided_slice %816 {offsets = [0, 0], sizes = [8, 32], strides = [1, 1]} : vector<8x128xf32> to vector<8x32xf32>
    %819 = vector.extract_strided_slice %816 {offsets = [0, 32], sizes = [8, 32], strides = [1, 1]} : vector<8x128xf32> to vector<8x32xf32>
    %820 = vector.extract_strided_slice %817 {offsets = [0, 64], sizes = [8, 32], strides = [1, 1]} : vector<8x128xf32> to vector<8x32xf32>
    %821 = vector.extract_strided_slice %816 {offsets = [0, 96], sizes = [8, 32], strides = [1, 1]} : vector<8x128xf32> to vector<8x32xf32>
    %822 = arith.mulf %819, %763 : vector<8x32xf32>
    %823 = arith.mulf %818, %820 : vector<8x32xf32>
    %824 = arith.addf %822, %823 : vector<8x32xf32>
    %825 = math.tanh %824 : vector<8x32xf32>
    %826 = arith.mulf %821, %825 : vector<8x32xf32>
    %827 = tpu.concatenate %826, %824 in 1 : vector<8x32xf32>, vector<8x32xf32> -> vector<8x64xf32>
    %c168_271 = arith.constant 168 : index
    %c0_272 = arith.constant 0 : index
    %828 = vector.load %arg2[%c168_271, %c0_272] : memref<264x160xf32, #tpu.memory_space<vmem>>, vector<64x160xf32>
    %cst_273 = arith.constant dense<0.000000e+00> : vector<8x160xf32>
    %829 = tpu.matmul %827, %828, %cst_273 {dimension_numbers = #tpu.dot_dimension_numbers<[1], [0], [0], [1], [0, 0, 1, 1], [], []>} : vector<8x64xf32>, vector<64x160xf32>, vector<8x160xf32> -> vector<8x160xf32>
    %830 = vector.extract_strided_slice %829 {offsets = [0, 0], sizes = [8, 128], strides = [1, 1]} : vector<8x160xf32> to vector<8x128xf32>
    %831 = vector.extract_strided_slice %829 {offsets = [0, 128], sizes = [8, 32], strides = [1, 1]} : vector<8x160xf32> to vector<8x32xf32>
    %c0_274 = arith.constant 0 : index
    %c0_275 = arith.constant 0 : index
    %832 = vector.load %arg4[%c0_274, %c0_275] : memref<72x32xf32, #tpu.memory_space<vmem>>, vector<72x32xf32>
    %833 = vector.shape_cast %832 : vector<72x32xf32> to vector<9x8x32xf32>
    %c0_276 = arith.constant 0 : index
    %c0_277 = arith.constant 0 : index
    %834 = vector.load %arg5[%c0_276, %c0_277] : memref<72x32xf32, #tpu.memory_space<vmem>>, vector<72x32xf32>
    %835 = vector.shape_cast %834 : vector<72x32xf32> to vector<9x8x32xf32>
    %836 = vector.shape_cast %831 : vector<8x32xf32> to vector<1x8x32xf32>
    %837 = vector.broadcast %836 : vector<1x8x32xf32> to vector<9x8x32xf32>
    %838 = arith.addf %835, %837 : vector<9x8x32xf32>
    %839 = math.tanh %838 : vector<9x8x32xf32>
    %c6_278 = arith.constant 6 : index
    %c0_279 = arith.constant 0 : index
    %840 = vector.load %arg2[%c6_278, %c0_279] : memref<264x160xf32, #tpu.memory_space<vmem>>, vector<1x32xf32>
    %841 = vector.shape_cast %840 : vector<1x32xf32> to vector<1x1x32xf32>
    %842 = vector.broadcast %841 : vector<1x1x32xf32> to vector<9x8x32xf32>
    %843 = arith.mulf %839, %842 : vector<9x8x32xf32>
    %cst_280 = arith.constant dense<0.000000e+00> : vector<9x8xf32>
    %844 = vector.multi_reduction <add>, %843, %cst_280 [2] : vector<9x8x32xf32> to vector<9x8xf32>
    %845 = vector.shape_cast %844 : vector<9x8xf32> to vector<9x8x1xf32>
    %846 = vector.shape_cast %2 : vector<1x1xf32> to vector<1x1x1xf32>
    %847 = vector.broadcast %846 : vector<1x1x1xf32> to vector<9x8x1xf32>
    %848 = arith.addf %845, %847 : vector<9x8x1xf32>
    %cst_281 = arith.constant dense<0xFF800000> : vector<8x1xf32>
    %849 = vector.multi_reduction <maximumf>, %848, %cst_281 [0] : vector<9x8x1xf32> to vector<8x1xf32>
    %850 = vector.shape_cast %849 : vector<8x1xf32> to vector<1x8x1xf32>
    %851 = vector.broadcast %850 : vector<1x8x1xf32> to vector<9x8x1xf32>
    %852 = arith.subf %848, %851 : vector<9x8x1xf32>
    %853 = math.exp %852 : vector<9x8x1xf32>
    %cst_282 = arith.constant dense<0.000000e+00> : vector<8x1xf32>
    %854 = vector.multi_reduction <add>, %853, %cst_282 [0] : vector<9x8x1xf32> to vector<8x1xf32>
    %855 = vector.shape_cast %854 : vector<8x1xf32> to vector<1x8x1xf32>
    %856 = vector.broadcast %855 : vector<1x8x1xf32> to vector<9x8x1xf32>
    %857 = arith.divf %853, %856 : vector<9x8x1xf32>
    %858 = vector.broadcast %857 : vector<9x8x1xf32> to vector<9x8x32xf32>
    %859 = arith.mulf %858, %833 : vector<9x8x32xf32>
    %cst_283 = arith.constant dense<0.000000e+00> : vector<8x32xf32>
    %860 = vector.multi_reduction <add>, %859, %cst_283 [0] : vector<9x8x32xf32> to vector<8x32xf32>
    %c72_284 = arith.constant 72 : index
    %c0_285 = arith.constant 0 : index
    %861 = vector.load %arg2[%c72_284, %c0_285] : memref<264x160xf32, #tpu.memory_space<vmem>>, vector<32x128xf32>
    %cst_286 = arith.constant dense<0.000000e+00> : vector<8x128xf32>
    %862 = tpu.matmul %860, %861, %cst_286 {dimension_numbers = #tpu.dot_dimension_numbers<[1], [0], [0], [1], [0, 0, 1, 1], [], []>} : vector<8x32xf32>, vector<32x128xf32>, vector<8x128xf32> -> vector<8x128xf32>
    %863 = arith.addf %862, %830 : vector<8x128xf32>
    %864 = vector.extract_strided_slice %458 {offsets = [0, 6], sizes = [8, 1], strides = [1, 1]} : vector<8x9xf32> to vector<8x1xf32>
    %c2_287 = arith.constant 2 : index
    %c0_288 = arith.constant 0 : index
    %865 = vector.load %arg2[%c2_287, %c0_288] : memref<264x160xf32, #tpu.memory_space<vmem>>, vector<1x128xf32>
    %866 = vector.broadcast %864 : vector<8x1xf32> to vector<8x128xf32>
    %867 = vector.broadcast %865 : vector<1x128xf32> to vector<8x128xf32>
    %868 = arith.mulf %866, %867 : vector<8x128xf32>
    %869 = arith.addf %863, %868 : vector<8x128xf32>
    %c1_289 = arith.constant 1 : index
    %c0_290 = arith.constant 0 : index
    %870 = vector.load %arg2[%c1_289, %c0_290] : memref<264x160xf32, #tpu.memory_space<vmem>>, vector<1x128xf32>
    %871 = vector.broadcast %870 : vector<1x128xf32> to vector<8x128xf32>
    %872 = arith.addf %869, %871 : vector<8x128xf32>
    %873 = arith.negf %872 : vector<8x128xf32>
    %874 = math.exp %873 : vector<8x128xf32>
    %cst_291 = arith.constant 1.000000e+00 : f32
    %875 = vector.broadcast %cst_291 : f32 to vector<8x128xf32>
    %876 = arith.addf %875, %874 : vector<8x128xf32>
    %877 = arith.divf %875, %876 : vector<8x128xf32>
    %878 = math.tanh %872 : vector<8x128xf32>
    %879 = vector.extract_strided_slice %877 {offsets = [0, 0], sizes = [8, 32], strides = [1, 1]} : vector<8x128xf32> to vector<8x32xf32>
    %880 = vector.extract_strided_slice %877 {offsets = [0, 32], sizes = [8, 32], strides = [1, 1]} : vector<8x128xf32> to vector<8x32xf32>
    %881 = vector.extract_strided_slice %878 {offsets = [0, 64], sizes = [8, 32], strides = [1, 1]} : vector<8x128xf32> to vector<8x32xf32>
    %882 = vector.extract_strided_slice %877 {offsets = [0, 96], sizes = [8, 32], strides = [1, 1]} : vector<8x128xf32> to vector<8x32xf32>
    %883 = arith.mulf %880, %824 : vector<8x32xf32>
    %884 = arith.mulf %879, %881 : vector<8x32xf32>
    %885 = arith.addf %883, %884 : vector<8x32xf32>
    %886 = math.tanh %885 : vector<8x32xf32>
    %887 = arith.mulf %882, %886 : vector<8x32xf32>
    %888 = tpu.concatenate %887, %885 in 1 : vector<8x32xf32>, vector<8x32xf32> -> vector<8x64xf32>
    %c168_292 = arith.constant 168 : index
    %c0_293 = arith.constant 0 : index
    %889 = vector.load %arg2[%c168_292, %c0_293] : memref<264x160xf32, #tpu.memory_space<vmem>>, vector<64x160xf32>
    %cst_294 = arith.constant dense<0.000000e+00> : vector<8x160xf32>
    %890 = tpu.matmul %888, %889, %cst_294 {dimension_numbers = #tpu.dot_dimension_numbers<[1], [0], [0], [1], [0, 0, 1, 1], [], []>} : vector<8x64xf32>, vector<64x160xf32>, vector<8x160xf32> -> vector<8x160xf32>
    %891 = vector.extract_strided_slice %890 {offsets = [0, 0], sizes = [8, 128], strides = [1, 1]} : vector<8x160xf32> to vector<8x128xf32>
    %892 = vector.extract_strided_slice %890 {offsets = [0, 128], sizes = [8, 32], strides = [1, 1]} : vector<8x160xf32> to vector<8x32xf32>
    %c0_295 = arith.constant 0 : index
    %c0_296 = arith.constant 0 : index
    %893 = vector.load %arg4[%c0_295, %c0_296] : memref<72x32xf32, #tpu.memory_space<vmem>>, vector<72x32xf32>
    %894 = vector.shape_cast %893 : vector<72x32xf32> to vector<9x8x32xf32>
    %c0_297 = arith.constant 0 : index
    %c0_298 = arith.constant 0 : index
    %895 = vector.load %arg5[%c0_297, %c0_298] : memref<72x32xf32, #tpu.memory_space<vmem>>, vector<72x32xf32>
    %896 = vector.shape_cast %895 : vector<72x32xf32> to vector<9x8x32xf32>
    %897 = vector.shape_cast %892 : vector<8x32xf32> to vector<1x8x32xf32>
    %898 = vector.broadcast %897 : vector<1x8x32xf32> to vector<9x8x32xf32>
    %899 = arith.addf %896, %898 : vector<9x8x32xf32>
    %900 = math.tanh %899 : vector<9x8x32xf32>
    %c6_299 = arith.constant 6 : index
    %c0_300 = arith.constant 0 : index
    %901 = vector.load %arg2[%c6_299, %c0_300] : memref<264x160xf32, #tpu.memory_space<vmem>>, vector<1x32xf32>
    %902 = vector.shape_cast %901 : vector<1x32xf32> to vector<1x1x32xf32>
    %903 = vector.broadcast %902 : vector<1x1x32xf32> to vector<9x8x32xf32>
    %904 = arith.mulf %900, %903 : vector<9x8x32xf32>
    %cst_301 = arith.constant dense<0.000000e+00> : vector<9x8xf32>
    %905 = vector.multi_reduction <add>, %904, %cst_301 [2] : vector<9x8x32xf32> to vector<9x8xf32>
    %906 = vector.shape_cast %905 : vector<9x8xf32> to vector<9x8x1xf32>
    %907 = vector.shape_cast %2 : vector<1x1xf32> to vector<1x1x1xf32>
    %908 = vector.broadcast %907 : vector<1x1x1xf32> to vector<9x8x1xf32>
    %909 = arith.addf %906, %908 : vector<9x8x1xf32>
    %cst_302 = arith.constant dense<0xFF800000> : vector<8x1xf32>
    %910 = vector.multi_reduction <maximumf>, %909, %cst_302 [0] : vector<9x8x1xf32> to vector<8x1xf32>
    %911 = vector.shape_cast %910 : vector<8x1xf32> to vector<1x8x1xf32>
    %912 = vector.broadcast %911 : vector<1x8x1xf32> to vector<9x8x1xf32>
    %913 = arith.subf %909, %912 : vector<9x8x1xf32>
    %914 = math.exp %913 : vector<9x8x1xf32>
    %cst_303 = arith.constant dense<0.000000e+00> : vector<8x1xf32>
    %915 = vector.multi_reduction <add>, %914, %cst_303 [0] : vector<9x8x1xf32> to vector<8x1xf32>
    %916 = vector.shape_cast %915 : vector<8x1xf32> to vector<1x8x1xf32>
    %917 = vector.broadcast %916 : vector<1x8x1xf32> to vector<9x8x1xf32>
    %918 = arith.divf %914, %917 : vector<9x8x1xf32>
    %919 = vector.broadcast %918 : vector<9x8x1xf32> to vector<9x8x32xf32>
    %920 = arith.mulf %919, %894 : vector<9x8x32xf32>
    %cst_304 = arith.constant dense<0.000000e+00> : vector<8x32xf32>
    %921 = vector.multi_reduction <add>, %920, %cst_304 [0] : vector<9x8x32xf32> to vector<8x32xf32>
    %c72_305 = arith.constant 72 : index
    %c0_306 = arith.constant 0 : index
    %922 = vector.load %arg2[%c72_305, %c0_306] : memref<264x160xf32, #tpu.memory_space<vmem>>, vector<32x128xf32>
    %cst_307 = arith.constant dense<0.000000e+00> : vector<8x128xf32>
    %923 = tpu.matmul %921, %922, %cst_307 {dimension_numbers = #tpu.dot_dimension_numbers<[1], [0], [0], [1], [0, 0, 1, 1], [], []>} : vector<8x32xf32>, vector<32x128xf32>, vector<8x128xf32> -> vector<8x128xf32>
    %924 = arith.addf %923, %891 : vector<8x128xf32>
    %925 = vector.extract_strided_slice %458 {offsets = [0, 7], sizes = [8, 1], strides = [1, 1]} : vector<8x9xf32> to vector<8x1xf32>
    %c2_308 = arith.constant 2 : index
    %c0_309 = arith.constant 0 : index
    %926 = vector.load %arg2[%c2_308, %c0_309] : memref<264x160xf32, #tpu.memory_space<vmem>>, vector<1x128xf32>
    %927 = vector.broadcast %925 : vector<8x1xf32> to vector<8x128xf32>
    %928 = vector.broadcast %926 : vector<1x128xf32> to vector<8x128xf32>
    %929 = arith.mulf %927, %928 : vector<8x128xf32>
    %930 = arith.addf %924, %929 : vector<8x128xf32>
    %c1_310 = arith.constant 1 : index
    %c0_311 = arith.constant 0 : index
    %931 = vector.load %arg2[%c1_310, %c0_311] : memref<264x160xf32, #tpu.memory_space<vmem>>, vector<1x128xf32>
    %932 = vector.broadcast %931 : vector<1x128xf32> to vector<8x128xf32>
    %933 = arith.addf %930, %932 : vector<8x128xf32>
    %934 = arith.negf %933 : vector<8x128xf32>
    %935 = math.exp %934 : vector<8x128xf32>
    %cst_312 = arith.constant 1.000000e+00 : f32
    %936 = vector.broadcast %cst_312 : f32 to vector<8x128xf32>
    %937 = arith.addf %936, %935 : vector<8x128xf32>
    %938 = arith.divf %936, %937 : vector<8x128xf32>
    %939 = math.tanh %933 : vector<8x128xf32>
    %940 = vector.extract_strided_slice %938 {offsets = [0, 0], sizes = [8, 32], strides = [1, 1]} : vector<8x128xf32> to vector<8x32xf32>
    %941 = vector.extract_strided_slice %938 {offsets = [0, 32], sizes = [8, 32], strides = [1, 1]} : vector<8x128xf32> to vector<8x32xf32>
    %942 = vector.extract_strided_slice %939 {offsets = [0, 64], sizes = [8, 32], strides = [1, 1]} : vector<8x128xf32> to vector<8x32xf32>
    %943 = vector.extract_strided_slice %938 {offsets = [0, 96], sizes = [8, 32], strides = [1, 1]} : vector<8x128xf32> to vector<8x32xf32>
    %944 = arith.mulf %941, %885 : vector<8x32xf32>
    %945 = arith.mulf %940, %942 : vector<8x32xf32>
    %946 = arith.addf %944, %945 : vector<8x32xf32>
    %947 = math.tanh %946 : vector<8x32xf32>
    %948 = arith.mulf %943, %947 : vector<8x32xf32>
    %949 = tpu.concatenate %948, %946 in 1 : vector<8x32xf32>, vector<8x32xf32> -> vector<8x64xf32>
    %c168_313 = arith.constant 168 : index
    %c0_314 = arith.constant 0 : index
    %950 = vector.load %arg2[%c168_313, %c0_314] : memref<264x160xf32, #tpu.memory_space<vmem>>, vector<64x160xf32>
    %cst_315 = arith.constant dense<0.000000e+00> : vector<8x160xf32>
    %951 = tpu.matmul %949, %950, %cst_315 {dimension_numbers = #tpu.dot_dimension_numbers<[1], [0], [0], [1], [0, 0, 1, 1], [], []>} : vector<8x64xf32>, vector<64x160xf32>, vector<8x160xf32> -> vector<8x160xf32>
    %952 = vector.extract_strided_slice %951 {offsets = [0, 0], sizes = [8, 128], strides = [1, 1]} : vector<8x160xf32> to vector<8x128xf32>
    %953 = vector.extract_strided_slice %951 {offsets = [0, 128], sizes = [8, 32], strides = [1, 1]} : vector<8x160xf32> to vector<8x32xf32>
    %c0_316 = arith.constant 0 : index
    %c0_317 = arith.constant 0 : index
    %954 = vector.load %arg4[%c0_316, %c0_317] : memref<72x32xf32, #tpu.memory_space<vmem>>, vector<72x32xf32>
    %955 = vector.shape_cast %954 : vector<72x32xf32> to vector<9x8x32xf32>
    %c0_318 = arith.constant 0 : index
    %c0_319 = arith.constant 0 : index
    %956 = vector.load %arg5[%c0_318, %c0_319] : memref<72x32xf32, #tpu.memory_space<vmem>>, vector<72x32xf32>
    %957 = vector.shape_cast %956 : vector<72x32xf32> to vector<9x8x32xf32>
    %958 = vector.shape_cast %953 : vector<8x32xf32> to vector<1x8x32xf32>
    %959 = vector.broadcast %958 : vector<1x8x32xf32> to vector<9x8x32xf32>
    %960 = arith.addf %957, %959 : vector<9x8x32xf32>
    %961 = math.tanh %960 : vector<9x8x32xf32>
    %c6_320 = arith.constant 6 : index
    %c0_321 = arith.constant 0 : index
    %962 = vector.load %arg2[%c6_320, %c0_321] : memref<264x160xf32, #tpu.memory_space<vmem>>, vector<1x32xf32>
    %963 = vector.shape_cast %962 : vector<1x32xf32> to vector<1x1x32xf32>
    %964 = vector.broadcast %963 : vector<1x1x32xf32> to vector<9x8x32xf32>
    %965 = arith.mulf %961, %964 : vector<9x8x32xf32>
    %cst_322 = arith.constant dense<0.000000e+00> : vector<9x8xf32>
    %966 = vector.multi_reduction <add>, %965, %cst_322 [2] : vector<9x8x32xf32> to vector<9x8xf32>
    %967 = vector.shape_cast %966 : vector<9x8xf32> to vector<9x8x1xf32>
    %968 = vector.shape_cast %2 : vector<1x1xf32> to vector<1x1x1xf32>
    %969 = vector.broadcast %968 : vector<1x1x1xf32> to vector<9x8x1xf32>
    %970 = arith.addf %967, %969 : vector<9x8x1xf32>
    %cst_323 = arith.constant dense<0xFF800000> : vector<8x1xf32>
    %971 = vector.multi_reduction <maximumf>, %970, %cst_323 [0] : vector<9x8x1xf32> to vector<8x1xf32>
    %972 = vector.shape_cast %971 : vector<8x1xf32> to vector<1x8x1xf32>
    %973 = vector.broadcast %972 : vector<1x8x1xf32> to vector<9x8x1xf32>
    %974 = arith.subf %970, %973 : vector<9x8x1xf32>
    %975 = math.exp %974 : vector<9x8x1xf32>
    %cst_324 = arith.constant dense<0.000000e+00> : vector<8x1xf32>
    %976 = vector.multi_reduction <add>, %975, %cst_324 [0] : vector<9x8x1xf32> to vector<8x1xf32>
    %977 = vector.shape_cast %976 : vector<8x1xf32> to vector<1x8x1xf32>
    %978 = vector.broadcast %977 : vector<1x8x1xf32> to vector<9x8x1xf32>
    %979 = arith.divf %975, %978 : vector<9x8x1xf32>
    %980 = vector.broadcast %979 : vector<9x8x1xf32> to vector<9x8x32xf32>
    %981 = arith.mulf %980, %955 : vector<9x8x32xf32>
    %cst_325 = arith.constant dense<0.000000e+00> : vector<8x32xf32>
    %982 = vector.multi_reduction <add>, %981, %cst_325 [0] : vector<9x8x32xf32> to vector<8x32xf32>
    %c72_326 = arith.constant 72 : index
    %c0_327 = arith.constant 0 : index
    %983 = vector.load %arg2[%c72_326, %c0_327] : memref<264x160xf32, #tpu.memory_space<vmem>>, vector<32x128xf32>
    %cst_328 = arith.constant dense<0.000000e+00> : vector<8x128xf32>
    %984 = tpu.matmul %982, %983, %cst_328 {dimension_numbers = #tpu.dot_dimension_numbers<[1], [0], [0], [1], [0, 0, 1, 1], [], []>} : vector<8x32xf32>, vector<32x128xf32>, vector<8x128xf32> -> vector<8x128xf32>
    %985 = arith.addf %984, %952 : vector<8x128xf32>
    %986 = vector.extract_strided_slice %458 {offsets = [0, 8], sizes = [8, 1], strides = [1, 1]} : vector<8x9xf32> to vector<8x1xf32>
    %c2_329 = arith.constant 2 : index
    %c0_330 = arith.constant 0 : index
    %987 = vector.load %arg2[%c2_329, %c0_330] : memref<264x160xf32, #tpu.memory_space<vmem>>, vector<1x128xf32>
    %988 = vector.broadcast %986 : vector<8x1xf32> to vector<8x128xf32>
    %989 = vector.broadcast %987 : vector<1x128xf32> to vector<8x128xf32>
    %990 = arith.mulf %988, %989 : vector<8x128xf32>
    %991 = arith.addf %985, %990 : vector<8x128xf32>
    %c1_331 = arith.constant 1 : index
    %c0_332 = arith.constant 0 : index
    %992 = vector.load %arg2[%c1_331, %c0_332] : memref<264x160xf32, #tpu.memory_space<vmem>>, vector<1x128xf32>
    %993 = vector.broadcast %992 : vector<1x128xf32> to vector<8x128xf32>
    %994 = arith.addf %991, %993 : vector<8x128xf32>
    %995 = arith.negf %994 : vector<8x128xf32>
    %996 = math.exp %995 : vector<8x128xf32>
    %cst_333 = arith.constant 1.000000e+00 : f32
    %997 = vector.broadcast %cst_333 : f32 to vector<8x128xf32>
    %998 = arith.addf %997, %996 : vector<8x128xf32>
    %999 = arith.divf %997, %998 : vector<8x128xf32>
    %1000 = math.tanh %994 : vector<8x128xf32>
    %1001 = vector.extract_strided_slice %999 {offsets = [0, 0], sizes = [8, 32], strides = [1, 1]} : vector<8x128xf32> to vector<8x32xf32>
    %1002 = vector.extract_strided_slice %999 {offsets = [0, 32], sizes = [8, 32], strides = [1, 1]} : vector<8x128xf32> to vector<8x32xf32>
    %1003 = vector.extract_strided_slice %1000 {offsets = [0, 64], sizes = [8, 32], strides = [1, 1]} : vector<8x128xf32> to vector<8x32xf32>
    %1004 = vector.extract_strided_slice %999 {offsets = [0, 96], sizes = [8, 32], strides = [1, 1]} : vector<8x128xf32> to vector<8x32xf32>
    %1005 = arith.mulf %1002, %946 : vector<8x32xf32>
    %1006 = arith.mulf %1001, %1003 : vector<8x32xf32>
    %1007 = arith.addf %1005, %1006 : vector<8x32xf32>
    %1008 = math.tanh %1007 : vector<8x32xf32>
    %1009 = arith.mulf %1004, %1008 : vector<8x32xf32>
    %1010 = tpu.concatenate %1009, %982 in 1 : vector<8x32xf32>, vector<8x32xf32> -> vector<8x64xf32>
    %c104 = arith.constant 104 : index
    %c0_334 = arith.constant 0 : index
    %1011 = vector.load %arg2[%c104, %c0_334] : memref<264x160xf32, #tpu.memory_space<vmem>>, vector<64x128xf32>
    %cst_335 = arith.constant dense<0.000000e+00> : vector<8x128xf32>
    %1012 = tpu.matmul %1010, %1011, %cst_335 {dimension_numbers = #tpu.dot_dimension_numbers<[1], [0], [0], [1], [0, 0, 1, 1], [], []>} : vector<8x64xf32>, vector<64x128xf32>, vector<8x128xf32> -> vector<8x128xf32>
    %c7_336 = arith.constant 7 : index
    %c0_337 = arith.constant 0 : index
    %1013 = vector.load %arg2[%c7_336, %c0_337] : memref<264x160xf32, #tpu.memory_space<vmem>>, vector<1x128xf32>
    %1014 = vector.broadcast %1013 : vector<1x128xf32> to vector<8x128xf32>
    %1015 = arith.addf %1012, %1014 : vector<8x128xf32>
    %c0_338 = arith.constant 0 : index
    %c0_339 = arith.constant 0 : index
    %1016 = vector.load %arg3[%c0_338, %c0_339] : memref<8x128xf32, #tpu.memory_space<vmem>>, vector<8x128xf32>
    tpu.vector_store %arg3[%c0_338, %c0_339], %1015 {strides = array<i32>} : memref<8x128xf32, #tpu.memory_space<vmem>>, vector<8x128xf32>,
    return
  }
}

</mosaic_0001>

<bundles_post_ra>
// kernel: tpu_custom_call.1
= control target key start
LH: loop header
LB: loop body
LE: loop exit
PB: predicated region body
PF: predicated region fallthrough
CT: control target
= control target key end

     0   :  { %v8984_v2 = vmov 0   ;;  %s8978_s0 = inlined_call_operand.vmem [shape: f32[9,8,4], index: 0, kind: input, shape index: {}]   ;;  %s8979_s1 = inlined_call_operand.vmem [shape: f32[8,9], index: 1, kind: input, shape index: {}]   ;;  %s8980_s2 = inlined_call_operand.vmem [shape: f32[264,160], index: 2, kind: input, shape index: {}]   ;;  %s8981_s3 = inlined_call_operand.hbm [shape: f32[8,128], index: 3, kind: output, shape index: {}]  }
   0x1   :  { %v41_v0 = vld [vmem:[%s8980_s2 + $0x21] ss:$0 sm:$0xff]  ;;  %v31_v1 = vld [vmem:[%s8980_s2 + $0x20] ss:$0 sm:$0xff]  ;;  %6559 = vset.pattern.permute.xlu1 %v8984_v2  ;;  %6558 = vset.pattern.permute.xlu0 %v8984_v2  ;;  %v51_v3 = vld [vmem:[%s8980_s2 + $0x22] ss:$0 sm:$0xff] }
   0x2   :  { %44 = vperm.xlu1 %6559, %v41_v0   ;;  %34 = vperm.xlu0 %6558, %v31_v1   ;;  %v15_v4 = vld [vmem:[%s8980_s2 + $0x10] ss:$0 sm:$0xff] }
   0x3   :  { %8 = vsyncpa [#allocation5], 0  ;;  %v71_v5 = vld [vmem:[%s8980_s2 + $0x24] ss:$0 sm:$0xff]  ;;  %v61_v6 = vld [vmem:[%s8980_s2 + $0x23] ss:$0 sm:$0xff] }
   0x4   :  { %v91_v7 = vld [vmem:[%s8980_s2 + $0x26] ss:$0 sm:$0xff]  ;;  %v81_v8 = vld [vmem:[%s8980_s2 + $0x25] ss:$0 sm:$0xff]  ;;  %v101_v9 = vld [vmem:[%s8980_s2 + $0x27] ss:$0 sm:$0xff] }
   0x5   :  { %v111_v10 = vld [vmem:[%s8980_s2 + $0x30] ss:$0 sm:$0xff]  ;;  %v7263_v11 = vld [vmem:[%s8980_s2 + $0x3] ss:$0 sm:$0xff]  ;;  %v7268_v12 = vld [vmem:[%s8980_s2 + $0x4] ss:$0 sm:$0xff] }
   0x6   :  { %54 = vperm.xlu1 %6559, %v51_v3   ;;  %26 = vperm.xlu0 %6558, %v15_v4   ;;  %v193_v13 = vmul.f32 0.0, %v7263_v11  ;;  %v194_v14 = vmul.f32 0.0, %v7268_v12  ;;  %vm119_vm0 = vcmask 261120   ;;  %v7276_v19 = vld [vmem:[%s8978_s0] sm:$0xff]  ;;  %v7281_v20 = vld [vmem:[%s8978_s0 + $0x8] sm:$0xff]  ;;  %v7288_v26 = vld [vmem:[%s8978_s0 + $0x10] sm:$0xff] }
   0x7   :  { %v7294_v30 = vld [vmem:[%s8978_s0 + $0x18] sm:$0xff]  ;;  %v7300_v34 = vld [vmem:[%s8978_s0 + $0x20] sm:$0xff]  ;;  %v7306_v38 = vld [vmem:[%s8978_s0 + $0x28] sm:$0xff]  ;;  %vm200_vm1 = vcmask 31744   ;;  %v8985_v1 = vmov 0.0|0.0   ;;  %vm7194_vm2 = vmmov 0  }
   0x8   :  { %v195_v15 = vadd.f32 %v194_v14, %v193_v13  ;;  %v7312_v42 = vld [vmem:[%s8978_s0 + $0x30] sm:$0xff]  ;;  %v7318_v46 = vld [vmem:[%s8978_s0 + $0x38] sm:$0xff]  ;;  %v5765_v47 = vld [vmem:[%s8978_s0 + $0x40] sm:$0xff]  ;;  %6272 = vmatprep.subr.bf16.mxu0 %v8985_v1  ;;  %vm216_vm3 = vcmask 1043456   ;;  %s7196_s12 = smov 64   ;;  %s7197_s13 = smov 32  }
   0x9   :  { %v19_v62 = vld [vmem:[%s8980_s2 + $0x50] sm:$0xff]  ;;  %v20_v63 = vld [vmem:[%s8980_s2 + $0x60] sm:$0xff]  ;;  %s7198_s14 = smov 96   ;;  %vm2295_vm4 = vcmask 15368   ;;  %vm2139_vm5 = vcmask 523264  }
   0xa   :  { %74 = vperm.xlu1 %6559, %v71_v5   ;;  %64 = vperm.xlu0 %6558, %v61_v6   ;;  %v196_v16 = vsel %vm119_vm0, %v195_v15, 0.0  ;;  %v21_v0 = vld [vmem:[%s8980_s2 + $0x70] sm:$0xff]  ;;  %v7339_v3 = vpack.c.bf16 %v20_v63, %v19_v62  ;;  %v22_v4 = vld [vmem:[%s8980_s2 + $0x80] sm:$0xff]  ;;  %v8982_v5 = vmov 0.0  }
   0xb   :  { %5983 = vmatprep.mubr.msk.f32.mxu0 %vm7194_vm2, %v8982_v5  ;;  %v7349_v6 = vld [vmem:[%s8980_s2 + $0x40] sm:$0xf]  ;;  %5986 = vmatprep.subr.mxu1 %v8982_v5 }
   0xc   :  { %5988 = vmatprep.mubr.msk.f32.mxu1 %vm7194_vm2, %v8982_v5  ;;  %6274 = vmatpush3.bf16.msra.mxu0 %v7339_v3 }
   0xd   :  { %5987 = vmatpush3.msk.msra.mxu1 %vm216_vm3, %v7349_v6  ;;  %6275 = vmatprep.subr.bf16.mxu0 %v8985_v1 }
   0xe   :  { %94 = vperm.xlu1 %6559, %v91_v7   ;;  %84 = vperm.xlu0 %6558, %v81_v8   ;;  %v7355_v7 = vpack.c.bf16 %v22_v4, %v21_v0 }
   0xf   :  { %6278 = vmatprep.subr.bf16.mxu1 %v8985_v1 }
  0x10   :  { %6277 = vmatpush3.bf16.msra.mxu0 %v7355_v7 }
  0x11   :  { %6018 = vmatprep.subr.mxu0 %v8982_v5 }
  0x12   :  { %104 = vperm.xlu1 %6559, %v101_v9  }
  0x13   :  { %5984 = vmatmul.mubr.f32.vlgmr.msra.gmra.mrb[0].mxu0 %v8982_v5 }
  0x14   :  { %6019 = vmatpush3.msk.msra.mxu0 %vm216_vm3, %v7349_v6  ;;  %6020 = vmatprep.mubr.msk.f32.mxu0 %vm7194_vm2, %v8982_v5 }
  0x15   :  { %6290 = vmatprep.subr.bf16.mxu0 %v8985_v1 }
  0x16   :  { %114 = vperm.xlu1 %6559, %v111_v10  }
  0x2d   :  { %197 = vadd.xlane.f32.xlu0 %v196_v16  ;;  %v7380_v16 = vld [vmem:[%s8980_s2] ss:$0 sm:$0xff] }
  0x81   :  { %v35_v17 = vpop.permute.xlu0 %34  ;;  %v45_v18 = vpop.permute.xlu1 %44 }
  0x82   :  { %v37_v22 = vmul.f32 %v35_v17, %v7276_v19  ;;  %v47_v24 = vmul.f32 %v7281_v20, %v45_v18 }
  0x85   :  { %v27_v21 = vpop.permute.xlu0 %26  ;;  %v55_v23 = vpop.permute.xlu1 %54 }
  0x86   :  { %v38_v25 = vadd.f32 %v37_v22, %v27_v21  ;;  %v57_v27 = vmul.f32 %v7288_v26, %v55_v23 }
  0x88   :  { %v48_v28 = vadd.f32 %v47_v24, %v38_v25 }
  0x89   :  { %v75_v29 = vpop.permute.xlu1 %74  ;;  %v65_v31 = vpop.permute.xlu0 %64 }
  0x8a   :  { %v58_v32 = vadd.f32 %v57_v27, %v48_v28  ;;  %v67_v33 = vmul.f32 %v7294_v30, %v65_v31  ;;  %v77_v36 = vmul.f32 %v7300_v34, %v75_v29 }
  0x8c   :  { %v68_v37 = vadd.f32 %v67_v33, %v58_v32 }
  0x8d   :  { %v95_v35 = vpop.permute.xlu1 %94  ;;  %v85_v39 = vpop.permute.xlu0 %84 }
  0x8e   :  { %v78_v40 = vadd.f32 %v77_v36, %v68_v37  ;;  %v87_v41 = vmul.f32 %v7306_v38, %v85_v39  ;;  %v97_v44 = vmul.f32 %v7312_v42, %v95_v35 }
  0x90   :  { %v88_v45 = vadd.f32 %v87_v41, %v78_v40 }
  0x91   :  { %v105_v43 = vpop.permute.xlu1 %104 }
  0x92   :  { %v98_v49 = vadd.f32 %v97_v44, %v88_v45  ;;  %v107_v50 = vmul.f32 %v7318_v46, %v105_v43 }
  0x94   :  { %v108_v52 = vadd.f32 %v107_v50, %v98_v49 }
  0x95   :  { %v115_v48 = vpop.permute.xlu1 %114 }
  0x96   :  { %v117_v51 = vmul.f32 %v5765_v47, %v115_v48 }
  0x98   :  { %v7324_v53 = vadd.f32 %v117_v51, %v108_v52 }
  0xba   :  { %v198_v54 = vpop.xlane.xlu0 %197 }
  0xbb   :  { %v199_v55 = vadd.f32 %v198_v54, %v7324_v53 }
  0xbd   :  { %v201_v56 = vsel %vm200_vm1, %v199_v55, -inf }
  0xbe   :  { %202 = vmax.xlane.f32.xlu1 %v201_v56 }
  0xe6   :  { %v189_v14 = vpop.f32.mrb[0].mxu0 }
  0xe7   :  { %v5985_v15 = vpop.f32.mrb[1].mxu0 }
 0x14b   :  { %v203_v57 = vpop.xlane.xlu1 %202 }
 0x14c   :  { %v204_v58 = vsub.f32 %v199_v55, %v203_v57 }
 0x14e   :  { %v205_v59 = vmul.f32 1.442695, %v204_v58 }
 0x150   :  { %6581 = vpow2.f32 %v205_v59 }
 0x15a   :  { %v6582_v60 = vpop.eup %6581 }
 0x15b   :  { %v207_v61 = vsel %vm200_vm1, %v6582_v60, 0.0 }
 0x15c   :  { %208 = vadd.xlane.f32.xlu0 %v207_v61 }
 0x1e9   :  { %v209_v8 = vpop.xlane.xlu0 %208 }
 0x1ea   :  { %6583 = vrcp.f32 %v209_v8 }
 0x1f4   :  { %v6584_v9 = vpop.eup %6583 }
 0x1f5   :  { %v211_v10 = vmul.f32 %v6584_v9, %v6582_v60 }
 0x1f7   :  { %v212_v13 = vmul.f32 %v211_v10, %v7276_v19 }
 0x1f9   :  { %5989 = vmatmul.mubr.msk.f32.vlgmr.msra.gmra.mrb[0].mxu1 %vm200_vm1, %v212_v13 }
 0x1fa   :  { %6280 = vmatpush3.bf16.msra.mxu1 %v7339_v3  ;;  %5999 = vmatprep.mubr.msk.f32.mxu1 %vm7194_vm2, %v8982_v5 }
 0x1fb   :  { %6281 = vmatprep.subr.bf16.mxu1 %v8985_v1 }
 0x1fe   :  { %6283 = vmatpush3.bf16.msra.mxu1 %v7355_v7 }
 0x1ff   :  { %6002 = vmatprep.subr.mxu1 %v8982_v5 }
 0x2cc   :  { %v286_v17 = vpop.f32.mrb[0].mxu1 }
 0x2cd   :  { %v287_v18 = vadd.f32 %v286_v17, %v189_v14  ;;  %v5990_v19 = vpop.f32.mrb[1].mxu1 }
 0x2cf   :  { %v290_v21 = vadd.f32 %v287_v18, %v7380_v16 }
 0x2d1   :  { %6585 = vtanh.f32 %v290_v21  ;;  %v5768_v23 = vmul.f32 -1.442695, %v290_v21 }
 0x2d3   :  { %6587 = vpow2.f32 %v5768_v23 }
 0x2db   :  { %v6586_v22 = vpop.eup %6585 }
 0x2dc   :  { %300 = vrot.lane.b32.xlu0 %v6586_v22, %s7196_s12 }
 0x2dd   :  { %v6588_v24 = vpop.eup %6587 }
 0x2de   :  { %v294_v25 = vadd.f32 1.0, %v6588_v24 }
 0x2e0   :  { %398 = vrot.lane.b32.xlu0 %v7268_v12, %s7197_s13  ;;  %6589 = vrcp.f32 %v294_v25 }
 0x2ea   :  { %v6590_v27 = vpop.eup %6589 }
 0x2eb   :  { %v298_v31 = vmul.f32 0.0, %v6590_v27 }
 0x34e   :  { %v301_v28 = vpop.permute.xlu0 %300 }
 0x34f   :  { %v303_v29 = vmul.f32 %v6590_v27, %v301_v28 }
 0x351   :  { %305 = vrot.lane.b32.xlu1 %v303_v29, %s7197_s13 }
 0x352   :  { %v7391_v35 = vpop.permute.xlu0 %398 }
 0x355   :  { %393 = vrot.lane.b32.xlu1 %v7263_v11, %s7198_s14 }
 0x3c3   :  { %v306_v32 = vpop.permute.xlu1 %305 }
 0x3c4   :  { %v7388_v33 = vadd.f32 %v306_v32, %v298_v31 }
 0x3c6   :  { %6591 = vtanh.f32 %v7388_v33  ;;  %v401_v36 = vmul.f32 %v7391_v35, %v7388_v33 }
 0x3c7   :  { %v7397_v39 = vpop.permute.xlu1 %393 }
 0x3d0   :  { %v6592_v12 = vpop.eup %6591 }
 0x3d1   :  { %311 = vrot.lane.b32.xlu0 %v6592_v12, %s7196_s12 }
 0x3d5   :  { %403 = vrot.lane.b32.xlu0 %v401_v36, %s7196_s12 }
 0x443   :  { %v312_v37 = vpop.permute.xlu0 %311 }
 0x444   :  { %v314_v11 = vmul.f32 %v6590_v27, %v312_v37 }
 0x446   :  { %v396_v40 = vmul.f32 %v7397_v39, %v314_v11 }
 0x447   :  { %v404_v41 = vpop.permute.xlu0 %403 }
 0x448   :  { %v406_v43 = vadd.f32 %v404_v41, %v396_v40 }
 0x44a   :  { %408 = vrot.lane.b32.xlu1 %v406_v43, %s7197_s13 }
 0x4bc   :  { %v409_v44 = vpop.permute.xlu1 %408 }
 0x4bd   :  { %v411_v45 = vsel %vm119_vm0, %v409_v44, 0.0 }
 0x4be   :  { %412 = vadd.xlane.f32.xlu0 %v411_v45 }
 0x54b   :  { %v413_v47 = vpop.xlane.xlu0 %412 }
 0x54c   :  { %v414_v48 = vadd.f32 %v413_v47, %v7324_v53 }
 0x54e   :  { %v415_v49 = vsel %vm200_vm1, %v414_v48, -inf }
 0x54f   :  { %416 = vmax.xlane.f32.xlu1 %v415_v49 }
 0x5dc   :  { %v417_v50 = vpop.xlane.xlu1 %416 }
 0x5dd   :  { %v418_v51 = vsub.f32 %v414_v48, %v417_v50 }
 0x5df   :  { %v419_v52 = vmul.f32 1.442695, %v418_v51 }
 0x5e1   :  { %6593 = vpow2.f32 %v419_v52 }
 0x5eb   :  { %v6594_v54 = vpop.eup %6593 }
 0x5ec   :  { %v421_v55 = vsel %vm200_vm1, %v6594_v54, 0.0 }
 0x5ed   :  { %422 = vadd.xlane.f32.xlu0 %v421_v55 }
 0x603   :  { %316 = vrot.lane.b32.xlu0 %v314_v11, %s7197_s13 }
 0x67a   :  { %v423_v56 = vpop.xlane.xlu0 %422 }
 0x67b   :  { %6595 = vrcp.f32 %v423_v56 }
 0x67e   :  { %v317_v57 = vpop.permute.xlu0 %316 }
 0x67f   :  { %319 = vst.msk [vmem:[#allocation2] sm:$0xff] %vm119_vm0, %v317_v57  ;;  %6000 = vmatmul.mubr.msk.f32.vlgmr.msra.gmra.mrb[2].mxu1 %vm119_vm0, %v317_v57 }
 0x680   :  { %6003 = vmatpush3.msk.msra.mxu1 %vm216_vm3, %v7349_v6  ;;  %6004 = vmatprep.mubr.msk.f32.mxu1 %vm7194_vm2, %v8982_v5 }
 0x681   :  { %6284 = vmatprep.subr.bf16.mxu1 %v8985_v1 }
 0x685   :  { %v6596_v58 = vpop.eup %6595 }
 0x686   :  { %v425_v59 = vmul.f32 %v6596_v58, %v6594_v54 }
 0x688   :  { %v427_v60 = vmul.f32 %v7281_v20, %v425_v59 }
 0x68a   :  { %6005 = vmatmul.mubr.msk.f32.vlgmr.msra.gmra.mrb[4].mxu1 %vm200_vm1, %v427_v60 }
 0x68b   :  { %6286 = vmatpush3.bf16.msra.mxu1 %v7339_v3  ;;  %6015 = vmatprep.mubr.msk.f32.mxu1 %vm7194_vm2, %v8982_v5 }
 0x68c   :  { %6287 = vmatprep.subr.bf16.mxu1 %v8985_v1 }
 0x68f   :  { %6289 = vmatpush3.bf16.msra.mxu1 %v7355_v7 }
 0x690   :  { %6034 = vmatprep.subr.mxu1 %v8982_v5 }
 0x752   :  { %v388_v61 = vpop.f32.mrb[2].mxu1 }
 0x753   :  { %v6001_v62 = vpop.f32.mrb[3].mxu1 }
 0x75d   :  { %v497_v63 = vpop.f32.mrb[4].mxu1 }
 0x75e   :  { %v498_v0 = vadd.f32 %v497_v63, %v388_v61  ;;  %v6006_v4 = vpop.f32.mrb[5].mxu1 }
 0x760   :  { %v501_v20 = vadd.f32 %v498_v0, %v7380_v16 }
 0x762   :  { %6597 = vtanh.f32 %v501_v20  ;;  %v5773_v9 = vmul.f32 -1.442695, %v501_v20 }
 0x764   :  { %6599 = vpow2.f32 %v5773_v9 }
 0x76c   :  { %v6598_v8 = vpop.eup %6597 }
 0x76d   :  { %511 = vrot.lane.b32.xlu1 %v6598_v8, %s7196_s12 }
 0x76e   :  { %v6600_v10 = vpop.eup %6599 }
 0x76f   :  { %v505_v13 = vadd.f32 1.0, %v6600_v10 }
 0x771   :  { %6601 = vrcp.f32 %v505_v13 }
 0x77b   :  { %v6602_v14 = vpop.eup %6601 }
 0x77c   :  { %v509_v18 = vmul.f32 %v6602_v14, %v7388_v33 }
 0x7df   :  { %v512_v15 = vpop.permute.xlu1 %511 }
 0x7e0   :  { %v514_v17 = vmul.f32 %v6602_v14, %v512_v15 }
 0x7e2   :  { %516 = vrot.lane.b32.xlu1 %v514_v17, %s7197_s13 }
 0x854   :  { %v517_v19 = vpop.permute.xlu1 %516 }
 0x855   :  { %v519_v21 = vadd.f32 %v517_v19, %v509_v18 }
 0x857   :  { %6603 = vtanh.f32 %v519_v21  ;;  %v604_v22 = vmul.f32 %v519_v21, %v7391_v35 }
 0x859   :  { %606 = vrot.lane.b32.xlu1 %v604_v22, %s7196_s12 }
 0x861   :  { %v6604_v23 = vpop.eup %6603 }
 0x862   :  { %522 = vrot.lane.b32.xlu0 %v6604_v23, %s7196_s12 }
 0x8cb   :  { %v607_v28 = vpop.permute.xlu1 %606 }
 0x8d4   :  { %v523_v24 = vpop.permute.xlu0 %522 }
 0x8d5   :  { %v525_v25 = vmul.f32 %v6602_v14, %v523_v24 }
 0x8d7   :  { %v603_v27 = vmul.f32 %v525_v25, %v7397_v39 }
 0x8d9   :  { %v609_v29 = vadd.f32 %v607_v28, %v603_v27 }
 0x8db   :  { %611 = vrot.lane.b32.xlu0 %v609_v29, %s7197_s13 }
 0x94d   :  { %v612_v31 = vpop.permute.xlu0 %611 }
 0x94e   :  { %v614_v32 = vsel %vm119_vm0, %v612_v31, 0.0 }
 0x94f   :  { %615 = vadd.xlane.f32.xlu1 %v614_v32 }
 0x960   :  { %527 = vrot.lane.b32.xlu1 %v525_v25, %s7197_s13 }
 0x9dc   :  { %v616_v33 = vpop.xlane.xlu1 %615 }
 0x9dd   :  { %v617_v12 = vadd.f32 %v616_v33, %v7324_v53 }
 0x9df   :  { %v618_v36 = vsel %vm200_vm1, %v617_v12, -inf }
 0x9e0   :  { %619 = vmax.xlane.f32.xlu0 %v618_v36  ;;  %v528_v37 = vpop.permute.xlu1 %527 }
 0x9e1   :  { %530 = vst.msk [vmem:[#allocation2 + $0x8] sm:$0xff] %vm119_vm0, %v528_v37  ;;  %6016 = vmatmul.mubr.msk.f32.vlgmr.msra.gmra.mrb[6].mxu1 %vm119_vm0, %v528_v37 }
 0x9e2   :  { %6035 = vmatpush3.msk.msra.mxu1 %vm216_vm3, %v7349_v6  ;;  %6036 = vmatprep.mubr.msk.f32.mxu1 %vm7194_vm2, %v8982_v5 }
 0x9e3   :  { %6296 = vmatprep.subr.bf16.mxu1 %v8985_v1 }
 0xa6d   :  { %v620_v11 = vpop.xlane.xlu0 %619 }
 0xa6e   :  { %v621_v40 = vsub.f32 %v617_v12, %v620_v11 }
 0xa70   :  { %v622_v41 = vmul.f32 1.442695, %v621_v40 }
 0xa72   :  { %6605 = vpow2.f32 %v622_v41 }
 0xa7c   :  { %v6606_v43 = vpop.eup %6605 }
 0xa7d   :  { %v624_v44 = vsel %vm200_vm1, %v6606_v43, 0.0 }
 0xa7e   :  { %625 = vadd.xlane.f32.xlu0 %v624_v44 }
 0xab4   :  { %v599_v45 = vpop.f32.mrb[6].mxu1 }
 0xab5   :  { %v6017_v47 = vpop.f32.mrb[7].mxu1 }
 0xb0b   :  { %v626_v48 = vpop.xlane.xlu0 %625 }
 0xb0c   :  { %6607 = vrcp.f32 %v626_v48 }
 0xb16   :  { %v6608_v49 = vpop.eup %6607 }
 0xb17   :  { %v628_v50 = vmul.f32 %v6608_v49, %v6606_v43 }
 0xb19   :  { %v630_v51 = vmul.f32 %v7288_v26, %v628_v50 }
 0xb1b   :  { %6021 = vmatmul.mubr.msk.f32.vlgmr.msra.gmra.mrb[2].mxu0 %vm200_vm1, %v630_v51 }
 0xb1c   :  { %6292 = vmatpush3.bf16.msra.mxu0 %v7339_v3  ;;  %6031 = vmatprep.mubr.msk.f32.mxu0 %vm7194_vm2, %v8982_v5 }
 0xb1d   :  { %6293 = vmatprep.subr.bf16.mxu0 %v8985_v1 }
 0xb20   :  { %6295 = vmatpush3.bf16.msra.mxu0 %v7355_v7 }
 0xb21   :  { %6050 = vmatprep.subr.mxu0 %v8982_v5 }
 0xbee   :  { %v700_v52 = vpop.f32.mrb[2].mxu0 }
 0xbef   :  { %v701_v54 = vadd.f32 %v700_v52, %v599_v45  ;;  %v6022_v55 = vpop.f32.mrb[3].mxu0 }
 0xbf1   :  { %v704_v56 = vadd.f32 %v701_v54, %v7380_v16 }
 0xbf3   :  { %6609 = vtanh.f32 %v704_v56  ;;  %v5778_v57 = vmul.f32 -1.442695, %v704_v56 }
 0xbf5   :  { %6611 = vpow2.f32 %v5778_v57 }
 0xbfd   :  { %v6610_v26 = vpop.eup %6609 }
 0xbfe   :  { %714 = vrot.lane.b32.xlu0 %v6610_v26, %s7196_s12 }
 0xbff   :  { %v6612_v58 = vpop.eup %6611 }
 0xc00   :  { %v708_v59 = vadd.f32 1.0, %v6612_v58 }
 0xc02   :  { %6613 = vrcp.f32 %v708_v59 }
 0xc0c   :  { %v6614_v60 = vpop.eup %6613 }
 0xc0d   :  { %v712_v63 = vmul.f32 %v6614_v60, %v519_v21 }
 0xc70   :  { %v715_v61 = vpop.permute.xlu0 %714 }
 0xc71   :  { %v717_v62 = vmul.f32 %v6614_v60, %v715_v61 }
 0xc73   :  { %719 = vrot.lane.b32.xlu1 %v717_v62, %s7197_s13 }
 0xce5   :  { %v720_v0 = vpop.permute.xlu1 %719 }
 0xce6   :  { %v722_v4 = vadd.f32 %v720_v0, %v712_v63 }
 0xce8   :  { %6615 = vtanh.f32 %v722_v4  ;;  %v807_v20 = vmul.f32 %v722_v4, %v7391_v35 }
 0xcea   :  { %809 = vrot.lane.b32.xlu0 %v807_v20, %s7196_s12 }
 0xcf2   :  { %v6616_v8 = vpop.eup %6615 }
 0xcf3   :  { %725 = vrot.lane.b32.xlu1 %v6616_v8, %s7196_s12 }
 0xd5c   :  { %v810_v14 = vpop.permute.xlu0 %809 }
 0xd65   :  { %v726_v9 = vpop.permute.xlu1 %725 }
 0xd66   :  { %v728_v10 = vmul.f32 %v6614_v60, %v726_v9 }
 0xd68   :  { %v806_v13 = vmul.f32 %v728_v10, %v7397_v39 }
 0xd6a   :  { %v812_v15 = vadd.f32 %v810_v14, %v806_v13 }
 0xd6c   :  { %814 = vrot.lane.b32.xlu1 %v812_v15, %s7197_s13 }
 0xdde   :  { %v815_v17 = vpop.permute.xlu1 %814 }
 0xddf   :  { %v817_v18 = vsel %vm119_vm0, %v815_v17, 0.0 }
 0xde0   :  { %818 = vadd.xlane.f32.xlu0 %v817_v18 }
 0xe6d   :  { %v819_v19 = vpop.xlane.xlu0 %818 }
 0xe6e   :  { %v820_v21 = vadd.f32 %v819_v19, %v7324_v53 }
 0xe70   :  { %v821_v22 = vsel %vm200_vm1, %v820_v21, -inf }
 0xe71   :  { %822 = vmax.xlane.f32.xlu1 %v821_v22 }
 0xefe   :  { %v823_v23 = vpop.xlane.xlu1 %822 }
 0xeff   :  { %v824_v24 = vsub.f32 %v820_v21, %v823_v23 }
 0xf01   :  { %v825_v25 = vmul.f32 1.442695, %v824_v24 }
 0xf03   :  { %6617 = vpow2.f32 %v825_v25 }
 0xf0d   :  { %v6618_v27 = vpop.eup %6617 }
 0xf0e   :  { %v827_v28 = vsel %vm200_vm1, %v6618_v27, 0.0 }
 0xf0f   :  { %828 = vadd.xlane.f32.xlu0 %v827_v28 }
 0xf25   :  { %730 = vrot.lane.b32.xlu0 %v728_v10, %s7197_s13 }
 0xf9c   :  { %v829_v29 = vpop.xlane.xlu0 %828 }
 0xf9d   :  { %6619 = vrcp.f32 %v829_v29 }
 0xfa0   :  { %v731_v31 = vpop.permute.xlu0 %730 }
 0xfa1   :  { %733 = vst.msk [vmem:[#allocation2 + $0x10] sm:$0xff] %vm119_vm0, %v731_v31  ;;  %6032 = vmatmul.mubr.msk.f32.vlgmr.msra.gmra.mrb[4].mxu0 %vm119_vm0, %v731_v31 }
 0xfa2   :  { %6051 = vmatpush3.msk.msra.mxu0 %vm216_vm3, %v7349_v6  ;;  %6052 = vmatprep.mubr.msk.f32.mxu0 %vm7194_vm2, %v8982_v5 }
 0xfa3   :  { %6302 = vmatprep.subr.bf16.mxu0 %v8985_v1 }
 0xfa7   :  { %v6620_v32 = vpop.eup %6619 }
 0xfa8   :  { %v831_v33 = vmul.f32 %v6620_v32, %v6618_v27 }
 0xfaa   :  { %v833_v12 = vmul.f32 %v7294_v30, %v831_v33 }
 0xfac   :  { %6037 = vmatmul.mubr.msk.f32.vlgmr.msra.gmra.mrb[8].mxu1 %vm200_vm1, %v833_v12 }
 0xfad   :  { %6298 = vmatpush3.bf16.msra.mxu1 %v7339_v3  ;;  %6047 = vmatprep.mubr.msk.f32.mxu1 %vm7194_vm2, %v8982_v5 }
 0xfae   :  { %6299 = vmatprep.subr.bf16.mxu1 %v8985_v1 }
 0xfb1   :  { %6301 = vmatpush3.bf16.msra.mxu1 %v7355_v7 }
 0xfb2   :  { %6066 = vmatprep.subr.mxu1 %v8982_v5 }
0x1074   :  { %v802_v36 = vpop.f32.mrb[4].mxu0 }
0x1075   :  { %v6033_v37 = vpop.f32.mrb[5].mxu0 }
0x107f   :  { %v903_v11 = vpop.f32.mrb[8].mxu1 }
0x1080   :  { %v904_v40 = vadd.f32 %v903_v11, %v802_v36  ;;  %v6038_v41 = vpop.f32.mrb[9].mxu1 }
0x1082   :  { %v907_v30 = vadd.f32 %v904_v40, %v7380_v16 }
0x1084   :  { %6621 = vtanh.f32 %v907_v30  ;;  %v5783_v44 = vmul.f32 -1.442695, %v907_v30 }
0x1086   :  { %6623 = vpow2.f32 %v5783_v44 }
0x108e   :  { %v6622_v43 = vpop.eup %6621 }
0x108f   :  { %917 = vrot.lane.b32.xlu1 %v6622_v43, %s7196_s12 }
0x1090   :  { %v6624_v45 = vpop.eup %6623 }
0x1091   :  { %v911_v47 = vadd.f32 1.0, %v6624_v45 }
0x1093   :  { %6625 = vrcp.f32 %v911_v47 }
0x109d   :  { %v6626_v48 = vpop.eup %6625 }
0x109e   :  { %v915_v51 = vmul.f32 %v6626_v48, %v722_v4 }
0x1101   :  { %v918_v49 = vpop.permute.xlu1 %917 }
0x1102   :  { %v920_v50 = vmul.f32 %v6626_v48, %v918_v49 }
0x1104   :  { %922 = vrot.lane.b32.xlu1 %v920_v50, %s7197_s13 }
0x1176   :  { %v923_v52 = vpop.permute.xlu1 %922 }
0x1177   :  { %v925_v54 = vadd.f32 %v923_v52, %v915_v51 }
0x1179   :  { %6627 = vtanh.f32 %v925_v54  ;;  %v1010_v55 = vmul.f32 %v925_v54, %v7391_v35 }
0x117b   :  { %1012 = vrot.lane.b32.xlu1 %v1010_v55, %s7196_s12 }
0x1183   :  { %v6628_v56 = vpop.eup %6627 }
0x1184   :  { %928 = vrot.lane.b32.xlu0 %v6628_v56, %s7196_s12 }
0x11ed   :  { %v1013_v59 = vpop.permute.xlu1 %1012 }
0x11f6   :  { %v929_v26 = vpop.permute.xlu0 %928 }
0x11f7   :  { %v931_v57 = vmul.f32 %v6626_v48, %v929_v26 }
0x11f9   :  { %v1009_v58 = vmul.f32 %v931_v57, %v7397_v39 }
0x11fb   :  { %v1015_v60 = vadd.f32 %v1013_v59, %v1009_v58 }
0x11fd   :  { %1017 = vrot.lane.b32.xlu0 %v1015_v60, %s7197_s13 }
0x126f   :  { %v1018_v61 = vpop.permute.xlu0 %1017 }
0x1270   :  { %v1020_v62 = vsel %vm119_vm0, %v1018_v61, 0.0 }
0x1271   :  { %1021 = vadd.xlane.f32.xlu1 %v1020_v62 }
0x1282   :  { %933 = vrot.lane.b32.xlu1 %v931_v57, %s7197_s13 }
0x12fe   :  { %v1022_v63 = vpop.xlane.xlu1 %1021 }
0x12ff   :  { %v1023_v0 = vadd.f32 %v1022_v63, %v7324_v53 }
0x1301   :  { %v1024_v4 = vsel %vm200_vm1, %v1023_v0, -inf }
0x1302   :  { %1025 = vmax.xlane.f32.xlu0 %v1024_v4  ;;  %v934_v20 = vpop.permute.xlu1 %933 }
0x1303   :  { %936 = vst.msk [vmem:[#allocation2 + $0x18] sm:$0xff] %vm119_vm0, %v934_v20  ;;  %6048 = vmatmul.mubr.msk.f32.vlgmr.msra.gmra.mrb[10].mxu1 %vm119_vm0, %v934_v20 }
0x1304   :  { %6067 = vmatpush3.msk.msra.mxu1 %vm216_vm3, %v7349_v6  ;;  %6068 = vmatprep.mubr.msk.f32.mxu1 %vm7194_vm2, %v8982_v5 }
0x1305   :  { %6308 = vmatprep.subr.bf16.mxu1 %v8985_v1 }
0x138f   :  { %v1026_v8 = vpop.xlane.xlu0 %1025 }
0x1390   :  { %v1027_v9 = vsub.f32 %v1023_v0, %v1026_v8 }
0x1392   :  { %v1028_v10 = vmul.f32 1.442695, %v1027_v9 }
0x1394   :  { %6629 = vpow2.f32 %v1028_v10 }
0x139e   :  { %v6630_v13 = vpop.eup %6629 }
0x139f   :  { %v1030_v14 = vsel %vm200_vm1, %v6630_v13, 0.0 }
0x13a0   :  { %1031 = vadd.xlane.f32.xlu0 %v1030_v14 }
0x13d6   :  { %v1005_v15 = vpop.f32.mrb[10].mxu1 }
0x13d7   :  { %v6049_v17 = vpop.f32.mrb[11].mxu1 }
0x142d   :  { %v1032_v18 = vpop.xlane.xlu0 %1031 }
0x142e   :  { %6631 = vrcp.f32 %v1032_v18 }
0x1438   :  { %v6632_v19 = vpop.eup %6631 }
0x1439   :  { %v1034_v21 = vmul.f32 %v6632_v19, %v6630_v13 }
0x143b   :  { %v1036_v22 = vmul.f32 %v7300_v34, %v1034_v21 }
0x143d   :  { %6053 = vmatmul.mubr.msk.f32.vlgmr.msra.gmra.mrb[6].mxu0 %vm200_vm1, %v1036_v22 }
0x143e   :  { %6304 = vmatpush3.bf16.msra.mxu0 %v7339_v3  ;;  %6063 = vmatprep.mubr.msk.f32.mxu0 %vm7194_vm2, %v8982_v5 }
0x143f   :  { %6305 = vmatprep.subr.bf16.mxu0 %v8985_v1 }
0x1442   :  { %6307 = vmatpush3.bf16.msra.mxu0 %v7355_v7 }
0x1443   :  { %6082 = vmatprep.subr.mxu0 %v8982_v5 }
0x1510   :  { %v1106_v23 = vpop.f32.mrb[6].mxu0 }
0x1511   :  { %v1107_v24 = vadd.f32 %v1106_v23, %v1005_v15  ;;  %v6054_v25 = vpop.f32.mrb[7].mxu0 }
0x1513   :  { %v1110_v27 = vadd.f32 %v1107_v24, %v7380_v16 }
0x1515   :  { %6633 = vtanh.f32 %v1110_v27  ;;  %v5788_v28 = vmul.f32 -1.442695, %v1110_v27 }
0x1517   :  { %6635 = vpow2.f32 %v5788_v28 }
0x151f   :  { %v6634_v34 = vpop.eup %6633 }
0x1520   :  { %1120 = vrot.lane.b32.xlu0 %v6634_v34, %s7196_s12 }
0x1521   :  { %v6636_v29 = vpop.eup %6635 }
0x1522   :  { %v1114_v31 = vadd.f32 1.0, %v6636_v29 }
0x1524   :  { %6637 = vrcp.f32 %v1114_v31 }
0x152e   :  { %v6638_v32 = vpop.eup %6637 }
0x152f   :  { %v1118_v36 = vmul.f32 %v6638_v32, %v925_v54 }
0x1592   :  { %v1121_v33 = vpop.permute.xlu0 %1120 }
0x1593   :  { %v1123_v12 = vmul.f32 %v6638_v32, %v1121_v33 }
0x1595   :  { %1125 = vrot.lane.b32.xlu1 %v1123_v12, %s7197_s13 }
0x1607   :  { %v1126_v37 = vpop.permute.xlu1 %1125 }
0x1608   :  { %v1128_v11 = vadd.f32 %v1126_v37, %v1118_v36 }
0x160a   :  { %6639 = vtanh.f32 %v1128_v11  ;;  %v1213_v40 = vmul.f32 %v1128_v11, %v7391_v35 }
0x160c   :  { %1215 = vrot.lane.b32.xlu0 %v1213_v40, %s7196_s12 }
0x1614   :  { %v6640_v41 = vpop.eup %6639 }
0x1615   :  { %1131 = vrot.lane.b32.xlu1 %v6640_v41, %s7196_s12 }
0x167e   :  { %v1216_v45 = vpop.permute.xlu0 %1215 }
0x1687   :  { %v1132_v30 = vpop.permute.xlu1 %1131 }
0x1688   :  { %v1134_v43 = vmul.f32 %v6638_v32, %v1132_v30 }
0x168a   :  { %v1212_v44 = vmul.f32 %v1134_v43, %v7397_v39 }
0x168c   :  { %v1218_v47 = vadd.f32 %v1216_v45, %v1212_v44 }
0x168e   :  { %1220 = vrot.lane.b32.xlu1 %v1218_v47, %s7197_s13 }
0x1700   :  { %v1221_v48 = vpop.permute.xlu1 %1220 }
0x1701   :  { %v1223_v49 = vsel %vm119_vm0, %v1221_v48, 0.0 }
0x1702   :  { %1224 = vadd.xlane.f32.xlu0 %v1223_v49 }
0x178f   :  { %v1225_v50 = vpop.xlane.xlu0 %1224 }
0x1790   :  { %v1226_v51 = vadd.f32 %v1225_v50, %v7324_v53 }
0x1792   :  { %v1227_v52 = vsel %vm200_vm1, %v1226_v51, -inf }
0x1793   :  { %1228 = vmax.xlane.f32.xlu1 %v1227_v52 }
0x1820   :  { %v1229_v54 = vpop.xlane.xlu1 %1228 }
0x1821   :  { %v1230_v55 = vsub.f32 %v1226_v51, %v1229_v54 }
0x1823   :  { %v1231_v56 = vmul.f32 1.442695, %v1230_v55 }
0x1825   :  { %6641 = vpow2.f32 %v1231_v56 }
0x182f   :  { %v6642_v26 = vpop.eup %6641 }
0x1830   :  { %v1233_v57 = vsel %vm200_vm1, %v6642_v26, 0.0 }
0x1831   :  { %1234 = vadd.xlane.f32.xlu0 %v1233_v57 }
0x1847   :  { %1136 = vrot.lane.b32.xlu0 %v1134_v43, %s7197_s13 }
0x18be   :  { %v1235_v58 = vpop.xlane.xlu0 %1234 }
0x18bf   :  { %6643 = vrcp.f32 %v1235_v58 }
0x18c2   :  { %v1137_v59 = vpop.permute.xlu0 %1136 }
0x18c3   :  { %1139 = vst.msk [vmem:[#allocation2 + $0x20] sm:$0xff] %vm119_vm0, %v1137_v59  ;;  %6064 = vmatmul.mubr.msk.f32.vlgmr.msra.gmra.mrb[8].mxu0 %vm119_vm0, %v1137_v59 }
0x18c4   :  { %6083 = vmatpush3.msk.msra.mxu0 %vm216_vm3, %v7349_v6  ;;  %6084 = vmatprep.mubr.msk.f32.mxu0 %vm7194_vm2, %v8982_v5 }
0x18c5   :  { %6314 = vmatprep.subr.bf16.mxu0 %v8985_v1 }
0x18c9   :  { %v6644_v60 = vpop.eup %6643 }
0x18ca   :  { %v1237_v61 = vmul.f32 %v6644_v60, %v6642_v26 }
0x18cc   :  { %v1239_v62 = vmul.f32 %v7306_v38, %v1237_v61 }
0x18ce   :  { %6069 = vmatmul.mubr.msk.f32.vlgmr.msra.gmra.mrb[12].mxu1 %vm200_vm1, %v1239_v62 }
0x18cf   :  { %6310 = vmatpush3.bf16.msra.mxu1 %v7339_v3  ;;  %6079 = vmatprep.mubr.msk.f32.mxu1 %vm7194_vm2, %v8982_v5 }
0x18d0   :  { %6311 = vmatprep.subr.bf16.mxu1 %v8985_v1 }
0x18d3   :  { %6313 = vmatpush3.bf16.msra.mxu1 %v7355_v7 }
0x18d4   :  { %6098 = vmatprep.subr.mxu1 %v8982_v5 }
0x1996   :  { %v1208_v63 = vpop.f32.mrb[8].mxu0 }
0x1997   :  { %v6065_v0 = vpop.f32.mrb[9].mxu0 }
0x19a1   :  { %v1309_v4 = vpop.f32.mrb[12].mxu1 }
0x19a2   :  { %v1310_v20 = vadd.f32 %v1309_v4, %v1208_v63  ;;  %v6070_v8 = vpop.f32.mrb[13].mxu1 }
0x19a4   :  { %v1313_v38 = vadd.f32 %v1310_v20, %v7380_v16 }
0x19a6   :  { %6645 = vtanh.f32 %v1313_v38  ;;  %v5793_v10 = vmul.f32 -1.442695, %v1313_v38 }
0x19a8   :  { %6647 = vpow2.f32 %v5793_v10 }
0x19b0   :  { %v6646_v9 = vpop.eup %6645 }
0x19b1   :  { %1323 = vrot.lane.b32.xlu1 %v6646_v9, %s7196_s12 }
0x19b2   :  { %v6648_v13 = vpop.eup %6647 }
0x19b3   :  { %v1317_v14 = vadd.f32 1.0, %v6648_v13 }
0x19b5   :  { %6649 = vrcp.f32 %v1317_v14 }
0x19bf   :  { %v6650_v15 = vpop.eup %6649 }
0x19c0   :  { %v1321_v19 = vmul.f32 %v6650_v15, %v1128_v11 }
0x1a23   :  { %v1324_v17 = vpop.permute.xlu1 %1323 }
0x1a24   :  { %v1326_v18 = vmul.f32 %v6650_v15, %v1324_v17 }
0x1a26   :  { %1328 = vrot.lane.b32.xlu1 %v1326_v18, %s7197_s13 }
0x1a98   :  { %v1329_v21 = vpop.permute.xlu1 %1328 }
0x1a99   :  { %v1331_v22 = vadd.f32 %v1329_v21, %v1321_v19 }
0x1a9b   :  { %6651 = vtanh.f32 %v1331_v22  ;;  %v1416_v23 = vmul.f32 %v1331_v22, %v7391_v35 }
0x1a9d   :  { %1418 = vrot.lane.b32.xlu1 %v1416_v23, %s7196_s12 }
0x1aa5   :  { %v6652_v24 = vpop.eup %6651 }
0x1aa6   :  { %1334 = vrot.lane.b32.xlu0 %v6652_v24, %s7196_s12 }
0x1b0f   :  { %v1419_v28 = vpop.permute.xlu1 %1418 }
0x1b18   :  { %v1335_v25 = vpop.permute.xlu0 %1334 }
0x1b19   :  { %v1337_v27 = vmul.f32 %v6650_v15, %v1335_v25 }
0x1b1b   :  { %v1415_v34 = vmul.f32 %v1337_v27, %v7397_v39 }
0x1b1d   :  { %v1421_v29 = vadd.f32 %v1419_v28, %v1415_v34 }
0x1b1f   :  { %1423 = vrot.lane.b32.xlu0 %v1421_v29, %s7197_s13 }
0x1b91   :  { %v1424_v31 = vpop.permute.xlu0 %1423 }
0x1b92   :  { %v1426_v32 = vsel %vm119_vm0, %v1424_v31, 0.0 }
0x1b93   :  { %1427 = vadd.xlane.f32.xlu1 %v1426_v32 }
0x1ba4   :  { %1339 = vrot.lane.b32.xlu1 %v1337_v27, %s7197_s13 }
0x1c20   :  { %v1428_v33 = vpop.xlane.xlu1 %1427 }
0x1c21   :  { %v1429_v12 = vadd.f32 %v1428_v33, %v7324_v53 }
0x1c23   :  { %v1430_v36 = vsel %vm200_vm1, %v1429_v12, -inf }
0x1c24   :  { %1431 = vmax.xlane.f32.xlu0 %v1430_v36  ;;  %v1340_v37 = vpop.permute.xlu1 %1339 }
0x1c25   :  { %1342 = vst.msk [vmem:[#allocation2 + $0x28] sm:$0xff] %vm119_vm0, %v1340_v37  ;;  %6080 = vmatmul.mubr.msk.f32.vlgmr.msra.gmra.mrb[14].mxu1 %vm119_vm0, %v1340_v37 }
0x1c26   :  { %6099 = vmatpush3.msk.msra.mxu1 %vm216_vm3, %v7349_v6  ;;  %6100 = vmatprep.mubr.msk.f32.mxu1 %vm7194_vm2, %v8982_v5 }
0x1c27   :  { %6320 = vmatprep.subr.bf16.mxu1 %v8985_v1 }
0x1cb1   :  { %v1432_v11 = vpop.xlane.xlu0 %1431 }
0x1cb2   :  { %v1433_v40 = vsub.f32 %v1429_v12, %v1432_v11 }
0x1cb4   :  { %v1434_v41 = vmul.f32 1.442695, %v1433_v40 }
0x1cb6   :  { %6653 = vpow2.f32 %v1434_v41 }
0x1cc0   :  { %v6654_v30 = vpop.eup %6653 }
0x1cc1   :  { %v1436_v43 = vsel %vm200_vm1, %v6654_v30, 0.0 }
0x1cc2   :  { %1437 = vadd.xlane.f32.xlu0 %v1436_v43 }
0x1cf8   :  { %v1411_v44 = vpop.f32.mrb[14].mxu1 }
0x1cf9   :  { %v6081_v45 = vpop.f32.mrb[15].mxu1 }
0x1d4f   :  { %v1438_v47 = vpop.xlane.xlu0 %1437 }
0x1d50   :  { %6655 = vrcp.f32 %v1438_v47 }
0x1d5a   :  { %v6656_v48 = vpop.eup %6655 }
0x1d5b   :  { %v1440_v49 = vmul.f32 %v6656_v48, %v6654_v30 }
0x1d5d   :  { %v1442_v50 = vmul.f32 %v7312_v42, %v1440_v49 }
0x1d5f   :  { %6085 = vmatmul.mubr.msk.f32.vlgmr.msra.gmra.mrb[10].mxu0 %vm200_vm1, %v1442_v50 }
0x1d60   :  { %6316 = vmatpush3.bf16.msra.mxu0 %v7339_v3  ;;  %6095 = vmatprep.mubr.msk.f32.mxu0 %vm7194_vm2, %v8982_v5 }
0x1d61   :  { %6317 = vmatprep.subr.bf16.mxu0 %v8985_v1 }
0x1d64   :  { %6319 = vmatpush3.bf16.msra.mxu0 %v7355_v7 }
0x1d65   :  { %6114 = vmatprep.subr.mxu0 %v8982_v5 }
0x1e32   :  { %v1512_v51 = vpop.f32.mrb[10].mxu0 }
0x1e33   :  { %v1513_v52 = vadd.f32 %v1512_v51, %v1411_v44  ;;  %v6086_v54 = vpop.f32.mrb[11].mxu0 }
0x1e35   :  { %v1516_v55 = vadd.f32 %v1513_v52, %v7380_v16 }
0x1e37   :  { %6657 = vtanh.f32 %v1516_v55  ;;  %v5798_v56 = vmul.f32 -1.442695, %v1516_v55 }
0x1e39   :  { %6659 = vpow2.f32 %v5798_v56 }
0x1e41   :  { %v6658_v42 = vpop.eup %6657 }
0x1e42   :  { %1526 = vrot.lane.b32.xlu0 %v6658_v42, %s7196_s12 }
0x1e43   :  { %v6660_v26 = vpop.eup %6659 }
0x1e44   :  { %v1520_v57 = vadd.f32 1.0, %v6660_v26 }
0x1e46   :  { %6661 = vrcp.f32 %v1520_v57 }
0x1e50   :  { %v6662_v58 = vpop.eup %6661 }
0x1e51   :  { %v1524_v61 = vmul.f32 %v6662_v58, %v1331_v22 }
0x1eb4   :  { %v1527_v59 = vpop.permute.xlu0 %1526 }
0x1eb5   :  { %v1529_v60 = vmul.f32 %v6662_v58, %v1527_v59 }
0x1eb7   :  { %1531 = vrot.lane.b32.xlu1 %v1529_v60, %s7197_s13  ;;  %v2126_v60 = vld [vmem:[%s8980_s2 + $0x168] sm:$0xff] }
0x1f29   :  { %v1532_v62 = vpop.permute.xlu1 %1531 }
0x1f2a   :  { %v1534_v63 = vadd.f32 %v1532_v62, %v1524_v61  ;;  %v2123_v62 = vld [vmem:[%s8980_s2 + $0x150] sm:$0xff] }
0x1f2c   :  { %6663 = vtanh.f32 %v1534_v63  ;;  %v1619_v0 = vmul.f32 %v1534_v63, %v7391_v35 }
0x1f2e   :  { %1621 = vrot.lane.b32.xlu0 %v1619_v0, %s7196_s12 }
0x1f36   :  { %v6664_v4 = vpop.eup %6663 }
0x1f37   :  { %1537 = vrot.lane.b32.xlu1 %v6664_v4, %s7196_s12  ;;  %v2128_v4 = vld [vmem:[%s8980_s2 + $0x178] sm:$0xff] }
0x1fa0   :  { %v1622_v9 = vpop.permute.xlu0 %1621 }
0x1fa9   :  { %v1538_v20 = vpop.permute.xlu1 %1537 }
0x1faa   :  { %v1540_v8 = vmul.f32 %v6662_v58, %v1538_v20  ;;  %v2130_v20 = vld [vmem:[%s8980_s2 + $0x188] sm:$0xff] }
0x1fac   :  { %v1618_v38 = vmul.f32 %v1540_v8, %v7397_v39 }
0x1fae   :  { %v1624_v10 = vadd.f32 %v1622_v9, %v1618_v38  ;;  %v2129_v38 = vld [vmem:[%s8980_s2 + $0x180] sm:$0xff]  ;;  %v7639_v9 = vpack.c.bf16 %v2130_v20, %v2128_v4 }
0x1fb0   :  { %1626 = vrot.lane.b32.xlu1 %v1624_v10, %s7197_s13 }
0x2022   :  { %v1627_v13 = vpop.permute.xlu1 %1626 }
0x2023   :  { %v1629_v14 = vsel %vm119_vm0, %v1627_v13, 0.0  ;;  %v2132_v13 = vld [vmem:[%s8980_s2 + $0x198] sm:$0xff] }
0x2024   :  { %1630 = vadd.xlane.f32.xlu0 %v1629_v14  ;;  %v2134_v14 = vld [vmem:[%s8980_s2 + $0x1a8] sm:$0xff] }
0x20b1   :  { %v1631_v15 = vpop.xlane.xlu0 %1630 }
0x20b2   :  { %v1632_v17 = vadd.f32 %v1631_v15, %v7324_v53  ;;  %v7651_v15 = vpack.c.bf16 %v2134_v14, %v2132_v13 }
0x20b4   :  { %v1633_v18 = vsel %vm200_vm1, %v1632_v17, -inf }
0x20b5   :  { %1634 = vmax.xlane.f32.xlu1 %v1633_v18  ;;  %v2133_v18 = vld [vmem:[%s8980_s2 + $0x1a0] sm:$0xff] }
0x2142   :  { %v1635_v19 = vpop.xlane.xlu1 %1634 }
0x2143   :  { %v1636_v21 = vsub.f32 %v1632_v17, %v1635_v19  ;;  %v2131_v17 = vld [vmem:[%s8980_s2 + $0x190] sm:$0xff] }
0x2144   :  { %v7659_v19 = vpack.c.bf16 %v2133_v18, %v2131_v17 }
0x2145   :  { %v1637_v22 = vmul.f32 1.442695, %v1636_v21  ;;  %v2136_v21 = vld [vmem:[%s8980_s2 + $0x1b8] sm:$0xff] }
0x2147   :  { %6665 = vpow2.f32 %v1637_v22  ;;  %v2138_v22 = vld [vmem:[%s8980_s2 + $0x1c8] sm:$0xff] }
0x2151   :  { %v6666_v23 = vpop.eup %6665 }
0x2152   :  { %v1639_v24 = vsel %vm200_vm1, %v6666_v23, 0.0 }
0x2153   :  { %1640 = vadd.xlane.f32.xlu0 %v1639_v24  ;;  %v2135_v24 = vld [vmem:[%s8980_s2 + $0x1b0] sm:$0xff] }
0x2169   :  { %1542 = vrot.lane.b32.xlu0 %v1540_v8, %s7197_s13  ;;  %v2127_v8 = vld [vmem:[%s8980_s2 + $0x170] sm:$0xff] }
0x216a   :  { %v7641_v10 = vpack.c.bf16 %v2129_v38, %v2127_v8 }
0x21e0   :  { %v1641_v25 = vpop.xlane.xlu0 %1640 }
0x21e1   :  { %6667 = vrcp.f32 %v1641_v25  ;;  %v2137_v25 = vld [vmem:[%s8980_s2 + $0x1c0] sm:$0xff] }
0x21e4   :  { %v1543_v27 = vpop.permute.xlu0 %1542 }
0x21e5   :  { %1545 = vst.msk [vmem:[#allocation2 + $0x30] sm:$0xff] %vm119_vm0, %v1543_v27  ;;  %6096 = vmatmul.mubr.msk.f32.vlgmr.msra.gmra.mrb[12].mxu0 %vm119_vm0, %v1543_v27  ;;  %v7677_v27 = vpack.c.bf16 %v2137_v25, %v2135_v24 }
0x21e6   :  { %6115 = vmatpush3.msk.msra.mxu0 %vm216_vm3, %v7349_v6  ;;  %6116 = vmatprep.mubr.msk.f32.mxu0 %vm7194_vm2, %v8982_v5 }
0x21e7   :  { %6326 = vmatprep.subr.bf16.mxu0 %v8985_v1 }
0x21eb   :  { %v6668_v34 = vpop.eup %6667 }
0x21ec   :  { %v1643_v28 = vmul.f32 %v6668_v34, %v6666_v23  ;;  %v7669_v23 = vpack.c.bf16 %v2138_v22, %v2136_v21 }
0x21ee   :  { %v1645_v29 = vmul.f32 %v7318_v46, %v1643_v28 }
0x21f0   :  { %6101 = vmatmul.mubr.msk.f32.vlgmr.msra.gmra.mrb[16].mxu1 %vm200_vm1, %v1645_v29 }
0x21f1   :  { %6322 = vmatpush3.bf16.msra.mxu1 %v7339_v3  ;;  %6111 = vmatprep.mubr.msk.f32.mxu1 %vm7194_vm2, %v8982_v5 }
0x21f2   :  { %6323 = vmatprep.subr.bf16.mxu1 %v8985_v1 }
0x21f5   :  { %6325 = vmatpush3.bf16.msra.mxu1 %v7355_v7 }
0x22b8   :  { %v1614_v6 = vpop.f32.mrb[12].mxu0 }
0x22b9   :  { %v6097_v31 = vpop.f32.mrb[13].mxu0 }
0x22ba   :  { %v1962_v31 = vld [vmem:[%s8980_s2 + $0x1e0] sm:$0xff] }
0x22c3   :  { %v1715_v32 = vpop.f32.mrb[16].mxu1 }
0x22c4   :  { %v1716_v33 = vadd.f32 %v1715_v32, %v1614_v6  ;;  %v6102_v12 = vpop.f32.mrb[17].mxu1  ;;  %v1961_v6 = vld [vmem:[%s8980_s2 + $0x1d0] sm:$0xff] }
0x22c6   :  { %v1719_v36 = vadd.f32 %v1716_v33, %v7380_v16  ;;  %v5805_v33 = vld [vmem:[%s8978_s0 + $0x40] sm:$0xff] }
0x22c8   :  { %6669 = vtanh.f32 %v1719_v36  ;;  %v5803_v37 = vmul.f32 -1.442695, %v1719_v36  ;;  %v6327_v36 = vpack.c.bf16 %v1962_v31, %v1961_v6 }
0x22ca   :  { %6671 = vpow2.f32 %v5803_v37  ;;  %v1963_v37 = vld [vmem:[%s8980_s2 + $0x1f0] sm:$0xff] }
0x22d2   :  { %v6670_v46 = vpop.eup %6669 }
0x22d3   :  { %1729 = vrot.lane.b32.xlu1 %v6670_v46, %s7196_s12 }
0x22d4   :  { %v6672_v3 = vpop.eup %6671 }
0x22d5   :  { %v1723_v11 = vadd.f32 1.0, %v6672_v3  ;;  %v1964_v3 = vld [vmem:[%s8980_s2 + $0x200] sm:$0xff] }
0x22d7   :  { %6673 = vrcp.f32 %v1723_v11  ;;  %v6330_v11 = vpack.c.bf16 %v1964_v3, %v1963_v37 }
0x22e1   :  { %v6674_v40 = vpop.eup %6673 }
0x22e2   :  { %v1727_v7 = vmul.f32 %v6674_v40, %v1534_v63  ;;  %v2125_v63 = vld [vmem:[%s8980_s2 + $0x160] sm:$0xff] }
0x22e3   :  { %v7623_v0 = vpack.c.bf16 %v2125_v63, %v2123_v62 }
0x2345   :  { %v1730_v41 = vpop.permute.xlu1 %1729 }
0x2346   :  { %v1732_v30 = vmul.f32 %v6674_v40, %v1730_v41  ;;  %v7711_v41 = vld [vmem:[#allocation2 + $0x8] sm:$0xff] }
0x2348   :  { %1734 = vrot.lane.b32.xlu1 %v1732_v30, %s7197_s13  ;;  %v7717_v30 = vld [vmem:[#allocation2 + $0x10] sm:$0xff] }
0x23ba   :  { %v1735_v43 = vpop.permute.xlu1 %1734 }
0x23bb   :  { %v7592_v44 = vadd.f32 %v1735_v43, %v1727_v7  ;;  %v7723_v7 = vld [vmem:[#allocation2 + $0x18] sm:$0xff]  ;;  %v7729_v43 = vld [vmem:[#allocation2 + $0x20] sm:$0xff] }
0x23bd   :  { %6675 = vtanh.f32 %v7592_v44  ;;  %v1822_v16 = vmul.f32 %v7592_v44, %v7391_v35 }
0x23bf   :  { %1824 = vrot.lane.b32.xlu1 %v1822_v16, %s7196_s12  ;;  %v7735_v16 = vld [vmem:[#allocation2 + $0x28] sm:$0xff] }
0x23c7   :  { %v6676_v45 = vpop.eup %6675 }
0x23c8   :  { %1740 = vrot.lane.b32.xlu0 %v6676_v45, %s7196_s12  ;;  %v7741_v45 = vld [vmem:[#allocation2 + $0x30] sm:$0xff] }
0x2431   :  { %v1825_v50 = vpop.permute.xlu1 %1824 }
0x243a   :  { %v1741_v47 = vpop.permute.xlu0 %1740 }
0x243b   :  { %v1743_v48 = vmul.f32 %v6674_v40, %v1741_v47  ;;  %v7705_v40 = vld [vmem:[#allocation2] sm:$0xff] }
0x243d   :  { %v1821_v49 = vmul.f32 %v1743_v48, %v7397_v39 }
0x243f   :  { %v1827_v51 = vadd.f32 %v1825_v50, %v1821_v49 }
0x2441   :  { %1829 = vrot.lane.b32.xlu0 %v1827_v51, %s7197_s13 }
0x24b3   :  { %v1830_v52 = vpop.permute.xlu0 %1829 }
0x24b4   :  { %v1832_v54 = vsel %vm119_vm0, %v1830_v52, 0.0 }
0x24b5   :  { %1833 = vadd.xlane.f32.xlu1 %v1832_v54  ;;  %v7103_v54 = vld [vmem:[%s8980_s2] ss:$0 sm:$0xff] }
0x24c6   :  { %1745 = vrot.lane.b32.xlu1 %v1743_v48, %s7197_s13 }
0x2542   :  { %v1834_v35 = vpop.xlane.xlu1 %1833 }
0x2543   :  { %v1835_v55 = vadd.f32 %v1834_v35, %v7324_v53  ;;  %v2124_v53 = vld [vmem:[%s8980_s2 + $0x158] sm:$0xff] }
0x2544   :  { %v7615_v61 = vpack.c.bf16 %v2126_v60, %v2124_v53 }
0x2545   :  { %v1836_v42 = vsel %vm200_vm1, %v1835_v55, -inf }
0x2546   :  { %1837 = vmax.xlane.f32.xlu0 %v1836_v42  ;;  %v1746_v56 = vpop.permute.xlu1 %1745  ;;  %6333 = vmatprep.subr.bf16.mxu1 %v7615_v61 }
0x2547   :  { %1748 = vst.msk [vmem:[#allocation2 + $0x38] sm:$0xff] %vm119_vm0, %v1746_v56  ;;  %6112 = vmatmul.mubr.msk.f32.vlgmr.msra.gmra.mrb[18].mxu1 %vm119_vm0, %v1746_v56 }
0x2548   :  { %2206 = vmatprep.mubr.f32.mxu1 %v8982_v5  ;;  %6335 = vmatpush1.bf16.msra.mxu1 %v7623_v0 }
0x2549   :  { %6337 = vmatprep.subr.bf16.mxu1 %v7639_v9 }
0x254c   :  { %6339 = vmatpush1.bf16.msra.mxu1 %v7641_v10 }
0x254d   :  { %6341 = vmatprep.subr.bf16.mxu1 %v7651_v15 }
0x254e   :  { %v7747_v47 = vld [vmem:[#allocation2 + $0x38] sm:$0xff] }
0x2550   :  { %6343 = vmatpush1.bf16.msra.mxu1 %v7659_v19 }
0x2551   :  { %6345 = vmatprep.subr.bf16.mxu1 %v7669_v23 }
0x2554   :  { %6347 = vmatpush1.bf16.msra.mxu1 %v7677_v27 }
0x2555   :  { %6348 = vmatprep.subr.bf16.mxu1 %v8985_v1 }
0x2557   :  { %2207 = vmatmul.mubr.f32.vlgmr.msra.gmra.mrb[20].mxu1 %v8982_v5 }
0x2558   :  { %6162 = vmatprep.mubr.msk.f32.mxu1 %vm7194_vm2, %v8982_v5 }
0x25d3   :  { %v1838_v39 = vpop.xlane.xlu0 %1837 }
0x25d4   :  { %v1839_v26 = vsub.f32 %v1835_v55, %v1838_v39  ;;  %v7763_v55 = vld [vmem:[%s8980_s2 + $0x5] ss:$0 sm:$0xff] }
0x25d6   :  { %v1840_v57 = vmul.f32 1.442695, %v1839_v26 }
0x25d8   :  { %6677 = vpow2.f32 %v1840_v57 }
0x25e2   :  { %v6678_v58 = vpop.eup %6677 }
0x25e3   :  { %v1842_v59 = vsel %vm200_vm1, %v6678_v58, 0.0 }
0x25e4   :  { %1843 = vadd.xlane.f32.xlu0 %v1842_v59 }
0x261a   :  { %v1817_v34 = vpop.f32.mrb[18].mxu1 }
0x261b   :  { %v6113_v28 = vpop.f32.mrb[19].mxu1 }
0x262a   :  { %v7753_v48 = vpop.f32.mrb[20].mxu1 }
0x262b   :  { %v7755_v49 = vpop.f32.mrb[21].mxu1 }
0x2671   :  { %v1844_v29 = vpop.xlane.xlu0 %1843 }
0x2672   :  { %6679 = vrcp.f32 %v1844_v29 }
0x267c   :  { %v6680_v32 = vpop.eup %6679 }
0x267d   :  { %v1846_v12 = vmul.f32 %v6680_v32, %v6678_v58 }
0x267f   :  { %v1848_v46 = vmul.f32 %v5805_v33, %v1846_v12 }
0x2681   :  { %6117 = vmatmul.mubr.msk.f32.vlgmr.msra.gmra.mrb[14].mxu0 %vm200_vm1, %v1848_v46 }
0x2682   :  { %6328 = vmatpush3.bf16.msra.mxu0 %v6327_v36  ;;  %6127 = vmatprep.mubr.msk.f32.mxu0 %vm7194_vm2, %v8982_v5 }
0x2683   :  { %6329 = vmatprep.subr.bf16.mxu0 %v8985_v1 }
0x2686   :  { %6331 = vmatpush3.bf16.msra.mxu0 %v6330_v11 }
0x2687   :  { %6370 = vmatprep.subr.bf16.mxu0 %v8985_v1 }
0x2689   :  { %6128 = vmatmul.mubr.msk.f32.vlgmr.msra.gmra.mrb[16].mxu0 %vm119_vm0, %v7705_v40 }
0x268a   :  { %6130 = vmatprep.mubr.msk.f32.mxu0 %vm7194_vm2, %v8982_v5 }
0x268d   :  { %6131 = vmatmul.mubr.msk.f32.gmra.mrb[18].mxu0 %vm119_vm0, %v7711_v41 }
0x268e   :  { %6133 = vmatprep.mubr.msk.f32.mxu0 %vm7194_vm2, %v8982_v5 }
0x2691   :  { %6134 = vmatmul.mubr.msk.f32.gmra.mrb[20].mxu0 %vm119_vm0, %v7717_v30 }
0x2692   :  { %6136 = vmatprep.mubr.msk.f32.mxu0 %vm7194_vm2, %v8982_v5 }
0x2695   :  { %6137 = vmatmul.mubr.msk.f32.gmra.mrb[22].mxu0 %vm119_vm0, %v7723_v7 }
0x2696   :  { %6139 = vmatprep.mubr.msk.f32.mxu0 %vm7194_vm2, %v8982_v5 }
0x2699   :  { %6140 = vmatmul.mubr.msk.f32.gmra.mrb[24].mxu0 %vm119_vm0, %v7729_v43 }
0x269a   :  { %6142 = vmatprep.mubr.msk.f32.mxu0 %vm7194_vm2, %v8982_v5 }
0x269d   :  { %6143 = vmatmul.mubr.msk.f32.gmra.mrb[26].mxu0 %vm119_vm0, %v7735_v16 }
0x269e   :  { %6145 = vmatprep.mubr.msk.f32.mxu0 %vm7194_vm2, %v8982_v5 }
0x26a1   :  { %6146 = vmatmul.mubr.msk.f32.gmra.mrb[28].mxu0 %vm119_vm0, %v7741_v45 }
0x26a2   :  { %6148 = vmatprep.mubr.msk.f32.mxu0 %vm7194_vm2, %v8982_v5 }
0x26a5   :  { %6149 = vmatmul.mubr.msk.f32.gmra.mrb[30].mxu0 %vm119_vm0, %v7747_v47 }
0x26a6   :  { %6151 = vmatprep.mubr.msk.f32.mxu0 %vm7194_vm2, %v8982_v5 }
0x2754   :  { %v1918_v50 = vpop.f32.mrb[14].mxu0 }
0x2755   :  { %v1919_v51 = vadd.f32 %v1918_v50, %v1817_v34  ;;  %v6118_v52 = vpop.f32.mrb[15].mxu0 }
0x2757   :  { %v1922_v35 = vadd.f32 %v7103_v54, %v1919_v51 }
0x2759   :  { %6681 = vtanh.f32 %v1922_v35  ;;  %v5808_v29 = vmul.f32 -1.442695, %v1922_v35 }
0x275b   :  { %6683 = vpow2.f32 %v5808_v29 }
0x275c   :  { %v2059_v42 = vpop.f32.mrb[16].mxu0 }
0x275d   :  { %v2060_v56 = vadd.f32 %v2059_v42, %v7763_v55  ;;  %v6129_v39 = vpop.f32.mrb[17].mxu0 }
0x275e   :  { %v7804_v39 = vld [vmem:[%s8980_s2 + $0x6] ss:$0 sm:$0xff] }
0x275f   :  { %2103 = vst.msk [vmem:[#allocation3] sm:$0xff] %vm119_vm0, %v2060_v56 }
0x2760   :  { %v2064_v26 = vpop.f32.mrb[18].mxu0 }
0x2761   :  { %v2065_v57 = vadd.f32 %v2064_v26, %v7763_v55  ;;  %v6132_v58 = vpop.f32.mrb[19].mxu0 }
0x2763   :  { %v6682_v59 = vpop.eup %6681  ;;  %2104 = vst.msk [vmem:[#allocation3 + $0x8] sm:$0xff] %vm119_vm0, %v2065_v57 }
0x2764   :  { %v2069_v53 = vpop.f32.mrb[20].mxu0  ;;  %1932 = vrot.lane.b32.xlu0 %v6682_v59, %s7196_s12 }
0x2765   :  { %v2070_v60 = vadd.f32 %v2069_v53, %v7763_v55  ;;  %v6135_v62 = vpop.f32.mrb[21].mxu0  ;;  %v6684_v6 = vpop.eup %6683 }
0x2766   :  { %v1926_v31 = vadd.f32 1.0, %v6684_v6  ;;  %v7785_v11 = vld [vmem:[#allocation3] sm:$0xff] }
0x2767   :  { %2105 = vst.msk [vmem:[#allocation3 + $0x10] sm:$0xff] %vm119_vm0, %v2070_v60  ;;  %v2231_v50 = vadd.f32 %v7785_v11, %v7755_v49 }
0x2768   :  { %v2074_v63 = vpop.f32.mrb[22].mxu0  ;;  %6685 = vrcp.f32 %v1926_v31 }
0x2769   :  { %v2075_v4 = vadd.f32 %v2074_v63, %v7763_v55  ;;  %v6138_v20 = vpop.f32.mrb[23].mxu0 }
0x276b   :  { %2106 = vst.msk [vmem:[#allocation3 + $0x18] sm:$0xff] %vm119_vm0, %v2075_v4 }
0x276c   :  { %v2079_v8 = vpop.f32.mrb[24].mxu0 }
0x276d   :  { %v2080_v38 = vadd.f32 %v2079_v8, %v7763_v55  ;;  %v6141_v13 = vpop.f32.mrb[25].mxu0 }
0x276e   :  { %v7789_v51 = vld [vmem:[#allocation3 + $0x10] sm:$0xff] }
0x276f   :  { %2107 = vst.msk [vmem:[#allocation3 + $0x20] sm:$0xff] %vm119_vm0, %v2080_v38  ;;  %v2233_v52 = vadd.f32 %v7789_v51, %v7755_v49 }
0x2770   :  { %v2084_v14 = vpop.f32.mrb[26].mxu0 }
0x2771   :  { %v2085_v17 = vadd.f32 %v2084_v14, %v7763_v55  ;;  %v6144_v18 = vpop.f32.mrb[27].mxu0 }
0x2772   :  { %v6686_v32 = vpop.eup %6685  ;;  %v7819_v18 = vld [vmem:[#allocation3 + $0x8] sm:$0xff] }
0x2773   :  { %2108 = vst.msk [vmem:[#allocation3 + $0x28] sm:$0xff] %vm119_vm0, %v2085_v17  ;;  %v1930_v36 = vmul.f32 %v6686_v32, %v7592_v44 }
0x2774   :  { %v2089_v21 = vpop.f32.mrb[28].mxu0 }
0x2775   :  { %v2090_v22 = vadd.f32 %v2089_v21, %v7763_v55  ;;  %v6147_v24 = vpop.f32.mrb[29].mxu0  ;;  %v2232_v21 = vadd.f32 %v7819_v18, %v7755_v49 }
0x2776   :  { %v7815_v14 = vld [vmem:[#allocation3 + $0x20] sm:$0xff] }
0x2777   :  { %2109 = vst.msk [vmem:[#allocation3 + $0x30] sm:$0xff] %vm119_vm0, %v2090_v22  ;;  %v2235_v17 = vadd.f32 %v7815_v14, %v7755_v49  ;;  %v7823_v22 = vld [vmem:[#allocation3 + $0x18] sm:$0xff] }
0x2778   :  { %v2094_v25 = vpop.f32.mrb[30].mxu0  ;;  %v2234_v24 = vadd.f32 %v7823_v22, %v7755_v49 }
0x2779   :  { %v2095_v34 = vadd.f32 %v2094_v25, %v7763_v55  ;;  %v6150_v28 = vpop.f32.mrb[31].mxu0 }
0x277a   :  { %v7793_v54 = vld [vmem:[#allocation3 + $0x28] sm:$0xff] }
0x277b   :  { %2110 = vst.msk [vmem:[#allocation3 + $0x38] sm:$0xff] %vm119_vm0, %v2095_v34  ;;  %v2236_v44 = vadd.f32 %v7793_v54, %v7755_v49 }
0x277e   :  { %v7827_v25 = vld [vmem:[#allocation3 + $0x30] sm:$0xff] }
0x277f   :  { %v2237_v34 = vadd.f32 %v7827_v25, %v7755_v49 }
0x2782   :  { %v7797_v35 = vld [vmem:[#allocation3 + $0x38] sm:$0xff] }
0x2783   :  { %v2238_v42 = vadd.f32 %v7797_v35, %v7755_v49 }
0x27d6   :  { %v1933_v33 = vpop.permute.xlu0 %1932 }
0x27d7   :  { %v1935_v12 = vmul.f32 %v6686_v32, %v1933_v33 }
0x27d9   :  { %1937 = vrot.lane.b32.xlu1 %v1935_v12, %s7197_s13 }
0x284b   :  { %v1938_v46 = vpop.permute.xlu1 %1937 }
0x284c   :  { %v1940_v37 = vadd.f32 %v1938_v46, %v1930_v36 }
0x284e   :  { %6687 = vtanh.f32 %v1940_v37 }
0x284f   :  { %6689 = vtanh.f32 %v2231_v50 }
0x2850   :  { %6691 = vtanh.f32 %v2233_v52 }
0x2851   :  { %6693 = vtanh.f32 %v2236_v44 }
0x2852   :  { %6695 = vtanh.f32 %v2238_v42 }
0x2853   :  { %6697 = vtanh.f32 %v2235_v17 }
0x2854   :  { %6699 = vtanh.f32 %v2232_v21 }
0x2855   :  { %6701 = vtanh.f32 %v2234_v24 }
0x2856   :  { %6703 = vtanh.f32 %v2237_v34 }
0x2858   :  { %v6688_v3 = vpop.eup %6687 }
0x2859   :  { %1943 = vrot.lane.b32.xlu1 %v6688_v3, %s7196_s12  ;;  %v6690_v56 = vpop.eup %6689 }
0x285a   :  { %v2250_v26 = vmul.f32 %v6690_v56, %v7804_v39  ;;  %v6692_v57 = vpop.eup %6691 }
0x285b   :  { %v2252_v59 = vmul.f32 %v6692_v57, %v7804_v39  ;;  %v6694_v53 = vpop.eup %6693 }
0x285c   :  { %v2259_v58 = vsel %vm119_vm0, %v2250_v26, 0.0  ;;  %v2255_v62 = vmul.f32 %v6694_v53, %v7804_v39  ;;  %v6696_v63 = vpop.eup %6695 }
0x285d   :  { %v2265_v60 = vsel %vm119_vm0, %v2252_v59, 0.0  ;;  %v2257_v20 = vmul.f32 %v6696_v63, %v7804_v39  ;;  %v6698_v28 = vpop.eup %6697 }
0x285e   :  { %v2274_v4 = vsel %vm119_vm0, %v2255_v62, 0.0  ;;  %v2254_v29 = vmul.f32 %v6698_v28, %v7804_v39  ;;  %v6700_v6 = vpop.eup %6699  ;;  %v8988_v62 = vmov 1  }
0x285f   :  { %v2280_v8 = vsel %vm119_vm0, %v2257_v20, 0.0  ;;  %v6702_v33 = vpop.eup %6701  ;;  %6560 = vset.pattern.permute.xlu1 %v8988_v62  ;;  %6561 = vset.pattern.permute.xlu0 %v8988_v62 }
0x2860   :  { %v2271_v31 = vsel %vm119_vm0, %v2254_v29, 0.0  ;;  %v2253_v36 = vmul.f32 %v6702_v33, %v7804_v39  ;;  %v6704_v46 = vpop.eup %6703 }
0x2861   :  { %v2256_v3 = vmul.f32 %v6704_v46, %v7804_v39 }
0x2862   :  { %v2268_v37 = vsel %vm119_vm0, %v2253_v36, 0.0 }
0x2863   :  { %v2277_v50 = vsel %vm119_vm0, %v2256_v3, 0.0 }
0x287d   :  { %2260 = vadd.xlane.f32.xlu1 %v2259_v58 }
0x2881   :  { %2266 = vadd.xlane.f32.xlu1 %v2265_v60 }
0x2885   :  { %2275 = vadd.xlane.f32.xlu1 %v2274_v4 }
0x2889   :  { %2281 = vadd.xlane.f32.xlu1 %v2280_v8 }
0x28cb   :  { %v1944_v38 = vpop.permute.xlu1 %1943 }
0x28cc   :  { %v1946_v13 = vmul.f32 %v6686_v32, %v1944_v38  ;;  %v2251_v32 = vmul.f32 %v6700_v6, %v7804_v39 }
0x28ce   :  { %1948 = vrot.lane.b32.xlu0 %v1946_v13, %s7197_s13  ;;  %v2262_v12 = vsel %vm119_vm0, %v2251_v32, 0.0 }
0x28ed   :  { %2272 = vadd.xlane.f32.xlu0 %v2271_v31 }
0x28f1   :  { %2263 = vadd.xlane.f32.xlu0 %v2262_v12 }
0x28f5   :  { %2269 = vadd.xlane.f32.xlu0 %v2268_v37 }
0x28f9   :  { %2278 = vadd.xlane.f32.xlu0 %v2277_v50 }
0x290a   :  { %v2261_v63 = vpop.xlane.xlu1 %2260 }
0x290e   :  { %v2267_v20 = vpop.xlane.xlu1 %2266 }
0x2912   :  { %v2276_v38 = vpop.xlane.xlu1 %2275 }
0x2916   :  { %v2282_v34 = vpop.xlane.xlu1 %2281 }
0x2940   :  { %v1949_v52 = vpop.permute.xlu0 %1948 }
0x2941   :  { %1951 = vst.msk [vmem:[#allocation2 + $0x40] sm:$0xff] %vm119_vm0, %v1949_v52 }
0x2948   :  { %v7840_v44 = vld [vmem:[#allocation2 + $0x40] sm:$0xff] }
0x2949   :  { %6152 = vmatmul.mubr.msk.f32.gmra.mrb[32].mxu0 %vm119_vm0, %v7840_v44 }
0x294a   :  { %6173 = vmatprep.mubr.msk.f32.mxu0 %vm7194_vm2, %v8982_v5 }
0x2a1c   :  { %v2099_v42 = vpop.f32.mrb[32].mxu0 }
0x2a1d   :  { %v2100_v56 = vadd.f32 %v2099_v42, %v7763_v55  ;;  %v6153_v26 = vpop.f32.mrb[33].mxu0  ;;  %v2273_v55 = vpop.xlane.xlu0 %2272 }
0x2a1f   :  { %2111 = vst.msk [vmem:[#allocation3 + $0x40] sm:$0xff] %vm119_vm0, %v2100_v56 }
0x2a21   :  { %v2264_v4 = vpop.xlane.xlu0 %2263 }
0x2a25   :  { %v2270_v8 = vpop.xlane.xlu0 %2269 }
0x2a26   :  { %v7848_v57 = vld [vmem:[#allocation3 + $0x40] sm:$0xff] }
0x2a27   :  { %v2239_v58 = vadd.f32 %v7848_v57, %v7755_v49  ;;  %v7859_v49 = vld [vmem:[%s8980_s2 + $0x10] ss:$0 sm:$0xff] }
0x2a28   :  { %v2290_v17 = vadd.f32 %v7859_v49, %v2273_v55  ;;  %v2286_v24 = vadd.f32 %v7859_v49, %v2261_v63  ;;  %v2288_v28 = vadd.f32 %v7859_v49, %v2267_v20  ;;  %v2287_v29 = vadd.f32 %v7859_v49, %v2264_v4 }
0x2a29   :  { %6705 = vtanh.f32 %v2239_v58  ;;  %v2279_v13 = vpop.xlane.xlu0 %2278  ;;  %v2289_v6 = vadd.f32 %v7859_v49, %v2270_v8  ;;  %v2291_v31 = vadd.f32 %v7859_v49, %v2276_v38  ;;  %v2293_v32 = vadd.f32 %v7859_v49, %v2282_v34 }
0x2a2a   :  { %v2292_v21 = vadd.f32 %v7859_v49, %v2279_v13  ;;  %v2300_v33 = vsel %vm2295_vm4, %v2290_v17, -inf  ;;  %v2296_v36 = vsel %vm2295_vm4, %v2286_v24, -inf  ;;  %v2298_v37 = vsel %vm2295_vm4, %v2288_v28, -inf }
0x2a2b   :  { %v2297_v3 = vsel %vm2295_vm4, %v2287_v29, -inf  ;;  %v2299_v50 = vsel %vm2295_vm4, %v2289_v6, -inf  ;;  %v2301_v42 = vmax.f32 %v2296_v36, %v2300_v33  ;;  %v2302_v26 = vsel %vm2295_vm4, %v2291_v31, -inf }
0x2a2c   :  { %v2304_v12 = vsel %vm2295_vm4, %v2292_v21, -inf  ;;  %v2306_v58 = vsel %vm2295_vm4, %v2293_v32, -inf }
0x2a2d   :  { %v2305_v56 = vmax.f32 %v2298_v37, %v2304_v12 }
0x2a33   :  { %v6706_v59 = vpop.eup %6705 }
0x2a34   :  { %v2258_v53 = vmul.f32 %v6706_v59, %v7804_v39 }
0x2a36   :  { %v2283_v60 = vsel %vm119_vm0, %v2258_v53, 0.0  ;;  %v2303_v53 = vmax.f32 %v2297_v3, %v2302_v26 }
0x2a37   :  { %2284 = vadd.xlane.f32.xlu0 %v2283_v60  ;;  %v2307_v60 = vmax.f32 %v2299_v50, %v2306_v58 }
0x2a39   :  { %v2311_v63 = vmax.f32 %v2305_v56, %v2307_v60 }
0x2ac4   :  { %v2285_v46 = vpop.xlane.xlu0 %2284 }
0x2ac5   :  { %v2294_v52 = vadd.f32 %v7859_v49, %v2285_v46 }
0x2ac7   :  { %v2308_v59 = vsel %vm2295_vm4, %v2294_v52, -inf }
0x2ac8   :  { %v2309_v55 = vmax.f32 %v2301_v42, %v2308_v59 }
0x2aca   :  { %v2310_v4 = vmax.f32 %v2309_v55, %v2303_v53 }
0x2acc   :  { %v2312_v20 = vmax.f32 %v2310_v4, %v2311_v63 }
0x2ace   :  { %v2313_v8 = vsub.f32 %v2286_v24, %v2312_v20  ;;  %v2314_v38 = vsub.f32 %v2287_v29, %v2312_v20  ;;  %v2315_v13 = vsub.f32 %v2288_v28, %v2312_v20  ;;  %v2316_v34 = vsub.f32 %v2289_v6, %v2312_v20 }
0x2acf   :  { %v2317_v5 = vsub.f32 %v2290_v17, %v2312_v20  ;;  %v2318_v36 = vsub.f32 %v2291_v31, %v2312_v20  ;;  %v2319_v2 = vsub.f32 %v2292_v21, %v2312_v20  ;;  %v2320_v3 = vsub.f32 %v2293_v32, %v2312_v20 }
0x2ad0   :  { %v2322_v46 = vmul.f32 1.442695, %v2313_v8  ;;  %v2324_v33 = vmul.f32 1.442695, %v2314_v38  ;;  %v2326_v12 = vmul.f32 1.442695, %v2315_v13  ;;  %v2321_v42 = vsub.f32 %v2294_v52, %v2312_v20 }
0x2ad1   :  { %v2328_v37 = vmul.f32 1.442695, %v2316_v34  ;;  %v2330_v1 = vmul.f32 1.442695, %v2317_v5  ;;  %v2332_v50 = vmul.f32 1.442695, %v2318_v36 }
0x2ad2   :  { %6707 = vpow2.f32 %v2322_v46  ;;  %v2334_v24 = vmul.f32 1.442695, %v2319_v2  ;;  %v2336_v28 = vmul.f32 1.442695, %v2320_v3  ;;  %v2338_v17 = vmul.f32 1.442695, %v2321_v42 }
0x2ad3   :  { %6709 = vpow2.f32 %v2324_v33  ;;  %v8987_v42 = vmov 3  }
0x2ad4   :  { %6711 = vpow2.f32 %v2326_v12 }
0x2ad5   :  { %6713 = vpow2.f32 %v2328_v37 }
0x2ad6   :  { %6715 = vpow2.f32 %v2330_v1 }
0x2ad7   :  { %6717 = vpow2.f32 %v2332_v50 }
0x2ad8   :  { %6719 = vpow2.f32 %v2334_v24 }
0x2ad9   :  { %6721 = vpow2.f32 %v2336_v28 }
0x2ada   :  { %6723 = vpow2.f32 %v2338_v17 }
0x2adc   :  { %v6708_v29 = vpop.eup %6707 }
0x2add   :  { %v6710_v6 = vpop.eup %6709  ;;  %v2340_v31 = vsel %vm2295_vm4, %v6708_v29, 0.0 }
0x2ade   :  { %v6712_v56 = vpop.eup %6711  ;;  %v2341_v21 = vsel %vm2295_vm4, %v6710_v6, 0.0 }
0x2adf   :  { %v6714_v5 = vpop.eup %6713  ;;  %v2342_v32 = vadd.f32 %v2341_v21, %v2340_v31  ;;  %v2343_v26 = vsel %vm2295_vm4, %v6712_v56, 0.0  ;;  %v2439_v21 = vld [vmem:[%s8980_s2 + $0xa0] sm:$0xff] }
0x2ae0   :  { %v6716_v52 = vpop.eup %6715  ;;  %v2345_v2 = vsel %vm2295_vm4, %v6714_v5, 0.0 }
0x2ae1   :  { %v2344_v1 = vadd.f32 %v2343_v26, %v2342_v32  ;;  %v6718_v58 = vpop.eup %6717  ;;  %v2347_v53 = vsel %vm2295_vm4, %v6716_v52, 0.0  ;;  %v9016_v32 = vmov 0.0|0.0   ;;  %v2440_v26 = vld [vmem:[%s8980_s2 + $0xb0] sm:$0xff] }
0x2ae2   :  { %v6720_v60 = vpop.eup %6719  ;;  %v2349_v63 = vsel %vm2295_vm4, %v6718_v58, 0.0 }
0x2ae3   :  { %v2346_v59 = vadd.f32 %v2345_v2, %v2344_v1  ;;  %v6722_v4 = vpop.eup %6721  ;;  %v2351_v8 = vsel %vm2295_vm4, %v6720_v60, 0.0  ;;  %v8990_v1 = vmov 2  }
0x2ae4   :  { %v6724_v38 = vpop.eup %6723  ;;  %v2353_v34 = vsel %vm2295_vm4, %v6722_v4, 0.0 }
0x2ae5   :  { %v2348_v55 = vadd.f32 %v2347_v53, %v2346_v59  ;;  %v2355_v33 = vsel %vm2295_vm4, %v6724_v38, 0.0 }
0x2ae7   :  { %v2350_v20 = vadd.f32 %v2349_v63, %v2348_v55 }
0x2ae9   :  { %v2352_v13 = vadd.f32 %v2351_v8, %v2350_v20 }
0x2aeb   :  { %v2354_v46 = vadd.f32 %v2353_v34, %v2352_v13 }
0x2aed   :  { %v2356_v12 = vadd.f32 %v2355_v33, %v2354_v46 }
0x2aef   :  { %6725 = vrcp.f32 %v2356_v12 }
0x2af9   :  { %v6726_v36 = vpop.eup %6725 }
0x2afa   :  { %v2359_v37 = vmul.f32 %v6726_v36, %v6710_v6  ;;  %v2358_v3 = vmul.f32 %v6726_v36, %v6708_v29  ;;  %v2360_v50 = vmul.f32 %v6726_v36, %v6712_v56  ;;  %v2361_v24 = vmul.f32 %v6726_v36, %v6714_v5  ;;  %v2438_v56 = vld [vmem:[%s8980_s2 + $0x90] sm:$0xff] }
0x2afb   :  { %v2362_v28 = vmul.f32 %v6726_v36, %v6716_v52  ;;  %v2363_v17 = vmul.f32 %v6726_v36, %v6718_v58  ;;  %v2364_v31 = vmul.f32 %v6726_v36, %v6720_v60  ;;  %v2365_v29 = vmul.f32 %v6726_v36, %v6722_v4  ;;  %v2441_v52 = vld [vmem:[%s8980_s2 + $0xc0] sm:$0xff] }
0x2afc   :  { %2374 = vperm.xlu0 %6561, %v2359_v37   ;;  %2369 = vperm.xlu1 %6560, %v2358_v3   ;;  %v2366_v6 = vmul.f32 %v6726_v36, %v6724_v38  ;;  %v7897_v5 = vpack.c.bf16 %v2439_v21, %v2438_v56  ;;  %v7910_v2 = vpack.c.bf16 %v2441_v52, %v2440_v26  ;;  %v9017_v58 = vmov 0  }
0x2afe   :  { %6350 = vmatpush3.bf16.msra.mxu1 %v7897_v5  ;;  %6372 = vmatpush3.bf16.msra.mxu0 %v7897_v5 }
0x2aff   :  { %6351 = vmatprep.subr.bf16.mxu1 %v9016_v32  ;;  %6373 = vmatprep.subr.bf16.mxu0 %v9016_v32 }
0x2b00   :  { %2379 = vperm.xlu1 %6560, %v2360_v50   ;;  %6563 = vset.pattern.permute.xlu0 %v8987_v42 }
0x2b01   :  { %2119 = vperm.xlu0 %6563, %v7859_v49  }
0x2b02   :  { %6353 = vmatpush3.bf16.msra.mxu1 %v7910_v2  ;;  %6375 = vmatpush3.bf16.msra.mxu0 %v7910_v2 }
0x2b03   :  { %6355 = vmatprep.subr.bf16.mxu1 %v7615_v61  ;;  %6392 = vmatprep.subr.bf16.mxu0 %v9016_v32 }
0x2b04   :  { %2384 = vperm.xlu1 %6560, %v2361_v24  }
0x2b05   :  { %6566 = vset.pattern.permute.xlu0 %v8988_v62 }
0x2b08   :  { %2389 = vperm.xlu1 %6560, %v2362_v28  }
0x2b0c   :  { %2394 = vperm.xlu1 %6560, %v2363_v17  }
0x2b10   :  { %2399 = vperm.xlu1 %6560, %v2364_v31  }
0x2b14   :  { %2404 = vperm.xlu1 %6560, %v2365_v29  }
0x2b18   :  { %2409 = vperm.xlu1 %6560, %v2366_v6  }
0x2b1c   :  { %6562 = vset.pattern.permute.xlu1 %v8990_v1 }
0x2b1d   :  { %2114 = vperm.xlu1 %6562, %v7859_v49  }
0x2b21   :  { %6564 = vset.pattern.permute.xlu1 %v9017_v58 }
0x2b7b   :  { %v2370_v59 = vpop.permute.xlu1 %2369  ;;  %v2375_v60 = vpop.permute.xlu0 %2374 }
0x2b7c   :  { %v2413_v63 = vmul.f32 %v2375_v60, %v7711_v41  ;;  %v2412_v4 = vmul.f32 %v2370_v59, %v7705_v40  ;;  %v9018_v60 = vmov 0.0  }
0x2b7e   :  { %v2422_v38 = vsel %vm119_vm0, %v2413_v63, 0.0  ;;  %v2421_v13 = vsel %vm119_vm0, %v2412_v4, 0.0  ;;  %v7956_v63 = vld [vmem:[%s8980_s2 + $0x2] ss:$0 sm:$0xff] }
0x2b7f   :  { %v2380_v53 = vpop.permute.xlu1 %2379  ;;  %v2423_v36 = vadd.f32 %v2422_v38, %v2421_v13 }
0x2b80   :  { %v2414_v8 = vmul.f32 %v2380_v53, %v7717_v30  ;;  %v2120_v53 = vpop.permute.xlu0 %2119 }
0x2b82   :  { %v2424_v33 = vsel %vm119_vm0, %v2414_v8, 0.0 }
0x2b83   :  { %v2385_v55 = vpop.permute.xlu1 %2384  ;;  %v2425_v40 = vadd.f32 %v2424_v33, %v2423_v36 }
0x2b84   :  { %v2415_v34 = vmul.f32 %v2385_v55, %v7723_v7 }
0x2b86   :  { %v2426_v37 = vsel %vm119_vm0, %v2415_v34, 0.0  ;;  %v7963_v34 = vld [vmem:[%s8980_s2 + $0x1] ss:$0 sm:$0xff] }
0x2b87   :  { %v2390_v20 = vpop.permute.xlu1 %2389  ;;  %v2427_v24 = vadd.f32 %v2426_v37, %v2425_v40 }
0x2b88   :  { %v2416_v12 = vmul.f32 %v2390_v20, %v7729_v43 }
0x2b8a   :  { %v2428_v30 = vsel %vm119_vm0, %v2416_v12, 0.0 }
0x2b8b   :  { %v2395_v46 = vpop.permute.xlu1 %2394  ;;  %v2429_v7 = vadd.f32 %v2428_v30, %v2427_v24 }
0x2b8c   :  { %v2417_v41 = vmul.f32 %v2395_v46, %v7735_v16 }
0x2b8e   :  { %v2430_v28 = vsel %vm119_vm0, %v2417_v41, 0.0 }
0x2b8f   :  { %v2400_v3 = vpop.permute.xlu1 %2399  ;;  %v2431_v29 = vadd.f32 %v2430_v28, %v2429_v7 }
0x2b90   :  { %v2418_v50 = vmul.f32 %v2400_v3, %v7741_v45  ;;  %v2112_v45 = vld [vmem:[%s8979_s1] sm:$0xff] }
0x2b92   :  { %v2432_v31 = vsel %vm119_vm0, %v2418_v50, 0.0 }
0x2b93   :  { %v2405_v17 = vpop.permute.xlu1 %2404  ;;  %v2433_v56 = vadd.f32 %v2432_v31, %v2431_v29 }
0x2b94   :  { %v2419_v43 = vmul.f32 %v2405_v17, %v7747_v47 }
0x2b96   :  { %v2434_v6 = vsel %vm119_vm0, %v2419_v43, 0.0 }
0x2b97   :  { %v2410_v16 = vpop.permute.xlu1 %2409  ;;  %v2435_v26 = vadd.f32 %v2434_v6, %v2433_v56 }
0x2b98   :  { %v2420_v21 = vmul.f32 %v2410_v16, %v7840_v44 }
0x2b9a   :  { %v2436_v52 = vsel %vm119_vm0, %v2420_v21, 0.0 }
0x2b9b   :  { %v2437_v58 = vadd.f32 %v2436_v52, %v2435_v26 }
0x2b9c   :  { %v2115_v59 = vpop.permute.xlu1 %2114 }
0x2b9d   :  { %6163 = vmatmul.mubr.msk.f32.vlgmr.msra.gmra.mrb[22].mxu1 %vm119_vm0, %v2437_v58  ;;  %v2117_v47 = vmul.f32 %v2115_v59, %v2112_v45 }
0x2b9e   :  { %6357 = vmatpush1.bf16.msra.mxu1 %v7623_v0  ;;  %2621 = vmatprep.mubr.f32.mxu1 %v9018_v60 }
0x2b9f   :  { %v7942_v55 = vadd.f32 %v2120_v53, %v2117_v47  ;;  %6359 = vmatprep.subr.bf16.mxu1 %v7639_v9 }
0x2ba1   :  { %2518 = vperm.xlu1 %6564, %v7942_v55  }
0x2ba2   :  { %6361 = vmatpush1.bf16.msra.mxu1 %v7641_v10 }
0x2ba3   :  { %6363 = vmatprep.subr.bf16.mxu1 %v7651_v15 }
0x2ba5   :  { %6565 = vset.pattern.permute.xlu1 %v8988_v62 }
0x2ba6   :  { %6365 = vmatpush1.bf16.msra.mxu1 %v7659_v19 }
0x2ba7   :  { %6367 = vmatprep.subr.bf16.mxu1 %v7669_v23 }
0x2baa   :  { %6369 = vmatpush1.bf16.msra.mxu1 %v7677_v27 }
0x2bab   :  { %6377 = vmatprep.subr.bf16.mxu1 %v7615_v61 }
0x2c20   :  { %v2519_v4 = vpop.permute.xlu1 %2518 }
0x2c21   :  { %v2521_v20 = vmul.f32 %v2519_v4, %v7956_v63 }
0x2c70   :  { %v2511_v8 = vpop.f32.mrb[22].mxu1 }
0x2c71   :  { %v2512_v38 = vadd.f32 %v2511_v8, %v7753_v48  ;;  %v6164_v13 = vpop.f32.mrb[23].mxu1 }
0x2c73   :  { %v2522_v46 = vadd.f32 %v2521_v20, %v2512_v38 }
0x2c75   :  { %v2524_v33 = vadd.f32 %v7963_v34, %v2522_v46 }
0x2c77   :  { %6727 = vtanh.f32 %v2524_v33  ;;  %v5819_v36 = vmul.f32 -1.442695, %v2524_v33 }
0x2c79   :  { %6729 = vpow2.f32 %v5819_v36 }
0x2c81   :  { %v6728_v12 = vpop.eup %6727 }
0x2c82   :  { %2534 = vrot.lane.b32.xlu1 %v6728_v12, %s7196_s12 }
0x2c83   :  { %v6730_v37 = vpop.eup %6729 }
0x2c84   :  { %v2528_v41 = vadd.f32 1.0, %v6730_v37 }
0x2c86   :  { %6731 = vrcp.f32 %v2528_v41 }
0x2c90   :  { %v6732_v40 = vpop.eup %6731 }
0x2c91   :  { %v2532_v30 = vmul.f32 0.0, %v6732_v40 }
0x2cf4   :  { %v2535_v48 = vpop.permute.xlu1 %2534 }
0x2cf5   :  { %v2537_v3 = vmul.f32 %v6732_v40, %v2535_v48 }
0x2cf7   :  { %2539 = vrot.lane.b32.xlu0 %v2537_v3, %s7197_s13 }
0x2d69   :  { %v2540_v50 = vpop.permute.xlu0 %2539 }
0x2d6a   :  { %v7968_v24 = vadd.f32 %v2540_v50, %v2532_v30 }
0x2d6c   :  { %6733 = vtanh.f32 %v7968_v24 }
0x2d76   :  { %v6734_v28 = vpop.eup %6733 }
0x2d77   :  { %2545 = vrot.lane.b32.xlu1 %v6734_v28, %s7196_s12 }
0x2de9   :  { %v2546_v7 = vpop.permute.xlu1 %2545 }
0x2dea   :  { %v2548_v17 = vmul.f32 %v6732_v40, %v2546_v7 }
0x2dec   :  { %2550 = vrot.lane.b32.xlu0 %v2548_v17, %s7197_s13 }
0x2e5e   :  { %v2551_v31 = vpop.permute.xlu0 %2550 }
0x2e5f   :  { %v2553_v43 = vsel %vm119_vm0, %v2551_v31, %v7968_v24 }
0x2e60   :  { %5820 = vmatmul.mubr.msk.f32.vlgmr.msra.gmra.mrb[24].mxu1 %vm2139_vm5, %v2553_v43 }
0x2e61   :  { %6379 = vmatpush1.bf16.msra.mxu1 %v7623_v0  ;;  %3009 = vmatprep.mubr.f32.mxu1 %v9018_v60 }
0x2e62   :  { %6381 = vmatprep.subr.bf16.mxu1 %v7639_v9 }
0x2e65   :  { %6383 = vmatpush1.bf16.msra.mxu1 %v7641_v10 }
0x2e66   :  { %6385 = vmatprep.subr.bf16.mxu1 %v7651_v15 }
0x2e69   :  { %6387 = vmatpush1.bf16.msra.mxu1 %v7659_v19 }
0x2e6a   :  { %6389 = vmatprep.subr.bf16.mxu1 %v7669_v23 }
0x2e6d   :  { %6391 = vmatpush1.bf16.msra.mxu1 %v7677_v27 }
0x2e6e   :  { %6414 = vmatprep.subr.bf16.mxu1 %v9016_v32 }
0x2f33   :  { %v7985_v29 = vpop.f32.mrb[24].mxu1 }
0x2f34   :  { %v2625_v6 = vpop.f32.mrb[25].mxu1 }
0x2f35   :  { %v2632_v56 = vadd.f32 %v2625_v6, %v7815_v14  ;;  %v2628_v16 = vadd.f32 %v2625_v6, %v7785_v11  ;;  %v2629_v21 = vadd.f32 %v2625_v6, %v7819_v18  ;;  %v2630_v26 = vadd.f32 %v2625_v6, %v7789_v51 }
0x2f36   :  { %v2631_v52 = vadd.f32 %v2625_v6, %v7823_v22  ;;  %v2633_v45 = vadd.f32 %v2625_v6, %v7793_v54  ;;  %v2634_v58 = vadd.f32 %v2625_v6, %v7827_v25  ;;  %v2635_v14 = vadd.f32 %v2625_v6, %v7797_v35 }
0x2f37   :  { %6735 = vtanh.f32 %v2632_v56  ;;  %v2636_v11 = vadd.f32 %v2625_v6, %v7848_v57 }
0x2f38   :  { %6737 = vtanh.f32 %v2628_v16 }
0x2f39   :  { %6739 = vtanh.f32 %v2629_v21 }
0x2f3a   :  { %6741 = vtanh.f32 %v2630_v26 }
0x2f3b   :  { %6743 = vtanh.f32 %v2631_v52 }
0x2f3c   :  { %6745 = vtanh.f32 %v2633_v45 }
0x2f3d   :  { %6747 = vtanh.f32 %v2634_v58 }
0x2f3e   :  { %6749 = vtanh.f32 %v2635_v14 }
0x2f3f   :  { %6751 = vtanh.f32 %v2636_v11 }
0x2f41   :  { %v6736_v18 = vpop.eup %6735 }
0x2f42   :  { %v6738_v51 = vpop.eup %6737  ;;  %v2650_v59 = vmul.f32 %v6736_v18, %v7804_v39 }
0x2f43   :  { %v6740_v22 = vpop.eup %6739  ;;  %v2646_v53 = vmul.f32 %v6738_v51, %v7804_v39 }
0x2f44   :  { %v6742_v54 = vpop.eup %6741  ;;  %v2667_v47 = vsel %vm119_vm0, %v2650_v59, 0.0  ;;  %v2647_v25 = vmul.f32 %v6740_v22, %v7804_v39 }
0x2f45   :  { %v6744_v4 = vpop.eup %6743  ;;  %2668 = vadd.xlane.f32.xlu0 %v2667_v47  ;;  %v2655_v35 = vsel %vm119_vm0, %v2646_v53, 0.0  ;;  %v2648_v20 = vmul.f32 %v6742_v54, %v7804_v39 }
0x2f46   :  { %v6746_v8 = vpop.eup %6745  ;;  %2656 = vadd.xlane.f32.xlu1 %v2655_v35  ;;  %v2658_v38 = vsel %vm119_vm0, %v2647_v25, 0.0  ;;  %v2649_v13 = vmul.f32 %v6744_v4, %v7804_v39 }
0x2f47   :  { %v6748_v46 = vpop.eup %6747  ;;  %v2661_v33 = vsel %vm119_vm0, %v2648_v20, 0.0  ;;  %v2651_v12 = vmul.f32 %v6746_v8, %v7804_v39 }
0x2f48   :  { %v6750_v36 = vpop.eup %6749  ;;  %v2664_v37 = vsel %vm119_vm0, %v2649_v13, 0.0  ;;  %v2652_v41 = vmul.f32 %v6748_v46, %v7804_v39 }
0x2f49   :  { %2659 = vadd.xlane.f32.xlu0 %v2658_v38  ;;  %v6752_v40 = vpop.eup %6751  ;;  %v2670_v48 = vsel %vm119_vm0, %v2651_v12, 0.0  ;;  %v2653_v3 = vmul.f32 %v6750_v36, %v7804_v39 }
0x2f4a   :  { %2662 = vadd.xlane.f32.xlu1 %v2661_v33  ;;  %v2673_v30 = vsel %vm119_vm0, %v2652_v41, 0.0  ;;  %v2654_v50 = vmul.f32 %v6752_v40, %v7804_v39 }
0x2f4b   :  { %v2676_v28 = vsel %vm119_vm0, %v2653_v3, 0.0 }
0x2f4c   :  { %v2679_v7 = vsel %vm119_vm0, %v2654_v50, 0.0 }
0x2f4d   :  { %2665 = vadd.xlane.f32.xlu0 %v2664_v37 }
0x2f4e   :  { %2671 = vadd.xlane.f32.xlu1 %v2670_v48 }
0x2f51   :  { %2674 = vadd.xlane.f32.xlu0 %v2673_v30 }
0x2f52   :  { %2677 = vadd.xlane.f32.xlu1 %v2676_v28 }
0x2f55   :  { %2680 = vadd.xlane.f32.xlu0 %v2679_v7 }
0x2fd2   :  { %v2669_v17 = vpop.xlane.xlu0 %2668 }
0x2fd3   :  { %v2657_v31 = vpop.xlane.xlu1 %2656  ;;  %v2686_v21 = vadd.f32 %v7859_v49, %v2669_v17 }
0x2fd4   :  { %v2682_v26 = vadd.f32 %v7859_v49, %v2657_v31 }
0x2fd5   :  { %v2695_v51 = vsel %vm2295_vm4, %v2686_v21, -inf }
0x2fd6   :  { %v2660_v43 = vpop.xlane.xlu0 %2659  ;;  %v2691_v59 = vsel %vm2295_vm4, %v2682_v26, -inf }
0x2fd7   :  { %v2663_v6 = vpop.xlane.xlu1 %2662  ;;  %v2683_v22 = vadd.f32 %v7859_v49, %v2660_v43  ;;  %v2696_v8 = vmax.f32 %v2691_v59, %v2695_v51 }
0x2fd8   :  { %v2684_v39 = vadd.f32 %v7859_v49, %v2663_v6 }
0x2fd9   :  { %v2692_v46 = vsel %vm2295_vm4, %v2683_v22, -inf }
0x2fda   :  { %v2666_v56 = vpop.xlane.xlu0 %2665  ;;  %v2693_v25 = vsel %vm2295_vm4, %v2684_v39, -inf }
0x2fdb   :  { %v2672_v16 = vpop.xlane.xlu1 %2671  ;;  %v2685_v45 = vadd.f32 %v7859_v49, %v2666_v56 }
0x2fdc   :  { %v2687_v58 = vadd.f32 %v7859_v49, %v2672_v16 }
0x2fdd   :  { %v2694_v4 = vsel %vm2295_vm4, %v2685_v45, -inf }
0x2fde   :  { %v2675_v52 = vpop.xlane.xlu0 %2674  ;;  %v2697_v35 = vsel %vm2295_vm4, %v2687_v58, -inf }
0x2fdf   :  { %v2688_v14 = vadd.f32 %v7859_v49, %v2675_v52  ;;  %v2678_v11 = vpop.xlane.xlu1 %2677  ;;  %v2698_v12 = vmax.f32 %v2692_v46, %v2697_v35 }
0x2fe0   :  { %v2689_v18 = vadd.f32 %v7859_v49, %v2678_v11 }
0x2fe1   :  { %v2699_v53 = vsel %vm2295_vm4, %v2688_v14, -inf }
0x2fe2   :  { %v2701_v54 = vsel %vm2295_vm4, %v2689_v18, -inf  ;;  %v2681_v47 = vpop.xlane.xlu0 %2680  ;;  %v2700_v38 = vmax.f32 %v2693_v25, %v2699_v53 }
0x2fe3   :  { %v2690_v20 = vadd.f32 %v7859_v49, %v2681_v47  ;;  %v2702_v13 = vmax.f32 %v2694_v4, %v2701_v54 }
0x2fe5   :  { %v2703_v33 = vsel %vm2295_vm4, %v2690_v20, -inf  ;;  %v2706_v37 = vmax.f32 %v2700_v38, %v2702_v13 }
0x2fe6   :  { %v2704_v36 = vmax.f32 %v2696_v8, %v2703_v33 }
0x2fe8   :  { %v2705_v41 = vmax.f32 %v2704_v36, %v2698_v12 }
0x2fea   :  { %v2707_v40 = vmax.f32 %v2705_v41, %v2706_v37 }
0x2fec   :  { %v2708_v48 = vsub.f32 %v2682_v26, %v2707_v40  ;;  %v2709_v3 = vsub.f32 %v2683_v22, %v2707_v40  ;;  %v2710_v30 = vsub.f32 %v2684_v39, %v2707_v40  ;;  %v2711_v50 = vsub.f32 %v2685_v45, %v2707_v40 }
0x2fed   :  { %v2712_v28 = vsub.f32 %v2686_v21, %v2707_v40  ;;  %v2713_v31 = vsub.f32 %v2687_v58, %v2707_v40  ;;  %v2714_v6 = vsub.f32 %v2688_v14, %v2707_v40  ;;  %v2715_v16 = vsub.f32 %v2689_v18, %v2707_v40 }
0x2fee   :  { %v2717_v7 = vmul.f32 1.442695, %v2708_v48  ;;  %v2719_v17 = vmul.f32 1.442695, %v2709_v3  ;;  %v2721_v49 = vmul.f32 1.442695, %v2710_v30  ;;  %v2716_v11 = vsub.f32 %v2690_v20, %v2707_v40 }
0x2fef   :  { %v2723_v43 = vmul.f32 1.442695, %v2711_v50  ;;  %v2725_v56 = vmul.f32 1.442695, %v2712_v28  ;;  %v2727_v52 = vmul.f32 1.442695, %v2713_v31 }
0x2ff0   :  { %6753 = vpow2.f32 %v2717_v7  ;;  %v2729_v26 = vmul.f32 1.442695, %v2714_v6  ;;  %v2731_v39 = vmul.f32 1.442695, %v2715_v16  ;;  %v2733_v21 = vmul.f32 1.442695, %v2716_v11 }
0x2ff1   :  { %6755 = vpow2.f32 %v2719_v17 }
0x2ff2   :  { %6757 = vpow2.f32 %v2721_v49 }
0x2ff3   :  { %6759 = vpow2.f32 %v2723_v43 }
0x2ff4   :  { %6761 = vpow2.f32 %v2725_v56 }
0x2ff5   :  { %6763 = vpow2.f32 %v2727_v52 }
0x2ff6   :  { %6765 = vpow2.f32 %v2729_v26 }
0x2ff7   :  { %6767 = vpow2.f32 %v2731_v39  ;;  %v8042_v39 = vld [vmem:[#allocation2 + $0x8] sm:$0xff] }
0x2ff8   :  { %6769 = vpow2.f32 %v2733_v21 }
0x2ffa   :  { %v6754_v45 = vpop.eup %6753 }
0x2ffb   :  { %v6756_v51 = vpop.eup %6755  ;;  %v2735_v58 = vsel %vm2295_vm4, %v6754_v45, 0.0 }
0x2ffc   :  { %v6758_v59 = vpop.eup %6757  ;;  %v2736_v14 = vsel %vm2295_vm4, %v6756_v51, 0.0 }
0x2ffd   :  { %v6760_v22 = vpop.eup %6759  ;;  %v2737_v18 = vadd.f32 %v2736_v14, %v2735_v58  ;;  %v2738_v53 = vsel %vm2295_vm4, %v6758_v59, 0.0 }
0x2ffe   :  { %v6762_v54 = vpop.eup %6761  ;;  %v2740_v25 = vsel %vm2295_vm4, %v6760_v22, 0.0 }
0x2fff   :  { %v2739_v47 = vadd.f32 %v2738_v53, %v2737_v18  ;;  %v6764_v4 = vpop.eup %6763  ;;  %v2742_v20 = vsel %vm2295_vm4, %v6762_v54, 0.0  ;;  %v8053_v53 = vld [vmem:[#allocation2 + $0x18] sm:$0xff] }
0x3000   :  { %v6766_v8 = vpop.eup %6765  ;;  %v2744_v13 = vsel %vm2295_vm4, %v6764_v4, 0.0 }
0x3001   :  { %v2741_v35 = vadd.f32 %v2740_v25, %v2739_v47  ;;  %v6768_v46 = vpop.eup %6767  ;;  %v2746_v12 = vsel %vm2295_vm4, %v6766_v8, 0.0 }
0x3002   :  { %v6770_v36 = vpop.eup %6769  ;;  %v2748_v41 = vsel %vm2295_vm4, %v6768_v46, 0.0 }
0x3003   :  { %v2743_v38 = vadd.f32 %v2742_v20, %v2741_v35  ;;  %v2750_v48 = vsel %vm2295_vm4, %v6770_v36, 0.0 }
0x3005   :  { %v2745_v33 = vadd.f32 %v2744_v13, %v2743_v38  ;;  %v8061_v38 = vld [vmem:[#allocation2 + $0x28] sm:$0xff] }
0x3007   :  { %v2747_v37 = vadd.f32 %v2746_v12, %v2745_v33 }
0x3009   :  { %v2749_v40 = vadd.f32 %v2748_v41, %v2747_v37 }
0x300b   :  { %v2751_v3 = vadd.f32 %v2750_v48, %v2749_v40 }
0x300d   :  { %6771 = vrcp.f32 %v2751_v3 }
0x3017   :  { %v6772_v30 = vpop.eup %6771 }
0x3018   :  { %v2754_v50 = vmul.f32 %v6772_v30, %v6756_v51  ;;  %v2753_v28 = vmul.f32 %v6772_v30, %v6754_v45  ;;  %v2755_v7 = vmul.f32 %v6772_v30, %v6758_v59  ;;  %v2756_v17 = vmul.f32 %v6772_v30, %v6760_v22  ;;  %v8045_v45 = vld [vmem:[#allocation2] sm:$0xff]  ;;  %v8048_v59 = vld [vmem:[#allocation2 + $0x10] sm:$0xff] }
0x3019   :  { %v2757_v49 = vmul.f32 %v6772_v30, %v6762_v54  ;;  %v2758_v31 = vmul.f32 %v6772_v30, %v6764_v4  ;;  %v2759_v43 = vmul.f32 %v6772_v30, %v6766_v8  ;;  %v2760_v6 = vmul.f32 %v6772_v30, %v6768_v46  ;;  %v8057_v4 = vld [vmem:[#allocation2 + $0x20] sm:$0xff] }
0x301a   :  { %2769 = vperm.xlu0 %6566, %v2754_v50   ;;  %2764 = vperm.xlu1 %6565, %v2753_v28   ;;  %v2761_v56 = vmul.f32 %v6772_v30, %v6770_v36  ;;  %v8065_v36 = vld [vmem:[#allocation2 + $0x30] sm:$0xff]  ;;  %v8070_v50 = vld [vmem:[#allocation2 + $0x38] sm:$0xff] }
0x301e   :  { %2907 = vperm.xlu0 %6566, %v7942_v55   ;;  %2774 = vperm.xlu1 %6565, %v2755_v7  }
0x3022   :  { %2779 = vperm.xlu1 %6565, %v2756_v17  }
0x3026   :  { %2784 = vperm.xlu1 %6565, %v2757_v49  }
0x302a   :  { %2789 = vperm.xlu1 %6565, %v2758_v31  }
0x302e   :  { %2794 = vperm.xlu1 %6565, %v2759_v43  }
0x3032   :  { %2799 = vperm.xlu1 %6565, %v2760_v6  }
0x3036   :  { %2804 = vperm.xlu1 %6565, %v2761_v56  }
0x3099   :  { %v2765_v16 = vpop.permute.xlu1 %2764  ;;  %v2770_v11 = vpop.permute.xlu0 %2769 }
0x309a   :  { %v2808_v21 = vmul.f32 %v8042_v39, %v2770_v11  ;;  %v2807_v51 = vmul.f32 %v8045_v45, %v2765_v16 }
0x309c   :  { %v2817_v22 = vsel %vm119_vm0, %v2808_v21, 0.0  ;;  %v2816_v18 = vsel %vm119_vm0, %v2807_v51, 0.0 }
0x309d   :  { %v2775_v52 = vpop.permute.xlu1 %2774  ;;  %v2818_v20 = vadd.f32 %v2817_v22, %v2816_v18 }
0x309e   :  { %v2809_v14 = vmul.f32 %v8048_v59, %v2775_v52  ;;  %v2908_v52 = vpop.permute.xlu0 %2907 }
0x30a0   :  { %v2819_v25 = vsel %vm119_vm0, %v2809_v14, 0.0 }
0x30a1   :  { %v2780_v26 = vpop.permute.xlu1 %2779  ;;  %v2820_v46 = vadd.f32 %v2819_v25, %v2818_v20 }
0x30a2   :  { %v2810_v54 = vmul.f32 %v8053_v53, %v2780_v26 }
0x30a4   :  { %v2821_v8 = vsel %vm119_vm0, %v2810_v54, 0.0 }
0x30a5   :  { %v2785_v58 = vpop.permute.xlu1 %2784  ;;  %v2822_v41 = vadd.f32 %v2821_v8, %v2820_v46 }
0x30a6   :  { %v2811_v35 = vmul.f32 %v8057_v4, %v2785_v58 }
0x30a8   :  { %v2823_v12 = vsel %vm119_vm0, %v2811_v35, 0.0 }
0x30a9   :  { %v2790_v47 = vpop.permute.xlu1 %2789  ;;  %v2824_v48 = vadd.f32 %v2823_v12, %v2822_v41 }
0x30aa   :  { %v2812_v13 = vmul.f32 %v8061_v38, %v2790_v47 }
0x30ac   :  { %v2825_v40 = vsel %vm119_vm0, %v2812_v13, 0.0 }
0x30ad   :  { %v2795_v33 = vpop.permute.xlu1 %2794  ;;  %v2826_v7 = vadd.f32 %v2825_v40, %v2824_v48  ;;  %v8105_v40 = vld [vmem:[#allocation3 + $0x20] sm:$0xff] }
0x30ae   :  { %v2813_v37 = vmul.f32 %v8065_v36, %v2795_v33 }
0x30b0   :  { %v2827_v30 = vsel %vm119_vm0, %v2813_v37, 0.0 }
0x30b1   :  { %v2800_v3 = vpop.permute.xlu1 %2799  ;;  %v2828_v49 = vadd.f32 %v2827_v30, %v2826_v7 }
0x30b2   :  { %v2814_v28 = vmul.f32 %v8070_v50, %v2800_v3  ;;  %v8108_v3 = vld [vmem:[#allocation3] sm:$0xff] }
0x30b4   :  { %v2829_v17 = vsel %vm119_vm0, %v2814_v28, 0.0  ;;  %v8111_v28 = vld [vmem:[#allocation3 + $0x8] sm:$0xff] }
0x30b5   :  { %v2805_v31 = vpop.permute.xlu1 %2804  ;;  %v2830_v6 = vadd.f32 %v2829_v17, %v2828_v49  ;;  %v8114_v17 = vld [vmem:[#allocation3 + $0x10] sm:$0xff] }
0x30b6   :  { %v2815_v43 = vmul.f32 %v2805_v31, %v7840_v44  ;;  %v2910_v44 = vmul.f32 %v2908_v52, %v7956_v63  ;;  %9019 = vst [vmem:[#allocation7_spill] sm:$0xff] %v8114_v17  ;;  %v8117_v31 = vld [vmem:[#allocation3 + $0x18] sm:$0xff] }
0x30b8   :  { %v2831_v56 = vsel %vm119_vm0, %v2815_v43, 0.0 }
0x30b9   :  { %v2832_v16 = vadd.f32 %v2831_v56, %v2830_v6  ;;  %v8120_v6 = vld [vmem:[#allocation3 + $0x28] sm:$0xff] }
0x30ba   :  { %9020 = vst [vmem:[#allocation8_spill] sm:$0xff] %v8120_v6 }
0x30bb   :  { %6174 = vmatmul.mubr.msk.f32.vlgmr.msra.gmra.mrb[34].mxu0 %vm119_vm0, %v2832_v16  ;;  %v8123_v16 = vld [vmem:[#allocation3 + $0x30] sm:$0xff] }
0x30bc   :  { %6394 = vmatpush3.bf16.msra.mxu0 %v7897_v5  ;;  %6184 = vmatprep.mubr.msk.f32.mxu0 %vm7194_vm2, %v9018_v60  ;;  %9021 = vst [vmem:[#allocation9_spill] sm:$0xff] %v8123_v16 }
0x30bd   :  { %6395 = vmatprep.subr.bf16.mxu0 %v9016_v32 }
0x30c0   :  { %6397 = vmatpush3.bf16.msra.mxu0 %v7910_v2 }
0x30c1   :  { %6399 = vmatprep.subr.bf16.mxu0 %v7615_v61 }
0x318e   :  { %v2902_v11 = vpop.f32.mrb[34].mxu0 }
0x318f   :  { %v2903_v26 = vadd.f32 %v2902_v11, %v7985_v29  ;;  %v6175_v21 = vpop.f32.mrb[35].mxu0  ;;  %v8126_v11 = vld [vmem:[#allocation3 + $0x38] sm:$0xff] }
0x3190   :  { %9022 = vst [vmem:[#allocation10_spill] sm:$0xff] %v8126_v11 }
0x3191   :  { %v2911_v51 = vadd.f32 %v2910_v44, %v2903_v26 }
0x3193   :  { %v2912_v58 = vadd.f32 %v2911_v51, %v7963_v34 }
0x3195   :  { %6773 = vtanh.f32 %v2912_v58  ;;  %v5822_v22 = vmul.f32 -1.442695, %v2912_v58  ;;  %v8133_v58 = vld [vmem:[%s8980_s2 + $0x6] ss:$0 sm:$0xff] }
0x3196   :  { %9023 = vst [vmem:[#allocation11_spill] sm:$0xff] %v8133_v58 }
0x3197   :  { %6775 = vpow2.f32 %v5822_v22 }
0x319f   :  { %v6774_v14 = vpop.eup %6773 }
0x31a0   :  { %2922 = vrot.lane.b32.xlu1 %v6774_v14, %s7196_s12 }
0x31a1   :  { %v6776_v18 = vpop.eup %6775 }
0x31a2   :  { %v2916_v54 = vadd.f32 1.0, %v6776_v18 }
0x31a4   :  { %6777 = vrcp.f32 %v2916_v54 }
0x31ae   :  { %v6778_v47 = vpop.eup %6777 }
0x31af   :  { %v2920_v29 = vmul.f32 %v6778_v47, %v7968_v24 }
0x3212   :  { %v2923_v25 = vpop.permute.xlu1 %2922 }
0x3213   :  { %v2925_v35 = vmul.f32 %v6778_v47, %v2923_v25 }
0x3215   :  { %2927 = vrot.lane.b32.xlu0 %v2925_v35, %s7197_s13 }
0x3287   :  { %v2928_v20 = vpop.permute.xlu0 %2927 }
0x3288   :  { %v8089_v8 = vadd.f32 %v2928_v20, %v2920_v29 }
0x328a   :  { %6779 = vtanh.f32 %v8089_v8 }
0x3294   :  { %v6780_v13 = vpop.eup %6779 }
0x3295   :  { %2933 = vrot.lane.b32.xlu1 %v6780_v13, %s7196_s12 }
0x3307   :  { %v2934_v46 = vpop.permute.xlu1 %2933 }
0x3308   :  { %v2936_v33 = vmul.f32 %v6778_v47, %v2934_v46 }
0x330a   :  { %2938 = vrot.lane.b32.xlu0 %v2936_v33, %s7197_s13 }
0x337c   :  { %v2939_v12 = vpop.permute.xlu0 %2938 }
0x337d   :  { %v2941_v37 = vsel %vm119_vm0, %v2939_v12, %v8089_v8 }
0x337e   :  { %5823 = vmatmul.mubr.msk.f32.vlgmr.msra.gmra.mrb[26].mxu1 %vm2139_vm5, %v2941_v37 }
0x337f   :  { %6416 = vmatpush3.bf16.msra.mxu1 %v7897_v5  ;;  %6195 = vmatprep.mubr.msk.f32.mxu1 %vm7194_vm2, %v9018_v60 }
0x3380   :  { %6417 = vmatprep.subr.bf16.mxu1 %v9016_v32 }
0x3383   :  { %6419 = vmatpush3.bf16.msra.mxu1 %v7910_v2 }
0x3384   :  { %6421 = vmatprep.subr.bf16.mxu1 %v7615_v61 }
0x3451   :  { %v8103_v24 = vpop.f32.mrb[26].mxu1 }
0x3452   :  { %v3013_v41 = vpop.f32.mrb[27].mxu1 }
0x3453   :  { %v3020_v48 = vadd.f32 %v8105_v40, %v3013_v41  ;;  %v3016_v30 = vadd.f32 %v8108_v3, %v3013_v41  ;;  %v3017_v7 = vadd.f32 %v8111_v28, %v3013_v41  ;;  %v3018_v49 = vadd.f32 %v8114_v17, %v3013_v41 }
0x3454   :  { %v3019_v43 = vadd.f32 %v8117_v31, %v3013_v41  ;;  %v3021_v56 = vadd.f32 %v8120_v6, %v3013_v41  ;;  %v3022_v52 = vadd.f32 %v8123_v16, %v3013_v41  ;;  %v3023_v44 = vadd.f32 %v8126_v11, %v3013_v41 }
0x3455   :  { %6781 = vtanh.f32 %v3020_v48  ;;  %v3024_v26 = vadd.f32 %v3013_v41, %v7848_v57 }
0x3456   :  { %6783 = vtanh.f32 %v3016_v30 }
0x3457   :  { %6785 = vtanh.f32 %v3017_v7 }
0x3458   :  { %6787 = vtanh.f32 %v3018_v49 }
0x3459   :  { %6789 = vtanh.f32 %v3019_v43 }
0x345a   :  { %6791 = vtanh.f32 %v3021_v56 }
0x345b   :  { %6793 = vtanh.f32 %v3022_v52 }
0x345c   :  { %6795 = vtanh.f32 %v3023_v44 }
0x345d   :  { %6797 = vtanh.f32 %v3024_v26 }
0x345f   :  { %v6782_v21 = vpop.eup %6781 }
0x3460   :  { %v6784_v51 = vpop.eup %6783  ;;  %v3038_v14 = vmul.f32 %v8133_v58, %v6782_v21 }
0x3461   :  { %v6786_v22 = vpop.eup %6785  ;;  %v3034_v18 = vmul.f32 %v8133_v58, %v6784_v51 }
0x3462   :  { %v6788_v54 = vpop.eup %6787  ;;  %v3055_v47 = vsel %vm119_vm0, %v3038_v14, 0.0  ;;  %v3035_v25 = vmul.f32 %v8133_v58, %v6786_v22 }
0x3463   :  { %v6790_v57 = vpop.eup %6789  ;;  %3056 = vadd.xlane.f32.xlu0 %v3055_v47  ;;  %v3043_v35 = vsel %vm119_vm0, %v3034_v18, 0.0  ;;  %v3036_v29 = vmul.f32 %v8133_v58, %v6788_v54  ;;  %v8156_v47 = vld [vmem:[%s8980_s2 + $0x10] ss:$0 sm:$0xff] }
0x3464   :  { %v6792_v20 = vpop.eup %6791  ;;  %3044 = vadd.xlane.f32.xlu1 %v3043_v35  ;;  %v3046_v13 = vsel %vm119_vm0, %v3035_v25, 0.0  ;;  %v3037_v46 = vmul.f32 %v8133_v58, %v6790_v57 }
0x3465   :  { %v6794_v33 = vpop.eup %6793  ;;  %v3049_v12 = vsel %vm119_vm0, %v3036_v29, 0.0  ;;  %v3039_v37 = vmul.f32 %v8133_v58, %v6792_v20 }
0x3466   :  { %v6796_v41 = vpop.eup %6795  ;;  %v3052_v48 = vsel %vm119_vm0, %v3037_v46, 0.0  ;;  %v3040_v30 = vmul.f32 %v8133_v58, %v6794_v33 }
0x3467   :  { %3047 = vadd.xlane.f32.xlu0 %v3046_v13  ;;  %v6798_v7 = vpop.eup %6797  ;;  %v3058_v49 = vsel %vm119_vm0, %v3039_v37, 0.0  ;;  %v3041_v43 = vmul.f32 %v8133_v58, %v6796_v41 }
0x3468   :  { %3050 = vadd.xlane.f32.xlu1 %v3049_v12  ;;  %v3061_v56 = vsel %vm119_vm0, %v3040_v30, 0.0  ;;  %v3042_v52 = vmul.f32 %v8133_v58, %v6798_v7 }
0x3469   :  { %v3064_v44 = vsel %vm119_vm0, %v3041_v43, 0.0 }
0x346a   :  { %v3067_v26 = vsel %vm119_vm0, %v3042_v52, 0.0 }
0x346b   :  { %3053 = vadd.xlane.f32.xlu0 %v3052_v48 }
0x346c   :  { %3059 = vadd.xlane.f32.xlu1 %v3058_v49 }
0x346f   :  { %3062 = vadd.xlane.f32.xlu0 %v3061_v56 }
0x3470   :  { %3065 = vadd.xlane.f32.xlu1 %v3064_v44 }
0x3473   :  { %3068 = vadd.xlane.f32.xlu0 %v3067_v26 }
0x34f0   :  { %v3057_v21 = vpop.xlane.xlu0 %3056 }
0x34f1   :  { %v3045_v51 = vpop.xlane.xlu1 %3044  ;;  %v3074_v25 = vadd.f32 %v8156_v47, %v3057_v21 }
0x34f2   :  { %v3070_v57 = vadd.f32 %v8156_v47, %v3045_v51 }
0x34f3   :  { %v3083_v37 = vsel %vm2295_vm4, %v3074_v25, -inf }
0x34f4   :  { %v3048_v14 = vpop.xlane.xlu0 %3047  ;;  %v3079_v41 = vsel %vm2295_vm4, %v3070_v57, -inf }
0x34f5   :  { %v3051_v22 = vpop.xlane.xlu1 %3050  ;;  %v3071_v48 = vadd.f32 %v8156_v47, %v3048_v14  ;;  %v3084_v26 = vmax.f32 %v3079_v41, %v3083_v37 }
0x34f6   :  { %v3072_v29 = vadd.f32 %v8156_v47, %v3051_v22 }
0x34f7   :  { %v3080_v22 = vsel %vm2295_vm4, %v3071_v48, -inf }
0x34f8   :  { %v3054_v18 = vpop.xlane.xlu0 %3053  ;;  %v3081_v43 = vsel %vm2295_vm4, %v3072_v29, -inf }
0x34f9   :  { %v3060_v54 = vpop.xlane.xlu1 %3059  ;;  %v3073_v20 = vadd.f32 %v8156_v47, %v3054_v18 }
0x34fa   :  { %v3075_v13 = vadd.f32 %v8156_v47, %v3060_v54 }
0x34fb   :  { %v3082_v56 = vsel %vm2295_vm4, %v3073_v20, -inf }
0x34fc   :  { %v3063_v35 = vpop.xlane.xlu0 %3062  ;;  %v3085_v52 = vsel %vm2295_vm4, %v3075_v13, -inf }
0x34fd   :  { %v3076_v46 = vadd.f32 %v8156_v47, %v3063_v35  ;;  %v3066_v33 = vpop.xlane.xlu1 %3065  ;;  %v3086_v18 = vmax.f32 %v3080_v22, %v3085_v52 }
0x34fe   :  { %v3077_v12 = vadd.f32 %v8156_v47, %v3066_v33 }
0x34ff   :  { %v3087_v30 = vsel %vm2295_vm4, %v3076_v46, -inf }
0x3500   :  { %v3089_v7 = vsel %vm2295_vm4, %v3077_v12, -inf  ;;  %v3069_v49 = vpop.xlane.xlu0 %3068  ;;  %v3088_v21 = vmax.f32 %v3081_v43, %v3087_v30 }
0x3501   :  { %v3078_v44 = vadd.f32 %v8156_v47, %v3069_v49  ;;  %v3090_v51 = vmax.f32 %v3082_v56, %v3089_v7 }
0x3503   :  { %v3091_v14 = vsel %vm2295_vm4, %v3078_v44, -inf  ;;  %v3094_v35 = vmax.f32 %v3088_v21, %v3090_v51 }
0x3504   :  { %v3092_v54 = vmax.f32 %v3084_v26, %v3091_v14 }
0x3506   :  { %v3093_v33 = vmax.f32 %v3092_v54, %v3086_v18 }
0x3508   :  { %v3095_v42 = vmax.f32 %v3093_v33, %v3094_v35 }
0x350a   :  { %v3096_v62 = vsub.f32 %v3070_v57, %v3095_v42  ;;  %v3097_v1 = vsub.f32 %v3071_v48, %v3095_v42  ;;  %v3098_v58 = vsub.f32 %v3072_v29, %v3095_v42  ;;  %v3099_v11 = vsub.f32 %v3073_v20, %v3095_v42 }
0x350b   :  { %v3100_v6 = vsub.f32 %v3074_v25, %v3095_v42  ;;  %v3101_v37 = vsub.f32 %v3075_v13, %v3095_v42  ;;  %v3102_v30 = vsub.f32 %v3076_v46, %v3095_v42  ;;  %v3103_v43 = vsub.f32 %v3077_v12, %v3095_v42 }
0x350c   :  { %v3105_v17 = vmul.f32 1.442695, %v3096_v62  ;;  %v3107_v16 = vmul.f32 1.442695, %v3097_v1  ;;  %v3109_v49 = vmul.f32 1.442695, %v3098_v58  ;;  %v3104_v52 = vsub.f32 %v3078_v44, %v3095_v42 }
0x350d   :  { %v3111_v41 = vmul.f32 1.442695, %v3099_v11  ;;  %v3113_v7 = vmul.f32 1.442695, %v3100_v6  ;;  %v3115_v56 = vmul.f32 1.442695, %v3101_v37 }
0x350e   :  { %6799 = vpow2.f32 %v3105_v17  ;;  %v3117_v57 = vmul.f32 1.442695, %v3102_v30  ;;  %v3119_v29 = vmul.f32 1.442695, %v3103_v43  ;;  %v3121_v25 = vmul.f32 1.442695, %v3104_v52 }
0x350f   :  { %6801 = vpow2.f32 %v3107_v16 }
0x3510   :  { %6803 = vpow2.f32 %v3109_v49 }
0x3511   :  { %6805 = vpow2.f32 %v3111_v41 }
0x3512   :  { %6807 = vpow2.f32 %v3113_v7 }
0x3513   :  { %6809 = vpow2.f32 %v3115_v56 }
0x3514   :  { %6811 = vpow2.f32 %v3117_v57 }
0x3515   :  { %6813 = vpow2.f32 %v3119_v29 }
0x3516   :  { %6815 = vpow2.f32 %v3121_v25 }
0x3518   :  { %v6800_v62 = vpop.eup %6799 }
0x3519   :  { %v6802_v1 = vpop.eup %6801  ;;  %v3123_v11 = vsel %vm2295_vm4, %v6800_v62, 0.0 }
0x351a   :  { %v6804_v17 = vpop.eup %6803  ;;  %v3124_v16 = vsel %vm2295_vm4, %v6802_v1, 0.0 }
0x351b   :  { %v6806_v6 = vpop.eup %6805  ;;  %v3125_v58 = vadd.f32 %v3124_v16, %v3123_v11  ;;  %v3126_v20 = vsel %vm2295_vm4, %v6804_v17, 0.0 }
0x351c   :  { %v6808_v42 = vpop.eup %6807  ;;  %v3128_v46 = vsel %vm2295_vm4, %v6806_v6, 0.0 }
0x351d   :  { %v3127_v13 = vadd.f32 %v3126_v20, %v3125_v58  ;;  %v6810_v12 = vpop.eup %6809  ;;  %v3130_v44 = vsel %vm2295_vm4, %v6808_v42, 0.0  ;;  %v9024_v58 = vmov 2  }
0x351e   :  { %v6812_v26 = vpop.eup %6811  ;;  %v3132_v51 = vsel %vm2295_vm4, %v6810_v12, 0.0 }
0x351f   :  { %v3129_v48 = vadd.f32 %v3128_v46, %v3127_v13  ;;  %v6814_v22 = vpop.eup %6813  ;;  %v3134_v18 = vsel %vm2295_vm4, %v6812_v26, 0.0 }
0x3520   :  { %v6816_v54 = vpop.eup %6815  ;;  %v3136_v33 = vsel %vm2295_vm4, %v6814_v22, 0.0 }
0x3521   :  { %v3131_v21 = vadd.f32 %v3130_v44, %v3129_v48  ;;  %v3138_v37 = vsel %vm2295_vm4, %v6816_v54, 0.0 }
0x3523   :  { %v3133_v14 = vadd.f32 %v3132_v51, %v3131_v21 }
0x3525   :  { %v3135_v35 = vadd.f32 %v3134_v18, %v3133_v14 }
0x3527   :  { %v3137_v49 = vadd.f32 %v3136_v33, %v3135_v35 }
0x3529   :  { %v3139_v41 = vadd.f32 %v3138_v37, %v3137_v49 }
0x352b   :  { %6817 = vrcp.f32 %v3139_v41 }
0x3535   :  { %v6818_v30 = vpop.eup %6817 }
0x3536   :  { %v3142_v7 = vmul.f32 %v6818_v30, %v6802_v1  ;;  %v3141_v43 = vmul.f32 %v6818_v30, %v6800_v62  ;;  %v3145_v56 = vmul.f32 %v6818_v30, %v6808_v42  ;;  %v3143_v52 = vmul.f32 %v6818_v30, %v6804_v17 }
0x3537   :  { %v3147_v57 = vmul.f32 %v6818_v30, %v6812_v26  ;;  %v3144_v29 = vmul.f32 %v6818_v30, %v6806_v6  ;;  %v3149_v25 = vmul.f32 %v6818_v30, %v6816_v54  ;;  %v3146_v11 = vmul.f32 %v6818_v30, %v6810_v12 }
0x3538   :  { %3157 = vperm.xlu0 %6566, %v3142_v7   ;;  %3152 = vperm.xlu1 %6565, %v3141_v43   ;;  %v3148_v16 = vmul.f32 %v6818_v30, %v6814_v22  ;;  %v9025_v62 = vmov 1  }
0x353c   :  { %3172 = vperm.xlu0 %6566, %v3145_v56   ;;  %3162 = vperm.xlu1 %6565, %v3143_v52  }
0x3540   :  { %3182 = vperm.xlu0 %6566, %v3147_v57   ;;  %3167 = vperm.xlu1 %6565, %v3144_v29   ;;  %v8202_v29 = vld [vmem:[#allocation2 + $0x40] sm:$0xff] }
0x3544   :  { %3192 = vperm.xlu0 %6566, %v3149_v25   ;;  %3177 = vperm.xlu1 %6565, %v3146_v11  }
0x3548   :  { %3187 = vperm.xlu1 %6565, %v3148_v16  }
0x354c   :  { %6567 = vset.pattern.permute.xlu1 %v9024_v58 }
0x354d   :  { %3295 = vperm.xlu1 %6567, %v7942_v55  }
0x3551   :  { %6568 = vset.pattern.permute.xlu1 %v9025_v62 }
0x35b7   :  { %v3158_v1 = vpop.permute.xlu0 %3157  ;;  %v3153_v17 = vpop.permute.xlu1 %3152 }
0x35b8   :  { %v3196_v20 = vmul.f32 %v8042_v39, %v3158_v1  ;;  %v3195_v6 = vmul.f32 %v8045_v45, %v3153_v17 }
0x35ba   :  { %v3205_v46 = vsel %vm119_vm0, %v3196_v20, 0.0  ;;  %v3204_v12 = vsel %vm119_vm0, %v3195_v6, 0.0 }
0x35bb   :  { %v3173_v42 = vpop.permute.xlu0 %3172  ;;  %v3163_v13 = vpop.permute.xlu1 %3162  ;;  %v3206_v26 = vadd.f32 %v3205_v46, %v3204_v12 }
0x35bc   :  { %v3197_v48 = vmul.f32 %v8048_v59, %v3163_v13  ;;  %v3199_v22 = vmul.f32 %v8057_v4, %v3173_v42 }
0x35be   :  { %v3207_v44 = vsel %vm119_vm0, %v3197_v48, 0.0  ;;  %v3211_v49 = vsel %vm119_vm0, %v3199_v22, 0.0 }
0x35bf   :  { %v3183_v21 = vpop.permute.xlu0 %3182  ;;  %v3168_v51 = vpop.permute.xlu1 %3167  ;;  %v3208_v18 = vadd.f32 %v3207_v44, %v3206_v26 }
0x35c0   :  { %v3198_v14 = vmul.f32 %v8053_v53, %v3168_v51  ;;  %v3201_v37 = vmul.f32 %v8065_v36, %v3183_v21 }
0x35c2   :  { %v3209_v54 = vsel %vm119_vm0, %v3198_v14, 0.0  ;;  %v3215_v57 = vsel %vm119_vm0, %v3201_v37, 0.0 }
0x35c3   :  { %v3210_v35 = vadd.f32 %v3209_v54, %v3208_v18  ;;  %v3178_v33 = vpop.permute.xlu1 %3177  ;;  %v3193_v30 = vpop.permute.xlu0 %3192 }
0x35c4   :  { %v3200_v41 = vmul.f32 %v8061_v38, %v3178_v33  ;;  %v3203_v25 = vmul.f32 %v8202_v29, %v3193_v30 }
0x35c5   :  { %v3212_v7 = vadd.f32 %v3211_v49, %v3210_v35 }
0x35c6   :  { %v3213_v43 = vsel %vm119_vm0, %v3200_v41, 0.0  ;;  %v3219_v17 = vsel %vm119_vm0, %v3203_v25, 0.0 }
0x35c7   :  { %v3214_v56 = vadd.f32 %v3213_v43, %v3212_v7  ;;  %v3188_v52 = vpop.permute.xlu1 %3187 }
0x35c8   :  { %v3202_v11 = vmul.f32 %v8070_v50, %v3188_v52 }
0x35c9   :  { %v3216_v16 = vadd.f32 %v3215_v57, %v3214_v56  ;;  %v9026_v57 = vld [vmem:[#allocation9_spill] sm:$0xff] }
0x35ca   :  { %v3217_v58 = vsel %vm119_vm0, %v3202_v11, 0.0  ;;  %v9027_v11 = vld [vmem:[#allocation7_spill] sm:$0xff] }
0x35cb   :  { %v3218_v1 = vadd.f32 %v3217_v58, %v3216_v16  ;;  %v8246_v58 = vld [vmem:[#allocation3 + $0x40] sm:$0xff] }
0x35cc   :  { %v3296_v6 = vpop.permute.xlu1 %3295  ;;  %9028 = vst [vmem:[#allocation9_spill] sm:$0xff] %v8246_v58 }
0x35cd   :  { %v3220_v20 = vadd.f32 %v3219_v17, %v3218_v1  ;;  %v3298_v13 = vmul.f32 %v3296_v6, %v7956_v63  ;;  %v9029_v17 = vld [vmem:[#allocation8_spill] sm:$0xff]  ;;  %v9030_v6 = vld [vmem:[#allocation10_spill] sm:$0xff] }
0x35cf   :  { %6185 = vmatmul.mubr.msk.f32.vlgmr.msra.gmra.mrb[36].mxu0 %vm119_vm0, %v3220_v20 }
0x35d0   :  { %6401 = vmatpush1.bf16.msra.mxu0 %v7623_v0  ;;  %3397 = vmatprep.mubr.f32.mxu0 %v9018_v60 }
0x35d1   :  { %6403 = vmatprep.subr.bf16.mxu0 %v7639_v9 }
0x35d4   :  { %6405 = vmatpush1.bf16.msra.mxu0 %v7641_v10 }
0x35d5   :  { %6407 = vmatprep.subr.bf16.mxu0 %v7651_v15 }
0x35d8   :  { %6409 = vmatpush1.bf16.msra.mxu0 %v7659_v19 }
0x35d9   :  { %6411 = vmatprep.subr.bf16.mxu0 %v7669_v23 }
0x35dc   :  { %6413 = vmatpush1.bf16.msra.mxu0 %v7677_v27 }
0x35dd   :  { %6436 = vmatprep.subr.bf16.mxu0 %v9016_v32 }
0x36a2   :  { %v3290_v42 = vpop.f32.mrb[36].mxu0 }
0x36a3   :  { %v3291_v46 = vadd.f32 %v3290_v42, %v8103_v24  ;;  %v6186_v12 = vpop.f32.mrb[37].mxu0 }
0x36a4   :  { %v9031_v12 = vld [vmem:[#allocation11_spill] sm:$0xff] }
0x36a5   :  { %v3299_v48 = vadd.f32 %v3298_v13, %v3291_v46 }
0x36a7   :  { %v3300_v44 = vadd.f32 %v3299_v48, %v7963_v34 }
0x36a9   :  { %6819 = vtanh.f32 %v3300_v44  ;;  %v5825_v21 = vmul.f32 -1.442695, %v3300_v44 }
0x36ab   :  { %6821 = vpow2.f32 %v5825_v21 }
0x36b3   :  { %v6820_v26 = vpop.eup %6819 }
0x36b4   :  { %3310 = vrot.lane.b32.xlu0 %v6820_v26, %s7196_s12 }
0x36b5   :  { %v6822_v51 = vpop.eup %6821 }
0x36b6   :  { %v3304_v22 = vadd.f32 1.0, %v6822_v51 }
0x36b8   :  { %6823 = vrcp.f32 %v3304_v22 }
0x36c2   :  { %v6824_v14 = vpop.eup %6823 }
0x36c3   :  { %v3308_v63 = vmul.f32 %v6824_v14, %v8089_v8 }
0x3726   :  { %v3311_v18 = vpop.permute.xlu0 %3310 }
0x3727   :  { %v3313_v54 = vmul.f32 %v6824_v14, %v3311_v18 }
0x3729   :  { %3315 = vrot.lane.b32.xlu1 %v3313_v54, %s7197_s13 }
0x379b   :  { %v3316_v24 = vpop.permute.xlu1 %3315 }
0x379c   :  { %v8224_v35 = vadd.f32 %v3316_v24, %v3308_v63 }
0x379e   :  { %6825 = vtanh.f32 %v8224_v35 }
0x37a8   :  { %v6826_v34 = vpop.eup %6825 }
0x37a9   :  { %3321 = vrot.lane.b32.xlu0 %v6826_v34, %s7196_s12 }
0x381b   :  { %v3322_v33 = vpop.permute.xlu0 %3321 }
0x381c   :  { %v3324_v49 = vmul.f32 %v6824_v14, %v3322_v33 }
0x381e   :  { %3326 = vrot.lane.b32.xlu1 %v3324_v49, %s7197_s13 }
0x3890   :  { %v3327_v37 = vpop.permute.xlu1 %3326 }
0x3891   :  { %v3329_v41 = vsel %vm119_vm0, %v3327_v37, %v8224_v35 }
0x3892   :  { %5826 = vmatmul.mubr.msk.f32.vlgmr.msra.gmra.mrb[38].mxu0 %vm2139_vm5, %v3329_v41 }
0x3893   :  { %6438 = vmatpush3.bf16.msra.mxu0 %v7897_v5  ;;  %6206 = vmatprep.mubr.msk.f32.mxu0 %vm7194_vm2, %v9018_v60 }
0x3894   :  { %6439 = vmatprep.subr.bf16.mxu0 %v9016_v32 }
0x3897   :  { %6441 = vmatpush3.bf16.msra.mxu0 %v7910_v2 }
0x3898   :  { %6443 = vmatprep.subr.bf16.mxu0 %v7615_v61 }
0x3965   :  { %v8238_v8 = vpop.f32.mrb[38].mxu0 }
0x3966   :  { %v3401_v30 = vpop.f32.mrb[39].mxu0 }
0x3967   :  { %v3408_v7 = vadd.f32 %v8105_v40, %v3401_v30  ;;  %v3404_v43 = vadd.f32 %v8108_v3, %v3401_v30  ;;  %v3407_v56 = vadd.f32 %v8117_v31, %v3401_v30  ;;  %v3405_v52 = vadd.f32 %v8111_v28, %v3401_v30 }
0x3968   :  { %v3410_v25 = vadd.f32 %v9026_v57, %v3401_v30  ;;  %v3406_v16 = vadd.f32 %v9027_v11, %v3401_v30  ;;  %v3412_v1 = vadd.f32 %v8246_v58, %v3401_v30  ;;  %v3409_v20 = vadd.f32 %v9029_v17, %v3401_v30 }
0x3969   :  { %6827 = vtanh.f32 %v3408_v7  ;;  %v3411_v42 = vadd.f32 %v9030_v6, %v3401_v30 }
0x396a   :  { %6829 = vtanh.f32 %v3404_v43 }
0x396b   :  { %6831 = vtanh.f32 %v3407_v56 }
0x396c   :  { %6833 = vtanh.f32 %v3405_v52 }
0x396d   :  { %6835 = vtanh.f32 %v3410_v25 }
0x396e   :  { %6837 = vtanh.f32 %v3406_v16 }
0x396f   :  { %6839 = vtanh.f32 %v3412_v1 }
0x3970   :  { %6841 = vtanh.f32 %v3409_v20 }
0x3971   :  { %6843 = vtanh.f32 %v3411_v42 }
0x3973   :  { %v6828_v13 = vpop.eup %6827 }
0x3974   :  { %v6830_v46 = vpop.eup %6829  ;;  %v3426_v48 = vmul.f32 %v9031_v12, %v6828_v13 }
0x3975   :  { %v6832_v44 = vpop.eup %6831  ;;  %v3422_v26 = vmul.f32 %v9031_v12, %v6830_v46 }
0x3976   :  { %v6834_v21 = vpop.eup %6833  ;;  %v3443_v51 = vsel %vm119_vm0, %v3426_v48, 0.0  ;;  %v3425_v22 = vmul.f32 %v9031_v12, %v6832_v44 }
0x3977   :  { %v6836_v14 = vpop.eup %6835  ;;  %3444 = vadd.xlane.f32.xlu1 %v3443_v51  ;;  %v3431_v18 = vsel %vm119_vm0, %v3422_v26, 0.0  ;;  %v3423_v54 = vmul.f32 %v9031_v12, %v6834_v21 }
0x3978   :  { %v6838_v63 = vpop.eup %6837  ;;  %3432 = vadd.xlane.f32.xlu0 %v3431_v18  ;;  %v3440_v24 = vsel %vm119_vm0, %v3425_v22, 0.0  ;;  %v3428_v34 = vmul.f32 %v9031_v12, %v6836_v14 }
0x3979   :  { %v6840_v33 = vpop.eup %6839  ;;  %v3434_v49 = vsel %vm119_vm0, %v3423_v54, 0.0  ;;  %v3424_v37 = vmul.f32 %v9031_v12, %v6838_v63 }
0x397a   :  { %v6842_v41 = vpop.eup %6841  ;;  %v3449_v30 = vsel %vm119_vm0, %v3428_v34, 0.0  ;;  %v3430_v7 = vmul.f32 %v9031_v12, %v6840_v33 }
0x397b   :  { %3441 = vadd.xlane.f32.xlu1 %v3440_v24  ;;  %v3437_v43 = vsel %vm119_vm0, %v3424_v37, 0.0  ;;  %v3427_v56 = vmul.f32 %v9031_v12, %v6842_v41  ;;  %v6844_v52 = vpop.eup %6843 }
0x397c   :  { %3435 = vadd.xlane.f32.xlu0 %v3434_v49  ;;  %v3455_v25 = vsel %vm119_vm0, %v3430_v7, 0.0  ;;  %v3429_v1 = vmul.f32 %v9031_v12, %v6844_v52 }
0x397d   :  { %v3446_v16 = vsel %vm119_vm0, %v3427_v56, 0.0 }
0x397e   :  { %v3452_v20 = vsel %vm119_vm0, %v3429_v1, 0.0 }
0x397f   :  { %3450 = vadd.xlane.f32.xlu1 %v3449_v30 }
0x3980   :  { %3438 = vadd.xlane.f32.xlu0 %v3437_v43 }
0x3983   :  { %3456 = vadd.xlane.f32.xlu1 %v3455_v25 }
0x3984   :  { %3447 = vadd.xlane.f32.xlu0 %v3446_v16 }
0x3988   :  { %3453 = vadd.xlane.f32.xlu0 %v3452_v20 }
0x3a04   :  { %v3445_v42 = vpop.xlane.xlu1 %3444 }
0x3a05   :  { %v3433_v13 = vpop.xlane.xlu0 %3432  ;;  %v3462_v26 = vadd.f32 %v8156_v47, %v3445_v42 }
0x3a06   :  { %v3458_v21 = vadd.f32 %v8156_v47, %v3433_v13 }
0x3a07   :  { %v3471_v14 = vsel %vm2295_vm4, %v3462_v26, -inf }
0x3a08   :  { %v3442_v46 = vpop.xlane.xlu1 %3441  ;;  %v3467_v18 = vsel %vm2295_vm4, %v3458_v21, -inf }
0x3a09   :  { %v3436_v48 = vpop.xlane.xlu0 %3435  ;;  %v3461_v37 = vadd.f32 %v8156_v47, %v3442_v46  ;;  %v3472_v7 = vmax.f32 %v3467_v18, %v3471_v14 }
0x3a0a   :  { %v3459_v24 = vadd.f32 %v8156_v47, %v3436_v48 }
0x3a0b   :  { %v3470_v42 = vsel %vm2295_vm4, %v3461_v37, -inf }
0x3a0c   :  { %v3451_v44 = vpop.xlane.xlu1 %3450  ;;  %v3468_v56 = vsel %vm2295_vm4, %v3459_v24, -inf }
0x3a0d   :  { %v3439_v51 = vpop.xlane.xlu0 %3438  ;;  %v3464_v34 = vadd.f32 %v8156_v47, %v3451_v44 }
0x3a0e   :  { %v3460_v33 = vadd.f32 %v8156_v47, %v3439_v51 }
0x3a0f   :  { %v3475_v52 = vsel %vm2295_vm4, %v3464_v34, -inf }
0x3a10   :  { %v3457_v22 = vpop.xlane.xlu1 %3456  ;;  %v3469_v25 = vsel %vm2295_vm4, %v3460_v33, -inf }
0x3a11   :  { %v3466_v54 = vadd.f32 %v8156_v47, %v3457_v22  ;;  %v3448_v63 = vpop.xlane.xlu0 %3447  ;;  %v3476_v46 = vmax.f32 %v3469_v25, %v3475_v52 }
0x3a12   :  { %v3463_v49 = vadd.f32 %v8156_v47, %v3448_v63 }
0x3a13   :  { %v3479_v41 = vsel %vm2295_vm4, %v3466_v54, -inf }
0x3a14   :  { %v3473_v30 = vsel %vm2295_vm4, %v3463_v49, -inf  ;;  %v3480_v1 = vmax.f32 %v3472_v7, %v3479_v41 }
0x3a15   :  { %v3454_v43 = vpop.xlane.xlu0 %3453  ;;  %v3474_v20 = vmax.f32 %v3468_v56, %v3473_v30 }
0x3a16   :  { %v3465_v16 = vadd.f32 %v8156_v47, %v3454_v43 }
0x3a17   :  { %v3481_v44 = vmax.f32 %v3480_v1, %v3474_v20 }
0x3a18   :  { %v3477_v13 = vsel %vm2295_vm4, %v3465_v16, -inf }
0x3a19   :  { %v3478_v48 = vmax.f32 %v3470_v42, %v3477_v13 }
0x3a1b   :  { %v3482_v51 = vmax.f32 %v3476_v46, %v3478_v48 }
0x3a1d   :  { %v3483_v22 = vmax.f32 %v3481_v44, %v3482_v51 }
0x3a1f   :  { %v3484_v14 = vsub.f32 %v3458_v21, %v3483_v22  ;;  %v3485_v18 = vsub.f32 %v3459_v24, %v3483_v22  ;;  %v3486_v63 = vsub.f32 %v3460_v33, %v3483_v22  ;;  %v3487_v12 = vsub.f32 %v3461_v37, %v3483_v22 }
0x3a20   :  { %v3488_v6 = vsub.f32 %v3462_v26, %v3483_v22  ;;  %v3489_v43 = vsub.f32 %v3463_v49, %v3483_v22  ;;  %v3490_v30 = vsub.f32 %v3464_v34, %v3483_v22  ;;  %v3491_v56 = vsub.f32 %v3465_v16, %v3483_v22 }
0x3a21   :  { %v3493_v17 = vmul.f32 1.442695, %v3484_v14  ;;  %v3495_v58 = vmul.f32 1.442695, %v3485_v18  ;;  %v3497_v11 = vmul.f32 1.442695, %v3486_v63  ;;  %v3492_v25 = vsub.f32 %v3466_v54, %v3483_v22 }
0x3a22   :  { %v3499_v41 = vmul.f32 1.442695, %v3487_v12  ;;  %v3501_v7 = vmul.f32 1.442695, %v3488_v6  ;;  %v3503_v52 = vmul.f32 1.442695, %v3489_v43 }
0x3a23   :  { %6845 = vpow2.f32 %v3493_v17  ;;  %v3505_v21 = vmul.f32 1.442695, %v3490_v30  ;;  %v3507_v24 = vmul.f32 1.442695, %v3491_v56  ;;  %v3509_v26 = vmul.f32 1.442695, %v3492_v25 }
0x3a24   :  { %6847 = vpow2.f32 %v3495_v58 }
0x3a25   :  { %6849 = vpow2.f32 %v3497_v11 }
0x3a26   :  { %6851 = vpow2.f32 %v3499_v41 }
0x3a27   :  { %6853 = vpow2.f32 %v3501_v7 }
0x3a28   :  { %6855 = vpow2.f32 %v3503_v52 }
0x3a29   :  { %6857 = vpow2.f32 %v3505_v21 }
0x3a2a   :  { %6859 = vpow2.f32 %v3507_v24 }
0x3a2b   :  { %6861 = vpow2.f32 %v3509_v26 }
0x3a2d   :  { %v6846_v33 = vpop.eup %6845 }
0x3a2e   :  { %v6848_v37 = vpop.eup %6847  ;;  %v3511_v12 = vsel %vm2295_vm4, %v6846_v33, 0.0 }
0x3a2f   :  { %v6850_v17 = vpop.eup %6849  ;;  %v3512_v58 = vsel %vm2295_vm4, %v6848_v37, 0.0 }
0x3a30   :  { %v6852_v6 = vpop.eup %6851  ;;  %v3513_v11 = vadd.f32 %v3512_v58, %v3511_v12  ;;  %v3514_v34 = vsel %vm2295_vm4, %v6850_v17, 0.0 }
0x3a31   :  { %v6854_v54 = vpop.eup %6853  ;;  %v3516_v16 = vsel %vm2295_vm4, %v6852_v6, 0.0 }
0x3a32   :  { %v3515_v49 = vadd.f32 %v3514_v34, %v3513_v11  ;;  %v6856_v1 = vpop.eup %6855  ;;  %v3518_v42 = vsel %vm2295_vm4, %v6854_v54, 0.0  ;;  %v9032_v34 = vmov 3  }
0x3a33   :  { %v6858_v13 = vpop.eup %6857  ;;  %v3520_v48 = vsel %vm2295_vm4, %v6856_v1, 0.0 }
0x3a34   :  { %v3517_v20 = vadd.f32 %v3516_v16, %v3515_v49  ;;  %v6860_v44 = vpop.eup %6859  ;;  %v3522_v22 = vsel %vm2295_vm4, %v6858_v13, 0.0 }
0x3a35   :  { %v6862_v14 = vpop.eup %6861  ;;  %v3524_v63 = vsel %vm2295_vm4, %v6860_v44, 0.0 }
0x3a36   :  { %v3519_v46 = vadd.f32 %v3518_v42, %v3517_v20  ;;  %v3526_v41 = vsel %vm2295_vm4, %v6862_v14, 0.0 }
0x3a38   :  { %v3521_v51 = vadd.f32 %v3520_v48, %v3519_v46 }
0x3a3a   :  { %v3523_v18 = vadd.f32 %v3522_v22, %v3521_v51 }
0x3a3c   :  { %v3525_v43 = vadd.f32 %v3524_v63, %v3523_v18 }
0x3a3e   :  { %v3527_v30 = vadd.f32 %v3526_v41, %v3525_v43 }
0x3a40   :  { %6863 = vrcp.f32 %v3527_v30 }
0x3a4a   :  { %v6864_v7 = vpop.eup %6863 }
0x3a4b   :  { %v3530_v56 = vmul.f32 %v6864_v7, %v6848_v37  ;;  %v3529_v52 = vmul.f32 %v6864_v7, %v6846_v33  ;;  %v3531_v25 = vmul.f32 %v6864_v7, %v6850_v17  ;;  %v3532_v21 = vmul.f32 %v6864_v7, %v6852_v6 }
0x3a4c   :  { %v3533_v24 = vmul.f32 %v6864_v7, %v6854_v54  ;;  %v3534_v26 = vmul.f32 %v6864_v7, %v6856_v1  ;;  %v3535_v12 = vmul.f32 %v6864_v7, %v6858_v13  ;;  %v3536_v58 = vmul.f32 %v6864_v7, %v6860_v44 }
0x3a4d   :  { %3545 = vperm.xlu1 %6568, %v3530_v56   ;;  %3540 = vperm.xlu0 %6566, %v3529_v52   ;;  %v3537_v11 = vmul.f32 %v6864_v7, %v6862_v14 }
0x3a51   :  { %3550 = vperm.xlu1 %6568, %v3531_v25   ;;  %3555 = vperm.xlu0 %6566, %v3532_v21  }
0x3a55   :  { %3560 = vperm.xlu1 %6568, %v3533_v24   ;;  %3565 = vperm.xlu0 %6566, %v3534_v26  }
0x3a59   :  { %3570 = vperm.xlu1 %6568, %v3535_v12   ;;  %3575 = vperm.xlu0 %6566, %v3536_v58   ;;  %v8330_v12 = vld [vmem:[%s8980_s2 + $0x2] ss:$0 sm:$0xff] }
0x3a5d   :  { %3580 = vperm.xlu1 %6568, %v3537_v11   ;;  %6569 = vset.pattern.permute.xlu0 %v9032_v34 }
0x3a5e   :  { %3683 = vperm.xlu0 %6569, %v7942_v55  }
0x3a62   :  { %6570 = vset.pattern.permute.xlu0 %v9025_v62 }
0x3acc   :  { %v3546_v33 = vpop.permute.xlu1 %3545  ;;  %v3541_v37 = vpop.permute.xlu0 %3540 }
0x3acd   :  { %v3584_v17 = vmul.f32 %v8042_v39, %v3546_v33  ;;  %v3583_v6 = vmul.f32 %v8045_v45, %v3541_v37  ;;  %v8337_v37 = vld [vmem:[%s8980_s2 + $0x1] ss:$0 sm:$0xff] }
0x3acf   :  { %v3593_v54 = vsel %vm119_vm0, %v3584_v17, 0.0  ;;  %v3592_v49 = vsel %vm119_vm0, %v3583_v6, 0.0 }
0x3ad0   :  { %v3551_v16 = vpop.permute.xlu1 %3550  ;;  %v3556_v1 = vpop.permute.xlu0 %3555  ;;  %v3594_v13 = vadd.f32 %v3593_v54, %v3592_v49 }
0x3ad1   :  { %v3585_v20 = vmul.f32 %v8048_v59, %v3551_v16  ;;  %v3586_v42 = vmul.f32 %v8053_v53, %v3556_v1 }
0x3ad3   :  { %v3595_v46 = vsel %vm119_vm0, %v3585_v20, 0.0  ;;  %v3597_v39 = vsel %vm119_vm0, %v3586_v42, 0.0 }
0x3ad4   :  { %v3596_v48 = vadd.f32 %v3595_v46, %v3594_v13  ;;  %v3561_v44 = vpop.permute.xlu1 %3560  ;;  %v3566_v51 = vpop.permute.xlu0 %3565 }
0x3ad5   :  { %v3587_v45 = vmul.f32 %v8057_v4, %v3561_v44  ;;  %v3588_v22 = vmul.f32 %v8061_v38, %v3566_v51 }
0x3ad6   :  { %v3598_v14 = vadd.f32 %v3597_v39, %v3596_v48 }
0x3ad7   :  { %v3599_v18 = vsel %vm119_vm0, %v3587_v45, 0.0  ;;  %v3601_v53 = vsel %vm119_vm0, %v3588_v22, 0.0 }
0x3ad8   :  { %v3600_v63 = vadd.f32 %v3599_v18, %v3598_v14  ;;  %v3571_v43 = vpop.permute.xlu1 %3570  ;;  %v3576_v59 = vpop.permute.xlu0 %3575 }
0x3ad9   :  { %v3589_v41 = vmul.f32 %v8065_v36, %v3571_v43  ;;  %v3590_v30 = vmul.f32 %v8070_v50, %v3576_v59 }
0x3ada   :  { %v3602_v7 = vadd.f32 %v3601_v53, %v3600_v63  ;;  %v9033_v53 = vld [vmem:[#allocation7_spill] sm:$0xff] }
0x3adb   :  { %v3603_v56 = vsel %vm119_vm0, %v3589_v41, 0.0  ;;  %v3605_v4 = vsel %vm119_vm0, %v3590_v30, 0.0  ;;  %v9034_v30 = vld [vmem:[#allocation9_spill] sm:$0xff] }
0x3adc   :  { %v3604_v52 = vadd.f32 %v3603_v56, %v3602_v7  ;;  %v3581_v25 = vpop.permute.xlu1 %3580  ;;  %v9035_v56 = vld [vmem:[#allocation8_spill] sm:$0xff] }
0x3add   :  { %v3591_v38 = vmul.f32 %v8202_v29, %v3581_v25  ;;  %v3684_v36 = vpop.permute.xlu0 %3683  ;;  %v9037_v25 = vld [vmem:[#allocation11_spill] sm:$0xff] }
0x3ade   :  { %v3606_v21 = vadd.f32 %v3605_v4, %v3604_v52  ;;  %v3686_v58 = vmul.f32 %v8330_v12, %v3684_v36 }
0x3adf   :  { %v3607_v24 = vsel %vm119_vm0, %v3591_v38, 0.0 }
0x3ae0   :  { %v3608_v26 = vadd.f32 %v3607_v24, %v3606_v21 }
0x3ae2   :  { %6196 = vmatmul.mubr.msk.f32.vlgmr.msra.gmra.mrb[28].mxu1 %vm119_vm0, %v3608_v26 }
0x3ae3   :  { %6423 = vmatpush1.bf16.msra.mxu1 %v7623_v0  ;;  %3785 = vmatprep.mubr.f32.mxu1 %v9018_v60 }
0x3ae4   :  { %6425 = vmatprep.subr.bf16.mxu1 %v7639_v9 }
0x3ae7   :  { %6427 = vmatpush1.bf16.msra.mxu1 %v7641_v10 }
0x3ae8   :  { %6429 = vmatprep.subr.bf16.mxu1 %v7651_v15 }
0x3aeb   :  { %6431 = vmatpush1.bf16.msra.mxu1 %v7659_v19 }
0x3aec   :  { %6433 = vmatprep.subr.bf16.mxu1 %v7669_v23 }
0x3aef   :  { %6435 = vmatpush1.bf16.msra.mxu1 %v7677_v27 }
0x3af0   :  { %6458 = vmatprep.subr.bf16.mxu1 %v9016_v32 }
0x3bb5   :  { %v3678_v50 = vpop.f32.mrb[28].mxu1 }
0x3bb6   :  { %v3679_v11 = vadd.f32 %v3678_v50, %v8238_v8  ;;  %v6197_v34 = vpop.f32.mrb[29].mxu1 }
0x3bb8   :  { %v3687_v33 = vadd.f32 %v3686_v58, %v3679_v11 }
0x3bba   :  { %v3688_v17 = vadd.f32 %v8337_v37, %v3687_v33 }
0x3bbc   :  { %6865 = vtanh.f32 %v3688_v17  ;;  %v5828_v54 = vmul.f32 -1.442695, %v3688_v17 }
0x3bbe   :  { %6867 = vpow2.f32 %v5828_v54  ;;  %v8380_v54 = vld [vmem:[%s8980_s2 + $0x6] ss:$0 sm:$0xff] }
0x3bbf   :  { %9038 = vst [vmem:[#allocation7_spill] sm:$0xff] %v8380_v54 }
0x3bc6   :  { %v6866_v6 = vpop.eup %6865 }
0x3bc7   :  { %3698 = vrot.lane.b32.xlu1 %v6866_v6, %s7196_s12 }
0x3bc8   :  { %v6868_v49 = vpop.eup %6867 }
0x3bc9   :  { %v3692_v16 = vadd.f32 1.0, %v6868_v49 }
0x3bcb   :  { %6869 = vrcp.f32 %v3692_v16 }
0x3bd5   :  { %v6870_v1 = vpop.eup %6869 }
0x3bd6   :  { %v3696_v42 = vmul.f32 %v6870_v1, %v8224_v35 }
0x3c39   :  { %v3699_v8 = vpop.permute.xlu1 %3698 }
0x3c3a   :  { %v3701_v20 = vmul.f32 %v6870_v1, %v3699_v8 }
0x3c3c   :  { %3703 = vrot.lane.b32.xlu1 %v3701_v20, %s7197_s13 }
0x3cae   :  { %v3704_v13 = vpop.permute.xlu1 %3703 }
0x3caf   :  { %v8343_v46 = vadd.f32 %v3704_v13, %v3696_v42 }
0x3cb1   :  { %6871 = vtanh.f32 %v8343_v46 }
0x3cbb   :  { %v6872_v48 = vpop.eup %6871 }
0x3cbc   :  { %3709 = vrot.lane.b32.xlu0 %v6872_v48, %s7196_s12 }
0x3d2e   :  { %v3710_v44 = vpop.permute.xlu0 %3709 }
0x3d2f   :  { %v3712_v51 = vmul.f32 %v6870_v1, %v3710_v44 }
0x3d31   :  { %3714 = vrot.lane.b32.xlu1 %v3712_v51, %s7197_s13 }
0x3da3   :  { %v3715_v39 = vpop.permute.xlu1 %3714 }
0x3da4   :  { %v3717_v45 = vsel %vm119_vm0, %v3715_v39, %v8343_v46 }
0x3da5   :  { %5829 = vmatmul.mubr.msk.f32.vlgmr.msra.gmra.mrb[30].mxu1 %vm2139_vm5, %v3717_v45 }
0x3da6   :  { %6460 = vmatpush3.bf16.msra.mxu1 %v7897_v5  ;;  %6217 = vmatprep.mubr.msk.f32.mxu1 %vm7194_vm2, %v9018_v60 }
0x3da7   :  { %6461 = vmatprep.subr.bf16.mxu1 %v9016_v32 }
0x3daa   :  { %6463 = vmatpush3.bf16.msra.mxu1 %v7910_v2 }
0x3dab   :  { %6465 = vmatprep.subr.bf16.mxu1 %v7615_v61 }
0x3e78   :  { %v8357_v35 = vpop.f32.mrb[30].mxu1 }
0x3e79   :  { %v3789_v22 = vpop.f32.mrb[31].mxu1 }
0x3e7a   :  { %v3796_v14 = vadd.f32 %v8105_v40, %v3789_v22  ;;  %v3792_v18 = vadd.f32 %v8108_v3, %v3789_v22  ;;  %v3795_v63 = vadd.f32 %v8117_v31, %v3789_v22  ;;  %v3793_v43 = vadd.f32 %v8111_v28, %v3789_v22  ;;  %v9036_v3 = vld [vmem:[#allocation10_spill] sm:$0xff] }
0x3e7b   :  { %v3798_v59 = vadd.f32 %v9026_v57, %v3789_v22  ;;  %v3794_v41 = vadd.f32 %v9033_v53, %v3789_v22  ;;  %v3800_v7 = vadd.f32 %v9034_v30, %v3789_v22  ;;  %v3797_v40 = vadd.f32 %v9035_v56, %v3789_v22 }
0x3e7c   :  { %6873 = vtanh.f32 %v3796_v14  ;;  %v3799_v31 = vadd.f32 %v9036_v3, %v3789_v22 }
0x3e7d   :  { %6875 = vtanh.f32 %v3792_v18 }
0x3e7e   :  { %6877 = vtanh.f32 %v3795_v63 }
0x3e7f   :  { %6879 = vtanh.f32 %v3793_v43 }
0x3e80   :  { %6881 = vtanh.f32 %v3798_v59 }
0x3e81   :  { %6883 = vtanh.f32 %v3794_v41 }
0x3e82   :  { %6885 = vtanh.f32 %v3800_v7 }
0x3e83   :  { %6887 = vtanh.f32 %v3797_v40 }
0x3e84   :  { %6889 = vtanh.f32 %v3799_v31 }
0x3e86   :  { %v6874_v52 = vpop.eup %6873 }
0x3e87   :  { %v6876_v28 = vpop.eup %6875  ;;  %v3814_v4 = vmul.f32 %v9037_v25, %v6874_v52 }
0x3e88   :  { %v6878_v57 = vpop.eup %6877  ;;  %v3810_v38 = vmul.f32 %v9037_v25, %v6876_v28 }
0x3e89   :  { %v6880_v21 = vpop.eup %6879  ;;  %v3831_v24 = vsel %vm119_vm0, %v3814_v4, 0.0  ;;  %v3813_v26 = vmul.f32 %v9037_v25, %v6878_v57 }
0x3e8a   :  { %v6882_v36 = vpop.eup %6881  ;;  %3832 = vadd.xlane.f32.xlu1 %v3831_v24  ;;  %v3819_v50 = vsel %vm119_vm0, %v3810_v38, 0.0  ;;  %v3811_v58 = vmul.f32 %v9037_v25, %v6880_v21 }
0x3e8b   :  { %v6884_v11 = vpop.eup %6883  ;;  %3820 = vadd.xlane.f32.xlu0 %v3819_v50  ;;  %v3828_v34 = vsel %vm119_vm0, %v3813_v26, 0.0  ;;  %v3816_v33 = vmul.f32 %v9037_v25, %v6882_v36 }
0x3e8c   :  { %v6886_v17 = vpop.eup %6885  ;;  %v3822_v6 = vsel %vm119_vm0, %v3811_v58, 0.0  ;;  %v3812_v49 = vmul.f32 %v8380_v54, %v6884_v11  ;;  %v8409_v58 = vld [vmem:[%s8980_s2 + $0x10] ss:$0 sm:$0xff] }
0x3e8d   :  { %v6888_v16 = vpop.eup %6887  ;;  %v3837_v1 = vsel %vm119_vm0, %v3816_v33, 0.0  ;;  %v3818_v8 = vmul.f32 %v8380_v54, %v6886_v17 }
0x3e8e   :  { %3829 = vadd.xlane.f32.xlu1 %v3828_v34  ;;  %v3825_v20 = vsel %vm119_vm0, %v3812_v49, 0.0  ;;  %v3815_v42 = vmul.f32 %v8380_v54, %v6888_v16  ;;  %v6890_v13 = vpop.eup %6889 }
0x3e8f   :  { %3823 = vadd.xlane.f32.xlu0 %v3822_v6  ;;  %v3843_v48 = vsel %vm119_vm0, %v3818_v8, 0.0  ;;  %v3817_v51 = vmul.f32 %v8380_v54, %v6890_v13 }
0x3e90   :  { %v3834_v44 = vsel %vm119_vm0, %v3815_v42, 0.0 }
0x3e91   :  { %v3840_v39 = vsel %vm119_vm0, %v3817_v51, 0.0 }
0x3e92   :  { %3838 = vadd.xlane.f32.xlu1 %v3837_v1 }
0x3e93   :  { %3826 = vadd.xlane.f32.xlu0 %v3825_v20 }
0x3e96   :  { %3844 = vadd.xlane.f32.xlu1 %v3843_v48 }
0x3e97   :  { %3835 = vadd.xlane.f32.xlu0 %v3834_v44 }
0x3e9b   :  { %3841 = vadd.xlane.f32.xlu0 %v3840_v39 }
0x3f17   :  { %v3833_v45 = vpop.xlane.xlu1 %3832 }
0x3f18   :  { %v3821_v22 = vpop.xlane.xlu0 %3820  ;;  %v3850_v43 = vadd.f32 %v8156_v47, %v3833_v45 }
0x3f19   :  { %v3846_v59 = vadd.f32 %v8156_v47, %v3821_v22 }
0x3f1a   :  { %v3859_v7 = vsel %vm2295_vm4, %v3850_v43, -inf }
0x3f1b   :  { %v3830_v14 = vpop.xlane.xlu1 %3829  ;;  %v3855_v56 = vsel %vm2295_vm4, %v3846_v59, -inf }
0x3f1c   :  { %v3824_v18 = vpop.xlane.xlu0 %3823  ;;  %v3849_v4 = vadd.f32 %v8156_v47, %v3830_v14  ;;  %v3860_v21 = vmax.f32 %v3855_v56, %v3859_v7 }
0x3f1d   :  { %v3847_v31 = vadd.f32 %v8156_v47, %v3824_v18 }
0x3f1e   :  { %v3858_v33 = vsel %vm2295_vm4, %v3849_v4, -inf }
0x3f1f   :  { %v3839_v63 = vpop.xlane.xlu1 %3838  ;;  %v3856_v26 = vsel %vm2295_vm4, %v3847_v31, -inf }
0x3f20   :  { %v3827_v53 = vpop.xlane.xlu0 %3826  ;;  %v3852_v52 = vadd.f32 %v8156_v47, %v3839_v63 }
0x3f21   :  { %v3848_v28 = vadd.f32 %v8156_v47, %v3827_v53 }
0x3f22   :  { %v3863_v36 = vsel %vm2295_vm4, %v3852_v52, -inf }
0x3f23   :  { %v3845_v41 = vpop.xlane.xlu1 %3844  ;;  %v3857_v50 = vsel %vm2295_vm4, %v3848_v28, -inf }
0x3f24   :  { %v3854_v40 = vadd.f32 %v8156_v47, %v3845_v41  ;;  %v3836_v3 = vpop.xlane.xlu0 %3835  ;;  %v3864_v6 = vmax.f32 %v3857_v50, %v3863_v36 }
0x3f25   :  { %v3851_v25 = vadd.f32 %v8156_v47, %v3836_v3 }
0x3f26   :  { %v3867_v57 = vsel %vm2295_vm4, %v3854_v40, -inf }
0x3f27   :  { %v3861_v38 = vsel %vm2295_vm4, %v3851_v25, -inf  ;;  %v3868_v47 = vmax.f32 %v3860_v21, %v3867_v57 }
0x3f28   :  { %v3842_v24 = vpop.xlane.xlu0 %3841  ;;  %v3862_v34 = vmax.f32 %v3856_v26, %v3861_v38 }
0x3f29   :  { %v3853_v11 = vadd.f32 %v8409_v58, %v3842_v24 }
0x3f2a   :  { %v3869_v16 = vmax.f32 %v3868_v47, %v3862_v34 }
0x3f2b   :  { %v3865_v17 = vsel %vm2295_vm4, %v3853_v11, -inf }
0x3f2c   :  { %v3866_v49 = vmax.f32 %v3858_v33, %v3865_v17 }
0x3f2e   :  { %v3870_v1 = vmax.f32 %v3864_v6, %v3866_v49 }
0x3f30   :  { %v3871_v8 = vmax.f32 %v3869_v16, %v3870_v1 }
0x3f32   :  { %v3872_v20 = vsub.f32 %v3846_v59, %v3871_v8  ;;  %v3873_v42 = vsub.f32 %v3847_v31, %v3871_v8  ;;  %v3874_v13 = vsub.f32 %v3848_v28, %v3871_v8  ;;  %v3875_v48 = vsub.f32 %v3849_v4, %v3871_v8 }
0x3f33   :  { %v3876_v44 = vsub.f32 %v3850_v43, %v3871_v8  ;;  %v3877_v22 = vsub.f32 %v3851_v25, %v3871_v8  ;;  %v3878_v18 = vsub.f32 %v3852_v52, %v3871_v8  ;;  %v3879_v53 = vsub.f32 %v3853_v11, %v3871_v8 }
0x3f34   :  { %v3881_v51 = vmul.f32 1.442695, %v3872_v20  ;;  %v3883_v39 = vmul.f32 1.442695, %v3873_v42  ;;  %v3885_v45 = vmul.f32 1.442695, %v3874_v13  ;;  %v3880_v7 = vsub.f32 %v3854_v40, %v3871_v8 }
0x3f35   :  { %v3887_v14 = vmul.f32 1.442695, %v3875_v48  ;;  %v3889_v63 = vmul.f32 1.442695, %v3876_v44  ;;  %v3891_v41 = vmul.f32 1.442695, %v3877_v22 }
0x3f36   :  { %6891 = vpow2.f32 %v3881_v51  ;;  %v3893_v59 = vmul.f32 1.442695, %v3878_v18  ;;  %v3895_v56 = vmul.f32 1.442695, %v3879_v53  ;;  %v3897_v43 = vmul.f32 1.442695, %v3880_v7 }
0x3f37   :  { %6893 = vpow2.f32 %v3883_v39  ;;  %v7202_v39 = vmov 4  }
0x3f38   :  { %6895 = vpow2.f32 %v3885_v45 }
0x3f39   :  { %6897 = vpow2.f32 %v3887_v14 }
0x3f3a   :  { %6899 = vpow2.f32 %v3889_v63 }
0x3f3b   :  { %6901 = vpow2.f32 %v3891_v41 }
0x3f3c   :  { %6903 = vpow2.f32 %v3893_v59 }
0x3f3d   :  { %6905 = vpow2.f32 %v3895_v56 }
0x3f3e   :  { %6907 = vpow2.f32 %v3897_v43  ;;  %v8425_v43 = vld [vmem:[#allocation2 + $0x8] sm:$0xff] }
0x3f40   :  { %v6892_v3 = vpop.eup %6891 }
0x3f41   :  { %v6894_v31 = vpop.eup %6893  ;;  %v3899_v28 = vsel %vm2295_vm4, %v6892_v3, 0.0 }
0x3f42   :  { %v6896_v25 = vpop.eup %6895  ;;  %v3900_v52 = vsel %vm2295_vm4, %v6894_v31, 0.0 }
0x3f43   :  { %v6898_v4 = vpop.eup %6897  ;;  %v3901_v57 = vadd.f32 %v3900_v52, %v3899_v28  ;;  %v3902_v38 = vsel %vm2295_vm4, %v6896_v25, 0.0  ;;  %v8431_v52 = vld [vmem:[#allocation2 + $0x10] sm:$0xff] }
0x3f44   :  { %v6900_v40 = vpop.eup %6899  ;;  %v3904_v24 = vsel %vm2295_vm4, %v6898_v4, 0.0 }
0x3f45   :  { %v3903_v21 = vadd.f32 %v3902_v38, %v3901_v57  ;;  %v6902_v26 = vpop.eup %6901  ;;  %v3906_v50 = vsel %vm2295_vm4, %v6900_v40, 0.0 }
0x3f46   :  { %v6904_v11 = vpop.eup %6903  ;;  %v3908_v34 = vsel %vm2295_vm4, %v6902_v26, 0.0 }
0x3f47   :  { %v3905_v36 = vadd.f32 %v3904_v24, %v3903_v21  ;;  %v6906_v33 = vpop.eup %6905  ;;  %v3910_v6 = vsel %vm2295_vm4, %v6904_v11, 0.0 }
0x3f48   :  { %v6908_v49 = vpop.eup %6907  ;;  %v3912_v1 = vsel %vm2295_vm4, %v6906_v33, 0.0 }
0x3f49   :  { %v3907_v47 = vadd.f32 %v3906_v50, %v3905_v36  ;;  %v3914_v20 = vsel %vm2295_vm4, %v6908_v49, 0.0  ;;  %v8440_v36 = vld [vmem:[#allocation2 + $0x20] sm:$0xff] }
0x3f4b   :  { %v3909_v17 = vadd.f32 %v3908_v34, %v3907_v47  ;;  %v8444_v34 = vld [vmem:[#allocation2 + $0x28] sm:$0xff] }
0x3f4d   :  { %v3911_v16 = vadd.f32 %v3910_v6, %v3909_v17 }
0x3f4f   :  { %v3913_v8 = vadd.f32 %v3912_v1, %v3911_v16  ;;  %v8448_v16 = vld [vmem:[#allocation2 + $0x30] sm:$0xff] }
0x3f51   :  { %v3915_v42 = vadd.f32 %v3914_v20, %v3913_v8 }
0x3f53   :  { %6909 = vrcp.f32 %v3915_v42 }
0x3f5d   :  { %v6910_v13 = vpop.eup %6909 }
0x3f5e   :  { %v3918_v48 = vmul.f32 %v6910_v13, %v6894_v31  ;;  %v3917_v44 = vmul.f32 %v6910_v13, %v6892_v3  ;;  %v3919_v51 = vmul.f32 %v6910_v13, %v6896_v25  ;;  %v3920_v45 = vmul.f32 %v6910_v13, %v6898_v4  ;;  %v8428_v31 = vld [vmem:[#allocation2] sm:$0xff] }
0x3f5f   :  { %v3921_v22 = vmul.f32 %v6910_v13, %v6900_v40  ;;  %v3922_v14 = vmul.f32 %v6910_v13, %v6902_v26  ;;  %v3923_v18 = vmul.f32 %v6910_v13, %v6904_v11  ;;  %v3924_v63 = vmul.f32 %v6910_v13, %v6906_v33  ;;  %v8436_v40 = vld [vmem:[#allocation2 + $0x18] sm:$0xff] }
0x3f60   :  { %3933 = vperm.xlu1 %6568, %v3918_v48   ;;  %3928 = vperm.xlu0 %6570, %v3917_v44   ;;  %v3925_v53 = vmul.f32 %v6910_v13, %v6908_v49  ;;  %v8453_v44 = vld [vmem:[#allocation2 + $0x38] sm:$0xff] }
0x3f64   :  { %3938 = vperm.xlu1 %6568, %v3919_v51   ;;  %6571 = vset.pattern.permute.xlu0 %v7202_v39 }
0x3f65   :  { %4071 = vperm.xlu0 %6571, %v7942_v55  }
0x3f68   :  { %3943 = vperm.xlu1 %6568, %v3920_v45  }
0x3f69   :  { %6572 = vset.pattern.permute.xlu0 %v9025_v62 }
0x3f6c   :  { %3948 = vperm.xlu1 %6568, %v3921_v22  }
0x3f70   :  { %3953 = vperm.xlu1 %6568, %v3922_v14  }
0x3f74   :  { %3958 = vperm.xlu1 %6568, %v3923_v18  }
0x3f78   :  { %3963 = vperm.xlu1 %6568, %v3924_v63  }
0x3f7c   :  { %3968 = vperm.xlu1 %6568, %v3925_v53  }
0x3fdf   :  { %v3934_v41 = vpop.permute.xlu1 %3933  ;;  %v3929_v59 = vpop.permute.xlu0 %3928 }
0x3fe0   :  { %v3972_v3 = vmul.f32 %v8425_v43, %v3934_v41  ;;  %v3971_v28 = vmul.f32 %v8428_v31, %v3929_v59 }
0x3fe2   :  { %v3981_v57 = vsel %vm119_vm0, %v3972_v3, 0.0  ;;  %v3980_v38 = vsel %vm119_vm0, %v3971_v28, 0.0 }
0x3fe3   :  { %v3939_v7 = vpop.permute.xlu1 %3938  ;;  %v3982_v11 = vadd.f32 %v3981_v57, %v3980_v38 }
0x3fe4   :  { %v3973_v4 = vmul.f32 %v8431_v52, %v3939_v7 }
0x3fe6   :  { %v3983_v26 = vsel %vm119_vm0, %v3973_v4, 0.0 }
0x3fe7   :  { %v3944_v56 = vpop.permute.xlu1 %3943  ;;  %v3984_v17 = vadd.f32 %v3983_v26, %v3982_v11 }
0x3fe8   :  { %v3974_v21 = vmul.f32 %v8436_v40, %v3944_v56 }
0x3fea   :  { %v3985_v47 = vsel %vm119_vm0, %v3974_v21, 0.0 }
0x3feb   :  { %v3949_v25 = vpop.permute.xlu1 %3948  ;;  %v3986_v8 = vadd.f32 %v3985_v47, %v3984_v17 }
0x3fec   :  { %v3975_v50 = vmul.f32 %v8440_v36, %v3949_v25 }
0x3fee   :  { %v3987_v49 = vsel %vm119_vm0, %v3975_v50, 0.0 }
0x3fef   :  { %v3954_v24 = vpop.permute.xlu1 %3953  ;;  %v3988_v42 = vadd.f32 %v3987_v49, %v3986_v8 }
0x3ff0   :  { %v3976_v33 = vmul.f32 %v8444_v34, %v3954_v24 }
0x3ff2   :  { %v3989_v20 = vsel %vm119_vm0, %v3976_v33, 0.0 }
0x3ff3   :  { %v3959_v6 = vpop.permute.xlu1 %3958  ;;  %v3990_v39 = vadd.f32 %v3989_v20, %v3988_v42  ;;  %v8491_v20 = vld [vmem:[#allocation3 + $0x20] sm:$0xff] }
0x3ff4   :  { %v3977_v1 = vmul.f32 %v8448_v16, %v3959_v6 }
0x3ff6   :  { %v3991_v48 = vsel %vm119_vm0, %v3977_v1, 0.0 }
0x3ff7   :  { %v3964_v13 = vpop.permute.xlu1 %3963  ;;  %v3992_v22 = vadd.f32 %v3991_v48, %v3990_v39 }
0x3ff8   :  { %v3978_v51 = vmul.f32 %v8453_v44, %v3964_v13  ;;  %v8494_v13 = vld [vmem:[#allocation3] sm:$0xff] }
0x3ffa   :  { %v3993_v45 = vsel %vm119_vm0, %v3978_v51, 0.0  ;;  %v8497_v51 = vld [vmem:[#allocation3 + $0x18] sm:$0xff] }
0x3ffb   :  { %v3969_v14 = vpop.permute.xlu1 %3968  ;;  %v3994_v63 = vadd.f32 %v3993_v45, %v3992_v22  ;;  %v8500_v45 = vld [vmem:[#allocation3 + $0x8] sm:$0xff] }
0x3ffc   :  { %v3979_v18 = vmul.f32 %v8202_v29, %v3969_v14  ;;  %v4072_v29 = vpop.permute.xlu0 %4071  ;;  %v8503_v14 = vld [vmem:[#allocation3 + $0x30] sm:$0xff] }
0x3ffd   :  { %v4074_v59 = vmul.f32 %v8330_v12, %v4072_v29  ;;  %9039 = vst [vmem:[#allocation9_spill] sm:$0xff] %v8503_v14  ;;  %v8510_v29 = vld [vmem:[#allocation3 + $0x28] sm:$0xff] }
0x3ffe   :  { %v3995_v53 = vsel %vm119_vm0, %v3979_v18, 0.0  ;;  %9041 = vst [vmem:[#allocation10_spill] sm:$0xff] %v8510_v29 }
0x3fff   :  { %v3996_v41 = vadd.f32 %v3995_v53, %v3994_v63  ;;  %v8506_v63 = vld [vmem:[#allocation3 + $0x10] sm:$0xff] }
0x4000   :  { %9040 = vst [vmem:[#allocation8_spill] sm:$0xff] %v8506_v63 }
0x4001   :  { %6207 = vmatmul.mubr.msk.f32.vlgmr.msra.gmra.mrb[40].mxu0 %vm119_vm0, %v3996_v41 }
0x4002   :  { %6445 = vmatpush1.bf16.msra.mxu0 %v7623_v0  ;;  %4173 = vmatprep.mubr.f32.mxu0 %v9018_v60 }
0x4003   :  { %6447 = vmatprep.subr.bf16.mxu0 %v7639_v9 }
0x4006   :  { %6449 = vmatpush1.bf16.msra.mxu0 %v7641_v10 }
0x4007   :  { %6451 = vmatprep.subr.bf16.mxu0 %v7651_v15 }
0x400a   :  { %6453 = vmatpush1.bf16.msra.mxu0 %v7659_v19 }
0x400b   :  { %6455 = vmatprep.subr.bf16.mxu0 %v7669_v23 }
0x400e   :  { %6457 = vmatpush1.bf16.msra.mxu0 %v7677_v27 }
0x400f   :  { %6480 = vmatprep.subr.bf16.mxu0 %v9016_v32 }
0x40d4   :  { %v4066_v7 = vpop.f32.mrb[40].mxu0 }
0x40d5   :  { %v4067_v56 = vadd.f32 %v4066_v7, %v8357_v35  ;;  %v6208_v3 = vpop.f32.mrb[41].mxu0 }
0x40d7   :  { %v4075_v28 = vadd.f32 %v4074_v59, %v4067_v56  ;;  %v8513_v59 = vld [vmem:[#allocation3 + $0x38] sm:$0xff] }
0x40d8   :  { %9042 = vst [vmem:[#allocation11_spill] sm:$0xff] %v8513_v59 }
0x40d9   :  { %v4076_v25 = vadd.f32 %v8337_v37, %v4075_v28 }
0x40db   :  { %6911 = vtanh.f32 %v4076_v25  ;;  %v5831_v57 = vmul.f32 -1.442695, %v4076_v25 }
0x40dd   :  { %6913 = vpow2.f32 %v5831_v57 }
0x40e5   :  { %v6912_v4 = vpop.eup %6911 }
0x40e6   :  { %4086 = vrot.lane.b32.xlu1 %v6912_v4, %s7196_s12 }
0x40e7   :  { %v6914_v38 = vpop.eup %6913 }
0x40e8   :  { %v4080_v21 = vadd.f32 1.0, %v6914_v38 }
0x40ea   :  { %6915 = vrcp.f32 %v4080_v21 }
0x40f4   :  { %v6916_v24 = vpop.eup %6915 }
0x40f5   :  { %v4084_v35 = vmul.f32 %v6916_v24, %v8343_v46 }
0x4158   :  { %v4087_v26 = vpop.permute.xlu1 %4086 }
0x4159   :  { %v4089_v50 = vmul.f32 %v6916_v24, %v4087_v26 }
0x415b   :  { %4091 = vrot.lane.b32.xlu1 %v4089_v50, %s7197_s13 }
0x41cd   :  { %v4092_v11 = vpop.permute.xlu1 %4091 }
0x41ce   :  { %v8475_v47 = vadd.f32 %v4092_v11, %v4084_v35 }
0x41d0   :  { %6917 = vtanh.f32 %v8475_v47 }
0x41da   :  { %v6918_v33 = vpop.eup %6917 }
0x41db   :  { %4097 = vrot.lane.b32.xlu0 %v6918_v33, %s7196_s12 }
0x424d   :  { %v4098_v17 = vpop.permute.xlu0 %4097 }
0x424e   :  { %v4100_v6 = vmul.f32 %v6916_v24, %v4098_v17 }
0x4250   :  { %4102 = vrot.lane.b32.xlu1 %v4100_v6, %s7197_s13 }
0x42c2   :  { %v4103_v49 = vpop.permute.xlu1 %4102 }
0x42c3   :  { %v4105_v1 = vsel %vm119_vm0, %v4103_v49, %v8475_v47 }
0x42c4   :  { %5832 = vmatmul.mubr.msk.f32.vlgmr.msra.gmra.mrb[42].mxu0 %vm2139_vm5, %v4105_v1 }
0x42c5   :  { %6482 = vmatpush3.bf16.msra.mxu0 %v7897_v5  ;;  %6228 = vmatprep.mubr.msk.f32.mxu0 %vm7194_vm2, %v9018_v60 }
0x42c6   :  { %6483 = vmatprep.subr.bf16.mxu0 %v9016_v32 }
0x42c9   :  { %6485 = vmatpush3.bf16.msra.mxu0 %v7910_v2 }
0x42ca   :  { %6487 = vmatprep.subr.bf16.mxu0 %v7615_v61 }
0x4397   :  { %v8489_v46 = vpop.f32.mrb[42].mxu0 }
0x4398   :  { %v4177_v8 = vpop.f32.mrb[43].mxu0 }
0x4399   :  { %v4184_v42 = vadd.f32 %v8491_v20, %v4177_v8  ;;  %v4180_v48 = vadd.f32 %v8494_v13, %v4177_v8  ;;  %v4183_v39 = vadd.f32 %v8497_v51, %v4177_v8  ;;  %v4181_v22 = vadd.f32 %v8500_v45, %v4177_v8 }
0x439a   :  { %v4186_v18 = vadd.f32 %v8503_v14, %v4177_v8  ;;  %v4182_v53 = vadd.f32 %v8506_v63, %v4177_v8  ;;  %v4188_v41 = vadd.f32 %v9034_v30, %v4177_v8  ;;  %v4185_v7 = vadd.f32 %v8510_v29, %v4177_v8 }
0x439b   :  { %6919 = vtanh.f32 %v4184_v42  ;;  %v4187_v56 = vadd.f32 %v8513_v59, %v4177_v8 }
0x439c   :  { %6921 = vtanh.f32 %v4180_v48 }
0x439d   :  { %6923 = vtanh.f32 %v4183_v39 }
0x439e   :  { %6925 = vtanh.f32 %v4181_v22 }
0x439f   :  { %6927 = vtanh.f32 %v4186_v18 }
0x43a0   :  { %6929 = vtanh.f32 %v4182_v53 }
0x43a1   :  { %6931 = vtanh.f32 %v4188_v41 }
0x43a2   :  { %6933 = vtanh.f32 %v4185_v7 }
0x43a3   :  { %6935 = vtanh.f32 %v4187_v56 }
0x43a5   :  { %v6920_v3 = vpop.eup %6919 }
0x43a6   :  { %v6922_v28 = vpop.eup %6921  ;;  %v4202_v25 = vmul.f32 %v8380_v54, %v6920_v3 }
0x43a7   :  { %v6924_v4 = vpop.eup %6923  ;;  %v4198_v57 = vmul.f32 %v8380_v54, %v6922_v28 }
0x43a8   :  { %v6926_v38 = vpop.eup %6925  ;;  %v4219_v30 = vsel %vm119_vm0, %v4202_v25, 0.0  ;;  %v4201_v21 = vmul.f32 %v8380_v54, %v6924_v4 }
0x43a9   :  { %v6928_v24 = vpop.eup %6927  ;;  %4220 = vadd.xlane.f32.xlu1 %v4219_v30  ;;  %v4207_v26 = vsel %vm119_vm0, %v4198_v57, 0.0  ;;  %v4199_v50 = vmul.f32 %v8380_v54, %v6926_v38 }
0x43aa   :  { %v6930_v35 = vpop.eup %6929  ;;  %4208 = vadd.xlane.f32.xlu0 %v4207_v26  ;;  %v4216_v11 = vsel %vm119_vm0, %v4201_v21, 0.0  ;;  %v4204_v33 = vmul.f32 %v8380_v54, %v6928_v24 }
0x43ab   :  { %v6932_v17 = vpop.eup %6931  ;;  %v4210_v6 = vsel %vm119_vm0, %v4199_v50, 0.0  ;;  %v4200_v49 = vmul.f32 %v8380_v54, %v6930_v35 }
0x43ac   :  { %v6934_v1 = vpop.eup %6933  ;;  %v4225_v8 = vsel %vm119_vm0, %v4204_v33, 0.0  ;;  %v4206_v42 = vmul.f32 %v8380_v54, %v6932_v17 }
0x43ad   :  { %4217 = vadd.xlane.f32.xlu1 %v4216_v11  ;;  %v4213_v48 = vsel %vm119_vm0, %v4200_v49, 0.0  ;;  %v4203_v39 = vmul.f32 %v8380_v54, %v6934_v1  ;;  %v6936_v22 = vpop.eup %6935 }
0x43ae   :  { %4211 = vadd.xlane.f32.xlu0 %v4210_v6  ;;  %v4231_v18 = vsel %vm119_vm0, %v4206_v42, 0.0  ;;  %v4205_v41 = vmul.f32 %v8380_v54, %v6936_v22 }
0x43af   :  { %v4222_v53 = vsel %vm119_vm0, %v4203_v39, 0.0 }
0x43b0   :  { %v4228_v7 = vsel %vm119_vm0, %v4205_v41, 0.0 }
0x43b1   :  { %4226 = vadd.xlane.f32.xlu1 %v4225_v8 }
0x43b2   :  { %4214 = vadd.xlane.f32.xlu0 %v4213_v48 }
0x43b5   :  { %4232 = vadd.xlane.f32.xlu1 %v4231_v18 }
0x43b6   :  { %4223 = vadd.xlane.f32.xlu0 %v4222_v53 }
0x43ba   :  { %4229 = vadd.xlane.f32.xlu0 %v4228_v7 }
0x4436   :  { %v4221_v56 = vpop.xlane.xlu1 %4220 }
0x4437   :  { %v4209_v3 = vpop.xlane.xlu0 %4208  ;;  %v4238_v57 = vadd.f32 %v8409_v58, %v4221_v56 }
0x4438   :  { %v4234_v38 = vadd.f32 %v8409_v58, %v4209_v3 }
0x4439   :  { %v4247_v24 = vsel %vm2295_vm4, %v4238_v57, -inf }
0x443a   :  { %v4218_v28 = vpop.xlane.xlu1 %4217  ;;  %v4243_v26 = vsel %vm2295_vm4, %v4234_v38, -inf }
0x443b   :  { %v4212_v25 = vpop.xlane.xlu0 %4211  ;;  %v4237_v49 = vadd.f32 %v8409_v58, %v4218_v28  ;;  %v4248_v42 = vmax.f32 %v4243_v26, %v4247_v24 }
0x443c   :  { %v4235_v11 = vadd.f32 %v8409_v58, %v4212_v25 }
0x443d   :  { %v4246_v56 = vsel %vm2295_vm4, %v4237_v49, -inf }
0x443e   :  { %v4227_v4 = vpop.xlane.xlu1 %4226  ;;  %v4244_v39 = vsel %vm2295_vm4, %v4235_v11, -inf }
0x443f   :  { %v4215_v30 = vpop.xlane.xlu0 %4214  ;;  %v4240_v33 = vadd.f32 %v8409_v58, %v4227_v4 }
0x4440   :  { %v4236_v17 = vadd.f32 %v8409_v58, %v4215_v30 }
0x4441   :  { %v4251_v22 = vsel %vm2295_vm4, %v4240_v33, -inf }
0x4442   :  { %v4233_v21 = vpop.xlane.xlu1 %4232  ;;  %v4245_v18 = vsel %vm2295_vm4, %v4236_v17, -inf }
0x4443   :  { %v4242_v50 = vadd.f32 %v8409_v58, %v4233_v21  ;;  %v4224_v35 = vpop.xlane.xlu0 %4223  ;;  %v4252_v28 = vmax.f32 %v4245_v18, %v4251_v22 }
0x4444   :  { %v4239_v6 = vadd.f32 %v8409_v58, %v4224_v35 }
0x4445   :  { %v4255_v1 = vsel %vm2295_vm4, %v4242_v50, -inf }
0x4446   :  { %v4249_v8 = vsel %vm2295_vm4, %v4239_v6, -inf  ;;  %v4256_v41 = vmax.f32 %v4248_v42, %v4255_v1 }
0x4447   :  { %v4230_v48 = vpop.xlane.xlu0 %4229  ;;  %v4250_v7 = vmax.f32 %v4244_v39, %v4249_v8 }
0x4448   :  { %v4241_v53 = vadd.f32 %v8409_v58, %v4230_v48 }
0x4449   :  { %v4257_v4 = vmax.f32 %v4256_v41, %v4250_v7 }
0x444a   :  { %v4253_v3 = vsel %vm2295_vm4, %v4241_v53, -inf }
0x444b   :  { %v4254_v25 = vmax.f32 %v4246_v56, %v4253_v3 }
0x444d   :  { %v4258_v30 = vmax.f32 %v4252_v28, %v4254_v25 }
0x444f   :  { %v4259_v21 = vmax.f32 %v4257_v4, %v4258_v30 }
0x4451   :  { %v4260_v24 = vsub.f32 %v4234_v38, %v4259_v21  ;;  %v4261_v26 = vsub.f32 %v4235_v11, %v4259_v21  ;;  %v4262_v35 = vsub.f32 %v4236_v17, %v4259_v21  ;;  %v4263_v54 = vsub.f32 %v4237_v49, %v4259_v21 }
0x4452   :  { %v4264_v59 = vsub.f32 %v4238_v57, %v4259_v21  ;;  %v4265_v48 = vsub.f32 %v4239_v6, %v4259_v21  ;;  %v4266_v8 = vsub.f32 %v4240_v33, %v4259_v21  ;;  %v4267_v39 = vsub.f32 %v4241_v53, %v4259_v21 }
0x4453   :  { %v4269_v29 = vmul.f32 1.442695, %v4260_v24  ;;  %v4271_v63 = vmul.f32 1.442695, %v4261_v26  ;;  %v4273_v14 = vmul.f32 1.442695, %v4262_v35  ;;  %v4268_v18 = vsub.f32 %v4242_v50, %v4259_v21 }
0x4454   :  { %v4275_v1 = vmul.f32 1.442695, %v4263_v54  ;;  %v4277_v42 = vmul.f32 1.442695, %v4264_v59  ;;  %v4279_v22 = vmul.f32 1.442695, %v4265_v48 }
0x4455   :  { %6937 = vpow2.f32 %v4269_v29  ;;  %v4281_v38 = vmul.f32 1.442695, %v4266_v8  ;;  %v4283_v11 = vmul.f32 1.442695, %v4267_v39  ;;  %v4285_v57 = vmul.f32 1.442695, %v4268_v18 }
0x4456   :  { %6939 = vpow2.f32 %v4271_v63 }
0x4457   :  { %6941 = vpow2.f32 %v4273_v14 }
0x4458   :  { %6943 = vpow2.f32 %v4275_v1 }
0x4459   :  { %6945 = vpow2.f32 %v4277_v42 }
0x445a   :  { %6947 = vpow2.f32 %v4279_v22 }
0x445b   :  { %6949 = vpow2.f32 %v4281_v38 }
0x445c   :  { %6951 = vpow2.f32 %v4283_v11 }
0x445d   :  { %6953 = vpow2.f32 %v4285_v57 }
0x445f   :  { %v6938_v17 = vpop.eup %6937 }
0x4460   :  { %v6940_v49 = vpop.eup %6939  ;;  %v4287_v54 = vsel %vm2295_vm4, %v6938_v17, 0.0 }
0x4461   :  { %v6942_v29 = vpop.eup %6941  ;;  %v4288_v63 = vsel %vm2295_vm4, %v6940_v49, 0.0 }
0x4462   :  { %v6944_v59 = vpop.eup %6943  ;;  %v4289_v14 = vadd.f32 %v4288_v63, %v4287_v54  ;;  %v4290_v33 = vsel %vm2295_vm4, %v6942_v29, 0.0 }
0x4463   :  { %v6946_v50 = vpop.eup %6945  ;;  %v4292_v53 = vsel %vm2295_vm4, %v6944_v59, 0.0 }
0x4464   :  { %v4291_v6 = vadd.f32 %v4290_v33, %v4289_v14  ;;  %v6948_v41 = vpop.eup %6947  ;;  %v4294_v56 = vsel %vm2295_vm4, %v6946_v50, 0.0  ;;  %v7203_v33 = vmov 5  }
0x4465   :  { %v6950_v3 = vpop.eup %6949  ;;  %v4296_v25 = vsel %vm2295_vm4, %v6948_v41, 0.0 }
0x4466   :  { %v4293_v7 = vadd.f32 %v4292_v53, %v4291_v6  ;;  %v6952_v4 = vpop.eup %6951  ;;  %v4298_v21 = vsel %vm2295_vm4, %v6950_v3, 0.0 }
0x4467   :  { %v6954_v24 = vpop.eup %6953  ;;  %v4300_v35 = vsel %vm2295_vm4, %v6952_v4, 0.0 }
0x4468   :  { %v4295_v28 = vadd.f32 %v4294_v56, %v4293_v7  ;;  %v4302_v1 = vsel %vm2295_vm4, %v6954_v24, 0.0 }
0x446a   :  { %v4297_v30 = vadd.f32 %v4296_v25, %v4295_v28 }
0x446c   :  { %v4299_v26 = vadd.f32 %v4298_v21, %v4297_v30 }
0x446e   :  { %v4301_v48 = vadd.f32 %v4300_v35, %v4299_v26 }
0x4470   :  { %v4303_v8 = vadd.f32 %v4302_v1, %v4301_v48 }
0x4472   :  { %6955 = vrcp.f32 %v4303_v8 }
0x447c   :  { %v6956_v42 = vpop.eup %6955 }
0x447d   :  { %v4306_v39 = vmul.f32 %v6956_v42, %v6940_v49  ;;  %v4305_v22 = vmul.f32 %v6956_v42, %v6938_v17  ;;  %v4307_v18 = vmul.f32 %v6956_v42, %v6942_v29  ;;  %v4313_v38 = vmul.f32 %v6956_v42, %v6954_v24 }
0x447e   :  { %v4308_v11 = vmul.f32 %v6956_v42, %v6944_v59  ;;  %v4309_v57 = vmul.f32 %v6956_v42, %v6946_v50  ;;  %v4310_v54 = vmul.f32 %v6956_v42, %v6948_v41  ;;  %v4311_v63 = vmul.f32 %v6956_v42, %v6950_v3 }
0x447f   :  { %4321 = vperm.xlu1 %6568, %v4306_v39   ;;  %4316 = vperm.xlu0 %6572, %v4305_v22   ;;  %v4312_v14 = vmul.f32 %v6956_v42, %v6952_v4 }
0x4483   :  { %4326 = vperm.xlu1 %6568, %v4307_v18   ;;  %4356 = vperm.xlu0 %6572, %v4313_v38  }
0x4487   :  { %4331 = vperm.xlu1 %6568, %v4308_v11  }
0x448b   :  { %4336 = vperm.xlu1 %6568, %v4309_v57   ;;  %v8577_v57 = vld [vmem:[#allocation2 + $0x40] sm:$0xff] }
0x448f   :  { %4341 = vperm.xlu1 %6568, %v4310_v54  }
0x4493   :  { %4346 = vperm.xlu1 %6568, %v4311_v63  }
0x4497   :  { %4351 = vperm.xlu1 %6568, %v4312_v14  }
0x449b   :  { %6573 = vset.pattern.permute.xlu1 %v7203_v33 }
0x449c   :  { %4459 = vperm.xlu1 %6573, %v7942_v55  }
0x44a0   :  { %6574 = vset.pattern.permute.xlu1 %v9025_v62 }
0x44fe   :  { %v4322_v17 = vpop.permute.xlu1 %4321  ;;  %v4317_v29 = vpop.permute.xlu0 %4316 }
0x44ff   :  { %v4360_v59 = vmul.f32 %v8425_v43, %v4322_v17  ;;  %v4359_v50 = vmul.f32 %v8428_v31, %v4317_v29 }
0x4501   :  { %v4369_v7 = vsel %vm119_vm0, %v4360_v59, 0.0  ;;  %v4368_v56 = vsel %vm119_vm0, %v4359_v50, 0.0 }
0x4502   :  { %v4327_v49 = vpop.permute.xlu1 %4326  ;;  %v4370_v4 = vadd.f32 %v4369_v7, %v4368_v56  ;;  %v4357_v39 = vpop.permute.xlu0 %4356 }
0x4503   :  { %v4361_v53 = vmul.f32 %v8431_v52, %v4327_v49  ;;  %v4367_v54 = vmul.f32 %v8577_v57, %v4357_v39 }
0x4505   :  { %v4371_v28 = vsel %vm119_vm0, %v4361_v53, 0.0  ;;  %v4383_v49 = vsel %vm119_vm0, %v4367_v54, 0.0 }
0x4506   :  { %v4332_v6 = vpop.permute.xlu1 %4331  ;;  %v4372_v26 = vadd.f32 %v4371_v28, %v4370_v4 }
0x4507   :  { %v4362_v3 = vmul.f32 %v8436_v40, %v4332_v6 }
0x4509   :  { %v4373_v21 = vsel %vm119_vm0, %v4362_v3, 0.0 }
0x450a   :  { %v4337_v41 = vpop.permute.xlu1 %4336  ;;  %v4374_v48 = vadd.f32 %v4373_v21, %v4372_v26 }
0x450b   :  { %v4363_v25 = vmul.f32 %v8440_v36, %v4337_v41 }
0x450d   :  { %v4375_v35 = vsel %vm119_vm0, %v4363_v25, 0.0 }
0x450e   :  { %v4342_v30 = vpop.permute.xlu1 %4341  ;;  %v4376_v22 = vadd.f32 %v4375_v35, %v4374_v48 }
0x450f   :  { %v4364_v24 = vmul.f32 %v8444_v34, %v4342_v30 }
0x4511   :  { %v4377_v8 = vsel %vm119_vm0, %v4364_v24, 0.0 }
0x4512   :  { %v4347_v1 = vpop.permute.xlu1 %4346  ;;  %v4378_v38 = vadd.f32 %v4377_v8, %v4376_v22 }
0x4513   :  { %v4365_v42 = vmul.f32 %v8448_v16, %v4347_v1 }
0x4515   :  { %v4379_v18 = vsel %vm119_vm0, %v4365_v42, 0.0 }
0x4516   :  { %v4352_v11 = vpop.permute.xlu1 %4351  ;;  %v4380_v14 = vadd.f32 %v4379_v18, %v4378_v38 }
0x4517   :  { %v4366_v63 = vmul.f32 %v8453_v44, %v4352_v11  ;;  %v9043_v11 = vld [vmem:[#allocation9_spill] sm:$0xff] }
0x4519   :  { %v4381_v33 = vsel %vm119_vm0, %v4366_v63, 0.0  ;;  %v9044_v63 = vld [vmem:[#allocation8_spill] sm:$0xff] }
0x451a   :  { %v4382_v17 = vadd.f32 %v4381_v33, %v4380_v14 }
0x451b   :  { %v4460_v6 = vpop.permute.xlu1 %4459 }
0x451c   :  { %v4384_v29 = vadd.f32 %v4383_v49, %v4382_v17  ;;  %v4462_v50 = vmul.f32 %v8330_v12, %v4460_v6  ;;  %v9046_v17 = vld [vmem:[#allocation10_spill] sm:$0xff] }
0x451e   :  { %6218 = vmatmul.mubr.msk.f32.vlgmr.msra.gmra.mrb[32].mxu1 %vm119_vm0, %v4384_v29  ;;  %v9047_v29 = vld [vmem:[#allocation11_spill] sm:$0xff] }
0x451f   :  { %6467 = vmatpush1.bf16.msra.mxu1 %v7623_v0  ;;  %4561 = vmatprep.mubr.f32.mxu1 %v9018_v60 }
0x4520   :  { %6469 = vmatprep.subr.bf16.mxu1 %v7639_v9 }
0x4523   :  { %6471 = vmatpush1.bf16.msra.mxu1 %v7641_v10 }
0x4524   :  { %6473 = vmatprep.subr.bf16.mxu1 %v7651_v15 }
0x4527   :  { %6475 = vmatpush1.bf16.msra.mxu1 %v7659_v19 }
0x4528   :  { %6477 = vmatprep.subr.bf16.mxu1 %v7669_v23 }
0x452b   :  { %6479 = vmatpush1.bf16.msra.mxu1 %v7677_v27 }
0x452c   :  { %6502 = vmatprep.subr.bf16.mxu1 %v9016_v32 }
0x45f1   :  { %v4454_v59 = vpop.f32.mrb[32].mxu1 }
0x45f2   :  { %v4455_v53 = vadd.f32 %v4454_v59, %v8489_v46  ;;  %v6219_v41 = vpop.f32.mrb[33].mxu1 }
0x45f4   :  { %v4463_v7 = vadd.f32 %v4462_v50, %v4455_v53  ;;  %v9048_v53 = vld [vmem:[#allocation7_spill] sm:$0xff] }
0x45f6   :  { %v4464_v56 = vadd.f32 %v8337_v37, %v4463_v7 }
0x45f8   :  { %6957 = vtanh.f32 %v4464_v56  ;;  %v5834_v28 = vmul.f32 -1.442695, %v4464_v56 }
0x45fa   :  { %6959 = vpow2.f32 %v5834_v28 }
0x4602   :  { %v6958_v3 = vpop.eup %6957 }
0x4603   :  { %4474 = vrot.lane.b32.xlu0 %v6958_v3, %s7196_s12 }
0x4604   :  { %v6960_v25 = vpop.eup %6959 }
0x4605   :  { %v4468_v4 = vadd.f32 1.0, %v6960_v25 }
0x4607   :  { %6961 = vrcp.f32 %v4468_v4 }
0x4611   :  { %v6962_v30 = vpop.eup %6961 }
0x4612   :  { %v4472_v12 = vmul.f32 %v6962_v30, %v8475_v47 }
0x4675   :  { %v4475_v21 = vpop.permute.xlu0 %4474 }
0x4676   :  { %v4477_v24 = vmul.f32 %v6962_v30, %v4475_v21 }
0x4678   :  { %4479 = vrot.lane.b32.xlu1 %v4477_v24, %s7197_s13 }
0x46ea   :  { %v4480_v46 = vpop.permute.xlu1 %4479 }
0x46eb   :  { %v8599_v26 = vadd.f32 %v4480_v46, %v4472_v12 }
0x46ed   :  { %6963 = vtanh.f32 %v8599_v26 }
0x46f7   :  { %v6964_v37 = vpop.eup %6963 }
0x46f8   :  { %4485 = vrot.lane.b32.xlu0 %v6964_v37, %s7196_s12 }
0x476a   :  { %v4486_v35 = vpop.permute.xlu0 %4485 }
0x476b   :  { %v4488_v48 = vmul.f32 %v6962_v30, %v4486_v35 }
0x476d   :  { %4490 = vrot.lane.b32.xlu1 %v4488_v48, %s7197_s13 }
0x47df   :  { %v4491_v1 = vpop.permute.xlu1 %4490 }
0x47e0   :  { %v4493_v8 = vsel %vm119_vm0, %v4491_v1, %v8599_v26 }
0x47e1   :  { %5835 = vmatmul.mubr.msk.f32.vlgmr.msra.gmra.mrb[34].mxu1 %vm2139_vm5, %v4493_v8 }
0x47e2   :  { %6504 = vmatpush3.bf16.msra.mxu1 %v7897_v5  ;;  %6239 = vmatprep.mubr.msk.f32.mxu1 %vm7194_vm2, %v9018_v60 }
0x47e3   :  { %6505 = vmatprep.subr.bf16.mxu1 %v9016_v32 }
0x47e6   :  { %6507 = vmatpush3.bf16.msra.mxu1 %v7910_v2 }
0x47e7   :  { %6509 = vmatprep.subr.bf16.mxu1 %v7615_v61  ;;  %v8621_v61 = vld [vmem:[#allocation3 + $0x40] sm:$0xff] }
0x47e8   :  { %9045 = vst [vmem:[#allocation9_spill] sm:$0xff] %v8621_v61 }
0x48b4   :  { %v8613_v47 = vpop.f32.mrb[34].mxu1 }
0x48b5   :  { %v4565_v42 = vpop.f32.mrb[35].mxu1 }
0x48b6   :  { %v4572_v39 = vadd.f32 %v8491_v20, %v4565_v42  ;;  %v4568_v22 = vadd.f32 %v8494_v13, %v4565_v42  ;;  %v4571_v18 = vadd.f32 %v8497_v51, %v4565_v42  ;;  %v4569_v38 = vadd.f32 %v8500_v45, %v4565_v42 }
0x48b7   :  { %v4574_v54 = vadd.f32 %v9043_v11, %v4565_v42  ;;  %v4570_v14 = vadd.f32 %v9044_v63, %v4565_v42  ;;  %v4576_v33 = vadd.f32 %v8621_v61, %v4565_v42  ;;  %v4573_v49 = vadd.f32 %v9046_v17, %v4565_v42 }
0x48b8   :  { %6965 = vtanh.f32 %v4572_v39  ;;  %v4575_v6 = vadd.f32 %v9047_v29, %v4565_v42 }
0x48b9   :  { %6967 = vtanh.f32 %v4568_v22 }
0x48ba   :  { %6969 = vtanh.f32 %v4571_v18 }
0x48bb   :  { %6971 = vtanh.f32 %v4569_v38 }
0x48bc   :  { %6973 = vtanh.f32 %v4574_v54 }
0x48bd   :  { %6975 = vtanh.f32 %v4570_v14 }
0x48be   :  { %6977 = vtanh.f32 %v4576_v33 }
0x48bf   :  { %6979 = vtanh.f32 %v4573_v49 }
0x48c0   :  { %6981 = vtanh.f32 %v4575_v6 }
0x48c2   :  { %v6966_v59 = vpop.eup %6965 }
0x48c3   :  { %v6968_v50 = vpop.eup %6967  ;;  %v4590_v41 = vmul.f32 %v9048_v53, %v6966_v59 }
0x48c4   :  { %v6970_v7 = vpop.eup %6969  ;;  %v4586_v56 = vmul.f32 %v9048_v53, %v6968_v50 }
0x48c5   :  { %v6972_v3 = vpop.eup %6971  ;;  %v4607_v28 = vsel %vm119_vm0, %v4590_v41, 0.0  ;;  %v4589_v25 = vmul.f32 %v9048_v53, %v6970_v7 }
0x48c6   :  { %v6974_v4 = vpop.eup %6973  ;;  %4608 = vadd.xlane.f32.xlu1 %v4607_v28  ;;  %v4595_v30 = vsel %vm119_vm0, %v4586_v56, 0.0  ;;  %v4587_v21 = vmul.f32 %v9048_v53, %v6972_v3 }
0x48c7   :  { %v6976_v24 = vpop.eup %6975  ;;  %4596 = vadd.xlane.f32.xlu0 %v4595_v30  ;;  %v4604_v12 = vsel %vm119_vm0, %v4589_v25, 0.0  ;;  %v4592_v46 = vmul.f32 %v9048_v53, %v6974_v4 }
0x48c8   :  { %v6978_v37 = vpop.eup %6977  ;;  %v4598_v35 = vsel %vm119_vm0, %v4587_v21, 0.0  ;;  %v4588_v48 = vmul.f32 %v9048_v53, %v6976_v24 }
0x48c9   :  { %v6980_v1 = vpop.eup %6979  ;;  %v4613_v8 = vsel %vm119_vm0, %v4592_v46, 0.0  ;;  %v4594_v42 = vmul.f32 %v9048_v53, %v6978_v37 }
0x48ca   :  { %4605 = vadd.xlane.f32.xlu1 %v4604_v12  ;;  %v4601_v39 = vsel %vm119_vm0, %v4588_v48, 0.0  ;;  %v4591_v22 = vmul.f32 %v9048_v53, %v6980_v1  ;;  %v6982_v18 = vpop.eup %6981 }
0x48cb   :  { %4599 = vadd.xlane.f32.xlu0 %v4598_v35  ;;  %v4619_v38 = vsel %vm119_vm0, %v4594_v42, 0.0  ;;  %v4593_v14 = vmul.f32 %v9048_v53, %v6982_v18 }
0x48cc   :  { %v4610_v54 = vsel %vm119_vm0, %v4591_v22, 0.0 }
0x48cd   :  { %v4616_v33 = vsel %vm119_vm0, %v4593_v14, 0.0 }
0x48ce   :  { %4614 = vadd.xlane.f32.xlu1 %v4613_v8 }
0x48cf   :  { %4602 = vadd.xlane.f32.xlu0 %v4601_v39 }
0x48d2   :  { %4620 = vadd.xlane.f32.xlu1 %v4619_v38 }
0x48d3   :  { %4611 = vadd.xlane.f32.xlu0 %v4610_v54 }
0x48d7   :  { %4617 = vadd.xlane.f32.xlu0 %v4616_v33 }
0x4953   :  { %v4609_v49 = vpop.xlane.xlu1 %4608 }
0x4954   :  { %v4597_v6 = vpop.xlane.xlu0 %4596  ;;  %v4626_v7 = vadd.f32 %v8409_v58, %v4609_v49 }
0x4955   :  { %v4622_v56 = vadd.f32 %v8409_v58, %v4597_v6 }
0x4956   :  { %v4635_v25 = vsel %vm2295_vm4, %v4626_v7, -inf }
0x4957   :  { %v4606_v59 = vpop.xlane.xlu1 %4605  ;;  %v4631_v4 = vsel %vm2295_vm4, %v4622_v56, -inf }
0x4958   :  { %v4600_v50 = vpop.xlane.xlu0 %4599  ;;  %v4625_v37 = vadd.f32 %v8409_v58, %v4606_v59  ;;  %v4636_v1 = vmax.f32 %v4631_v4, %v4635_v25 }
0x4959   :  { %v4623_v21 = vadd.f32 %v8409_v58, %v4600_v50 }
0x495a   :  { %v4634_v14 = vsel %vm2295_vm4, %v4625_v37, -inf }
0x495b   :  { %v4615_v41 = vpop.xlane.xlu1 %4614  ;;  %v4632_v42 = vsel %vm2295_vm4, %v4623_v21, -inf }
0x495c   :  { %v4603_v3 = vpop.xlane.xlu0 %4602  ;;  %v4628_v24 = vadd.f32 %v8409_v58, %v4615_v41 }
0x495d   :  { %v4624_v12 = vadd.f32 %v8409_v58, %v4603_v3 }
0x495e   :  { %v4639_v39 = vsel %vm2295_vm4, %v4628_v24, -inf }
0x495f   :  { %v4621_v28 = vpop.xlane.xlu1 %4620  ;;  %v4633_v22 = vsel %vm2295_vm4, %v4624_v12, -inf }
0x4960   :  { %v4630_v53 = vadd.f32 %v8409_v58, %v4621_v28  ;;  %v4612_v30 = vpop.xlane.xlu0 %4611  ;;  %v4640_v49 = vmax.f32 %v4633_v22, %v4639_v39 }
0x4961   :  { %v4627_v46 = vadd.f32 %v8409_v58, %v4612_v30 }
0x4962   :  { %v4643_v35 = vsel %vm2295_vm4, %v4630_v53, -inf }
0x4963   :  { %v4637_v48 = vsel %vm2295_vm4, %v4627_v46, -inf  ;;  %v4644_v38 = vmax.f32 %v4636_v1, %v4643_v35 }
0x4964   :  { %v4618_v8 = vpop.xlane.xlu0 %4617  ;;  %v4638_v54 = vmax.f32 %v4632_v42, %v4637_v48 }
0x4965   :  { %v4629_v18 = vadd.f32 %v8409_v58, %v4618_v8 }
0x4966   :  { %v4645_v59 = vmax.f32 %v4644_v38, %v4638_v54 }
0x4967   :  { %v4641_v33 = vsel %vm2295_vm4, %v4629_v18, -inf }
0x4968   :  { %v4642_v6 = vmax.f32 %v4634_v14, %v4641_v33 }
0x496a   :  { %v4646_v50 = vmax.f32 %v4640_v49, %v4642_v6 }
0x496c   :  { %v4647_v41 = vmax.f32 %v4645_v59, %v4646_v50 }
0x496e   :  { %v4648_v3 = vsub.f32 %v4622_v56, %v4647_v41  ;;  %v4649_v28 = vsub.f32 %v4623_v21, %v4647_v41  ;;  %v4650_v25 = vsub.f32 %v4624_v12, %v4647_v41  ;;  %v4651_v4 = vsub.f32 %v4625_v37, %v4647_v41 }
0x496f   :  { %v4652_v30 = vsub.f32 %v4626_v7, %v4647_v41  ;;  %v4653_v58 = vsub.f32 %v4627_v46, %v4647_v41  ;;  %v4654_v48 = vsub.f32 %v4628_v24, %v4647_v41  ;;  %v4655_v8 = vsub.f32 %v4629_v18, %v4647_v41 }
0x4970   :  { %v4657_v29 = vmul.f32 1.442695, %v4648_v3  ;;  %v4659_v17 = vmul.f32 1.442695, %v4649_v28  ;;  %v4661_v61 = vmul.f32 1.442695, %v4650_v25  ;;  %v4656_v39 = vsub.f32 %v4630_v53, %v4647_v41 }
0x4971   :  { %v4663_v35 = vmul.f32 1.442695, %v4651_v4  ;;  %v4665_v1 = vmul.f32 1.442695, %v4652_v30  ;;  %v4667_v42 = vmul.f32 1.442695, %v4653_v58 }
0x4972   :  { %6983 = vpow2.f32 %v4657_v29  ;;  %v4669_v56 = vmul.f32 1.442695, %v4654_v48  ;;  %v4671_v21 = vmul.f32 1.442695, %v4655_v8  ;;  %v4673_v7 = vmul.f32 1.442695, %v4656_v39 }
0x4973   :  { %6985 = vpow2.f32 %v4659_v17 }
0x4974   :  { %6987 = vpow2.f32 %v4661_v61 }
0x4975   :  { %6989 = vpow2.f32 %v4663_v35 }
0x4976   :  { %6991 = vpow2.f32 %v4665_v1 }
0x4977   :  { %6993 = vpow2.f32 %v4667_v42 }
0x4978   :  { %6995 = vpow2.f32 %v4669_v56 }
0x4979   :  { %6997 = vpow2.f32 %v4671_v21 }
0x497a   :  { %6999 = vpow2.f32 %v4673_v7 }
0x497c   :  { %v6984_v12 = vpop.eup %6983 }
0x497d   :  { %v6986_v37 = vpop.eup %6985  ;;  %v4675_v46 = vsel %vm2295_vm4, %v6984_v12, 0.0 }
0x497e   :  { %v6988_v29 = vpop.eup %6987  ;;  %v4676_v17 = vsel %vm2295_vm4, %v6986_v37, 0.0 }
0x497f   :  { %v6990_v24 = vpop.eup %6989  ;;  %v4677_v61 = vadd.f32 %v4676_v17, %v4675_v46  ;;  %v4678_v22 = vsel %vm2295_vm4, %v6988_v29, 0.0 }
0x4980   :  { %v6992_v53 = vpop.eup %6991  ;;  %v4680_v38 = vsel %vm2295_vm4, %v6990_v24, 0.0 }
0x4981   :  { %v4679_v18 = vadd.f32 %v4678_v22, %v4677_v61  ;;  %v6994_v54 = vpop.eup %6993  ;;  %v4682_v33 = vsel %vm2295_vm4, %v6992_v53, 0.0  ;;  %v7204_v61 = vmov 6  }
0x4982   :  { %v6996_v49 = vpop.eup %6995  ;;  %v4684_v59 = vsel %vm2295_vm4, %v6994_v54, 0.0 }
0x4983   :  { %v4681_v14 = vadd.f32 %v4680_v38, %v4679_v18  ;;  %v6998_v50 = vpop.eup %6997  ;;  %v4686_v3 = vsel %vm2295_vm4, %v6996_v49, 0.0 }
0x4984   :  { %v7000_v28 = vpop.eup %6999  ;;  %v4688_v4 = vsel %vm2295_vm4, %v6998_v50, 0.0 }
0x4985   :  { %v4683_v6 = vadd.f32 %v4682_v33, %v4681_v14  ;;  %v4690_v58 = vsel %vm2295_vm4, %v7000_v28, 0.0 }
0x4987   :  { %v4685_v41 = vadd.f32 %v4684_v59, %v4683_v6 }
0x4989   :  { %v4687_v25 = vadd.f32 %v4686_v3, %v4685_v41 }
0x498b   :  { %v4689_v30 = vadd.f32 %v4688_v4, %v4687_v25 }
0x498d   :  { %v4691_v35 = vadd.f32 %v4690_v58, %v4689_v30 }
0x498f   :  { %7001 = vrcp.f32 %v4691_v35 }
0x4999   :  { %v7002_v48 = vpop.eup %7001 }
0x499a   :  { %v4694_v1 = vmul.f32 %v7002_v48, %v6986_v37  ;;  %v4693_v8 = vmul.f32 %v7002_v48, %v6984_v12  ;;  %v4695_v42 = vmul.f32 %v7002_v48, %v6988_v29  ;;  %v4696_v39 = vmul.f32 %v7002_v48, %v6990_v24 }
0x499b   :  { %v4697_v56 = vmul.f32 %v7002_v48, %v6992_v53  ;;  %v4698_v21 = vmul.f32 %v7002_v48, %v6994_v54  ;;  %v4699_v7 = vmul.f32 %v7002_v48, %v6996_v49  ;;  %v4700_v46 = vmul.f32 %v7002_v48, %v6998_v50 }
0x499c   :  { %4709 = vperm.xlu1 %6574, %v4694_v1   ;;  %4704 = vperm.xlu0 %6572, %v4693_v8   ;;  %v4701_v17 = vmul.f32 %v7002_v48, %v7000_v28 }
0x49a0   :  { %4714 = vperm.xlu1 %6574, %v4695_v42   ;;  %4719 = vperm.xlu0 %6572, %v4696_v39  }
0x49a4   :  { %4724 = vperm.xlu1 %6574, %v4697_v56   ;;  %4729 = vperm.xlu0 %6572, %v4698_v21   ;;  %v8704_v21 = vld [vmem:[%s8980_s2 + $0x2] ss:$0 sm:$0xff] }
0x49a8   :  { %4734 = vperm.xlu1 %6574, %v4699_v7   ;;  %4739 = vperm.xlu0 %6572, %v4700_v46  }
0x49ac   :  { %4744 = vperm.xlu1 %6574, %v4701_v17   ;;  %6575 = vset.pattern.permute.xlu0 %v7204_v61 }
0x49ad   :  { %4847 = vperm.xlu0 %6575, %v7942_v55  }
0x49b1   :  { %6576 = vset.pattern.permute.xlu0 %v9025_v62 }
0x4a1b   :  { %v4710_v12 = vpop.permute.xlu1 %4709  ;;  %v4705_v37 = vpop.permute.xlu0 %4704 }
0x4a1c   :  { %v4748_v29 = vmul.f32 %v8425_v43, %v4710_v12  ;;  %v4747_v24 = vmul.f32 %v8428_v31, %v4705_v37  ;;  %v8711_v12 = vld [vmem:[%s8980_s2 + $0x1] ss:$0 sm:$0xff] }
0x4a1e   :  { %v4757_v22 = vsel %vm119_vm0, %v4748_v29, 0.0  ;;  %v4756_v53 = vsel %vm119_vm0, %v4747_v24, 0.0 }
0x4a1f   :  { %v4715_v18 = vpop.permute.xlu1 %4714  ;;  %v4720_v38 = vpop.permute.xlu0 %4719  ;;  %v4758_v33 = vadd.f32 %v4757_v22, %v4756_v53 }
0x4a20   :  { %v4749_v54 = vmul.f32 %v8431_v52, %v4715_v18  ;;  %v4750_v14 = vmul.f32 %v8436_v40, %v4720_v38 }
0x4a22   :  { %v4759_v49 = vsel %vm119_vm0, %v4749_v54, 0.0  ;;  %v4761_v43 = vsel %vm119_vm0, %v4750_v14, 0.0 }
0x4a23   :  { %v4760_v6 = vadd.f32 %v4759_v49, %v4758_v33  ;;  %v4725_v59 = vpop.permute.xlu1 %4724  ;;  %v4730_v50 = vpop.permute.xlu0 %4729 }
0x4a24   :  { %v4751_v31 = vmul.f32 %v8440_v36, %v4725_v59  ;;  %v4752_v41 = vmul.f32 %v8444_v34, %v4730_v50 }
0x4a25   :  { %v4762_v3 = vadd.f32 %v4761_v43, %v4760_v6 }
0x4a26   :  { %v4763_v28 = vsel %vm119_vm0, %v4751_v31, 0.0  ;;  %v4765_v40 = vsel %vm119_vm0, %v4752_v41, 0.0 }
0x4a27   :  { %v4764_v25 = vadd.f32 %v4763_v28, %v4762_v3  ;;  %v4735_v4 = vpop.permute.xlu1 %4734  ;;  %v4740_v52 = vpop.permute.xlu0 %4739 }
0x4a28   :  { %v4753_v30 = vmul.f32 %v8448_v16, %v4735_v4  ;;  %v4754_v58 = vmul.f32 %v8453_v44, %v4740_v52 }
0x4a29   :  { %v4766_v35 = vadd.f32 %v4765_v40, %v4764_v25  ;;  %v9050_v40 = vld [vmem:[#allocation10_spill] sm:$0xff] }
0x4a2a   :  { %v4767_v48 = vsel %vm119_vm0, %v4753_v30, 0.0  ;;  %v4769_v36 = vsel %vm119_vm0, %v4754_v58, 0.0 }
0x4a2b   :  { %v4768_v1 = vadd.f32 %v4767_v48, %v4766_v35  ;;  %v4745_v8 = vpop.permute.xlu1 %4744 }
0x4a2c   :  { %v4755_v34 = vmul.f32 %v8577_v57, %v4745_v8  ;;  %v4848_v16 = vpop.permute.xlu0 %4847 }
0x4a2d   :  { %v4770_v42 = vadd.f32 %v4769_v36, %v4768_v1  ;;  %v4850_v7 = vmul.f32 %v8704_v21, %v4848_v16 }
0x4a2e   :  { %v4771_v39 = vsel %vm119_vm0, %v4755_v34, 0.0 }
0x4a2f   :  { %v4772_v56 = vadd.f32 %v4771_v39, %v4770_v42 }
0x4a31   :  { %6229 = vmatmul.mubr.msk.f32.vlgmr.msra.gmra.mrb[44].mxu0 %vm119_vm0, %v4772_v56 }
0x4a32   :  { %6489 = vmatpush1.bf16.msra.mxu0 %v7623_v0  ;;  %4949 = vmatprep.mubr.f32.mxu0 %v9018_v60 }
0x4a33   :  { %6491 = vmatprep.subr.bf16.mxu0 %v7639_v9 }
0x4a36   :  { %6493 = vmatpush1.bf16.msra.mxu0 %v7641_v10 }
0x4a37   :  { %6495 = vmatprep.subr.bf16.mxu0 %v7651_v15 }
0x4a3a   :  { %6497 = vmatpush1.bf16.msra.mxu0 %v7659_v19 }
0x4a3b   :  { %6499 = vmatprep.subr.bf16.mxu0 %v7669_v23 }
0x4a3e   :  { %6501 = vmatpush1.bf16.msra.mxu0 %v7677_v27 }
0x4a3f   :  { %6524 = vmatprep.subr.bf16.mxu0 %v9016_v32 }
0x4b04   :  { %v4842_v44 = vpop.f32.mrb[44].mxu0 }
0x4b05   :  { %v4843_v46 = vadd.f32 %v4842_v44, %v8613_v47  ;;  %v6230_v17 = vpop.f32.mrb[45].mxu0 }
0x4b07   :  { %v4851_v61 = vadd.f32 %v4850_v7, %v4843_v46 }
0x4b09   :  { %v4852_v37 = vadd.f32 %v8711_v12, %v4851_v61 }
0x4b0b   :  { %7003 = vtanh.f32 %v4852_v37  ;;  %v5837_v24 = vmul.f32 -1.442695, %v4852_v37 }
0x4b0d   :  { %7005 = vpow2.f32 %v5837_v24 }
0x4b15   :  { %v7004_v29 = vpop.eup %7003 }
0x4b16   :  { %4862 = vrot.lane.b32.xlu1 %v7004_v29, %s7196_s12 }
0x4b17   :  { %v7006_v22 = vpop.eup %7005 }
0x4b18   :  { %v4856_v53 = vadd.f32 1.0, %v7006_v22 }
0x4b1a   :  { %7007 = vrcp.f32 %v4856_v53 }
0x4b24   :  { %v7008_v18 = vpop.eup %7007 }
0x4b25   :  { %v4860_v54 = vmul.f32 %v7008_v18, %v8599_v26 }
0x4b88   :  { %v4863_v47 = vpop.permute.xlu1 %4862 }
0x4b89   :  { %v4865_v38 = vmul.f32 %v7008_v18, %v4863_v47 }
0x4b8b   :  { %4867 = vrot.lane.b32.xlu1 %v4865_v38, %s7197_s13 }
0x4bfd   :  { %v4868_v14 = vpop.permute.xlu1 %4867 }
0x4bfe   :  { %v8717_v33 = vadd.f32 %v4868_v14, %v4860_v54 }
0x4c00   :  { %7009 = vtanh.f32 %v8717_v33 }
0x4c0a   :  { %v7010_v49 = vpop.eup %7009 }
0x4c0b   :  { %4873 = vrot.lane.b32.xlu0 %v7010_v49, %s7196_s12 }
0x4c7d   :  { %v4874_v6 = vpop.permute.xlu0 %4873 }
0x4c7e   :  { %v4876_v59 = vmul.f32 %v7008_v18, %v4874_v6 }
0x4c80   :  { %4878 = vrot.lane.b32.xlu1 %v4876_v59, %s7197_s13 }
0x4cf2   :  { %v4879_v50 = vpop.permute.xlu1 %4878 }
0x4cf3   :  { %v4881_v43 = vsel %vm119_vm0, %v4879_v50, %v8717_v33  ;;  %v8768_v50 = vld [vmem:[%s8980_s2 + $0x10] ss:$0 sm:$0xff] }
0x4cf4   :  { %5838 = vmatmul.mubr.msk.f32.vlgmr.msra.gmra.mrb[46].mxu0 %vm2139_vm5, %v4881_v43 }
0x4cf5   :  { %6526 = vmatpush3.bf16.msra.mxu0 %v7897_v5  ;;  %6250 = vmatprep.mubr.msk.f32.mxu0 %vm7194_vm2, %v9018_v60 }
0x4cf6   :  { %6527 = vmatprep.subr.bf16.mxu0 %v9016_v32 }
0x4cf9   :  { %6529 = vmatpush3.bf16.msra.mxu0 %v7910_v2  ;;  %v9049_v2 = vld [vmem:[#allocation9_spill] sm:$0xff] }
0x4cfa   :  { %6530 = vmatprep.subr.bf16.mxu0 %v9016_v32 }
0x4dc7   :  { %v8731_v26 = vpop.f32.mrb[46].mxu0 }
0x4dc8   :  { %v4953_v31 = vpop.f32.mrb[47].mxu0 }
0x4dc9   :  { %v4960_v41 = vadd.f32 %v8491_v20, %v4953_v31  ;;  %v4956_v3 = vadd.f32 %v8494_v13, %v4953_v31  ;;  %v4959_v28 = vadd.f32 %v8497_v51, %v4953_v31  ;;  %v4957_v5 = vadd.f32 %v8500_v45, %v4953_v31  ;;  %v9051_v13 = vld [vmem:[#allocation11_spill] sm:$0xff] }
0x4dca   :  { %v4962_v25 = vadd.f32 %v9043_v11, %v4953_v31  ;;  %v4958_v4 = vadd.f32 %v9044_v63, %v4953_v31  ;;  %v4964_v52 = vadd.f32 %v9049_v2, %v4953_v31  ;;  %v4961_v20 = vadd.f32 %v9050_v40, %v4953_v31  ;;  %v8745_v11 = vld [vmem:[%s8980_s2 + $0x6] ss:$0 sm:$0xff] }
0x4dcb   :  { %7011 = vtanh.f32 %v4960_v41  ;;  %v4963_v51 = vadd.f32 %v9051_v13, %v4953_v31 }
0x4dcc   :  { %7013 = vtanh.f32 %v4956_v3 }
0x4dcd   :  { %7015 = vtanh.f32 %v4959_v28 }
0x4dce   :  { %7017 = vtanh.f32 %v4957_v5 }
0x4dcf   :  { %7019 = vtanh.f32 %v4962_v25 }
0x4dd0   :  { %7021 = vtanh.f32 %v4958_v4 }
0x4dd1   :  { %7023 = vtanh.f32 %v4964_v52 }
0x4dd2   :  { %7025 = vtanh.f32 %v4961_v20 }
0x4dd3   :  { %7027 = vtanh.f32 %v4963_v51 }
0x4dd5   :  { %v7012_v30 = vpop.eup %7011 }
0x4dd6   :  { %v7014_v45 = vpop.eup %7013  ;;  %v4978_v63 = vmul.f32 %v8745_v11, %v7012_v30 }
0x4dd7   :  { %v7016_v58 = vpop.eup %7015  ;;  %v4974_v35 = vmul.f32 %v8745_v11, %v7014_v45 }
0x4dd8   :  { %v7018_v48 = vpop.eup %7017  ;;  %v4995_v1 = vsel %vm119_vm0, %v4978_v63, 0.0  ;;  %v4977_v8 = vmul.f32 %v8745_v11, %v7016_v58 }
0x4dd9   :  { %v7020_v36 = vpop.eup %7019  ;;  %4996 = vadd.xlane.f32.xlu1 %v4995_v1  ;;  %v4983_v34 = vsel %vm119_vm0, %v4974_v35, 0.0  ;;  %v4975_v42 = vmul.f32 %v8745_v11, %v7018_v48 }
0x4dda   :  { %v7022_v39 = vpop.eup %7021  ;;  %4984 = vadd.xlane.f32.xlu0 %v4983_v34  ;;  %v4992_v56 = vsel %vm119_vm0, %v4977_v8, 0.0  ;;  %v4980_v16 = vmul.f32 %v8745_v11, %v7020_v36 }
0x4ddb   :  { %v7024_v44 = vpop.eup %7023  ;;  %v4986_v7 = vsel %vm119_vm0, %v4975_v42, 0.0  ;;  %v4976_v46 = vmul.f32 %v8745_v11, %v7022_v39 }
0x4ddc   :  { %v7026_v17 = vpop.eup %7025  ;;  %v5001_v61 = vsel %vm119_vm0, %v4980_v16, 0.0  ;;  %v4982_v37 = vmul.f32 %v8745_v11, %v7024_v44 }
0x4ddd   :  { %4993 = vadd.xlane.f32.xlu1 %v4992_v56  ;;  %v4989_v29 = vsel %vm119_vm0, %v4976_v46, 0.0  ;;  %v4979_v24 = vmul.f32 %v8745_v11, %v7026_v17  ;;  %v7028_v22 = vpop.eup %7027 }
0x4dde   :  { %4987 = vadd.xlane.f32.xlu0 %v4986_v7  ;;  %v5007_v53 = vsel %vm119_vm0, %v4982_v37, 0.0  ;;  %v4981_v47 = vmul.f32 %v8745_v11, %v7028_v22 }
0x4ddf   :  { %v4998_v18 = vsel %vm119_vm0, %v4979_v24, 0.0 }
0x4de0   :  { %v5004_v38 = vsel %vm119_vm0, %v4981_v47, 0.0 }
0x4de1   :  { %5002 = vadd.xlane.f32.xlu1 %v5001_v61 }
0x4de2   :  { %4990 = vadd.xlane.f32.xlu0 %v4989_v29 }
0x4de5   :  { %5008 = vadd.xlane.f32.xlu1 %v5007_v53 }
0x4de6   :  { %4999 = vadd.xlane.f32.xlu0 %v4998_v18 }
0x4dea   :  { %5005 = vadd.xlane.f32.xlu0 %v5004_v38 }
0x4e66   :  { %v4997_v54 = vpop.xlane.xlu1 %4996 }
0x4e67   :  { %v4985_v14 = vpop.xlane.xlu0 %4984  ;;  %v5014_v43 = vadd.f32 %v8768_v50, %v4997_v54 }
0x4e68   :  { %v5010_v31 = vadd.f32 %v8768_v50, %v4985_v14 }
0x4e69   :  { %v5023_v28 = vsel %vm2295_vm4, %v5014_v43, -inf }
0x4e6a   :  { %v4994_v49 = vpop.xlane.xlu1 %4993  ;;  %v5019_v5 = vsel %vm2295_vm4, %v5010_v31, -inf }
0x4e6b   :  { %v4988_v6 = vpop.xlane.xlu0 %4987  ;;  %v5013_v51 = vadd.f32 %v8768_v50, %v4994_v49  ;;  %v5024_v63 = vmax.f32 %v5019_v5, %v5023_v28 }
0x4e6c   :  { %v5011_v52 = vadd.f32 %v8768_v50, %v4988_v6 }
0x4e6d   :  { %v5022_v42 = vsel %vm2295_vm4, %v5013_v51, -inf }
0x4e6e   :  { %v5003_v59 = vpop.xlane.xlu1 %5002  ;;  %v5020_v35 = vsel %vm2295_vm4, %v5011_v52, -inf }
0x4e6f   :  { %v4991_v41 = vpop.xlane.xlu0 %4990  ;;  %v5016_v40 = vadd.f32 %v8768_v50, %v5003_v59 }
0x4e70   :  { %v5012_v20 = vadd.f32 %v8768_v50, %v4991_v41 }
0x4e71   :  { %v5027_v48 = vsel %vm2295_vm4, %v5016_v40, -inf }
0x4e72   :  { %v5009_v3 = vpop.xlane.xlu1 %5008  ;;  %v5021_v1 = vsel %vm2295_vm4, %v5012_v20, -inf }
0x4e73   :  { %v5018_v25 = vadd.f32 %v8768_v50, %v5009_v3  ;;  %v5000_v4 = vpop.xlane.xlu0 %4999  ;;  %v5028_v56 = vmax.f32 %v5021_v1, %v5027_v48 }
0x4e74   :  { %v5015_v13 = vadd.f32 %v8768_v50, %v5000_v4 }
0x4e75   :  { %v5031_v30 = vsel %vm2295_vm4, %v5018_v25, -inf }
0x4e76   :  { %v5025_v45 = vsel %vm2295_vm4, %v5015_v13, -inf  ;;  %v5032_v36 = vmax.f32 %v5024_v63, %v5031_v30 }
0x4e77   :  { %v5006_v58 = vpop.xlane.xlu0 %5005  ;;  %v5026_v34 = vmax.f32 %v5020_v35, %v5025_v45 }
0x4e78   :  { %v5017_v8 = vadd.f32 %v8768_v50, %v5006_v58 }
0x4e79   :  { %v5033_v44 = vmax.f32 %v5032_v36, %v5026_v34 }
0x4e7a   :  { %v5029_v39 = vsel %vm2295_vm4, %v5017_v8, -inf }
0x4e7b   :  { %v5030_v16 = vmax.f32 %v5022_v42, %v5029_v39 }
0x4e7d   :  { %v5034_v7 = vmax.f32 %v5028_v56, %v5030_v16 }
0x4e7f   :  { %v5035_v46 = vmax.f32 %v5033_v44, %v5034_v7 }
0x4e81   :  { %v5036_v17 = vsub.f32 %v5010_v31, %v5035_v46  ;;  %v5037_v61 = vsub.f32 %v5011_v52, %v5035_v46  ;;  %v5038_v37 = vsub.f32 %v5012_v20, %v5035_v46  ;;  %v5039_v29 = vsub.f32 %v5013_v51, %v5035_v46 }
0x4e82   :  { %v5040_v24 = vsub.f32 %v5014_v43, %v5035_v46  ;;  %v5041_v47 = vsub.f32 %v5015_v13, %v5035_v46  ;;  %v5042_v54 = vsub.f32 %v5016_v40, %v5035_v46  ;;  %v5043_v49 = vsub.f32 %v5017_v8, %v5035_v46 }
0x4e83   :  { %v5045_v22 = vmul.f32 1.442695, %v5036_v17  ;;  %v5047_v53 = vmul.f32 1.442695, %v5037_v61  ;;  %v5049_v18 = vmul.f32 1.442695, %v5038_v37  ;;  %v5044_v59 = vsub.f32 %v5018_v25, %v5035_v46 }
0x4e84   :  { %v5051_v38 = vmul.f32 1.442695, %v5039_v29  ;;  %v5053_v14 = vmul.f32 1.442695, %v5040_v24  ;;  %v5055_v6 = vmul.f32 1.442695, %v5041_v47 }
0x4e85   :  { %7029 = vpow2.f32 %v5045_v22  ;;  %v5057_v31 = vmul.f32 1.442695, %v5042_v54  ;;  %v5059_v41 = vmul.f32 1.442695, %v5043_v49  ;;  %v5061_v43 = vmul.f32 1.442695, %v5044_v59 }
0x4e86   :  { %7031 = vpow2.f32 %v5047_v53  ;;  %v7205_v29 = vmov 7   ;;  %v8799_v59 = vld [vmem:[#allocation2 + $0x8] sm:$0xff] }
0x4e87   :  { %7033 = vpow2.f32 %v5049_v18 }
0x4e88   :  { %7035 = vpow2.f32 %v5051_v38 }
0x4e89   :  { %7037 = vpow2.f32 %v5053_v14 }
0x4e8a   :  { %7039 = vpow2.f32 %v5055_v6 }
0x4e8b   :  { %7041 = vpow2.f32 %v5057_v31 }
0x4e8c   :  { %7043 = vpow2.f32 %v5059_v41  ;;  %v8802_v41 = vld [vmem:[#allocation2] sm:$0xff] }
0x4e8d   :  { %7045 = vpow2.f32 %v5061_v43 }
0x4e8f   :  { %v7030_v3 = vpop.eup %7029 }
0x4e90   :  { %v7032_v28 = vpop.eup %7031  ;;  %v5063_v5 = vsel %vm2295_vm4, %v7030_v3, 0.0 }
0x4e91   :  { %v7034_v4 = vpop.eup %7033  ;;  %v5064_v52 = vsel %vm2295_vm4, %v7032_v28, 0.0 }
0x4e92   :  { %v7036_v40 = vpop.eup %7035  ;;  %v5065_v20 = vadd.f32 %v5064_v52, %v5063_v5  ;;  %v5066_v13 = vsel %vm2295_vm4, %v7034_v4, 0.0  ;;  %v8810_v52 = vld [vmem:[#allocation2 + $0x18] sm:$0xff] }
0x4e93   :  { %v7038_v25 = vpop.eup %7037  ;;  %v5068_v30 = vsel %vm2295_vm4, %v7036_v40, 0.0 }
0x4e94   :  { %v5067_v51 = vadd.f32 %v5066_v13, %v5065_v20  ;;  %v7040_v45 = vpop.eup %7039  ;;  %v5070_v58 = vsel %vm2295_vm4, %v7038_v25, 0.0 }
0x4e95   :  { %v7042_v35 = vpop.eup %7041  ;;  %v5072_v1 = vsel %vm2295_vm4, %v7040_v45, 0.0 }
0x4e96   :  { %v5069_v63 = vadd.f32 %v5068_v30, %v5067_v51  ;;  %v7044_v8 = vpop.eup %7043  ;;  %v5074_v34 = vsel %vm2295_vm4, %v7042_v35, 0.0 }
0x4e97   :  { %v7046_v42 = vpop.eup %7045  ;;  %v5076_v56 = vsel %vm2295_vm4, %v7044_v8, 0.0 }
0x4e98   :  { %v5071_v48 = vadd.f32 %v5070_v58, %v5069_v63  ;;  %v5078_v44 = vsel %vm2295_vm4, %v7046_v42, 0.0  ;;  %v8818_v63 = vld [vmem:[#allocation2 + $0x28] sm:$0xff] }
0x4e9a   :  { %v5073_v36 = vadd.f32 %v5072_v1, %v5071_v48 }
0x4e9c   :  { %v5075_v39 = vadd.f32 %v5074_v34, %v5073_v36 }
0x4e9e   :  { %v5077_v16 = vadd.f32 %v5076_v56, %v5075_v39 }
0x4ea0   :  { %v5079_v7 = vadd.f32 %v5078_v44, %v5077_v16  ;;  %v8827_v44 = vld [vmem:[#allocation2 + $0x38] sm:$0xff] }
0x4ea2   :  { %7047 = vrcp.f32 %v5079_v7 }
0x4eac   :  { %v7048_v46 = vpop.eup %7047 }
0x4ead   :  { %v5082_v17 = vmul.f32 %v7048_v46, %v7032_v28  ;;  %v5081_v61 = vmul.f32 %v7048_v46, %v7030_v3  ;;  %v5083_v37 = vmul.f32 %v7048_v46, %v7034_v4  ;;  %v5084_v24 = vmul.f32 %v7048_v46, %v7036_v40  ;;  %v8805_v3 = vld [vmem:[#allocation2 + $0x10] sm:$0xff] }
0x4eae   :  { %v5085_v22 = vmul.f32 %v7048_v46, %v7038_v25  ;;  %v5086_v53 = vmul.f32 %v7048_v46, %v7040_v45  ;;  %v5087_v18 = vmul.f32 %v7048_v46, %v7042_v35  ;;  %v5088_v47 = vmul.f32 %v7048_v46, %v7044_v8  ;;  %v8814_v25 = vld [vmem:[#allocation2 + $0x20] sm:$0xff]  ;;  %v8822_v8 = vld [vmem:[#allocation2 + $0x30] sm:$0xff] }
0x4eaf   :  { %5097 = vperm.xlu1 %6574, %v5082_v17   ;;  %5092 = vperm.xlu0 %6576, %v5081_v61   ;;  %v5089_v38 = vmul.f32 %v7048_v46, %v7046_v42 }
0x4eb3   :  { %5102 = vperm.xlu1 %6574, %v5083_v37   ;;  %6577 = vset.pattern.permute.xlu0 %v7205_v29 }
0x4eb4   :  { %5235 = vperm.xlu0 %6577, %v7942_v55  }
0x4eb7   :  { %5107 = vperm.xlu1 %6574, %v5084_v24  }
0x4eb8   :  { %6578 = vset.pattern.permute.xlu0 %v9025_v62 }
0x4ebb   :  { %5112 = vperm.xlu1 %6574, %v5085_v22  }
0x4ebf   :  { %5117 = vperm.xlu1 %6574, %v5086_v53  }
0x4ec3   :  { %5122 = vperm.xlu1 %6574, %v5087_v18  }
0x4ec7   :  { %5127 = vperm.xlu1 %6574, %v5088_v47  }
0x4ecb   :  { %5132 = vperm.xlu1 %6574, %v5089_v38  }
0x4f2e   :  { %v5098_v54 = vpop.permute.xlu1 %5097  ;;  %v5093_v49 = vpop.permute.xlu0 %5092 }
0x4f2f   :  { %v5136_v31 = vmul.f32 %v8799_v59, %v5098_v54  ;;  %v5135_v62 = vmul.f32 %v8802_v41, %v5093_v49 }
0x4f31   :  { %v5145_v5 = vsel %vm119_vm0, %v5136_v31, 0.0  ;;  %v5144_v4 = vsel %vm119_vm0, %v5135_v62, 0.0 }
0x4f32   :  { %v5103_v14 = vpop.permute.xlu1 %5102  ;;  %v5146_v30 = vadd.f32 %v5145_v5, %v5144_v4 }
0x4f33   :  { %v5137_v28 = vmul.f32 %v8805_v3, %v5103_v14 }
0x4f35   :  { %v5147_v13 = vsel %vm119_vm0, %v5137_v28, 0.0 }
0x4f36   :  { %v5108_v6 = vpop.permute.xlu1 %5107  ;;  %v5148_v35 = vadd.f32 %v5147_v13, %v5146_v30 }
0x4f37   :  { %v5138_v40 = vmul.f32 %v8810_v52, %v5108_v6 }
0x4f39   :  { %v5149_v45 = vsel %vm119_vm0, %v5138_v40, 0.0 }
0x4f3a   :  { %v5113_v43 = vpop.permute.xlu1 %5112  ;;  %v5150_v34 = vadd.f32 %v5149_v45, %v5148_v35  ;;  %v7161_v45 = vld [vmem:[#allocation3 + $0x18] sm:$0xff]  ;;  %v7162_v35 = vld [vmem:[#allocation3 + $0x8] sm:$0xff] }
0x4f3b   :  { %v5139_v51 = vmul.f32 %v8814_v25, %v5113_v43 }
0x4f3d   :  { %v5151_v1 = vsel %vm119_vm0, %v5139_v51, 0.0  ;;  %v7160_v51 = vld [vmem:[#allocation3] sm:$0xff] }
0x4f3e   :  { %v5118_v20 = vpop.permute.xlu1 %5117  ;;  %v5152_v39 = vadd.f32 %v5151_v1, %v5150_v34  ;;  %v7163_v1 = vld [vmem:[#allocation3 + $0x30] sm:$0xff] }
0x4f3f   :  { %v5140_v58 = vmul.f32 %v8818_v63, %v5118_v20  ;;  %v7159_v20 = vld [vmem:[#allocation3 + $0x20] sm:$0xff]  ;;  %v7164_v34 = vld [vmem:[#allocation3 + $0x10] sm:$0xff] }
0x4f41   :  { %v5153_v42 = vsel %vm119_vm0, %v5140_v58, 0.0 }
0x4f42   :  { %v5123_v48 = vpop.permute.xlu1 %5122  ;;  %v5154_v46 = vadd.f32 %v5153_v42, %v5152_v39 }
0x4f43   :  { %v5141_v36 = vmul.f32 %v8822_v8, %v5123_v48 }
0x4f45   :  { %v5155_v16 = vsel %vm119_vm0, %v5141_v36, 0.0 }
0x4f46   :  { %v5128_v56 = vpop.permute.xlu1 %5127  ;;  %v5156_v61 = vadd.f32 %v5155_v16, %v5154_v46 }
0x4f47   :  { %v5142_v7 = vmul.f32 %v8827_v44, %v5128_v56  ;;  %v7165_v56 = vld [vmem:[#allocation3 + $0x28] sm:$0xff] }
0x4f49   :  { %v5157_v17 = vsel %vm119_vm0, %v5142_v7, 0.0  ;;  %v7166_v7 = vld [vmem:[#allocation3 + $0x38] sm:$0xff] }
0x4f4a   :  { %v5133_v37 = vpop.permute.xlu1 %5132  ;;  %v5158_v24 = vadd.f32 %v5157_v17, %v5156_v61 }
0x4f4b   :  { %v5143_v29 = vmul.f32 %v8577_v57, %v5133_v37  ;;  %v5236_v57 = vpop.permute.xlu0 %5235 }
0x4f4c   :  { %v5238_v47 = vmul.f32 %v8704_v21, %v5236_v57 }
0x4f4d   :  { %v5159_v22 = vsel %vm119_vm0, %v5143_v29, 0.0 }
0x4f4e   :  { %v5160_v53 = vadd.f32 %v5159_v22, %v5158_v24 }
0x4f50   :  { %6240 = vmatmul.mubr.msk.f32.vlgmr.msra.gmra.mrb[36].mxu1 %vm119_vm0, %v5160_v53 }
0x4f51   :  { %6511 = vmatpush1.bf16.msra.mxu1 %v7623_v0  ;;  %5337 = vmatprep.mubr.f32.mxu1 %v9018_v60 }
0x4f52   :  { %6513 = vmatprep.subr.bf16.mxu1 %v7639_v9 }
0x4f55   :  { %6515 = vmatpush1.bf16.msra.mxu1 %v7641_v10 }
0x4f56   :  { %6517 = vmatprep.subr.bf16.mxu1 %v7651_v15 }
0x4f59   :  { %6519 = vmatpush1.bf16.msra.mxu1 %v7659_v19 }
0x4f5a   :  { %6521 = vmatprep.subr.bf16.mxu1 %v7669_v23 }
0x4f5d   :  { %6523 = vmatpush1.bf16.msra.mxu1 %v7677_v27 }
0x5023   :  { %v5230_v18 = vpop.f32.mrb[36].mxu1 }
0x5024   :  { %v5231_v0 = vadd.f32 %v5230_v18, %v8731_v26  ;;  %v6241_v38 = vpop.f32.mrb[37].mxu1 }
0x5026   :  { %v5239_v54 = vadd.f32 %v5238_v47, %v5231_v0 }
0x5028   :  { %v5240_v9 = vadd.f32 %v8711_v12, %v5239_v54 }
0x502a   :  { %7049 = vtanh.f32 %v5240_v9  ;;  %v5840_v15 = vmul.f32 -1.442695, %v5240_v9 }
0x502c   :  { %7051 = vpow2.f32 %v5840_v15 }
0x5034   :  { %v7050_v10 = vpop.eup %7049 }
0x5035   :  { %5250 = vrot.lane.b32.xlu1 %v7050_v10, %s7196_s12 }
0x5036   :  { %v7052_v19 = vpop.eup %7051 }
0x5037   :  { %v5244_v23 = vadd.f32 1.0, %v7052_v19 }
0x5039   :  { %7053 = vrcp.f32 %v5244_v23 }
0x5043   :  { %v7054_v27 = vpop.eup %7053 }
0x5044   :  { %v5248_v26 = vmul.f32 %v7054_v27, %v8717_v33 }
0x50a7   :  { %v5251_v14 = vpop.permute.xlu1 %5250 }
0x50a8   :  { %v5253_v49 = vmul.f32 %v7054_v27, %v5251_v14 }
0x50aa   :  { %5255 = vrot.lane.b32.xlu1 %v5253_v49, %s7197_s13 }
0x511c   :  { %v5256_v6 = vpop.permute.xlu1 %5255 }
0x511d   :  { %v8848_v31 = vadd.f32 %v5256_v6, %v5248_v26 }
0x511f   :  { %7055 = vtanh.f32 %v8848_v31 }
0x5129   :  { %v7056_v62 = vpop.eup %7055 }
0x512a   :  { %5261 = vrot.lane.b32.xlu0 %v7056_v62, %s7196_s12 }
0x519c   :  { %v5262_v43 = vpop.permute.xlu0 %5261 }
0x519d   :  { %v5264_v28 = vmul.f32 %v7054_v27, %v5262_v43 }
0x519f   :  { %5266 = vrot.lane.b32.xlu1 %v5264_v28, %s7197_s13 }
0x5211   :  { %v5267_v5 = vpop.permute.xlu1 %5266 }
0x5212   :  { %v5269_v4 = vsel %vm119_vm0, %v5267_v5, %v8848_v31 }
0x5213   :  { %5841 = vmatmul.mubr.msk.f32.vlgmr.msra.gmra.mrb[38].mxu1 %vm2139_vm5, %v5269_v4 }
0x52e6   :  { %v8856_v40 = vpop.f32.mrb[38].mxu1 }
0x52e7   :  { %v5341_v33 = vpop.f32.mrb[39].mxu1 }
0x52e8   :  { %v5348_v13 = vadd.f32 %v7159_v20, %v5341_v33  ;;  %v5344_v30 = vadd.f32 %v7160_v51, %v5341_v33  ;;  %v5347_v58 = vadd.f32 %v7161_v45, %v5341_v33  ;;  %v5345_v48 = vadd.f32 %v7162_v35, %v5341_v33 }
0x52e9   :  { %v5350_v36 = vadd.f32 %v7163_v1, %v5341_v33  ;;  %v5346_v42 = vadd.f32 %v7164_v34, %v5341_v33  ;;  %v5352_v39 = vadd.f32 %v9049_v2, %v5341_v33  ;;  %v5349_v16 = vadd.f32 %v7165_v56, %v5341_v33 }
0x52ea   :  { %7057 = vtanh.f32 %v5348_v13  ;;  %v5351_v46 = vadd.f32 %v7166_v7, %v5341_v33 }
0x52eb   :  { %7059 = vtanh.f32 %v5344_v30 }
0x52ec   :  { %7061 = vtanh.f32 %v5347_v58 }
0x52ed   :  { %7063 = vtanh.f32 %v5345_v48 }
0x52ee   :  { %7065 = vtanh.f32 %v5350_v36 }
0x52ef   :  { %7067 = vtanh.f32 %v5346_v42 }
0x52f0   :  { %7069 = vtanh.f32 %v5352_v39 }
0x52f1   :  { %7071 = vtanh.f32 %v5349_v16 }
0x52f2   :  { %7073 = vtanh.f32 %v5351_v46 }
0x52f4   :  { %v7058_v17 = vpop.eup %7057 }
0x52f5   :  { %v7060_v61 = vpop.eup %7059  ;;  %v5366_v37 = vmul.f32 %v8745_v11, %v7058_v17 }
0x52f6   :  { %v7062_v29 = vpop.eup %7061  ;;  %v5362_v24 = vmul.f32 %v8745_v11, %v7060_v61 }
0x52f7   :  { %v7064_v22 = vpop.eup %7063  ;;  %v5383_v53 = vsel %vm119_vm0, %v5366_v37, 0.0  ;;  %v5365_v57 = vmul.f32 %v8745_v11, %v7062_v29 }
0x52f8   :  { %v7066_v2 = vpop.eup %7065  ;;  %5384 = vadd.xlane.f32.xlu1 %v5383_v53  ;;  %v5371_v18 = vsel %vm119_vm0, %v5362_v24, 0.0  ;;  %v5363_v47 = vmul.f32 %v8745_v11, %v7064_v22 }
0x52f9   :  { %v7068_v0 = vpop.eup %7067  ;;  %5372 = vadd.xlane.f32.xlu0 %v5371_v18  ;;  %v5380_v38 = vsel %vm119_vm0, %v5365_v57, 0.0  ;;  %v5368_v54 = vmul.f32 %v8745_v11, %v7066_v2 }
0x52fa   :  { %v7070_v9 = vpop.eup %7069  ;;  %v5374_v10 = vsel %vm119_vm0, %v5363_v47, 0.0  ;;  %v5364_v15 = vmul.f32 %v8745_v11, %v7068_v0 }
0x52fb   :  { %v7072_v19 = vpop.eup %7071  ;;  %v5389_v23 = vsel %vm119_vm0, %v5368_v54, 0.0  ;;  %v5370_v27 = vmul.f32 %v8745_v11, %v7070_v9 }
0x52fc   :  { %5381 = vadd.xlane.f32.xlu1 %v5380_v38  ;;  %v5377_v14 = vsel %vm119_vm0, %v5364_v15, 0.0  ;;  %v5367_v49 = vmul.f32 %v8745_v11, %v7072_v19  ;;  %v7074_v26 = vpop.eup %7073 }
0x52fd   :  { %5375 = vadd.xlane.f32.xlu0 %v5374_v10  ;;  %v5395_v6 = vsel %vm119_vm0, %v5370_v27, 0.0  ;;  %v5369_v43 = vmul.f32 %v8745_v11, %v7074_v26 }
0x52fe   :  { %v5386_v62 = vsel %vm119_vm0, %v5367_v49, 0.0 }
0x52ff   :  { %v5392_v28 = vsel %vm119_vm0, %v5369_v43, 0.0 }
0x5300   :  { %5390 = vadd.xlane.f32.xlu1 %v5389_v23 }
0x5301   :  { %5378 = vadd.xlane.f32.xlu0 %v5377_v14 }
0x5304   :  { %5396 = vadd.xlane.f32.xlu1 %v5395_v6 }
0x5305   :  { %5387 = vadd.xlane.f32.xlu0 %v5386_v62 }
0x5309   :  { %5393 = vadd.xlane.f32.xlu0 %v5392_v28 }
0x5385   :  { %v5385_v5 = vpop.xlane.xlu1 %5384 }
0x5386   :  { %v5373_v4 = vpop.xlane.xlu0 %5372  ;;  %v5402_v51 = vadd.f32 %v8768_v50, %v5385_v5 }
0x5387   :  { %v5398_v30 = vadd.f32 %v8768_v50, %v5373_v4 }
0x5388   :  { %v5411_v35 = vsel %vm2295_vm4, %v5402_v51, -inf }
0x5389   :  { %v5382_v33 = vpop.xlane.xlu1 %5381  ;;  %v5407_v48 = vsel %vm2295_vm4, %v5398_v30, -inf }
0x538a   :  { %v5376_v20 = vpop.xlane.xlu0 %5375  ;;  %v5401_v56 = vadd.f32 %v8768_v50, %v5382_v33  ;;  %v5412_v46 = vmax.f32 %v5407_v48, %v5411_v35 }
0x538b   :  { %v5399_v36 = vadd.f32 %v8768_v50, %v5376_v20 }
0x538c   :  { %v5410_v57 = vsel %vm2295_vm4, %v5401_v56, -inf }
0x538d   :  { %v5391_v13 = vpop.xlane.xlu1 %5390  ;;  %v5408_v61 = vsel %vm2295_vm4, %v5399_v36, -inf }
0x538e   :  { %v5379_v45 = vpop.xlane.xlu0 %5378  ;;  %v5404_v34 = vadd.f32 %v8768_v50, %v5391_v13 }
0x538f   :  { %v5400_v42 = vadd.f32 %v8768_v50, %v5379_v45 }
0x5390   :  { %v5415_v37 = vsel %vm2295_vm4, %v5404_v34, -inf }
0x5391   :  { %v5397_v58 = vpop.xlane.xlu1 %5396  ;;  %v5409_v29 = vsel %vm2295_vm4, %v5400_v42, -inf }
0x5392   :  { %v5406_v11 = vadd.f32 %v8768_v50, %v5397_v58  ;;  %v5388_v1 = vpop.xlane.xlu0 %5387  ;;  %v5416_v18 = vmax.f32 %v5409_v29, %v5415_v37 }
0x5393   :  { %v5403_v39 = vadd.f32 %v8768_v50, %v5388_v1 }
0x5394   :  { %v5419_v16 = vsel %vm2295_vm4, %v5406_v11, -inf }
0x5395   :  { %v5413_v7 = vsel %vm2295_vm4, %v5403_v39, -inf  ;;  %v5420_v22 = vmax.f32 %v5412_v46, %v5419_v16 }
0x5396   :  { %v5394_v17 = vpop.xlane.xlu0 %5393  ;;  %v5414_v53 = vmax.f32 %v5408_v61, %v5413_v7 }
0x5397   :  { %v5405_v24 = vadd.f32 %v8768_v50, %v5394_v17 }
0x5398   :  { %v5421_v0 = vmax.f32 %v5420_v22, %v5414_v53 }
0x5399   :  { %v5417_v2 = vsel %vm2295_vm4, %v5405_v24, -inf }
0x539a   :  { %v5418_v47 = vmax.f32 %v5410_v57, %v5417_v2 }
0x539c   :  { %v5422_v38 = vmax.f32 %v5416_v18, %v5418_v47 }
0x539e   :  { %v5423_v54 = vmax.f32 %v5421_v0, %v5422_v38 }
0x53a0   :  { %v5424_v9 = vsub.f32 %v5398_v30, %v5423_v54  ;;  %v5425_v10 = vsub.f32 %v5399_v36, %v5423_v54  ;;  %v5426_v15 = vsub.f32 %v5400_v42, %v5423_v54  ;;  %v5427_v19 = vsub.f32 %v5401_v56, %v5423_v54 }
0x53a1   :  { %v5428_v23 = vsub.f32 %v5402_v51, %v5423_v54  ;;  %v5429_v50 = vsub.f32 %v5403_v39, %v5423_v54  ;;  %v5430_v6 = vsub.f32 %v5404_v34, %v5423_v54  ;;  %v5431_v43 = vsub.f32 %v5405_v24, %v5423_v54 }
0x53a2   :  { %v5433_v27 = vmul.f32 1.442695, %v5424_v9  ;;  %v5435_v14 = vmul.f32 1.442695, %v5425_v10  ;;  %v5437_v49 = vmul.f32 1.442695, %v5426_v15  ;;  %v5432_v5 = vsub.f32 %v5406_v11, %v5423_v54 }
0x53a3   :  { %v5439_v26 = vmul.f32 1.442695, %v5427_v19  ;;  %v5441_v62 = vmul.f32 1.442695, %v5428_v23  ;;  %v5443_v28 = vmul.f32 1.442695, %v5429_v50 }
0x53a4   :  { %7075 = vpow2.f32 %v5433_v27  ;;  %v5445_v4 = vmul.f32 1.442695, %v5430_v6  ;;  %v5447_v33 = vmul.f32 1.442695, %v5431_v43  ;;  %v5449_v20 = vmul.f32 1.442695, %v5432_v5 }
0x53a5   :  { %7077 = vpow2.f32 %v5435_v14  ;;  %v7206_v10 = vmov 8  }
0x53a6   :  { %7079 = vpow2.f32 %v5437_v49 }
0x53a7   :  { %7081 = vpow2.f32 %v5439_v26 }
0x53a8   :  { %7083 = vpow2.f32 %v5441_v62 }
0x53a9   :  { %7085 = vpow2.f32 %v5443_v28 }
0x53aa   :  { %7087 = vpow2.f32 %v5445_v4 }
0x53ab   :  { %7089 = vpow2.f32 %v5447_v33 }
0x53ac   :  { %7091 = vpow2.f32 %v5449_v20 }
0x53ae   :  { %v7076_v13 = vpop.eup %7075 }
0x53af   :  { %v7078_v51 = vpop.eup %7077  ;;  %v5451_v30 = vsel %vm2295_vm4, %v7076_v13, 0.0 }
0x53b0   :  { %v7080_v45 = vpop.eup %7079  ;;  %v5452_v58 = vsel %vm2295_vm4, %v7078_v51, 0.0 }
0x53b1   :  { %v7082_v35 = vpop.eup %7081  ;;  %v5453_v48 = vadd.f32 %v5452_v58, %v5451_v30  ;;  %v5454_v1 = vsel %vm2295_vm4, %v7080_v45, 0.0 }
0x53b2   :  { %v7084_v11 = vpop.eup %7083  ;;  %v5456_v34 = vsel %vm2295_vm4, %v7082_v35, 0.0 }
0x53b3   :  { %v5455_v36 = vadd.f32 %v5454_v1, %v5453_v48  ;;  %v7086_v42 = vpop.eup %7085  ;;  %v5458_v56 = vsel %vm2295_vm4, %v7084_v11, 0.0 }
0x53b4   :  { %v7088_v16 = vpop.eup %7087  ;;  %v5460_v46 = vsel %vm2295_vm4, %v7086_v42, 0.0 }
0x53b5   :  { %v5457_v39 = vadd.f32 %v5456_v34, %v5455_v36  ;;  %v7090_v17 = vpop.eup %7089  ;;  %v5462_v37 = vsel %vm2295_vm4, %v7088_v16, 0.0  ;;  %v7167_v34 = vld [vmem:[#allocation2 + $0x40] sm:$0xff] }
0x53b6   :  { %v7092_v29 = vpop.eup %7091  ;;  %v5464_v22 = vsel %vm2295_vm4, %v7090_v17, 0.0 }
0x53b7   :  { %v5459_v7 = vadd.f32 %v5458_v56, %v5457_v39  ;;  %v5466_v57 = vsel %vm2295_vm4, %v7092_v29, 0.0 }
0x53b9   :  { %v5461_v61 = vadd.f32 %v5460_v46, %v5459_v7 }
0x53bb   :  { %v5463_v24 = vadd.f32 %v5462_v37, %v5461_v61 }
0x53bd   :  { %v5465_v53 = vadd.f32 %v5464_v22, %v5463_v24 }
0x53bf   :  { %v5467_v2 = vadd.f32 %v5466_v57, %v5465_v53 }
0x53c1   :  { %7093 = vrcp.f32 %v5467_v2 }
0x53cb   :  { %v7094_v18 = vpop.eup %7093 }
0x53cc   :  { %v5470_v47 = vmul.f32 %v7094_v18, %v7078_v51  ;;  %v5469_v0 = vmul.f32 %v7094_v18, %v7076_v13  ;;  %v5471_v38 = vmul.f32 %v7094_v18, %v7080_v45  ;;  %v5477_v54 = vmul.f32 %v7094_v18, %v7092_v29 }
0x53cd   :  { %v5472_v9 = vmul.f32 %v7094_v18, %v7082_v35  ;;  %v5473_v15 = vmul.f32 %v7094_v18, %v7084_v11  ;;  %v5474_v19 = vmul.f32 %v7094_v18, %v7086_v42  ;;  %v5475_v23 = vmul.f32 %v7094_v18, %v7088_v16 }
0x53ce   :  { %5485 = vperm.xlu1 %6574, %v5470_v47   ;;  %5480 = vperm.xlu0 %6578, %v5469_v0   ;;  %v5476_v27 = vmul.f32 %v7094_v18, %v7090_v17 }
0x53d2   :  { %5490 = vperm.xlu1 %6574, %v5471_v38   ;;  %5520 = vperm.xlu0 %6578, %v5477_v54   ;;  %v5662_v38 = vld [vmem:[%s8980_s2 + $0xe0] sm:$0xff]  ;;  %v5663_v54 = vld [vmem:[%s8980_s2 + $0xf0] sm:$0xff] }
0x53d6   :  { %5495 = vperm.xlu1 %6574, %v5472_v9   ;;  %6580 = vset.pattern.permute.xlu0 %v7206_v10 }
0x53da   :  { %5500 = vperm.xlu1 %6574, %v5473_v15   ;;  %v5665_v15 = vld [vmem:[%s8980_s2 + $0x110] sm:$0xff] }
0x53de   :  { %5505 = vperm.xlu1 %6574, %v5474_v19   ;;  %v5666_v19 = vld [vmem:[%s8980_s2 + $0x120] sm:$0xff] }
0x53e2   :  { %5510 = vperm.xlu1 %6574, %v5475_v23   ;;  %v6537_v23 = vpack.c.bf16 %v5666_v19, %v5665_v15 }
0x53e6   :  { %5515 = vperm.xlu1 %6574, %v5476_v27   ;;  %v5667_v27 = vld [vmem:[%s8980_s2 + $0x130] sm:$0xff] }
0x53ea   :  { %6579 = vset.pattern.permute.xlu1 %v7206_v10 }
0x53eb   :  { %5623 = vperm.xlu1 %6579, %v7942_v55  }
0x544d   :  { %v5486_v14 = vpop.permute.xlu1 %5485  ;;  %v5481_v50 = vpop.permute.xlu0 %5480 }
0x544e   :  { %v5524_v6 = vmul.f32 %v8799_v59, %v5486_v14  ;;  %v5523_v62 = vmul.f32 %v8802_v41, %v5481_v50  ;;  %v5668_v14 = vld [vmem:[%s8980_s2 + $0x140] sm:$0xff] }
0x544f   :  { %v6540_v50 = vpack.c.bf16 %v5668_v14, %v5667_v27 }
0x5450   :  { %v5533_v5 = vsel %vm119_vm0, %v5524_v6, 0.0  ;;  %v5532_v4 = vsel %vm119_vm0, %v5523_v62, 0.0 }
0x5451   :  { %v5491_v49 = vpop.permute.xlu1 %5490  ;;  %v5534_v13 = vadd.f32 %v5533_v5, %v5532_v4  ;;  %v5669_v5 = vld [vmem:[%s8980_s2 + $0x7] ss:$0 sm:$0xff] }
0x5452   :  { %v5525_v43 = vmul.f32 %v8805_v3, %v5491_v49 }
0x5454   :  { %v5535_v20 = vsel %vm119_vm0, %v5525_v43, 0.0 }
0x5455   :  { %v5496_v26 = vpop.permute.xlu1 %5495  ;;  %v5536_v41 = vadd.f32 %v5535_v20, %v5534_v13 }
0x5456   :  { %v5526_v33 = vmul.f32 %v8810_v52, %v5496_v26  ;;  %v5521_v52 = vpop.permute.xlu0 %5520 }
0x5457   :  { %v5531_v42 = vmul.f32 %v7167_v34, %v5521_v52 }
0x5458   :  { %v5537_v30 = vsel %vm119_vm0, %v5526_v33, 0.0 }
0x5459   :  { %v5501_v28 = vpop.permute.xlu1 %5500  ;;  %v5538_v45 = vadd.f32 %v5537_v30, %v5536_v41  ;;  %v5547_v7 = vsel %vm119_vm0, %v5531_v42, 0.0 }
0x545a   :  { %v5527_v55 = vmul.f32 %v8814_v25, %v5501_v28 }
0x545c   :  { %v5539_v3 = vsel %vm119_vm0, %v5527_v55, 0.0 }
0x545d   :  { %v5506_v51 = vpop.permute.xlu1 %5505  ;;  %v5540_v1 = vadd.f32 %v5539_v3, %v5538_v45 }
0x545e   :  { %v5528_v59 = vmul.f32 %v8818_v63, %v5506_v51 }
0x5460   :  { %v5541_v35 = vsel %vm119_vm0, %v5528_v59, 0.0 }
0x5461   :  { %v5511_v58 = vpop.permute.xlu1 %5510  ;;  %v5542_v25 = vadd.f32 %v5541_v35, %v5540_v1 }
0x5462   :  { %v5529_v48 = vmul.f32 %v8822_v8, %v5511_v58 }
0x5464   :  { %v5543_v11 = vsel %vm119_vm0, %v5529_v48, 0.0 }
0x5465   :  { %v5516_v36 = vpop.permute.xlu1 %5515  ;;  %v5544_v63 = vadd.f32 %v5543_v11, %v5542_v25 }
0x5466   :  { %v5530_v39 = vmul.f32 %v8827_v44, %v5516_v36 }
0x5468   :  { %v5545_v56 = vsel %vm119_vm0, %v5530_v39, 0.0 }
0x5469   :  { %v5546_v16 = vadd.f32 %v5545_v56, %v5544_v63 }
0x546a   :  { %v5624_v8 = vpop.permute.xlu1 %5623 }
0x546b   :  { %v5548_v46 = vadd.f32 %v5547_v7, %v5546_v16  ;;  %v5626_v61 = vmul.f32 %v8704_v21, %v5624_v8 }
0x546d   :  { %6251 = vmatmul.mubr.msk.f32.vlgmr.msra.gmra.mrb[48].mxu0 %vm119_vm0, %v5548_v46 }
0x546e   :  { %6269 = vmatprep.mubr.msk.f32.mxu0 %vm7194_vm2, %v9018_v60 }
0x5540   :  { %v5618_v17 = vpop.f32.mrb[48].mxu0 }
0x5541   :  { %v5619_v37 = vadd.f32 %v5618_v17, %v8856_v40  ;;  %v6252_v29 = vpop.f32.mrb[49].mxu0 }
0x5543   :  { %v5627_v44 = vadd.f32 %v5626_v61, %v5619_v37 }
0x5545   :  { %v5628_v24 = vadd.f32 %v8711_v12, %v5627_v44  ;;  %v5661_v12 = vld [vmem:[%s8980_s2 + $0xd0] sm:$0xff] }
0x5546   :  { %v6531_v9 = vpack.c.bf16 %v5662_v38, %v5661_v12 }
0x5547   :  { %7095 = vtanh.f32 %v5628_v24  ;;  %v5843_v53 = vmul.f32 -1.442695, %v5628_v24 }
0x5548   :  { %6532 = vmatpush3.bf16.msra.mxu0 %v6531_v9 }
0x5549   :  { %7097 = vpow2.f32 %v5843_v53  ;;  %6533 = vmatprep.subr.bf16.mxu0 %v9016_v32 }
0x5551   :  { %v7096_v22 = vpop.eup %7095 }
0x5552   :  { %5638 = vrot.lane.b32.xlu0 %v7096_v22, %s7196_s12 }
0x5553   :  { %v7098_v57 = vpop.eup %7097 }
0x5554   :  { %v5632_v2 = vadd.f32 1.0, %v7098_v57 }
0x5556   :  { %7099 = vrcp.f32 %v5632_v2 }
0x5560   :  { %v7100_v60 = vpop.eup %7099 }
0x5561   :  { %v5636_v21 = vmul.f32 %v7100_v60, %v8848_v31  ;;  %v5664_v31 = vld [vmem:[%s8980_s2 + $0x100] sm:$0xff] }
0x5562   :  { %v6534_v10 = vpack.c.bf16 %v5664_v31, %v5663_v54 }
0x5564   :  { %6535 = vmatpush3.bf16.msra.mxu0 %v6534_v10 }
0x5565   :  { %6536 = vmatprep.subr.bf16.mxu0 %v9016_v32 }
0x5568   :  { %6538 = vmatpush3.bf16.msra.mxu0 %v6537_v23 }
0x5569   :  { %6539 = vmatprep.subr.bf16.mxu0 %v9016_v32 }
0x556c   :  { %6541 = vmatpush3.bf16.msra.mxu0 %v6540_v50 }
0x55c4   :  { %v5639_v18 = vpop.permute.xlu0 %5638 }
0x55c5   :  { %v5641_v47 = vmul.f32 %v7100_v60, %v5639_v18 }
0x55c7   :  { %5643 = vrot.lane.b32.xlu1 %v5641_v47, %s7197_s13 }
0x5639   :  { %v5644_v40 = vpop.permute.xlu1 %5643 }
0x563a   :  { %v5646_v0 = vadd.f32 %v5644_v40, %v5636_v21 }
0x563c   :  { %7101 = vtanh.f32 %v5646_v0 }
0x5646   :  { %v7102_v49 = vpop.eup %7101 }
0x5647   :  { %5649 = vrot.lane.b32.xlu0 %v7102_v49, %s7196_s12  ;;  %s7207_s12 = smov [#allocation4]  }
0x5648   :  { %s5750_s10 = sshll.u32 %s7207_s12, 4  ;;  %s5751_s10 = int_to_ptr.vmem [resolvable:$true] %s5750_s10 }
0x5649   :  { %s7168_s11 = scalar_lea.vmem %s5751_s10, 128  ;;  %p7173_p1 = scmp.lt.s32.totalorder %s5751_s10, %s5751_s10 }
0x564a   :  { %p7169_p0 = scmp.ne.s32.totalorder %s5751_s10, %s7168_s11  ;;  %p7174_p2 = scmp.lt.s32.totalorder %s7168_s11, %s7168_s11 }
0x564b   :  { %5657 = vrot.lane.b32.xlu0 %v5548_v46, %s7197_s13 }
0x564c   :  { %p7175_p3 = por %p7174_p2, %p7173_p1 }
0x564e   :  { %p7176_p4 = pnand %p7175_p3, %p7169_p0 }
0x56b9   :  { %v5650_v26 = vpop.permute.xlu0 %5649 }
0x56ba   :  { %v5652_v6 = vmul.f32 %v7100_v60, %v5650_v26 }
0x56bc   :  { %5654 = vrot.lane.b32.xlu1 %v5652_v6, %s7197_s13 }
0x56bd   :  { %v5658_v62 = vpop.permute.xlu0 %5657 }
0x572e   :  { %v5655_v43 = vpop.permute.xlu1 %5654 }
0x572f   :  { %v5660_v28 = vsel %vm119_vm0, %v5655_v43, %v5658_v62 }
0x5730   :  { %6270 = vmatmul.mubr.msk.f32.vlgmr.msra.gmra.mrb[50].mxu0 %vm2139_vm5, %v5660_v28 }
0x5803   :  { %v5739_v32 = vpop.f32.mrb[50].mxu0 }
0x5804   :  { %v5740_v4 = vadd.f32 %v5739_v32, %v5669_v5  ;;  %v6271_v33 = vpop.f32.mrb[51].mxu0 }
0x5806   :  { %5743 = vst [vmem:[#allocation4] sm:$0xff] %v5740_v4 }
0x5807   :  { %7179 = shalt.err (!%p7176_p4)
}
0x5808   :  { %s7180_s15 = scalar_lea.hbm %s8981_s3, 128 }
0x5809   :  { %p7181_p5 = scmp.ne.s32.totalorder %s8981_s3, %s7180_s15  ;;  %p7184_p6 = scmp.lt.u32.totalorder %s7180_s15, %s8981_s3 }
0x580b   :  { %p7186_p7 = pnand %p7184_p6, %p7181_p5 }
0x580d   :  { %7189 = shalt.err (!%p7186_p7)
}
0x580e   :  { %5753 = dma.vmem_to_hbm [thread:$0]  %s5751_s10, 128, %s8981_s3, [#allocation5]  }
0x580f   :  { %7190 = dma.done.wait [#allocation5], 128  }
0x5810   :  { %7191 = vsyncadd [#allocation5], 4294967168 }
0x5811   :  { %5757 = vsyncpa [#allocation5], 1 }

</bundles_post_ra>
